<compile_context>
chip_gen: v7x
topology: tpu7x:2x2x1
jax: 0.10.0
libtpu: 0.0.40
codegen_flags: <defaults>
</compile_context>

<pallas_src>
import functools

import jax
import jax.numpy as jnp
from jax.experimental import pallas as pl
from jax.experimental.pallas import tpu as pltpu


# ----------------------------------------------------------------------------
# small helpers
# ----------------------------------------------------------------------------

_BLOCK_KEYS = ("bn1_s", "bn1_t", "w1", "b1", "bn2_s", "bn2_t", "w2", "b2",
               "wsk", "bsk")


def _block_arrays(bp):
    return [bp[k] for k in _BLOCK_KEYS]


def _load_block(refs):
    return {k: r[...] for k, r in zip(_BLOCK_KEYS, refs)}


def _const_spec(a, grid_rank):
    """Full-array block with a constant index map (resident across the grid)."""
    zeros = (0,) * a.ndim
    if grid_rank == 1:
        return pl.BlockSpec(a.shape, lambda i: zeros)
    return pl.BlockSpec(a.shape, lambda i, j: zeros)


def _pick_row_tile(bh, w, target_rows=2048):
    """Rows-of-width-w per grid step for kernel A.

    Guards the (8,128) rule on both the input (tp*w) and pooled output
    (tp*w/4) sublane counts, targets ~target_rows stacked samples per tile,
    and prefers >=2 grid steps (megacore / pipelining) when everything would
    otherwise fit in a single tile."""
    w4 = w // 4

    def ok(tp):
        return tp == bh or ((tp * w) % 8 == 0 and (tp * w4) % 8 == 0)

    divisors = [d for d in range(1, bh + 1) if bh % d == 0]
    valid = [d for d in divisors if ok(d)]
    fitting = [d for d in valid if d * w <= target_rows]
    tp = max(fitting) if fitting else min(valid)
    if tp == bh and bh > 1:
        smaller = [d for d in valid if d < bh and (d * w4) % 8 == 0]
        if smaller:
            tp = max(smaller)
    return tp


# ----------------------------------------------------------------------------
# in-kernel math (pure jnp / pltpu on VMEM-resident values)
# ----------------------------------------------------------------------------

def _row_masks(n, w):
    """Boundary masks for the zero padding of a (1,3) conv on stacked rows of
    width w: mask_l kills x[i-1] at i%w==0, mask_r kills x[i+1] at i%w==w-1."""
    row = jax.lax.broadcasted_iota(jnp.int32, (n, 1), 0) % w
    return row != 0, row != (w - 1)


def _conv1x3(x, w3, b, mask_l, mask_r):
    """(1,3) conv along W.  x: (N, Ci) f32; w3: (3*Ci, Co) bf16 stacked
    [W_left; W_center; W_right].  Shifts via pltpu.roll (XLU) + boundary mask
    (VPU); one MXU matmul on the lane-concatenated (N, 3*Ci) input."""
    n = x.shape[0]
    xl = jnp.where(mask_l, pltpu.roll(x, 1, axis=0), 0.0)       # x[i-1]
    xr = jnp.where(mask_r, pltpu.roll(x, n - 1, axis=0), 0.0)   # x[i+1]
    xcat = jnp.concatenate([xl, x, xr], axis=1).astype(jnp.bfloat16)
    return jnp.dot(xcat, w3, preferred_element_type=jnp.float32) + b


def _block(x, p, mask_l, mask_r):
    """Residual block: bn3(conv2(relu(bn2(conv1(bn1(x)))))) + sk(x), with the
    BN layers folded into (scale, shift) / into conv2's weights."""
    t1 = x * p["bn1_s"] + p["bn1_t"]
    o1 = _conv1x3(t1, p["w1"], p["b1"], mask_l, mask_r)
    t2 = jnp.maximum(o1 * p["bn2_s"] + p["bn2_t"], 0.0)
    o2 = _conv1x3(t2, p["w2"], p["b2"], mask_l, mask_r)          # bn3 folded
    sk = jnp.dot(x.astype(jnp.bfloat16), p["wsk"],
                 preferred_element_type=jnp.float32) + p["bsk"]
    return o2 + sk


def _maxpool4(y, scr_ref):
    """max_pool2d(kernel=(1,4)) on stacked rows: stage in a VMEM scratch ref,
    then four sublane-strided reads (pl.ds stride=4) + elementwise max."""
    scr_ref[...] = y
    n_out = y.shape[0] // 4
    p0 = scr_ref[pl.ds(0, n_out, stride=4), :]
    p1 = scr_ref[pl.ds(1, n_out, stride=4), :]
    p2 = scr_ref[pl.ds(2, n_out, stride=4), :]
    p3 = scr_ref[pl.ds(3, n_out, stride=4), :]
    return jnp.maximum(jnp.maximum(p0, p1), jnp.maximum(p2, p3))


# ----------------------------------------------------------------------------
# kernel A: z-norm + bn + conv1 + block1 + maxpool4     (grid over row tiles)
# ----------------------------------------------------------------------------

def _stem_block1_kernel(x_ref, pre_s, pre_t, c1w, c1b,
                        bn1_s, bn1_t, w1, b1, bn2_s, bn2_t, w2, b2, wsk, bsk,
                        out_ref, pool_scr, *, W):
    n = x_ref.shape[0]
    mask_l, mask_r = _row_masks(n, W)
    t = x_ref[...] * pre_s[...] + pre_t[...]                  # z-norm + bn folded
    c1 = _conv1x3(t, c1w[...], c1b[...], mask_l, mask_r)      # Net.conv1
    blk = _load_block((bn1_s, bn1_t, w1, b1, bn2_s, bn2_t, w2, b2, wsk, bsk))
    y1 = _block(c1, blk, mask_l, mask_r)                      # block b1
    out_ref[...] = _maxpool4(y1, pool_scr)                    # mp1


def stem_block1_pool(x2, pre_s, pre_t, conv1p, b1p, *, BH, W):
    C = x2.shape[1]
    C2 = b1p["w1"].shape[1]
    W4 = W // 4
    tp = _pick_row_tile(BH, W)
    n_in, n_out = tp * W, tp * W4
    ops = [x2, pre_s, pre_t, conv1p["w"], conv1p["b"]] + _block_arrays(b1p)
    in_specs = [pl.BlockSpec((n_in, C), lambda i: (i, 0))] \
        + [_const_spec(a, 1) for a in ops[1:]]
    return pl.pallas_call(
        functools.partial(_stem_block1_kernel, W=W),
        out_shape=jax.ShapeDtypeStruct((BH * W4, C2), jnp.float32),
        grid=(BH // tp,),
        in_specs=in_specs,
        out_specs=pl.BlockSpec((n_out, C2), lambda i: (i, 0)),
        scratch_shapes=[pltpu.VMEM((n_in, C2), jnp.float32)],
        compiler_params=pltpu.CompilerParams(
            dimension_semantics=("parallel",)),
    )(*ops)


# ----------------------------------------------------------------------------
# kernel B: block2 + maxpool4 + block3 + bnf/relu + att/det heads + tail + GAP
#           grid over (B, H); y_att / gap accumulate over the trailing h axis
# ----------------------------------------------------------------------------

def _trunk_heads_kernel(*args, W4, W16, H):
    mp1_ref = args[0]
    b2 = _load_block(args[1:11])
    b3 = _load_block(args[11:21])
    bnf_s, bnf_t, att_w, att_b, det_w, det_b = args[21:27]
    det_out, att_out, yatt_out, gap_out = args[27:31]
    pool_scr = args[31]

    h = pl.program_id(1)
    ml4, mr4 = _row_masks(W4, W4)
    ml16, mr16 = _row_masks(W16, W16)

    x = mp1_ref[0, 0]                                         # (W4, 2C)
    y2 = _block(x, b2, ml4, mr4)                              # block b2
    y2p = _maxpool4(y2, pool_scr)                             # mp2: (W16, 3C)
    y3 = _block(y2p, b3, ml16, mr16)                          # block b3
    bf = jnp.maximum(y3 * bnf_s[...] + bnf_t[...], 0.0)       # relu(bnf(b3))

    bfh = bf.astype(jnp.bfloat16)
    att_all = jnp.dot(bfh, att_w[...],
                      preferred_element_type=jnp.float32) + att_b[...]
    det_all = jnp.dot(bfh, det_w[...],
                      preferred_element_type=jnp.float32) + det_b[...]
    det_out[0, 0] = det_all                                   # (W16, nc)

    # softmax over W per channel, then channel-sum -> att_sc
    p = jnp.exp(att_all - jnp.max(att_all, axis=0, keepdims=True))
    p = p * pl.reciprocal(jnp.sum(p, axis=0, keepdims=True), approx=True)
    s = jnp.sum(p, axis=1, keepdims=True)                     # (W16, 1)
    att_out[0, 0] = s

    # second softmax over W of att_sc (identical for every class)
    e = jnp.exp(s - jnp.max(s, axis=0, keepdims=True))
    e = e * pl.reciprocal(jnp.sum(e, axis=0, keepdims=True), approx=True)
    yatt_h = jnp.sum(det_all * e, axis=0, keepdims=True)      # (1, nc)
    gap_h = jnp.sum(bf, axis=0, keepdims=True)                # (1, 3C)

    @pl.when(h == 0)
    def _():
        yatt_out[0] = yatt_h
        gap_out[0] = gap_h

    @pl.when(h > 0)
    def _():
        yatt_out[0] = yatt_out[0] + yatt_h
        gap_out[0] = gap_out[0] + gap_h

    @pl.when(h == H - 1)
    def _():
        gap_out[0] = gap_out[0] * (1.0 / (H * W16))           # GAP mean


def trunk_heads(mp1_4d, b2p, b3p, bnf, attp, detp, *, H, W4, W16):
    B, _, _, C2 = mp1_4d.shape
    C3 = b2p["w1"].shape[1]
    nc = detp["w"].shape[1]
    ops = ([mp1_4d] + _block_arrays(b2p) + _block_arrays(b3p)
           + [bnf[0], bnf[1], attp["w"], attp["b"], detp["w"], detp["b"]])
    in_specs = [pl.BlockSpec((1, 1, W4, C2), lambda b, h: (b, h, 0, 0))] \
        + [_const_spec(a, 2) for a in ops[1:]]
    out_shape = (jax.ShapeDtypeStruct((B, H, W16, nc), jnp.float32),   # det
                 jax.ShapeDtypeStruct((B, H, W16, 1), jnp.float32),    # att_sc
                 jax.ShapeDtypeStruct((B, 1, nc), jnp.float32),        # y_att
                 jax.ShapeDtypeStruct((B, 1, C3), jnp.float32))        # gap
    out_specs = (pl.BlockSpec((1, 1, W16, nc), lambda b, h: (b, h, 0, 0)),
                 pl.BlockSpec((1, 1, W16, 1), lambda b, h: (b, h, 0, 0)),
                 pl.BlockSpec((1, 1, nc), lambda b, h: (b, 0, 0)),
                 pl.BlockSpec((1, 1, C3), lambda b, h: (b, 0, 0)))
    return pl.pallas_call(
        functools.partial(_trunk_heads_kernel, W4=W4, W16=W16, H=H),
        out_shape=out_shape,
        grid=(B, H),
        in_specs=in_specs,
        out_specs=out_specs,
        scratch_shapes=[pltpu.VMEM((W4, C3), jnp.float32)],
        compiler_params=pltpu.CompilerParams(
            dimension_semantics=("parallel", "arbitrary")),
    )(*ops)


# ----------------------------------------------------------------------------
# fused dense head: den1 + dbn1/ReLU + den2 + dbn2/ReLU + prd + ensemble
# ----------------------------------------------------------------------------

def _head_kernel(gap_ref, w1, b1, s1, t1, w2, b2, s2, t2, wp, bp,
                 yatt_ref, out_ref):
    h1 = jnp.dot(gap_ref[...].astype(jnp.bfloat16), w1[...],
                 preferred_element_type=jnp.float32) + b1[...]
    h1 = jnp.maximum(h1 * s1[...] + t1[...], 0.0)
    h2 = jnp.dot(h1.astype(jnp.bfloat16), w2[...],
                 preferred_element_type=jnp.float32) + b2[...]
    h2 = jnp.maximum(h2 * s2[...] + t2[...], 0.0)
    y_cls = jnp.dot(h2.astype(jnp.bfloat16), wp[...],
                    preferred_element_type=jnp.float32) + bp[...]
    out_ref[...] = (y_cls + yatt_ref[...]) * 0.5


def dense_head(gap2, den1p, dbn1, den2p, dbn2, prdp, y_att2):
    Bn = gap2.shape[0]
    nc = prdp["w"].shape[1]
    return pl.pallas_call(
        _head_kernel,
        out_shape=jax.ShapeDtypeStruct((Bn, nc), jnp.float32),
    )(gap2, den1p["w"], den1p["b"], dbn1[0], dbn1[1],
      den2p["w"], den2p["b"], dbn2[0], dbn2[1],
      prdp["w"], prdp["b"], y_att2)


# ----------------------------------------------------------------------------
# Parameters (deterministic synthetic init; BN folded; matmul weights bf16)
# ----------------------------------------------------------------------------

class _KeyGen:
    def __init__(self, key):
        self._key = key
        self._i = 0

    def __call__(self):
        self._i += 1
        return jax.random.fold_in(self._key, self._i)


def _bn_params(kg, c):
    gamma = 1.0 + 0.1 * jax.random.normal(kg(), (1, c))
    beta = 0.1 * jax.random.normal(kg(), (1, c))
    mean = 0.1 * jax.random.normal(kg(), (1, c))
    var = 1.0 + 0.2 * jax.random.uniform(kg(), (1, c))
    s = gamma / jnp.sqrt(var + 1e-5)
    t = beta - mean * s
    return s.astype(jnp.float32), t.astype(jnp.float32)


def _conv3_params(kg, ci, co):
    w = jax.random.normal(kg(), (3, ci, co)) / ((3.0 * ci) ** 0.5)
    b = 0.05 * jax.random.normal(kg(), (1, co))
    return w.astype(jnp.float32), b.astype(jnp.float32)


def _conv1_params(kg, ci, co):
    w = jax.random.normal(kg(), (ci, co)) / (ci ** 0.5)
    b = 0.05 * jax.random.normal(kg(), (1, co))
    return w.astype(jnp.float32), b.astype(jnp.float32)


def _lin_params(kg, di, do):
    w = jax.random.normal(kg(), (di, do)) / (di ** 0.5)
    b = 0.05 * jax.random.normal(kg(), (1, do))
    return w.astype(jnp.float32), b.astype(jnp.float32)


def _block_params(kg, ci, co):
    bn1_s, bn1_t = _bn_params(kg, ci)
    bn2_s, bn2_t = _bn_params(kg, co)
    bn3_s, bn3_t = _bn_params(kg, co)
    w1, b1 = _conv3_params(kg, ci, co)
    w2, b2 = _conv3_params(kg, co, co)
    wsk, bsk = _conv1_params(kg, ci, co)
    # fold bn3 (post conv2) into conv2's weights / bias
    w2f = w2 * bn3_s.reshape(1, 1, co)
    b2f = b2 * bn3_s + bn3_t
    return dict(bn1_s=bn1_s, bn1_t=bn1_t, bn2_s=bn2_s, bn2_t=bn2_t,
                w1=w1.reshape(3 * ci, co).astype(jnp.bfloat16), b1=b1,
                w2=w2f.reshape(3 * co, co).astype(jnp.bfloat16), b2=b2f,
                wsk=wsk.astype(jnp.bfloat16), bsk=bsk)


def init_params(key, channel, num_classes):
    kg = _KeyGen(key)
    C = channel
    dns = 512 * 2
    p = {}
    p["bn"] = _bn_params(kg, C)
    w, b = _conv3_params(kg, C, C)
    p["conv1"] = dict(w=w.reshape(3 * C, C).astype(jnp.bfloat16), b=b)
    p["b1"] = _block_params(kg, C, 2 * C)
    p["b2"] = _block_params(kg, 2 * C, 3 * C)
    p["b3"] = _block_params(kg, 3 * C, 3 * C)
    p["bnf"] = _bn_params(kg, 3 * C)
    w, b = _conv1_params(kg, 3 * C, num_classes)
    p["det"] = dict(w=w.astype(jnp.bfloat16), b=b)
    w, b = _conv1_params(kg, 3 * C, 3 * C)
    p["att"] = dict(w=w.astype(jnp.bfloat16), b=b)
    w, b = _lin_params(kg, 3 * C, dns)
    p["den1"] = dict(w=w.astype(jnp.bfloat16), b=b)
    w, b = _lin_params(kg, dns, dns)
    p["den2"] = dict(w=w.astype(jnp.bfloat16), b=b)
    p["dbn1"] = _bn_params(kg, dns)
    p["dbn2"] = _bn_params(kg, dns)
    w, b = _lin_params(kg, dns, num_classes)
    p["prd"] = dict(w=w.astype(jnp.bfloat16), b=b)
    return p


# ----------------------------------------------------------------------------
# Forward pass (wrapper glue: cheap reshapes; only the tiny returned att/det
# tensors get an XLA transpose/broadcast to NCHW)
# ----------------------------------------------------------------------------

@jax.jit
def net_forward(params, x, Xavg, Xstd):
    # x: (B, H, C, W) -- the module permutes it to NCHW (B, C, H, W).
    B, H, C, W = x.shape
    nc = params["prd"]["w"].shape[1]
    assert W % 16 == 0, "W must be divisible by 16 (two (1,4) max-pools)"
    BH = B * H
    W4, W16 = W // 4, W // 16

    # channels-last stacked rows: (B*H*W, C)
    x2 = jnp.transpose(x, (0, 1, 3, 2)).reshape(BH * W, C).astype(jnp.float32)

    # fold input z-normalization (x - Xavg)/Xstd with self.bn affine
    bn_s, bn_t = params["bn"]
    Xstd2 = Xstd.reshape(1, C).astype(jnp.float32)
    Xavg2 = Xavg.reshape(1, C).astype(jnp.float32)
    pre_s = bn_s / Xstd2
    pre_t = bn_t - bn_s * Xavg2 / Xstd2

    # kernel A: stem + block1 + maxpool4
    mp1 = stem_block1_pool(x2, pre_s, pre_t, params["conv1"], params["b1"],
                           BH=BH, W=W)                      # (BH*W4, 2C)
    C2 = mp1.shape[1]

    # kernel B: block2 + maxpool4 + block3 + bnf/relu + att/det heads + GAP
    det_f, att_sc, y_att, gap = trunk_heads(
        mp1.reshape(B, H, W4, C2), params["b2"], params["b3"],
        params["bnf"], params["att"], params["det"],
        H=H, W4=W4, W16=W16)
    C3 = gap.shape[2]

    # fused classifier head: gap -> den1 -> den2 -> prd, ensembled with y_att
    y_ens = dense_head(gap.reshape(B, C3), params["den1"], params["dbn1"],
                       params["den2"], params["dbn2"], params["prd"],
                       y_att.reshape(B, nc))

    # module outputs in NCHW (tiny returned tensors only)
    det_ret = det_f.transpose(0, 3, 1, 2)                     # (B, nc, H, W16)
    att_ret = jnp.broadcast_to(att_sc.reshape(B, 1, H, W16), (B, nc, H, W16))
    return y_ens, [[att_ret, det_ret]]


# ----------------------------------------------------------------------------

if __name__ == "__main__":
    # W chosen so every post-pool width (W/4=32, W/16=8) stays a multiple of 8.
    B, H, C, W, NC = 2, 2, 4, 128, 3
    key = jax.random.PRNGKey(0)
    kx, ka, ks, kp = jax.random.split(key, 4)
    x = jax.random.normal(kx, (B, H, C, W), jnp.float32)
    Xavg = 0.1 * jax.random.normal(ka, (C,), jnp.float32)
    Xstd = 1.0 + 0.5 * jax.random.uniform(ks, (C,), jnp.float32)
    params = init_params(kp, C, NC)

    y_ens, ((att, det),) = net_forward(params, x, Xavg, Xstd)
    jax.block_until_ready((y_ens, att, det))

    assert y_ens.shape == (B, NC)
    assert att.shape == (B, NC, H, W // 16)
    assert det.shape == (B, NC, H, W // 16)
    assert bool(jnp.all(jnp.isfinite(y_ens)))
    assert bool(jnp.all(jnp.isfinite(att)))
    assert bool(jnp.all(jnp.isfinite(det)))
    print("KERNEL_OK")
</pallas_src>

<mosaic_0001>
module attributes {stable_mosaic.version = 11 : i64} {
  func.func @_trunk_heads_kernel(%arg0: i32, %arg1: i32, %arg2: memref<1x1x32x8xf32, #tpu.memory_space<vmem>>, %arg3: memref<1x8xf32, #tpu.memory_space<vmem>>, %arg4: memref<1x8xf32, #tpu.memory_space<vmem>>, %arg5: memref<24x12xbf16, #tpu.memory_space<vmem>>, %arg6: memref<1x12xf32, #tpu.memory_space<vmem>>, %arg7: memref<1x12xf32, #tpu.memory_space<vmem>>, %arg8: memref<1x12xf32, #tpu.memory_space<vmem>>, %arg9: memref<36x12xbf16, #tpu.memory_space<vmem>>, %arg10: memref<1x12xf32, #tpu.memory_space<vmem>>, %arg11: memref<8x12xbf16, #tpu.memory_space<vmem>>, %arg12: memref<1x12xf32, #tpu.memory_space<vmem>>, %arg13: memref<1x12xf32, #tpu.memory_space<vmem>>, %arg14: memref<1x12xf32, #tpu.memory_space<vmem>>, %arg15: memref<36x12xbf16, #tpu.memory_space<vmem>>, %arg16: memref<1x12xf32, #tpu.memory_space<vmem>>, %arg17: memref<1x12xf32, #tpu.memory_space<vmem>>, %arg18: memref<1x12xf32, #tpu.memory_space<vmem>>, %arg19: memref<36x12xbf16, #tpu.memory_space<vmem>>, %arg20: memref<1x12xf32, #tpu.memory_space<vmem>>, %arg21: memref<12x12xbf16, #tpu.memory_space<vmem>>, %arg22: memref<1x12xf32, #tpu.memory_space<vmem>>, %arg23: memref<1x12xf32, #tpu.memory_space<vmem>>, %arg24: memref<1x12xf32, #tpu.memory_space<vmem>>, %arg25: memref<12x12xbf16, #tpu.memory_space<vmem>>, %arg26: memref<1x12xf32, #tpu.memory_space<vmem>>, %arg27: memref<12x3xbf16, #tpu.memory_space<vmem>>, %arg28: memref<1x3xf32, #tpu.memory_space<vmem>>, %arg29: memref<1x1x8x3xf32, #tpu.memory_space<vmem>>, %arg30: memref<1x1x8x1xf32, #tpu.memory_space<vmem>>, %arg31: memref<1x1x3xf32, #tpu.memory_space<vmem>>, %arg32: memref<1x1x12xf32, #tpu.memory_space<vmem>>, %arg33: memref<32x12xf32, #tpu.memory_space<vmem>>) attributes {dimension_semantics = [#tpu.dimension_semantics<parallel>, #tpu.dimension_semantics<arbitrary>], iteration_bounds = array<i64: 2, 2>, scalar_prefetch = 0 : i64, scratch_operands = 1 : i64, tpu.core_type = #tpu.core_type<tc>, window_params = [{transform_indices = @transform_0, window_bounds = array<i64: 1, 1, 32, 8>}, {pipeline_mode = #tpu.pipeline_mode<synchronous>, transform_indices = @transform_1, window_bounds = array<i64: 1, 8>}, {pipeline_mode = #tpu.pipeline_mode<synchronous>, transform_indices = @transform_2, window_bounds = array<i64: 1, 8>}, {pipeline_mode = #tpu.pipeline_mode<synchronous>, transform_indices = @transform_3, window_bounds = array<i64: 24, 12>}, {pipeline_mode = #tpu.pipeline_mode<synchronous>, transform_indices = @transform_4, window_bounds = array<i64: 1, 12>}, {pipeline_mode = #tpu.pipeline_mode<synchronous>, transform_indices = @transform_5, window_bounds = array<i64: 1, 12>}, {pipeline_mode = #tpu.pipeline_mode<synchronous>, transform_indices = @transform_6, window_bounds = array<i64: 1, 12>}, {pipeline_mode = #tpu.pipeline_mode<synchronous>, transform_indices = @transform_7, window_bounds = array<i64: 36, 12>}, {pipeline_mode = #tpu.pipeline_mode<synchronous>, transform_indices = @transform_8, window_bounds = array<i64: 1, 12>}, {pipeline_mode = #tpu.pipeline_mode<synchronous>, transform_indices = @transform_9, window_bounds = array<i64: 8, 12>}, {pipeline_mode = #tpu.pipeline_mode<synchronous>, transform_indices = @transform_10, window_bounds = array<i64: 1, 12>}, {pipeline_mode = #tpu.pipeline_mode<synchronous>, transform_indices = @transform_11, window_bounds = array<i64: 1, 12>}, {pipeline_mode = #tpu.pipeline_mode<synchronous>, transform_indices = @transform_12, window_bounds = array<i64: 1, 12>}, {pipeline_mode = #tpu.pipeline_mode<synchronous>, transform_indices = @transform_13, window_bounds = array<i64: 36, 12>}, {pipeline_mode = #tpu.pipeline_mode<synchronous>, transform_indices = @transform_14, window_bounds = array<i64: 1, 12>}, {pipeline_mode = #tpu.pipeline_mode<synchronous>, transform_indices = @transform_15, window_bounds = array<i64: 1, 12>}, {pipeline_mode = #tpu.pipeline_mode<synchronous>, transform_indices = @transform_16, window_bounds = array<i64: 1, 12>}, {pipeline_mode = #tpu.pipeline_mode<synchronous>, transform_indices = @transform_17, window_bounds = array<i64: 36, 12>}, {pipeline_mode = #tpu.pipeline_mode<synchronous>, transform_indices = @transform_18, window_bounds = array<i64: 1, 12>}, {pipeline_mode = #tpu.pipeline_mode<synchronous>, transform_indices = @transform_19, window_bounds = array<i64: 12, 12>}, {pipeline_mode = #tpu.pipeline_mode<synchronous>, transform_indices = @transform_20, window_bounds = array<i64: 1, 12>}, {pipeline_mode = #tpu.pipeline_mode<synchronous>, transform_indices = @transform_21, window_bounds = array<i64: 1, 12>}, {pipeline_mode = #tpu.pipeline_mode<synchronous>, transform_indices = @transform_22, window_bounds = array<i64: 1, 12>}, {pipeline_mode = #tpu.pipeline_mode<synchronous>, transform_indices = @transform_23, window_bounds = array<i64: 12, 12>}, {pipeline_mode = #tpu.pipeline_mode<synchronous>, transform_indices = @transform_24, window_bounds = array<i64: 1, 12>}, {pipeline_mode = #tpu.pipeline_mode<synchronous>, transform_indices = @transform_25, window_bounds = array<i64: 12, 3>}, {pipeline_mode = #tpu.pipeline_mode<synchronous>, transform_indices = @transform_26, window_bounds = array<i64: 1, 3>}, {transform_indices = @transform_27, window_bounds = array<i64: 1, 1, 8, 3>}, {transform_indices = @transform_28, window_bounds = array<i64: 1, 1, 8, 1>}, {transform_indices = @transform_29, window_bounds = array<i64: 1, 1, 3>}, {transform_indices = @transform_30, window_bounds = array<i64: 1, 1, 12>}]} {
    %c0 = arith.constant 0 : index
    %c0_0 = arith.constant 0 : index
    %0 = vector.load %arg3[%c0, %c0_0] : memref<1x8xf32, #tpu.memory_space<vmem>>, vector<1x8xf32>
    %c0_1 = arith.constant 0 : index
    %c0_2 = arith.constant 0 : index
    %1 = vector.load %arg4[%c0_1, %c0_2] : memref<1x8xf32, #tpu.memory_space<vmem>>, vector<1x8xf32>
    %c0_3 = arith.constant 0 : index
    %c0_4 = arith.constant 0 : index
    %2 = vector.load %arg5[%c0_3, %c0_4] : memref<24x12xbf16, #tpu.memory_space<vmem>>, vector<24x12xbf16>
    %c0_5 = arith.constant 0 : index
    %c0_6 = arith.constant 0 : index
    %3 = vector.load %arg6[%c0_5, %c0_6] : memref<1x12xf32, #tpu.memory_space<vmem>>, vector<1x12xf32>
    %c0_7 = arith.constant 0 : index
    %c0_8 = arith.constant 0 : index
    %4 = vector.load %arg7[%c0_7, %c0_8] : memref<1x12xf32, #tpu.memory_space<vmem>>, vector<1x12xf32>
    %c0_9 = arith.constant 0 : index
    %c0_10 = arith.constant 0 : index
    %5 = vector.load %arg8[%c0_9, %c0_10] : memref<1x12xf32, #tpu.memory_space<vmem>>, vector<1x12xf32>
    %c0_11 = arith.constant 0 : index
    %c0_12 = arith.constant 0 : index
    %6 = vector.load %arg9[%c0_11, %c0_12] : memref<36x12xbf16, #tpu.memory_space<vmem>>, vector<36x12xbf16>
    %c0_13 = arith.constant 0 : index
    %c0_14 = arith.constant 0 : index
    %7 = vector.load %arg10[%c0_13, %c0_14] : memref<1x12xf32, #tpu.memory_space<vmem>>, vector<1x12xf32>
    %c0_15 = arith.constant 0 : index
    %c0_16 = arith.constant 0 : index
    %8 = vector.load %arg11[%c0_15, %c0_16] : memref<8x12xbf16, #tpu.memory_space<vmem>>, vector<8x12xbf16>
    %c0_17 = arith.constant 0 : index
    %c0_18 = arith.constant 0 : index
    %9 = vector.load %arg12[%c0_17, %c0_18] : memref<1x12xf32, #tpu.memory_space<vmem>>, vector<1x12xf32>
    %c0_19 = arith.constant 0 : index
    %c0_20 = arith.constant 0 : index
    %10 = vector.load %arg13[%c0_19, %c0_20] : memref<1x12xf32, #tpu.memory_space<vmem>>, vector<1x12xf32>
    %c0_21 = arith.constant 0 : index
    %c0_22 = arith.constant 0 : index
    %11 = vector.load %arg14[%c0_21, %c0_22] : memref<1x12xf32, #tpu.memory_space<vmem>>, vector<1x12xf32>
    %c0_23 = arith.constant 0 : index
    %c0_24 = arith.constant 0 : index
    %12 = vector.load %arg15[%c0_23, %c0_24] : memref<36x12xbf16, #tpu.memory_space<vmem>>, vector<36x12xbf16>
    %c0_25 = arith.constant 0 : index
    %c0_26 = arith.constant 0 : index
    %13 = vector.load %arg16[%c0_25, %c0_26] : memref<1x12xf32, #tpu.memory_space<vmem>>, vector<1x12xf32>
    %c0_27 = arith.constant 0 : index
    %c0_28 = arith.constant 0 : index
    %14 = vector.load %arg17[%c0_27, %c0_28] : memref<1x12xf32, #tpu.memory_space<vmem>>, vector<1x12xf32>
    %c0_29 = arith.constant 0 : index
    %c0_30 = arith.constant 0 : index
    %15 = vector.load %arg18[%c0_29, %c0_30] : memref<1x12xf32, #tpu.memory_space<vmem>>, vector<1x12xf32>
    %c0_31 = arith.constant 0 : index
    %c0_32 = arith.constant 0 : index
    %16 = vector.load %arg19[%c0_31, %c0_32] : memref<36x12xbf16, #tpu.memory_space<vmem>>, vector<36x12xbf16>
    %c0_33 = arith.constant 0 : index
    %c0_34 = arith.constant 0 : index
    %17 = vector.load %arg20[%c0_33, %c0_34] : memref<1x12xf32, #tpu.memory_space<vmem>>, vector<1x12xf32>
    %c0_35 = arith.constant 0 : index
    %c0_36 = arith.constant 0 : index
    %18 = vector.load %arg21[%c0_35, %c0_36] : memref<12x12xbf16, #tpu.memory_space<vmem>>, vector<12x12xbf16>
    %c0_37 = arith.constant 0 : index
    %c0_38 = arith.constant 0 : index
    %19 = vector.load %arg22[%c0_37, %c0_38] : memref<1x12xf32, #tpu.memory_space<vmem>>, vector<1x12xf32>
    %20 = tpu.iota {dimensions = array<i32: 0>} : vector<32x1xi32>
    %c32_i32 = arith.constant 32 : i32
    %c0_i32 = arith.constant 0 : i32
    %21 = arith.cmpi eq, %c32_i32, %c0_i32 : i32
    %c1_i32 = arith.constant 1 : i32
    %22 = arith.select %21, %c1_i32, %c32_i32 : i32
    %23 = vector.broadcast %22 : i32 to vector<32x1xi32>
    %24 = arith.remsi %20, %23 : vector<32x1xi32>
    %c0_i32_39 = arith.constant 0 : i32
    %25 = vector.broadcast %c0_i32_39 : i32 to vector<32x1xi32>
    %26 = arith.cmpi ne, %24, %25 : vector<32x1xi32>
    %c0_i32_40 = arith.constant 0 : i32
    %27 = vector.broadcast %c0_i32_40 : i32 to vector<32x1xi32>
    %28 = arith.cmpi slt, %24, %27 : vector<32x1xi32>
    %c0_i32_41 = arith.constant 0 : i32
    %29 = arith.cmpi slt, %22, %c0_i32_41 : i32
    %30 = vector.broadcast %29 : i1 to vector<32x1xi1>
    %31 = vector.broadcast %30 : vector<32x1xi1> to vector<32x1xi1>
    %32 = arith.xori %28, %31 : vector<32x1xi1>
    %33 = arith.andi %32, %26 : vector<32x1xi1>
    %34 = vector.broadcast %22 : i32 to vector<32x1xi32>
    %35 = arith.addi %24, %34 : vector<32x1xi32>
    %36 = arith.select %33, %35, %24 : vector<32x1xi1>, vector<32x1xi32>
    %c0_i32_42 = arith.constant 0 : i32
    %37 = vector.broadcast %c0_i32_42 : i32 to vector<32x1xi32>
    %38 = arith.cmpi ne, %36, %37 : vector<32x1xi32>
    %c31_i32 = arith.constant 31 : i32
    %39 = vector.broadcast %c31_i32 : i32 to vector<32x1xi32>
    %40 = arith.cmpi ne, %36, %39 : vector<32x1xi32>
    %41 = tpu.iota {dimensions = array<i32: 0>} : vector<8x1xi32>
    %c8_i32 = arith.constant 8 : i32
    %c0_i32_43 = arith.constant 0 : i32
    %42 = arith.cmpi eq, %c8_i32, %c0_i32_43 : i32
    %c1_i32_44 = arith.constant 1 : i32
    %43 = arith.select %42, %c1_i32_44, %c8_i32 : i32
    %44 = vector.broadcast %43 : i32 to vector<8x1xi32>
    %45 = arith.remsi %41, %44 : vector<8x1xi32>
    %c0_i32_45 = arith.constant 0 : i32
    %46 = vector.broadcast %c0_i32_45 : i32 to vector<8x1xi32>
    %47 = arith.cmpi ne, %45, %46 : vector<8x1xi32>
    %c0_i32_46 = arith.constant 0 : i32
    %48 = vector.broadcast %c0_i32_46 : i32 to vector<8x1xi32>
    %49 = arith.cmpi slt, %45, %48 : vector<8x1xi32>
    %c0_i32_47 = arith.constant 0 : i32
    %50 = arith.cmpi slt, %43, %c0_i32_47 : i32
    %51 = vector.broadcast %50 : i1 to vector<8x1xi1>
    %52 = vector.broadcast %51 : vector<8x1xi1> to vector<8x1xi1>
    %53 = arith.xori %49, %52 : vector<8x1xi1>
    %54 = arith.andi %53, %47 : vector<8x1xi1>
    %55 = vector.broadcast %43 : i32 to vector<8x1xi32>
    %56 = arith.addi %45, %55 : vector<8x1xi32>
    %57 = arith.select %54, %56, %45 : vector<8x1xi1>, vector<8x1xi32>
    %c0_i32_48 = arith.constant 0 : i32
    %58 = vector.broadcast %c0_i32_48 : i32 to vector<8x1xi32>
    %59 = arith.cmpi ne, %57, %58 : vector<8x1xi32>
    %c7_i32 = arith.constant 7 : i32
    %60 = vector.broadcast %c7_i32 : i32 to vector<8x1xi32>
    %61 = arith.cmpi ne, %57, %60 : vector<8x1xi32>
    %c0_49 = arith.constant 0 : index
    %c0_50 = arith.constant 0 : index
    %c0_51 = arith.constant 0 : index
    %c0_52 = arith.constant 0 : index
    %62 = vector.load %arg2[%c0_49, %c0_50, %c0_51, %c0_52] : memref<1x1x32x8xf32, #tpu.memory_space<vmem>>, vector<1x1x32x8xf32>
    %63 = vector.shape_cast %62 : vector<1x1x32x8xf32> to vector<32x8xf32>
    %64 = vector.broadcast %0 : vector<1x8xf32> to vector<32x8xf32>
    %65 = arith.mulf %63, %64 : vector<32x8xf32>
    %66 = vector.broadcast %1 : vector<1x8xf32> to vector<32x8xf32>
    %67 = arith.addf %65, %66 : vector<32x8xf32>
    %c1_i32_53 = arith.constant 1 : i32
    %68 = tpu.dynamic_rotate %67 by %c1_i32_53 dim 0 : vector<32x8xf32>, i32 -> vector<32x8xf32>
    %cst = arith.constant 0.000000e+00 : f32
    %69 = vector.shape_cast %38 : vector<32x1xi1> to vector<32x1xi1>
    %70 = vector.broadcast %69 : vector<32x1xi1> to vector<32x8xi1>
    %71 = vector.broadcast %cst : f32 to vector<32x8xf32>
    %72 = arith.select %70, %68, %71 : vector<32x8xi1>, vector<32x8xf32>
    %c31_i32_54 = arith.constant 31 : i32
    %73 = tpu.dynamic_rotate %67 by %c31_i32_54 dim 0 : vector<32x8xf32>, i32 -> vector<32x8xf32>
    %cst_55 = arith.constant 0.000000e+00 : f32
    %74 = vector.shape_cast %40 : vector<32x1xi1> to vector<32x1xi1>
    %75 = vector.broadcast %74 : vector<32x1xi1> to vector<32x8xi1>
    %76 = vector.broadcast %cst_55 : f32 to vector<32x8xf32>
    %77 = arith.select %75, %73, %76 : vector<32x8xi1>, vector<32x8xf32>
    %78 = tpu.concatenate %72, %67, %77 in 1 : vector<32x8xf32>, vector<32x8xf32>, vector<32x8xf32> -> vector<32x24xf32>
    %79 = arith.truncf %78 : vector<32x24xf32> to vector<32x24xbf16>
    %cst_56 = arith.constant dense<0.000000e+00> : vector<32x12xf32>
    %80 = tpu.matmul %79, %2, %cst_56 {dimension_numbers = #tpu.dot_dimension_numbers<[1], [0], [0], [1], [0, 0, 1, 1], [], []>} : vector<32x24xbf16>, vector<24x12xbf16>, vector<32x12xf32> -> vector<32x12xf32>
    %81 = vector.broadcast %3 : vector<1x12xf32> to vector<32x12xf32>
    %82 = arith.addf %80, %81 : vector<32x12xf32>
    %83 = vector.broadcast %4 : vector<1x12xf32> to vector<32x12xf32>
    %84 = arith.mulf %82, %83 : vector<32x12xf32>
    %85 = vector.broadcast %5 : vector<1x12xf32> to vector<32x12xf32>
    %86 = arith.addf %84, %85 : vector<32x12xf32>
    %cst_57 = arith.constant 0.000000e+00 : f32
    %87 = vector.broadcast %cst_57 : f32 to vector<32x12xf32>
    %88 = arith.maximumf %86, %87 : vector<32x12xf32>
    %c1_i32_58 = arith.constant 1 : i32
    %89 = tpu.dynamic_rotate %88 by %c1_i32_58 dim 0 : vector<32x12xf32>, i32 -> vector<32x12xf32>
    %cst_59 = arith.constant 0.000000e+00 : f32
    %90 = vector.shape_cast %38 : vector<32x1xi1> to vector<32x1xi1>
    %91 = vector.broadcast %90 : vector<32x1xi1> to vector<32x12xi1>
    %92 = vector.broadcast %cst_59 : f32 to vector<32x12xf32>
    %93 = arith.select %91, %89, %92 : vector<32x12xi1>, vector<32x12xf32>
    %c31_i32_60 = arith.constant 31 : i32
    %94 = tpu.dynamic_rotate %88 by %c31_i32_60 dim 0 : vector<32x12xf32>, i32 -> vector<32x12xf32>
    %cst_61 = arith.constant 0.000000e+00 : f32
    %95 = vector.shape_cast %40 : vector<32x1xi1> to vector<32x1xi1>
    %96 = vector.broadcast %95 : vector<32x1xi1> to vector<32x12xi1>
    %97 = vector.broadcast %cst_61 : f32 to vector<32x12xf32>
    %98 = arith.select %96, %94, %97 : vector<32x12xi1>, vector<32x12xf32>
    %99 = tpu.concatenate %93, %88, %98 in 1 : vector<32x12xf32>, vector<32x12xf32>, vector<32x12xf32> -> vector<32x36xf32>
    %100 = arith.truncf %99 : vector<32x36xf32> to vector<32x36xbf16>
    %cst_62 = arith.constant dense<0.000000e+00> : vector<32x12xf32>
    %101 = tpu.matmul %100, %6, %cst_62 {dimension_numbers = #tpu.dot_dimension_numbers<[1], [0], [0], [1], [0, 0, 1, 1], [], []>} : vector<32x36xbf16>, vector<36x12xbf16>, vector<32x12xf32> -> vector<32x12xf32>
    %102 = vector.broadcast %7 : vector<1x12xf32> to vector<32x12xf32>
    %103 = arith.addf %101, %102 : vector<32x12xf32>
    %104 = arith.truncf %63 : vector<32x8xf32> to vector<32x8xbf16>
    %cst_63 = arith.constant dense<0.000000e+00> : vector<32x12xf32>
    %105 = tpu.matmul %104, %8, %cst_63 {dimension_numbers = #tpu.dot_dimension_numbers<[1], [0], [0], [1], [0, 0, 1, 1], [], []>} : vector<32x8xbf16>, vector<8x12xbf16>, vector<32x12xf32> -> vector<32x12xf32>
    %106 = vector.broadcast %9 : vector<1x12xf32> to vector<32x12xf32>
    %107 = arith.addf %105, %106 : vector<32x12xf32>
    %108 = arith.addf %103, %107 : vector<32x12xf32>
    %c0_64 = arith.constant 0 : index
    %c0_65 = arith.constant 0 : index
    %109 = vector.load %arg33[%c0_64, %c0_65] : memref<32x12xf32, #tpu.memory_space<vmem>>, vector<32x12xf32>
    tpu.vector_store %arg33[%c0_64, %c0_65], %108 {strides = array<i32>} : memref<32x12xf32, #tpu.memory_space<vmem>>, vector<32x12xf32>,
    %c0_66 = arith.constant 0 : index
    %c0_67 = arith.constant 0 : index
    %110 = tpu.strided_load %arg33[%c0_66, %c0_67] {strides = array<i32: 4, 1>} : memref<32x12xf32, #tpu.memory_space<vmem>>, vector<8x12xf32>
    %c1 = arith.constant 1 : index
    %c0_68 = arith.constant 0 : index
    %111 = tpu.strided_load %arg33[%c1, %c0_68] {strides = array<i32: 4, 1>} : memref<32x12xf32, #tpu.memory_space<vmem>>, vector<8x12xf32>
    %c2 = arith.constant 2 : index
    %c0_69 = arith.constant 0 : index
    %112 = tpu.strided_load %arg33[%c2, %c0_69] {strides = array<i32: 4, 1>} : memref<32x12xf32, #tpu.memory_space<vmem>>, vector<8x12xf32>
    %c3 = arith.constant 3 : index
    %c0_70 = arith.constant 0 : index
    %113 = tpu.strided_load %arg33[%c3, %c0_70] {strides = array<i32: 4, 1>} : memref<32x12xf32, #tpu.memory_space<vmem>>, vector<8x12xf32>
    %114 = arith.maximumf %110, %111 : vector<8x12xf32>
    %115 = arith.maximumf %112, %113 : vector<8x12xf32>
    %116 = arith.maximumf %114, %115 : vector<8x12xf32>
    %117 = vector.broadcast %10 : vector<1x12xf32> to vector<8x12xf32>
    %118 = arith.mulf %116, %117 : vector<8x12xf32>
    %119 = vector.broadcast %11 : vector<1x12xf32> to vector<8x12xf32>
    %120 = arith.addf %118, %119 : vector<8x12xf32>
    %c1_i32_71 = arith.constant 1 : i32
    %121 = tpu.dynamic_rotate %120 by %c1_i32_71 dim 0 : vector<8x12xf32>, i32 -> vector<8x12xf32>
    %cst_72 = arith.constant 0.000000e+00 : f32
    %122 = vector.shape_cast %59 : vector<8x1xi1> to vector<8x1xi1>
    %123 = vector.broadcast %122 : vector<8x1xi1> to vector<8x12xi1>
    %124 = vector.broadcast %cst_72 : f32 to vector<8x12xf32>
    %125 = arith.select %123, %121, %124 : vector<8x12xi1>, vector<8x12xf32>
    %c7_i32_73 = arith.constant 7 : i32
    %126 = tpu.dynamic_rotate %120 by %c7_i32_73 dim 0 : vector<8x12xf32>, i32 -> vector<8x12xf32>
    %cst_74 = arith.constant 0.000000e+00 : f32
    %127 = vector.shape_cast %61 : vector<8x1xi1> to vector<8x1xi1>
    %128 = vector.broadcast %127 : vector<8x1xi1> to vector<8x12xi1>
    %129 = vector.broadcast %cst_74 : f32 to vector<8x12xf32>
    %130 = arith.select %128, %126, %129 : vector<8x12xi1>, vector<8x12xf32>
    %131 = tpu.concatenate %125, %120, %130 in 1 : vector<8x12xf32>, vector<8x12xf32>, vector<8x12xf32> -> vector<8x36xf32>
    %132 = arith.truncf %131 : vector<8x36xf32> to vector<8x36xbf16>
    %cst_75 = arith.constant dense<0.000000e+00> : vector<8x12xf32>
    %133 = tpu.matmul %132, %12, %cst_75 {dimension_numbers = #tpu.dot_dimension_numbers<[1], [0], [0], [1], [0, 0, 1, 1], [], []>} : vector<8x36xbf16>, vector<36x12xbf16>, vector<8x12xf32> -> vector<8x12xf32>
    %134 = vector.broadcast %13 : vector<1x12xf32> to vector<8x12xf32>
    %135 = arith.addf %133, %134 : vector<8x12xf32>
    %136 = vector.broadcast %14 : vector<1x12xf32> to vector<8x12xf32>
    %137 = arith.mulf %135, %136 : vector<8x12xf32>
    %138 = vector.broadcast %15 : vector<1x12xf32> to vector<8x12xf32>
    %139 = arith.addf %137, %138 : vector<8x12xf32>
    %cst_76 = arith.constant 0.000000e+00 : f32
    %140 = vector.broadcast %cst_76 : f32 to vector<8x12xf32>
    %141 = arith.maximumf %139, %140 : vector<8x12xf32>
    %c1_i32_77 = arith.constant 1 : i32
    %142 = tpu.dynamic_rotate %141 by %c1_i32_77 dim 0 : vector<8x12xf32>, i32 -> vector<8x12xf32>
    %cst_78 = arith.constant 0.000000e+00 : f32
    %143 = vector.shape_cast %59 : vector<8x1xi1> to vector<8x1xi1>
    %144 = vector.broadcast %143 : vector<8x1xi1> to vector<8x12xi1>
    %145 = vector.broadcast %cst_78 : f32 to vector<8x12xf32>
    %146 = arith.select %144, %142, %145 : vector<8x12xi1>, vector<8x12xf32>
    %c7_i32_79 = arith.constant 7 : i32
    %147 = tpu.dynamic_rotate %141 by %c7_i32_79 dim 0 : vector<8x12xf32>, i32 -> vector<8x12xf32>
    %cst_80 = arith.constant 0.000000e+00 : f32
    %148 = vector.shape_cast %61 : vector<8x1xi1> to vector<8x1xi1>
    %149 = vector.broadcast %148 : vector<8x1xi1> to vector<8x12xi1>
    %150 = vector.broadcast %cst_80 : f32 to vector<8x12xf32>
    %151 = arith.select %149, %147, %150 : vector<8x12xi1>, vector<8x12xf32>
    %152 = tpu.concatenate %146, %141, %151 in 1 : vector<8x12xf32>, vector<8x12xf32>, vector<8x12xf32> -> vector<8x36xf32>
    %153 = arith.truncf %152 : vector<8x36xf32> to vector<8x36xbf16>
    %cst_81 = arith.constant dense<0.000000e+00> : vector<8x12xf32>
    %154 = tpu.matmul %153, %16, %cst_81 {dimension_numbers = #tpu.dot_dimension_numbers<[1], [0], [0], [1], [0, 0, 1, 1], [], []>} : vector<8x36xbf16>, vector<36x12xbf16>, vector<8x12xf32> -> vector<8x12xf32>
    %155 = vector.broadcast %17 : vector<1x12xf32> to vector<8x12xf32>
    %156 = arith.addf %154, %155 : vector<8x12xf32>
    %157 = arith.truncf %116 : vector<8x12xf32> to vector<8x12xbf16>
    %cst_82 = arith.constant dense<0.000000e+00> : vector<8x12xf32>
    %158 = tpu.matmul %157, %18, %cst_82 {dimension_numbers = #tpu.dot_dimension_numbers<[1], [0], [0], [1], [0, 0, 1, 1], [], []>} : vector<8x12xbf16>, vector<12x12xbf16>, vector<8x12xf32> -> vector<8x12xf32>
    %159 = vector.broadcast %19 : vector<1x12xf32> to vector<8x12xf32>
    %160 = arith.addf %158, %159 : vector<8x12xf32>
    %161 = arith.addf %156, %160 : vector<8x12xf32>
    %c0_83 = arith.constant 0 : index
    %c0_84 = arith.constant 0 : index
    %162 = vector.load %arg23[%c0_83, %c0_84] : memref<1x12xf32, #tpu.memory_space<vmem>>, vector<1x12xf32>
    %163 = vector.broadcast %162 : vector<1x12xf32> to vector<8x12xf32>
    %164 = arith.mulf %161, %163 : vector<8x12xf32>
    %c0_85 = arith.constant 0 : index
    %c0_86 = arith.constant 0 : index
    %165 = vector.load %arg24[%c0_85, %c0_86] : memref<1x12xf32, #tpu.memory_space<vmem>>, vector<1x12xf32>
    %166 = vector.broadcast %165 : vector<1x12xf32> to vector<8x12xf32>
    %167 = arith.addf %164, %166 : vector<8x12xf32>
    %cst_87 = arith.constant 0.000000e+00 : f32
    %168 = vector.broadcast %cst_87 : f32 to vector<8x12xf32>
    %169 = arith.maximumf %167, %168 : vector<8x12xf32>
    %170 = arith.truncf %169 : vector<8x12xf32> to vector<8x12xbf16>
    %c0_88 = arith.constant 0 : index
    %c0_89 = arith.constant 0 : index
    %171 = vector.load %arg25[%c0_88, %c0_89] : memref<12x12xbf16, #tpu.memory_space<vmem>>, vector<12x12xbf16>
    %cst_90 = arith.constant dense<0.000000e+00> : vector<8x12xf32>
    %172 = tpu.matmul %170, %171, %cst_90 {dimension_numbers = #tpu.dot_dimension_numbers<[1], [0], [0], [1], [0, 0, 1, 1], [], []>} : vector<8x12xbf16>, vector<12x12xbf16>, vector<8x12xf32> -> vector<8x12xf32>
    %c0_91 = arith.constant 0 : index
    %c0_92 = arith.constant 0 : index
    %173 = vector.load %arg26[%c0_91, %c0_92] : memref<1x12xf32, #tpu.memory_space<vmem>>, vector<1x12xf32>
    %174 = vector.broadcast %173 : vector<1x12xf32> to vector<8x12xf32>
    %175 = arith.addf %172, %174 : vector<8x12xf32>
    %c0_93 = arith.constant 0 : index
    %c0_94 = arith.constant 0 : index
    %176 = vector.load %arg27[%c0_93, %c0_94] : memref<12x3xbf16, #tpu.memory_space<vmem>>, vector<12x3xbf16>
    %cst_95 = arith.constant dense<0.000000e+00> : vector<8x3xf32>
    %177 = tpu.matmul %170, %176, %cst_95 {dimension_numbers = #tpu.dot_dimension_numbers<[1], [0], [0], [1], [0, 0, 1, 1], [], []>} : vector<8x12xbf16>, vector<12x3xbf16>, vector<8x3xf32> -> vector<8x3xf32>
    %c0_96 = arith.constant 0 : index
    %c0_97 = arith.constant 0 : index
    %178 = vector.load %arg28[%c0_96, %c0_97] : memref<1x3xf32, #tpu.memory_space<vmem>>, vector<1x3xf32>
    %179 = vector.broadcast %178 : vector<1x3xf32> to vector<8x3xf32>
    %180 = arith.addf %177, %179 : vector<8x3xf32>
    %c0_98 = arith.constant 0 : index
    %c0_99 = arith.constant 0 : index
    %c0_100 = arith.constant 0 : index
    %c0_101 = arith.constant 0 : index
    %181 = vector.load %arg29[%c0_98, %c0_99, %c0_100, %c0_101] : memref<1x1x8x3xf32, #tpu.memory_space<vmem>>, vector<1x1x8x3xf32>
    %182 = vector.shape_cast %181 : vector<1x1x8x3xf32> to vector<8x3xf32>
    %183 = vector.shape_cast %180 : vector<8x3xf32> to vector<1x1x8x3xf32>
    tpu.vector_store %arg29[%c0_98, %c0_99, %c0_100, %c0_101], %183 {strides = array<i32>} : memref<1x1x8x3xf32, #tpu.memory_space<vmem>>, vector<1x1x8x3xf32>,
    %cst_102 = arith.constant dense<0xFF800000> : vector<12xf32>
    %184 = vector.multi_reduction <maximumf>, %175, %cst_102 [0] : vector<8x12xf32> to vector<12xf32>
    %185 = vector.shape_cast %184 : vector<12xf32> to vector<1x12xf32>
    %186 = vector.broadcast %185 : vector<1x12xf32> to vector<8x12xf32>
    %187 = arith.subf %175, %186 : vector<8x12xf32>
    %188 = math.exp %187 : vector<8x12xf32>
    %cst_103 = arith.constant dense<0.000000e+00> : vector<12xf32>
    %189 = vector.multi_reduction <add>, %188, %cst_103 [0] : vector<8x12xf32> to vector<12xf32>
    %190 = vector.shape_cast %189 : vector<12xf32> to vector<1x12xf32>
    %191 = tpu.reciprocal %190 {approx = true} : vector<1x12xf32> -> vector<1x12xf32>
    %192 = vector.broadcast %191 : vector<1x12xf32> to vector<8x12xf32>
    %193 = arith.mulf %188, %192 : vector<8x12xf32>
    %cst_104 = arith.constant dense<0.000000e+00> : vector<8xf32>
    %194 = vector.multi_reduction <add>, %193, %cst_104 [1] : vector<8x12xf32> to vector<8xf32>
    %195 = vector.shape_cast %194 : vector<8xf32> to vector<8x1xf32>
    %c0_105 = arith.constant 0 : index
    %c0_106 = arith.constant 0 : index
    %c0_107 = arith.constant 0 : index
    %c0_108 = arith.constant 0 : index
    %196 = vector.load %arg30[%c0_105, %c0_106, %c0_107, %c0_108] : memref<1x1x8x1xf32, #tpu.memory_space<vmem>>, vector<1x1x8x1xf32>
    %197 = vector.shape_cast %196 : vector<1x1x8x1xf32> to vector<8x1xf32>
    %198 = vector.shape_cast %195 : vector<8x1xf32> to vector<1x1x8x1xf32>
    tpu.vector_store %arg30[%c0_105, %c0_106, %c0_107, %c0_108], %198 {strides = array<i32>} : memref<1x1x8x1xf32, #tpu.memory_space<vmem>>, vector<1x1x8x1xf32>,
    %cst_109 = arith.constant dense<0xFF800000> : vector<1xf32>
    %199 = vector.multi_reduction <maximumf>, %195, %cst_109 [0] : vector<8x1xf32> to vector<1xf32>
    %200 = vector.shape_cast %199 : vector<1xf32> to vector<1x1xf32>
    %201 = vector.broadcast %200 : vector<1x1xf32> to vector<8x1xf32>
    %202 = arith.subf %195, %201 : vector<8x1xf32>
    %203 = math.exp %202 : vector<8x1xf32>
    %cst_110 = arith.constant dense<0.000000e+00> : vector<1xf32>
    %204 = vector.multi_reduction <add>, %203, %cst_110 [0] : vector<8x1xf32> to vector<1xf32>
    %205 = vector.shape_cast %204 : vector<1xf32> to vector<1x1xf32>
    %206 = tpu.reciprocal %205 {approx = true} : vector<1x1xf32> -> vector<1x1xf32>
    %207 = vector.broadcast %206 : vector<1x1xf32> to vector<8x1xf32>
    %208 = arith.mulf %203, %207 : vector<8x1xf32>
    %209 = vector.broadcast %208 : vector<8x1xf32> to vector<8x3xf32>
    %210 = arith.mulf %180, %209 : vector<8x3xf32>
    %cst_111 = arith.constant dense<0.000000e+00> : vector<3xf32>
    %211 = vector.multi_reduction <add>, %210, %cst_111 [0] : vector<8x3xf32> to vector<3xf32>
    %212 = vector.shape_cast %211 : vector<3xf32> to vector<1x3xf32>
    %cst_112 = arith.constant dense<0.000000e+00> : vector<12xf32>
    %213 = vector.multi_reduction <add>, %169, %cst_112 [0] : vector<8x12xf32> to vector<12xf32>
    %214 = vector.shape_cast %213 : vector<12xf32> to vector<1x12xf32>
    %c0_i32_113 = arith.constant 0 : i32
    %215 = arith.cmpi eq, %arg1, %c0_i32_113 : i32
    %216 = arith.extui %215 : i1 to i32
    %c0_i32_114 = arith.constant 0 : i32
    %217 = arith.cmpi ne, %216, %c0_i32_114 : i32
    scf.if %217 {
      %c0_119 = arith.constant 0 : index
      %c0_120 = arith.constant 0 : index
      %c0_121 = arith.constant 0 : index
      %224 = vector.load %arg31[%c0_119, %c0_120, %c0_121] : memref<1x1x3xf32, #tpu.memory_space<vmem>>, vector<1x1x3xf32>
      %225 = vector.shape_cast %224 : vector<1x1x3xf32> to vector<1x3xf32>
      %226 = vector.shape_cast %212 : vector<1x3xf32> to vector<1x1x3xf32>
      tpu.vector_store %arg31[%c0_119, %c0_120, %c0_121], %226 {strides = array<i32>} : memref<1x1x3xf32, #tpu.memory_space<vmem>>, vector<1x1x3xf32>,
      %c0_122 = arith.constant 0 : index
      %c0_123 = arith.constant 0 : index
      %c0_124 = arith.constant 0 : index
      %227 = vector.load %arg32[%c0_122, %c0_123, %c0_124] : memref<1x1x12xf32, #tpu.memory_space<vmem>>, vector<1x1x12xf32>
      %228 = vector.shape_cast %227 : vector<1x1x12xf32> to vector<1x12xf32>
      %229 = vector.shape_cast %214 : vector<1x12xf32> to vector<1x1x12xf32>
      tpu.vector_store %arg32[%c0_122, %c0_123, %c0_124], %229 {strides = array<i32>} : memref<1x1x12xf32, #tpu.memory_space<vmem>>, vector<1x1x12xf32>,
    } else {
    }
    %c0_i32_115 = arith.constant 0 : i32
    %218 = arith.cmpi sgt, %arg1, %c0_i32_115 : i32
    %219 = arith.extui %218 : i1 to i32
    %c0_i32_116 = arith.constant 0 : i32
    %220 = arith.cmpi ne, %219, %c0_i32_116 : i32
    scf.if %220 {
      %c0_119 = arith.constant 0 : index
      %c0_120 = arith.constant 0 : index
      %c0_121 = arith.constant 0 : index
      %224 = vector.load %arg31[%c0_119, %c0_120, %c0_121] : memref<1x1x3xf32, #tpu.memory_space<vmem>>, vector<1x1x3xf32>
      %225 = vector.shape_cast %224 : vector<1x1x3xf32> to vector<1x3xf32>
      %226 = arith.addf %225, %212 : vector<1x3xf32>
      %c0_122 = arith.constant 0 : index
      %c0_123 = arith.constant 0 : index
      %c0_124 = arith.constant 0 : index
      %227 = vector.load %arg31[%c0_122, %c0_123, %c0_124] : memref<1x1x3xf32, #tpu.memory_space<vmem>>, vector<1x1x3xf32>
      %228 = vector.shape_cast %227 : vector<1x1x3xf32> to vector<1x3xf32>
      %229 = vector.shape_cast %226 : vector<1x3xf32> to vector<1x1x3xf32>
      tpu.vector_store %arg31[%c0_122, %c0_123, %c0_124], %229 {strides = array<i32>} : memref<1x1x3xf32, #tpu.memory_space<vmem>>, vector<1x1x3xf32>,
      %c0_125 = arith.constant 0 : index
      %c0_126 = arith.constant 0 : index
      %c0_127 = arith.constant 0 : index
      %230 = vector.load %arg32[%c0_125, %c0_126, %c0_127] : memref<1x1x12xf32, #tpu.memory_space<vmem>>, vector<1x1x12xf32>
      %231 = vector.shape_cast %230 : vector<1x1x12xf32> to vector<1x12xf32>
      %232 = arith.addf %231, %214 : vector<1x12xf32>
      %c0_128 = arith.constant 0 : index
      %c0_129 = arith.constant 0 : index
      %c0_130 = arith.constant 0 : index
      %233 = vector.load %arg32[%c0_128, %c0_129, %c0_130] : memref<1x1x12xf32, #tpu.memory_space<vmem>>, vector<1x1x12xf32>
      %234 = vector.shape_cast %233 : vector<1x1x12xf32> to vector<1x12xf32>
      %235 = vector.shape_cast %232 : vector<1x12xf32> to vector<1x1x12xf32>
      tpu.vector_store %arg32[%c0_128, %c0_129, %c0_130], %235 {strides = array<i32>} : memref<1x1x12xf32, #tpu.memory_space<vmem>>, vector<1x1x12xf32>,
    } else {
    }
    %c1_i32_117 = arith.constant 1 : i32
    %221 = arith.cmpi eq, %arg1, %c1_i32_117 : i32
    %222 = arith.extui %221 : i1 to i32
    %c0_i32_118 = arith.constant 0 : i32
    %223 = arith.cmpi ne, %222, %c0_i32_118 : i32
    scf.if %223 {
      %c0_119 = arith.constant 0 : index
      %c0_120 = arith.constant 0 : index
      %c0_121 = arith.constant 0 : index
      %224 = vector.load %arg32[%c0_119, %c0_120, %c0_121] : memref<1x1x12xf32, #tpu.memory_space<vmem>>, vector<1x1x12xf32>
      %225 = vector.shape_cast %224 : vector<1x1x12xf32> to vector<1x12xf32>
      %cst_122 = arith.constant 6.250000e-02 : f32
      %226 = vector.broadcast %cst_122 : f32 to vector<1x12xf32>
      %227 = arith.mulf %225, %226 : vector<1x12xf32>
      %c0_123 = arith.constant 0 : index
      %c0_124 = arith.constant 0 : index
      %c0_125 = arith.constant 0 : index
      %228 = vector.load %arg32[%c0_123, %c0_124, %c0_125] : memref<1x1x12xf32, #tpu.memory_space<vmem>>, vector<1x1x12xf32>
      %229 = vector.shape_cast %228 : vector<1x1x12xf32> to vector<1x12xf32>
      %230 = vector.shape_cast %227 : vector<1x12xf32> to vector<1x1x12xf32>
      tpu.vector_store %arg32[%c0_123, %c0_124, %c0_125], %230 {strides = array<i32>} : memref<1x1x12xf32, #tpu.memory_space<vmem>>, vector<1x1x12xf32>,
    } else {
    }
    return
  }
  func.func @transform_0(%arg0: i32, %arg1: i32) -> (i32, i32, i32, i32) {
    %c0_i32 = arith.constant 0 : i32
    %c0_i32_0 = arith.constant 0 : i32
    %c0_i32_1 = arith.constant 0 : i32
    return %arg0, %arg1, %c0_i32, %c0_i32_0 : i32, i32, i32, i32
  }
  func.func @transform_1(%arg0: i32, %arg1: i32) -> (i32, i32) {
    %c0_i32 = arith.constant 0 : i32
    %c0_i32_0 = arith.constant 0 : i32
    %c0_i32_1 = arith.constant 0 : i32
    return %c0_i32, %c0_i32_0 : i32, i32
  }
  func.func @transform_2(%arg0: i32, %arg1: i32) -> (i32, i32) {
    %c0_i32 = arith.constant 0 : i32
    %c0_i32_0 = arith.constant 0 : i32
    %c0_i32_1 = arith.constant 0 : i32
    return %c0_i32, %c0_i32_0 : i32, i32
  }
  func.func @transform_3(%arg0: i32, %arg1: i32) -> (i32, i32) {
    %c0_i32 = arith.constant 0 : i32
    %c0_i32_0 = arith.constant 0 : i32
    %c0_i32_1 = arith.constant 0 : i32
    return %c0_i32, %c0_i32_0 : i32, i32
  }
  func.func @transform_4(%arg0: i32, %arg1: i32) -> (i32, i32) {
    %c0_i32 = arith.constant 0 : i32
    %c0_i32_0 = arith.constant 0 : i32
    %c0_i32_1 = arith.constant 0 : i32
    return %c0_i32, %c0_i32_0 : i32, i32
  }
  func.func @transform_5(%arg0: i32, %arg1: i32) -> (i32, i32) {
    %c0_i32 = arith.constant 0 : i32
    %c0_i32_0 = arith.constant 0 : i32
    %c0_i32_1 = arith.constant 0 : i32
    return %c0_i32, %c0_i32_0 : i32, i32
  }
  func.func @transform_6(%arg0: i32, %arg1: i32) -> (i32, i32) {
    %c0_i32 = arith.constant 0 : i32
    %c0_i32_0 = arith.constant 0 : i32
    %c0_i32_1 = arith.constant 0 : i32
    return %c0_i32, %c0_i32_0 : i32, i32
  }
  func.func @transform_7(%arg0: i32, %arg1: i32) -> (i32, i32) {
    %c0_i32 = arith.constant 0 : i32
    %c0_i32_0 = arith.constant 0 : i32
    %c0_i32_1 = arith.constant 0 : i32
    return %c0_i32, %c0_i32_0 : i32, i32
  }
  func.func @transform_8(%arg0: i32, %arg1: i32) -> (i32, i32) {
    %c0_i32 = arith.constant 0 : i32
    %c0_i32_0 = arith.constant 0 : i32
    %c0_i32_1 = arith.constant 0 : i32
    return %c0_i32, %c0_i32_0 : i32, i32
  }
  func.func @transform_9(%arg0: i32, %arg1: i32) -> (i32, i32) {
    %c0_i32 = arith.constant 0 : i32
    %c0_i32_0 = arith.constant 0 : i32
    %c0_i32_1 = arith.constant 0 : i32
    return %c0_i32, %c0_i32_0 : i32, i32
  }
  func.func @transform_10(%arg0: i32, %arg1: i32) -> (i32, i32) {
    %c0_i32 = arith.constant 0 : i32
    %c0_i32_0 = arith.constant 0 : i32
    %c0_i32_1 = arith.constant 0 : i32
    return %c0_i32, %c0_i32_0 : i32, i32
  }
  func.func @transform_11(%arg0: i32, %arg1: i32) -> (i32, i32) {
    %c0_i32 = arith.constant 0 : i32
    %c0_i32_0 = arith.constant 0 : i32
    %c0_i32_1 = arith.constant 0 : i32
    return %c0_i32, %c0_i32_0 : i32, i32
  }
  func.func @transform_12(%arg0: i32, %arg1: i32) -> (i32, i32) {
    %c0_i32 = arith.constant 0 : i32
    %c0_i32_0 = arith.constant 0 : i32
    %c0_i32_1 = arith.constant 0 : i32
    return %c0_i32, %c0_i32_0 : i32, i32
  }
  func.func @transform_13(%arg0: i32, %arg1: i32) -> (i32, i32) {
    %c0_i32 = arith.constant 0 : i32
    %c0_i32_0 = arith.constant 0 : i32
    %c0_i32_1 = arith.constant 0 : i32
    return %c0_i32, %c0_i32_0 : i32, i32
  }
  func.func @transform_14(%arg0: i32, %arg1: i32) -> (i32, i32) {
    %c0_i32 = arith.constant 0 : i32
    %c0_i32_0 = arith.constant 0 : i32
    %c0_i32_1 = arith.constant 0 : i32
    return %c0_i32, %c0_i32_0 : i32, i32
  }
  func.func @transform_15(%arg0: i32, %arg1: i32) -> (i32, i32) {
    %c0_i32 = arith.constant 0 : i32
    %c0_i32_0 = arith.constant 0 : i32
    %c0_i32_1 = arith.constant 0 : i32
    return %c0_i32, %c0_i32_0 : i32, i32
  }
  func.func @transform_16(%arg0: i32, %arg1: i32) -> (i32, i32) {
    %c0_i32 = arith.constant 0 : i32
    %c0_i32_0 = arith.constant 0 : i32
    %c0_i32_1 = arith.constant 0 : i32
    return %c0_i32, %c0_i32_0 : i32, i32
  }
  func.func @transform_17(%arg0: i32, %arg1: i32) -> (i32, i32) {
    %c0_i32 = arith.constant 0 : i32
    %c0_i32_0 = arith.constant 0 : i32
    %c0_i32_1 = arith.constant 0 : i32
    return %c0_i32, %c0_i32_0 : i32, i32
  }
  func.func @transform_18(%arg0: i32, %arg1: i32) -> (i32, i32) {
    %c0_i32 = arith.constant 0 : i32
    %c0_i32_0 = arith.constant 0 : i32
    %c0_i32_1 = arith.constant 0 : i32
    return %c0_i32, %c0_i32_0 : i32, i32
  }
  func.func @transform_19(%arg0: i32, %arg1: i32) -> (i32, i32) {
    %c0_i32 = arith.constant 0 : i32
    %c0_i32_0 = arith.constant 0 : i32
    %c0_i32_1 = arith.constant 0 : i32
    return %c0_i32, %c0_i32_0 : i32, i32
  }
  func.func @transform_20(%arg0: i32, %arg1: i32) -> (i32, i32) {
    %c0_i32 = arith.constant 0 : i32
    %c0_i32_0 = arith.constant 0 : i32
    %c0_i32_1 = arith.constant 0 : i32
    return %c0_i32, %c0_i32_0 : i32, i32
  }
  func.func @transform_21(%arg0: i32, %arg1: i32) -> (i32, i32) {
    %c0_i32 = arith.constant 0 : i32
    %c0_i32_0 = arith.constant 0 : i32
    %c0_i32_1 = arith.constant 0 : i32
    return %c0_i32, %c0_i32_0 : i32, i32
  }
  func.func @transform_22(%arg0: i32, %arg1: i32) -> (i32, i32) {
    %c0_i32 = arith.constant 0 : i32
    %c0_i32_0 = arith.constant 0 : i32
    %c0_i32_1 = arith.constant 0 : i32
    return %c0_i32, %c0_i32_0 : i32, i32
  }
  func.func @transform_23(%arg0: i32, %arg1: i32) -> (i32, i32) {
    %c0_i32 = arith.constant 0 : i32
    %c0_i32_0 = arith.constant 0 : i32
    %c0_i32_1 = arith.constant 0 : i32
    return %c0_i32, %c0_i32_0 : i32, i32
  }
  func.func @transform_24(%arg0: i32, %arg1: i32) -> (i32, i32) {
    %c0_i32 = arith.constant 0 : i32
    %c0_i32_0 = arith.constant 0 : i32
    %c0_i32_1 = arith.constant 0 : i32
    return %c0_i32, %c0_i32_0 : i32, i32
  }
  func.func @transform_25(%arg0: i32, %arg1: i32) -> (i32, i32) {
    %c0_i32 = arith.constant 0 : i32
    %c0_i32_0 = arith.constant 0 : i32
    %c0_i32_1 = arith.constant 0 : i32
    return %c0_i32, %c0_i32_0 : i32, i32
  }
  func.func @transform_26(%arg0: i32, %arg1: i32) -> (i32, i32) {
    %c0_i32 = arith.constant 0 : i32
    %c0_i32_0 = arith.constant 0 : i32
    %c0_i32_1 = arith.constant 0 : i32
    return %c0_i32, %c0_i32_0 : i32, i32
  }
  func.func @transform_27(%arg0: i32, %arg1: i32) -> (i32, i32, i32, i32) {
    %c0_i32 = arith.constant 0 : i32
    %c0_i32_0 = arith.constant 0 : i32
    %c0_i32_1 = arith.constant 0 : i32
    return %arg0, %arg1, %c0_i32, %c0_i32_0 : i32, i32, i32, i32
  }
  func.func @transform_28(%arg0: i32, %arg1: i32) -> (i32, i32, i32, i32) {
    %c0_i32 = arith.constant 0 : i32
    %c0_i32_0 = arith.constant 0 : i32
    %c0_i32_1 = arith.constant 0 : i32
    return %arg0, %arg1, %c0_i32, %c0_i32_0 : i32, i32, i32, i32
  }
  func.func @transform_29(%arg0: i32, %arg1: i32) -> (i32, i32, i32) {
    %c0_i32 = arith.constant 0 : i32
    %c0_i32_0 = arith.constant 0 : i32
    %c0_i32_1 = arith.constant 0 : i32
    return %arg0, %c0_i32, %c0_i32_0 : i32, i32, i32
  }
  func.func @transform_30(%arg0: i32, %arg1: i32) -> (i32, i32, i32) {
    %c0_i32 = arith.constant 0 : i32
    %c0_i32_0 = arith.constant 0 : i32
    %c0_i32_1 = arith.constant 0 : i32
    return %arg0, %c0_i32, %c0_i32_0 : i32, i32, i32
  }
}

module attributes {stable_mosaic.version = 11 : i64} {
  func.func @_head_kernel(%arg0: memref<2x12xf32, #tpu.memory_space<vmem>>, %arg1: memref<12x1024xbf16, #tpu.memory_space<vmem>>, %arg2: memref<1x1024xf32, #tpu.memory_space<vmem>>, %arg3: memref<1x1024xf32, #tpu.memory_space<vmem>>, %arg4: memref<1x1024xf32, #tpu.memory_space<vmem>>, %arg5: memref<1024x1024xbf16, #tpu.memory_space<vmem>>, %arg6: memref<1x1024xf32, #tpu.memory_space<vmem>>, %arg7: memref<1x1024xf32, #tpu.memory_space<vmem>>, %arg8: memref<1x1024xf32, #tpu.memory_space<vmem>>, %arg9: memref<1024x3xbf16, #tpu.memory_space<vmem>>, %arg10: memref<1x3xf32, #tpu.memory_space<vmem>>, %arg11: memref<2x3xf32, #tpu.memory_space<vmem>>, %arg12: memref<2x3xf32, #tpu.memory_space<vmem>>) attributes {dimension_semantics = [], scalar_prefetch = 0 : i64, scratch_operands = 0 : i64, tpu.core_type = #tpu.core_type<tc>} {
    %c0 = arith.constant 0 : index
    %c0_0 = arith.constant 0 : index
    %0 = vector.load %arg0[%c0, %c0_0] : memref<2x12xf32, #tpu.memory_space<vmem>>, vector<2x12xf32>
    %1 = arith.truncf %0 : vector<2x12xf32> to vector<2x12xbf16>
    %c0_1 = arith.constant 0 : index
    %c0_2 = arith.constant 0 : index
    %2 = vector.load %arg1[%c0_1, %c0_2] : memref<12x1024xbf16, #tpu.memory_space<vmem>>, vector<12x1024xbf16>
    %cst = arith.constant dense<0.000000e+00> : vector<2x1024xf32>
    %3 = tpu.matmul %1, %2, %cst {dimension_numbers = #tpu.dot_dimension_numbers<[1], [0], [0], [1], [0, 0, 1, 1], [], []>} : vector<2x12xbf16>, vector<12x1024xbf16>, vector<2x1024xf32> -> vector<2x1024xf32>
    %c0_3 = arith.constant 0 : index
    %c0_4 = arith.constant 0 : index
    %4 = vector.load %arg2[%c0_3, %c0_4] : memref<1x1024xf32, #tpu.memory_space<vmem>>, vector<1x1024xf32>
    %5 = vector.broadcast %4 : vector<1x1024xf32> to vector<2x1024xf32>
    %6 = arith.addf %3, %5 : vector<2x1024xf32>
    %c0_5 = arith.constant 0 : index
    %c0_6 = arith.constant 0 : index
    %7 = vector.load %arg3[%c0_5, %c0_6] : memref<1x1024xf32, #tpu.memory_space<vmem>>, vector<1x1024xf32>
    %8 = vector.broadcast %7 : vector<1x1024xf32> to vector<2x1024xf32>
    %9 = arith.mulf %6, %8 : vector<2x1024xf32>
    %c0_7 = arith.constant 0 : index
    %c0_8 = arith.constant 0 : index
    %10 = vector.load %arg4[%c0_7, %c0_8] : memref<1x1024xf32, #tpu.memory_space<vmem>>, vector<1x1024xf32>
    %11 = vector.broadcast %10 : vector<1x1024xf32> to vector<2x1024xf32>
    %12 = arith.addf %9, %11 : vector<2x1024xf32>
    %cst_9 = arith.constant 0.000000e+00 : f32
    %13 = vector.broadcast %cst_9 : f32 to vector<2x1024xf32>
    %14 = arith.maximumf %12, %13 : vector<2x1024xf32>
    %15 = arith.truncf %14 : vector<2x1024xf32> to vector<2x1024xbf16>
    %c0_10 = arith.constant 0 : index
    %c0_11 = arith.constant 0 : index
    %16 = vector.load %arg5[%c0_10, %c0_11] : memref<1024x1024xbf16, #tpu.memory_space<vmem>>, vector<1024x1024xbf16>
    %cst_12 = arith.constant dense<0.000000e+00> : vector<2x1024xf32>
    %17 = tpu.matmul %15, %16, %cst_12 {dimension_numbers = #tpu.dot_dimension_numbers<[1], [0], [0], [1], [0, 0, 1, 1], [], []>} : vector<2x1024xbf16>, vector<1024x1024xbf16>, vector<2x1024xf32> -> vector<2x1024xf32>
    %c0_13 = arith.constant 0 : index
    %c0_14 = arith.constant 0 : index
    %18 = vector.load %arg6[%c0_13, %c0_14] : memref<1x1024xf32, #tpu.memory_space<vmem>>, vector<1x1024xf32>
    %19 = vector.broadcast %18 : vector<1x1024xf32> to vector<2x1024xf32>
    %20 = arith.addf %17, %19 : vector<2x1024xf32>
    %c0_15 = arith.constant 0 : index
    %c0_16 = arith.constant 0 : index
    %21 = vector.load %arg7[%c0_15, %c0_16] : memref<1x1024xf32, #tpu.memory_space<vmem>>, vector<1x1024xf32>
    %22 = vector.broadcast %21 : vector<1x1024xf32> to vector<2x1024xf32>
    %23 = arith.mulf %20, %22 : vector<2x1024xf32>
    %c0_17 = arith.constant 0 : index
    %c0_18 = arith.constant 0 : index
    %24 = vector.load %arg8[%c0_17, %c0_18] : memref<1x1024xf32, #tpu.memory_space<vmem>>, vector<1x1024xf32>
    %25 = vector.broadcast %24 : vector<1x1024xf32> to vector<2x1024xf32>
    %26 = arith.addf %23, %25 : vector<2x1024xf32>
    %cst_19 = arith.constant 0.000000e+00 : f32
    %27 = vector.broadcast %cst_19 : f32 to vector<2x1024xf32>
    %28 = arith.maximumf %26, %27 : vector<2x1024xf32>
    %29 = arith.truncf %28 : vector<2x1024xf32> to vector<2x1024xbf16>
    %c0_20 = arith.constant 0 : index
    %c0_21 = arith.constant 0 : index
    %30 = vector.load %arg9[%c0_20, %c0_21] : memref<1024x3xbf16, #tpu.memory_space<vmem>>, vector<1024x3xbf16>
    %cst_22 = arith.constant dense<0.000000e+00> : vector<2x3xf32>
    %31 = tpu.matmul %29, %30, %cst_22 {dimension_numbers = #tpu.dot_dimension_numbers<[1], [0], [0], [1], [0, 0, 1, 1], [], []>} : vector<2x1024xbf16>, vector<1024x3xbf16>, vector<2x3xf32> -> vector<2x3xf32>
    %c0_23 = arith.constant 0 : index
    %c0_24 = arith.constant 0 : index
    %32 = vector.load %arg10[%c0_23, %c0_24] : memref<1x3xf32, #tpu.memory_space<vmem>>, vector<1x3xf32>
    %33 = vector.broadcast %32 : vector<1x3xf32> to vector<2x3xf32>
    %34 = arith.addf %31, %33 : vector<2x3xf32>
    %c0_25 = arith.constant 0 : index
    %c0_26 = arith.constant 0 : index
    %35 = vector.load %arg11[%c0_25, %c0_26] : memref<2x3xf32, #tpu.memory_space<vmem>>, vector<2x3xf32>
    %36 = arith.addf %34, %35 : vector<2x3xf32>
    %cst_27 = arith.constant 5.000000e-01 : f32
    %37 = vector.broadcast %cst_27 : f32 to vector<2x3xf32>
    %38 = arith.mulf %36, %37 : vector<2x3xf32>
    %c0_28 = arith.constant 0 : index
    %c0_29 = arith.constant 0 : index
    %39 = vector.load %arg12[%c0_28, %c0_29] : memref<2x3xf32, #tpu.memory_space<vmem>>, vector<2x3xf32>
    tpu.vector_store %arg12[%c0_28, %c0_29], %38 {strides = array<i32>} : memref<2x3xf32, #tpu.memory_space<vmem>>, vector<2x3xf32>,
    return
  }
}

module attributes {stable_mosaic.version = 11 : i64} {
  func.func @_stem_block1_kernel(%arg0: i32, %arg1: memref<256x4xf32, #tpu.memory_space<vmem>>, %arg2: memref<1x4xf32, #tpu.memory_space<vmem>>, %arg3: memref<1x4xf32, #tpu.memory_space<vmem>>, %arg4: memref<12x4xbf16, #tpu.memory_space<vmem>>, %arg5: memref<1x4xf32, #tpu.memory_space<vmem>>, %arg6: memref<1x4xf32, #tpu.memory_space<vmem>>, %arg7: memref<1x4xf32, #tpu.memory_space<vmem>>, %arg8: memref<12x8xbf16, #tpu.memory_space<vmem>>, %arg9: memref<1x8xf32, #tpu.memory_space<vmem>>, %arg10: memref<1x8xf32, #tpu.memory_space<vmem>>, %arg11: memref<1x8xf32, #tpu.memory_space<vmem>>, %arg12: memref<24x8xbf16, #tpu.memory_space<vmem>>, %arg13: memref<1x8xf32, #tpu.memory_space<vmem>>, %arg14: memref<4x8xbf16, #tpu.memory_space<vmem>>, %arg15: memref<1x8xf32, #tpu.memory_space<vmem>>, %arg16: memref<64x8xf32, #tpu.memory_space<vmem>>, %arg17: memref<256x8xf32, #tpu.memory_space<vmem>>) attributes {dimension_semantics = [#tpu.dimension_semantics<parallel>], iteration_bounds = array<i64: 2>, scalar_prefetch = 0 : i64, scratch_operands = 1 : i64, tpu.core_type = #tpu.core_type<tc>, window_params = [{transform_indices = @transform_0, window_bounds = array<i64: 256, 4>}, {pipeline_mode = #tpu.pipeline_mode<synchronous>, transform_indices = @transform_1, window_bounds = array<i64: 1, 4>}, {pipeline_mode = #tpu.pipeline_mode<synchronous>, transform_indices = @transform_2, window_bounds = array<i64: 1, 4>}, {pipeline_mode = #tpu.pipeline_mode<synchronous>, transform_indices = @transform_3, window_bounds = array<i64: 12, 4>}, {pipeline_mode = #tpu.pipeline_mode<synchronous>, transform_indices = @transform_4, window_bounds = array<i64: 1, 4>}, {pipeline_mode = #tpu.pipeline_mode<synchronous>, transform_indices = @transform_5, window_bounds = array<i64: 1, 4>}, {pipeline_mode = #tpu.pipeline_mode<synchronous>, transform_indices = @transform_6, window_bounds = array<i64: 1, 4>}, {pipeline_mode = #tpu.pipeline_mode<synchronous>, transform_indices = @transform_7, window_bounds = array<i64: 12, 8>}, {pipeline_mode = #tpu.pipeline_mode<synchronous>, transform_indices = @transform_8, window_bounds = array<i64: 1, 8>}, {pipeline_mode = #tpu.pipeline_mode<synchronous>, transform_indices = @transform_9, window_bounds = array<i64: 1, 8>}, {pipeline_mode = #tpu.pipeline_mode<synchronous>, transform_indices = @transform_10, window_bounds = array<i64: 1, 8>}, {pipeline_mode = #tpu.pipeline_mode<synchronous>, transform_indices = @transform_11, window_bounds = array<i64: 24, 8>}, {pipeline_mode = #tpu.pipeline_mode<synchronous>, transform_indices = @transform_12, window_bounds = array<i64: 1, 8>}, {pipeline_mode = #tpu.pipeline_mode<synchronous>, transform_indices = @transform_13, window_bounds = array<i64: 4, 8>}, {pipeline_mode = #tpu.pipeline_mode<synchronous>, transform_indices = @transform_14, window_bounds = array<i64: 1, 8>}, {transform_indices = @transform_15, window_bounds = array<i64: 64, 8>}]} {
    %0 = tpu.iota {dimensions = array<i32: 0>} : vector<256x1xi32>
    %c128_i32 = arith.constant 128 : i32
    %c0_i32 = arith.constant 0 : i32
    %1 = arith.cmpi eq, %c128_i32, %c0_i32 : i32
    %c1_i32 = arith.constant 1 : i32
    %2 = arith.select %1, %c1_i32, %c128_i32 : i32
    %3 = vector.broadcast %2 : i32 to vector<256x1xi32>
    %4 = arith.remsi %0, %3 : vector<256x1xi32>
    %c0_i32_0 = arith.constant 0 : i32
    %5 = vector.broadcast %c0_i32_0 : i32 to vector<256x1xi32>
    %6 = arith.cmpi ne, %4, %5 : vector<256x1xi32>
    %c0_i32_1 = arith.constant 0 : i32
    %7 = vector.broadcast %c0_i32_1 : i32 to vector<256x1xi32>
    %8 = arith.cmpi slt, %4, %7 : vector<256x1xi32>
    %c0_i32_2 = arith.constant 0 : i32
    %9 = arith.cmpi slt, %2, %c0_i32_2 : i32
    %10 = vector.broadcast %9 : i1 to vector<256x1xi1>
    %11 = vector.broadcast %10 : vector<256x1xi1> to vector<256x1xi1>
    %12 = arith.xori %8, %11 : vector<256x1xi1>
    %13 = arith.andi %12, %6 : vector<256x1xi1>
    %14 = vector.broadcast %2 : i32 to vector<256x1xi32>
    %15 = arith.addi %4, %14 : vector<256x1xi32>
    %16 = arith.select %13, %15, %4 : vector<256x1xi1>, vector<256x1xi32>
    %c0_i32_3 = arith.constant 0 : i32
    %17 = vector.broadcast %c0_i32_3 : i32 to vector<256x1xi32>
    %18 = arith.cmpi ne, %16, %17 : vector<256x1xi32>
    %c127_i32 = arith.constant 127 : i32
    %19 = vector.broadcast %c127_i32 : i32 to vector<256x1xi32>
    %20 = arith.cmpi ne, %16, %19 : vector<256x1xi32>
    %c0 = arith.constant 0 : index
    %c0_4 = arith.constant 0 : index
    %21 = vector.load %arg1[%c0, %c0_4] : memref<256x4xf32, #tpu.memory_space<vmem>>, vector<256x4xf32>
    %c0_5 = arith.constant 0 : index
    %c0_6 = arith.constant 0 : index
    %22 = vector.load %arg2[%c0_5, %c0_6] : memref<1x4xf32, #tpu.memory_space<vmem>>, vector<1x4xf32>
    %23 = vector.broadcast %22 : vector<1x4xf32> to vector<256x4xf32>
    %24 = arith.mulf %21, %23 : vector<256x4xf32>
    %c0_7 = arith.constant 0 : index
    %c0_8 = arith.constant 0 : index
    %25 = vector.load %arg3[%c0_7, %c0_8] : memref<1x4xf32, #tpu.memory_space<vmem>>, vector<1x4xf32>
    %26 = vector.broadcast %25 : vector<1x4xf32> to vector<256x4xf32>
    %27 = arith.addf %24, %26 : vector<256x4xf32>
    %c0_9 = arith.constant 0 : index
    %c0_10 = arith.constant 0 : index
    %28 = vector.load %arg4[%c0_9, %c0_10] : memref<12x4xbf16, #tpu.memory_space<vmem>>, vector<12x4xbf16>
    %c0_11 = arith.constant 0 : index
    %c0_12 = arith.constant 0 : index
    %29 = vector.load %arg5[%c0_11, %c0_12] : memref<1x4xf32, #tpu.memory_space<vmem>>, vector<1x4xf32>
    %c1_i32_13 = arith.constant 1 : i32
    %30 = tpu.dynamic_rotate %27 by %c1_i32_13 dim 0 : vector<256x4xf32>, i32 -> vector<256x4xf32>
    %cst = arith.constant 0.000000e+00 : f32
    %31 = vector.shape_cast %18 : vector<256x1xi1> to vector<256x1xi1>
    %32 = vector.broadcast %31 : vector<256x1xi1> to vector<256x4xi1>
    %33 = vector.broadcast %cst : f32 to vector<256x4xf32>
    %34 = arith.select %32, %30, %33 : vector<256x4xi1>, vector<256x4xf32>
    %c255_i32 = arith.constant 255 : i32
    %35 = tpu.dynamic_rotate %27 by %c255_i32 dim 0 : vector<256x4xf32>, i32 -> vector<256x4xf32>
    %cst_14 = arith.constant 0.000000e+00 : f32
    %36 = vector.shape_cast %20 : vector<256x1xi1> to vector<256x1xi1>
    %37 = vector.broadcast %36 : vector<256x1xi1> to vector<256x4xi1>
    %38 = vector.broadcast %cst_14 : f32 to vector<256x4xf32>
    %39 = arith.select %37, %35, %38 : vector<256x4xi1>, vector<256x4xf32>
    %40 = tpu.concatenate %34, %27, %39 in 1 : vector<256x4xf32>, vector<256x4xf32>, vector<256x4xf32> -> vector<256x12xf32>
    %41 = arith.truncf %40 : vector<256x12xf32> to vector<256x12xbf16>
    %cst_15 = arith.constant dense<0.000000e+00> : vector<256x4xf32>
    %42 = tpu.matmul %41, %28, %cst_15 {dimension_numbers = #tpu.dot_dimension_numbers<[1], [0], [0], [1], [0, 0, 1, 1], [], []>} : vector<256x12xbf16>, vector<12x4xbf16>, vector<256x4xf32> -> vector<256x4xf32>
    %43 = vector.broadcast %29 : vector<1x4xf32> to vector<256x4xf32>
    %44 = arith.addf %42, %43 : vector<256x4xf32>
    %c0_16 = arith.constant 0 : index
    %c0_17 = arith.constant 0 : index
    %45 = vector.load %arg6[%c0_16, %c0_17] : memref<1x4xf32, #tpu.memory_space<vmem>>, vector<1x4xf32>
    %c0_18 = arith.constant 0 : index
    %c0_19 = arith.constant 0 : index
    %46 = vector.load %arg7[%c0_18, %c0_19] : memref<1x4xf32, #tpu.memory_space<vmem>>, vector<1x4xf32>
    %c0_20 = arith.constant 0 : index
    %c0_21 = arith.constant 0 : index
    %47 = vector.load %arg8[%c0_20, %c0_21] : memref<12x8xbf16, #tpu.memory_space<vmem>>, vector<12x8xbf16>
    %c0_22 = arith.constant 0 : index
    %c0_23 = arith.constant 0 : index
    %48 = vector.load %arg9[%c0_22, %c0_23] : memref<1x8xf32, #tpu.memory_space<vmem>>, vector<1x8xf32>
    %c0_24 = arith.constant 0 : index
    %c0_25 = arith.constant 0 : index
    %49 = vector.load %arg10[%c0_24, %c0_25] : memref<1x8xf32, #tpu.memory_space<vmem>>, vector<1x8xf32>
    %c0_26 = arith.constant 0 : index
    %c0_27 = arith.constant 0 : index
    %50 = vector.load %arg11[%c0_26, %c0_27] : memref<1x8xf32, #tpu.memory_space<vmem>>, vector<1x8xf32>
    %c0_28 = arith.constant 0 : index
    %c0_29 = arith.constant 0 : index
    %51 = vector.load %arg12[%c0_28, %c0_29] : memref<24x8xbf16, #tpu.memory_space<vmem>>, vector<24x8xbf16>
    %c0_30 = arith.constant 0 : index
    %c0_31 = arith.constant 0 : index
    %52 = vector.load %arg13[%c0_30, %c0_31] : memref<1x8xf32, #tpu.memory_space<vmem>>, vector<1x8xf32>
    %c0_32 = arith.constant 0 : index
    %c0_33 = arith.constant 0 : index
    %53 = vector.load %arg14[%c0_32, %c0_33] : memref<4x8xbf16, #tpu.memory_space<vmem>>, vector<4x8xbf16>
    %c0_34 = arith.constant 0 : index
    %c0_35 = arith.constant 0 : index
    %54 = vector.load %arg15[%c0_34, %c0_35] : memref<1x8xf32, #tpu.memory_space<vmem>>, vector<1x8xf32>
    %55 = vector.broadcast %45 : vector<1x4xf32> to vector<256x4xf32>
    %56 = arith.mulf %44, %55 : vector<256x4xf32>
    %57 = vector.broadcast %46 : vector<1x4xf32> to vector<256x4xf32>
    %58 = arith.addf %56, %57 : vector<256x4xf32>
    %c1_i32_36 = arith.constant 1 : i32
    %59 = tpu.dynamic_rotate %58 by %c1_i32_36 dim 0 : vector<256x4xf32>, i32 -> vector<256x4xf32>
    %cst_37 = arith.constant 0.000000e+00 : f32
    %60 = vector.shape_cast %18 : vector<256x1xi1> to vector<256x1xi1>
    %61 = vector.broadcast %60 : vector<256x1xi1> to vector<256x4xi1>
    %62 = vector.broadcast %cst_37 : f32 to vector<256x4xf32>
    %63 = arith.select %61, %59, %62 : vector<256x4xi1>, vector<256x4xf32>
    %c255_i32_38 = arith.constant 255 : i32
    %64 = tpu.dynamic_rotate %58 by %c255_i32_38 dim 0 : vector<256x4xf32>, i32 -> vector<256x4xf32>
    %cst_39 = arith.constant 0.000000e+00 : f32
    %65 = vector.shape_cast %20 : vector<256x1xi1> to vector<256x1xi1>
    %66 = vector.broadcast %65 : vector<256x1xi1> to vector<256x4xi1>
    %67 = vector.broadcast %cst_39 : f32 to vector<256x4xf32>
    %68 = arith.select %66, %64, %67 : vector<256x4xi1>, vector<256x4xf32>
    %69 = tpu.concatenate %63, %58, %68 in 1 : vector<256x4xf32>, vector<256x4xf32>, vector<256x4xf32> -> vector<256x12xf32>
    %70 = arith.truncf %69 : vector<256x12xf32> to vector<256x12xbf16>
    %cst_40 = arith.constant dense<0.000000e+00> : vector<256x8xf32>
    %71 = tpu.matmul %70, %47, %cst_40 {dimension_numbers = #tpu.dot_dimension_numbers<[1], [0], [0], [1], [0, 0, 1, 1], [], []>} : vector<256x12xbf16>, vector<12x8xbf16>, vector<256x8xf32> -> vector<256x8xf32>
    %72 = vector.broadcast %48 : vector<1x8xf32> to vector<256x8xf32>
    %73 = arith.addf %71, %72 : vector<256x8xf32>
    %74 = vector.broadcast %49 : vector<1x8xf32> to vector<256x8xf32>
    %75 = arith.mulf %73, %74 : vector<256x8xf32>
    %76 = vector.broadcast %50 : vector<1x8xf32> to vector<256x8xf32>
    %77 = arith.addf %75, %76 : vector<256x8xf32>
    %cst_41 = arith.constant 0.000000e+00 : f32
    %78 = vector.broadcast %cst_41 : f32 to vector<256x8xf32>
    %79 = arith.maximumf %77, %78 : vector<256x8xf32>
    %c1_i32_42 = arith.constant 1 : i32
    %80 = tpu.dynamic_rotate %79 by %c1_i32_42 dim 0 : vector<256x8xf32>, i32 -> vector<256x8xf32>
    %cst_43 = arith.constant 0.000000e+00 : f32
    %81 = vector.shape_cast %18 : vector<256x1xi1> to vector<256x1xi1>
    %82 = vector.broadcast %81 : vector<256x1xi1> to vector<256x8xi1>
    %83 = vector.broadcast %cst_43 : f32 to vector<256x8xf32>
    %84 = arith.select %82, %80, %83 : vector<256x8xi1>, vector<256x8xf32>
    %c255_i32_44 = arith.constant 255 : i32
    %85 = tpu.dynamic_rotate %79 by %c255_i32_44 dim 0 : vector<256x8xf32>, i32 -> vector<256x8xf32>
    %cst_45 = arith.constant 0.000000e+00 : f32
    %86 = vector.shape_cast %20 : vector<256x1xi1> to vector<256x1xi1>
    %87 = vector.broadcast %86 : vector<256x1xi1> to vector<256x8xi1>
    %88 = vector.broadcast %cst_45 : f32 to vector<256x8xf32>
    %89 = arith.select %87, %85, %88 : vector<256x8xi1>, vector<256x8xf32>
    %90 = tpu.concatenate %84, %79, %89 in 1 : vector<256x8xf32>, vector<256x8xf32>, vector<256x8xf32> -> vector<256x24xf32>
    %91 = arith.truncf %90 : vector<256x24xf32> to vector<256x24xbf16>
    %cst_46 = arith.constant dense<0.000000e+00> : vector<256x8xf32>
    %92 = tpu.matmul %91, %51, %cst_46 {dimension_numbers = #tpu.dot_dimension_numbers<[1], [0], [0], [1], [0, 0, 1, 1], [], []>} : vector<256x24xbf16>, vector<24x8xbf16>, vector<256x8xf32> -> vector<256x8xf32>
    %93 = vector.broadcast %52 : vector<1x8xf32> to vector<256x8xf32>
    %94 = arith.addf %92, %93 : vector<256x8xf32>
    %95 = arith.truncf %44 : vector<256x4xf32> to vector<256x4xbf16>
    %cst_47 = arith.constant dense<0.000000e+00> : vector<256x8xf32>
    %96 = tpu.matmul %95, %53, %cst_47 {dimension_numbers = #tpu.dot_dimension_numbers<[1], [0], [0], [1], [0, 0, 1, 1], [], []>} : vector<256x4xbf16>, vector<4x8xbf16>, vector<256x8xf32> -> vector<256x8xf32>
    %97 = vector.broadcast %54 : vector<1x8xf32> to vector<256x8xf32>
    %98 = arith.addf %96, %97 : vector<256x8xf32>
    %99 = arith.addf %94, %98 : vector<256x8xf32>
    %c0_48 = arith.constant 0 : index
    %c0_49 = arith.constant 0 : index
    %100 = vector.load %arg17[%c0_48, %c0_49] : memref<256x8xf32, #tpu.memory_space<vmem>>, vector<256x8xf32>
    tpu.vector_store %arg17[%c0_48, %c0_49], %99 {strides = array<i32>} : memref<256x8xf32, #tpu.memory_space<vmem>>, vector<256x8xf32>,
    %c0_50 = arith.constant 0 : index
    %c0_51 = arith.constant 0 : index
    %101 = tpu.strided_load %arg17[%c0_50, %c0_51] {strides = array<i32: 4, 1>} : memref<256x8xf32, #tpu.memory_space<vmem>>, vector<64x8xf32>
    %c1 = arith.constant 1 : index
    %c0_52 = arith.constant 0 : index
    %102 = tpu.strided_load %arg17[%c1, %c0_52] {strides = array<i32: 4, 1>} : memref<256x8xf32, #tpu.memory_space<vmem>>, vector<64x8xf32>
    %c2 = arith.constant 2 : index
    %c0_53 = arith.constant 0 : index
    %103 = tpu.strided_load %arg17[%c2, %c0_53] {strides = array<i32: 4, 1>} : memref<256x8xf32, #tpu.memory_space<vmem>>, vector<64x8xf32>
    %c3 = arith.constant 3 : index
    %c0_54 = arith.constant 0 : index
    %104 = tpu.strided_load %arg17[%c3, %c0_54] {strides = array<i32: 4, 1>} : memref<256x8xf32, #tpu.memory_space<vmem>>, vector<64x8xf32>
    %105 = arith.maximumf %101, %102 : vector<64x8xf32>
    %106 = arith.maximumf %103, %104 : vector<64x8xf32>
    %107 = arith.maximumf %105, %106 : vector<64x8xf32>
    %c0_55 = arith.constant 0 : index
    %c0_56 = arith.constant 0 : index
    %108 = vector.load %arg16[%c0_55, %c0_56] : memref<64x8xf32, #tpu.memory_space<vmem>>, vector<64x8xf32>
    tpu.vector_store %arg16[%c0_55, %c0_56], %107 {strides = array<i32>} : memref<64x8xf32, #tpu.memory_space<vmem>>, vector<64x8xf32>,
    return
  }
  func.func @transform_0(%arg0: i32) -> (i32, i32) {
    %c0_i32 = arith.constant 0 : i32
    %c0_i32_0 = arith.constant 0 : i32
    return %arg0, %c0_i32 : i32, i32
  }
  func.func @transform_1(%arg0: i32) -> (i32, i32) {
    %c0_i32 = arith.constant 0 : i32
    %c0_i32_0 = arith.constant 0 : i32
    %c0_i32_1 = arith.constant 0 : i32
    return %c0_i32, %c0_i32_0 : i32, i32
  }
  func.func @transform_2(%arg0: i32) -> (i32, i32) {
    %c0_i32 = arith.constant 0 : i32
    %c0_i32_0 = arith.constant 0 : i32
    %c0_i32_1 = arith.constant 0 : i32
    return %c0_i32, %c0_i32_0 : i32, i32
  }
  func.func @transform_3(%arg0: i32) -> (i32, i32) {
    %c0_i32 = arith.constant 0 : i32
    %c0_i32_0 = arith.constant 0 : i32
    %c0_i32_1 = arith.constant 0 : i32
    return %c0_i32, %c0_i32_0 : i32, i32
  }
  func.func @transform_4(%arg0: i32) -> (i32, i32) {
    %c0_i32 = arith.constant 0 : i32
    %c0_i32_0 = arith.constant 0 : i32
    %c0_i32_1 = arith.constant 0 : i32
    return %c0_i32, %c0_i32_0 : i32, i32
  }
  func.func @transform_5(%arg0: i32) -> (i32, i32) {
    %c0_i32 = arith.constant 0 : i32
    %c0_i32_0 = arith.constant 0 : i32
    %c0_i32_1 = arith.constant 0 : i32
    return %c0_i32, %c0_i32_0 : i32, i32
  }
  func.func @transform_6(%arg0: i32) -> (i32, i32) {
    %c0_i32 = arith.constant 0 : i32
    %c0_i32_0 = arith.constant 0 : i32
    %c0_i32_1 = arith.constant 0 : i32
    return %c0_i32, %c0_i32_0 : i32, i32
  }
  func.func @transform_7(%arg0: i32) -> (i32, i32) {
    %c0_i32 = arith.constant 0 : i32
    %c0_i32_0 = arith.constant 0 : i32
    %c0_i32_1 = arith.constant 0 : i32
    return %c0_i32, %c0_i32_0 : i32, i32
  }
  func.func @transform_8(%arg0: i32) -> (i32, i32) {
    %c0_i32 = arith.constant 0 : i32
    %c0_i32_0 = arith.constant 0 : i32
    %c0_i32_1 = arith.constant 0 : i32
    return %c0_i32, %c0_i32_0 : i32, i32
  }
  func.func @transform_9(%arg0: i32) -> (i32, i32) {
    %c0_i32 = arith.constant 0 : i32
    %c0_i32_0 = arith.constant 0 : i32
    %c0_i32_1 = arith.constant 0 : i32
    return %c0_i32, %c0_i32_0 : i32, i32
  }
  func.func @transform_10(%arg0: i32) -> (i32, i32) {
    %c0_i32 = arith.constant 0 : i32
    %c0_i32_0 = arith.constant 0 : i32
    %c0_i32_1 = arith.constant 0 : i32
    return %c0_i32, %c0_i32_0 : i32, i32
  }
  func.func @transform_11(%arg0: i32) -> (i32, i32) {
    %c0_i32 = arith.constant 0 : i32
    %c0_i32_0 = arith.constant 0 : i32
    %c0_i32_1 = arith.constant 0 : i32
    return %c0_i32, %c0_i32_0 : i32, i32
  }
  func.func @transform_12(%arg0: i32) -> (i32, i32) {
    %c0_i32 = arith.constant 0 : i32
    %c0_i32_0 = arith.constant 0 : i32
    %c0_i32_1 = arith.constant 0 : i32
    return %c0_i32, %c0_i32_0 : i32, i32
  }
  func.func @transform_13(%arg0: i32) -> (i32, i32) {
    %c0_i32 = arith.constant 0 : i32
    %c0_i32_0 = arith.constant 0 : i32
    %c0_i32_1 = arith.constant 0 : i32
    return %c0_i32, %c0_i32_0 : i32, i32
  }
  func.func @transform_14(%arg0: i32) -> (i32, i32) {
    %c0_i32 = arith.constant 0 : i32
    %c0_i32_0 = arith.constant 0 : i32
    %c0_i32_1 = arith.constant 0 : i32
    return %c0_i32, %c0_i32_0 : i32, i32
  }
  func.func @transform_15(%arg0: i32) -> (i32, i32) {
    %c0_i32 = arith.constant 0 : i32
    %c0_i32_0 = arith.constant 0 : i32
    return %arg0, %c0_i32 : i32, i32
  }
}

</mosaic_0001>

<bundles_post_ra>
// kernel: net_forward.4
= control target key start
LH: loop header
LB: loop body
LE: loop exit
PB: predicated region body
PF: predicated region fallthrough
CT: control target
= control target key end

     0   :  { %s3952_s6 = smov 1   ;;  %s3953_s10 = smov 2   ;;  %s4761_s0 = inlined_call_operand.smem [shape: u32[31], index: -1, kind: input, shape index: {}] }
   0x1   :  { %s4019_s5 = sld [smem:[%s4761_s0]]   ;;  %s3954_s14 = smov 3  }
   0x2   :  { %s4024_s9 = sld [smem:[%s4761_s0 + %s3952_s6]]   ;;  %s3955_s18 = smov 4  }
   0x3   :  { %s4029_s13 = sld [smem:[%s4761_s0 + %s3953_s10]]   ;;  %s3956_s22 = smov 5  }
   0x4   :  { %s4034_s17 = sld [smem:[%s4761_s0 + %s3954_s14]]   ;;  %s3957_s26 = smov 6  }
   0x5   :  { %s4039_s21 = sld [smem:[%s4761_s0 + %s3955_s18]]   ;;  %s3958_s30 = smov 7  }
   0x6   :  { %s4044_s25 = sld [smem:[%s4761_s0 + %s3956_s22]]   ;;  %s3959_s4 = smov 8  }
   0x7   :  { %4787 = sst [smem:[#allocation46_spill]] %s4019_s5  ;;  %s3960_s10 = smov 9  }
   0x8   :  { %4788 = sst [smem:[#allocation47_spill]] %s4024_s9  ;;  %s3961_s15 = smov 10  }
   0x9   :  { %4789 = sst [smem:[#allocation48_spill]] %s4029_s13  ;;  %s3962_s20 = smov 11  }
   0xa   :  { %4790 = sst [smem:[#allocation49_spill]] %s4034_s17  ;;  %s3964_s1 = smov 13  }
   0xb   :  { %s4049_s29 = sld [smem:[%s4761_s0 + %s3957_s26]]   ;;  %s3963_s26 = smov 12  }
   0xc   :  { %s4054_s3 = sld [smem:[%s4761_s0 + %s3958_s30]]   ;;  %s3965_s7 = smov 14  }
   0xd   :  { %s4059_s8 = sld [smem:[%s4761_s0 + %s3959_s4]]   ;;  %s3967_s22 = smov 16  }
   0xe   :  { %s4064_s14 = sld [smem:[%s4761_s0 + %s3960_s10]]   ;;  %s3968_s28 = smov 17  }
   0xf   :  { %s4069_s19 = sld [smem:[%s4761_s0 + %s3961_s15]]   ;;  %s3966_s15 = smov 15  }
  0x10   :  { %s4074_s24 = sld [smem:[%s4761_s0 + %s3962_s20]]  }
  0x11   :  { %s4079_s30 = sld [smem:[%s4761_s0 + %s3963_s26]]  }
  0x12   :  { %4791 = sst [smem:[#allocation50_spill]] %s4054_s3 }
  0x13   :  { %4792 = sst [smem:[#allocation51_spill]] %s4059_s8 }
  0x14   :  { %4793 = sst [smem:[#allocation52_spill]] %s4064_s14 }
  0x15   :  { %4794 = sst [smem:[#allocation53_spill]] %s4069_s19 }
  0x16   :  { %4795 = sst [smem:[#allocation54_spill]] %s4074_s24 }
  0x17   :  { %s4084_s6 = sld [smem:[%s4761_s0 + %s3964_s1]]  }
  0x18   :  { %s4089_s12 = sld [smem:[%s4761_s0 + %s3965_s7]]   ;;  %s3969_s7 = smov 18  }
  0x19   :  { %s4094_s20 = sld [smem:[%s4761_s0 + %s3966_s15]]   ;;  %s3970_s15 = smov 19  }
  0x1a   :  { %s4099_s27 = sld [smem:[%s4761_s0 + %s3967_s22]]   ;;  %s3971_s22 = smov 20  }
  0x1b   :  { %s4104_s4 = sld [smem:[%s4761_s0 + %s3968_s28]]   ;;  %s3972_s28 = smov 21  }
  0x1c   :  { %s4114_s3 = sld [smem:[%s4761_s0 + %s3970_s15]]   ;;  %s3974_s15 = smov 23  }
  0x1d   :  { %4796 = sst [smem:[#allocation55_spill]] %s4084_s6 }
  0x1e   :  { %4797 = sst [smem:[#allocation56_spill]] %s4089_s12 }
  0x1f   :  { %s4109_s6 = sld [smem:[%s4761_s0 + %s3969_s7]]   ;;  %s3973_s7 = smov 22  }
  0x20   :  { %4798 = sst [smem:[#allocation57_spill]] %s4099_s27 }
  0x21   :  { %4799 = sst [smem:[#allocation58_spill]] %s4104_s4 }
  0x22   :  { %4801 = sst [smem:[#allocation60_spill]] %s4114_s3 }
  0x23   :  { %s4119_s5 = sld [smem:[%s4761_s0 + %s3971_s22]]   ;;  %s3975_s22 = smov 24  }
  0x24   :  { %s4124_s4 = sld [smem:[%s4761_s0 + %s3972_s28]]   ;;  %s3976_s28 = smov 25  }
  0x25   :  { %4800 = sst [smem:[#allocation59_spill]] %s4109_s6 }
  0x26   :  { %s4129_s17 = sld [smem:[%s4761_s0 + %s3973_s7]]   ;;  %s3977_s7 = smov 26  }
  0x27   :  { %s4134_s3 = sld [smem:[%s4761_s0 + %s3974_s15]]   ;;  %s3978_s15 = smov 27  }
  0x28   :  { %s4139_s27 = sld [smem:[%s4761_s0 + %s3975_s22]]   ;;  %s3979_s22 = smov 28  }
  0x29   :  { %4802 = sst [smem:[#allocation61_spill]] %s4119_s5 }
  0x2a   :  { %4803 = sst [smem:[#allocation62_spill]] %s4124_s4 }
  0x2b   :  { %s4144_s4 = sld [smem:[%s4761_s0 + %s3976_s28]]   ;;  %s3980_s28 = smov 29  }
  0x2c   :  { %4804 = sst [smem:[#allocation63_spill]] %s4129_s17 }
  0x2d   :  { %4805 = sst [smem:[#allocation64_spill]] %s4134_s3 }
  0x2e   :  { %s4149_s12 = sld [smem:[%s4761_s0 + %s3977_s7]]   ;;  %s3981_s7 = smov 30  }
  0x2f   :  { %s4154_s3 = sld [smem:[%s4761_s0 + %s3978_s15]]  }
  0x30   :  { %s4159_s24 = sld [smem:[%s4761_s0 + %s3979_s22]]  }
  0x31   :  { %4806 = sst [smem:[#allocation65_spill]] %s4144_s4 }
  0x32   :  { %s4164_s4 = sld [smem:[%s4761_s0 + %s3980_s28]]  }
  0x34   :  { %4807 = sst [smem:[#allocation66_spill]] %s4149_s12 }
  0x35   :  { %4808 = sst [smem:[#allocation67_spill]] %s4154_s3 }
  0x36   :  { %4809 = sst [smem:[#allocation68_spill]] %s4159_s24 }
  0x37   :  { %s4169_s12 = sld [smem:[%s4761_s0 + %s3981_s7]]  }
  0x38   :  { %67 = vsyncpa [#allocation4], 0 }
  0x39   :  { %68 = vsyncpa [#allocation6], 0 }
  0x3a   :  { %69 = vsyncpa [#allocation9], 0 }
  0x3b   :  { %70 = vsyncpa [#allocation12], 0 }
  0x3c   :  { %71 = vsyncpa [#allocation15], 0 }
  0x3d   :  { %72 = vsyncpa [#allocation18], 0 }
  0x3e   :  { %73 = vsyncpa [#allocation21], 0 }
  0x3f   :  { %74 = vsyncpa [#allocation24], 0 }
  0x40   :  { %75 = vsyncpa [#allocation27], 0 }
  0x41   :  { %76 = vsyncpa [#allocation30], 0 }
  0x42   :  { %77 = vsyncpa [#allocation33], 0  ;;  %s4171_s15 = smov 0   ;;  %s4173_s16 = smov 0  }
  0x43   :  { %s4175_s18 = smov 0   ;;  %s4177_s22 = smov 0  }
  0x44   :  { %s4179_s0 = smov 0  }
  0x45 LB: > { %s4810_s19 = sld [smem:[#allocation53_spill]]  ;;  %s4811_s17 = sld [smem:[#allocation63_spill]]  ;;  %s3942_s18 = sphi %s4175_s18, %s4853_s18   ;;  %s3938_s16 = sphi %s4173_s16, %s4852_s16   ;;  %s3934_s15 = sphi %s4171_s15, %s4851_s15   ;;  %s3950_s0 = sphi %s4179_s0, %s83_s0   ;;  %s3946_s22 = sphi %s4177_s22, %s4854_s22  }
  0x46   : > { %s4812_s14 = sld [smem:[#allocation52_spill]]  ;;  %s4813_s13 = sld [smem:[#allocation48_spill]] }
  0x47   : > { %s4814_s9 = sld [smem:[#allocation47_spill]]  ;;  %s4815_s6 = sld [smem:[#allocation59_spill]] }
  0x48   : > { %s4816_s5 = sld [smem:[#allocation61_spill]]  ;;  %s4817_s8 = sld [smem:[#allocation51_spill]] }
  0x49   : > { %4818 = sst [smem:[#allocation69_spill]] %s3950_s0  ;;  %s3982_s23 = smov [#allocation5]  }
  0x4a   : > { %s806_s26 = sshll.u32 %s3982_s23, 4  ;;  %s2718_s28 = sadd.s32 4294967295, %s3950_s0   ;;  %s4203_s26 = int_to_ptr.vmem [resolvable:$true] %s806_s26 }
  0x4b   : > { %p2720_p0 = scmp.ge.s32.totalorder %s3950_s0, 1  ;;  %p782_p1 = scmp.lt.s32.totalorder %s3950_s0, 5 }
  0x4c   : > { %p4199_p2 = scmp.eq.s32.totalorder %s2718_s28, 0  ;;  %s3983_s7 = smov [#allocation8]  }
  0x4d   : > { %p4205_p3 = pnand %p2720_p0, %p782_p1  ;;  %s831_s10 = sshll.u32 %s3983_s7, 4  ;;  %s4211_s10 = int_to_ptr.vmem [resolvable:$true] %s831_s10 }
  0x4e   : > { %s4819_s1 = scalar_select %p4199_p2, 1, 0 }
  0x4f   : > { %s4820_s2 = scalar_select %p4205_p3, 1, 0 }
  0x50   : > { %p3013_p4 = pneg %p4205_p3  ;;  %s3984_s11 = smov [#allocation11]  }
  0x51   : > { %s856_s23 = sshll.u32 %s3984_s11, 4  ;;  %s3985_s0 = smov [#allocation14]   ;;  %s4219_s23 = int_to_ptr.vmem [resolvable:$true] %s856_s23 }
  0x52   : > { %p4215_p5 = pnand %p4199_p2, %p3013_p4  ;;  %s878_s24 = sshll.u32 %s3985_s0, 4  ;;  %s4221_s24 = int_to_ptr.vmem [resolvable:$true] %s878_s24 }
  0x53   : > { %s3280_s3 = scalar_lea.hbm %s4813_s13, 16 }
  0x54   : > { %p3281_p6 = scmp.ne.s32.totalorder %s4813_s13, %s3280_s3  ;;  %p4227_p7 = pneg %p4215_p5 }
  0x55   : > { %p3287_p10 = scmp.lt.u32.totalorder %s3280_s3, %s4813_s13 }
  0x56   : > { %p3283_p8 = pnand %p4227_p7, %p3281_p6 }
  0x58   : > { %p3284_p9 = pneg %p3283_p8 }
  0x5a   : > { %p3289_p11 = pnand %p3287_p10, %p3284_p9 }
  0x5c   : > { %3292 = shalt.err (!%p3289_p11)
}
  0x5d   : > { %s3293_s0 = scalar_lea.vmem %s4203_s26, 16  ;;  %s3300_s11 = scalar_lea.vmem %s4203_s26, 32 }
  0x5e   : > { %p3294_p12 = scmp.ne.s32.totalorder %s4203_s26, %s3293_s0  ;;  %p3301_p1 = scmp.lt.s32.totalorder %s4203_s26, %s4203_s26 }
  0x5f   : > { %p3302_p4 = scmp.lt.s32.totalorder %s3300_s11, %s3293_s0 }
  0x60   : > { %p3296_p13 = pnand %p3294_p12, %p4227_p7 }
  0x61   : > { %p3303_p2 = por %p3302_p4, %p3301_p1 }
  0x62   : > { %p3297_p0 = pneg %p3296_p13 }
  0x64   : > { %p3304_p6 = pnand %p3303_p2, %p3297_p0 }
  0x66   : > { %3307 = shalt.err (!%p3304_p6)
}
  0x67   : > { %3019 = dma.hbm_to_vmem [thread:$0]  (!%p4215_p5), %s4813_s13, 16, %s4203_s26, [#allocation6]  }
  0x68   : > { %s3308_s3 = scalar_lea.hbm %s4044_s25, 16 }
  0x69   : > { %p3309_p8 = scmp.ne.s32.totalorder %s4044_s25, %s3308_s3  ;;  %p3315_p11 = scmp.lt.u32.totalorder %s3308_s3, %s4044_s25 }
  0x6b   : > { %p3311_p9 = pnand %p3309_p8, %p4227_p7 }
  0x6d   : > { %p3312_p10 = pneg %p3311_p9 }
  0x6f   : > { %p3317_p12 = pnand %p3315_p11, %p3312_p10 }
  0x71   : > { %3320 = shalt.err (!%p3317_p12)
}
  0x72   : > { %s3321_s0 = scalar_lea.vmem %s4211_s10, 16  ;;  %s3328_s11 = scalar_lea.vmem %s4211_s10, 32 }
  0x73   : > { %p3322_p2 = scmp.ne.s32.totalorder %s4211_s10, %s3321_s0  ;;  %p3329_p1 = scmp.lt.s32.totalorder %s4211_s10, %s4211_s10 }
  0x74   : > { %p3330_p4 = scmp.lt.s32.totalorder %s3328_s11, %s3321_s0 }
  0x75   : > { %p3324_p13 = pnand %p3322_p2, %p4227_p7 }
  0x76   : > { %p3331_p6 = por %p3330_p4, %p3329_p1 }
  0x77   : > { %p3325_p0 = pneg %p3324_p13 }
  0x79   : > { %p3332_p8 = pnand %p3331_p6, %p3325_p0 }
  0x7b   : > { %3335 = shalt.err (!%p3332_p8)
}
  0x7c   : > { %3025 = dma.hbm_to_vmem [thread:$0]  (!%p4215_p5), %s4044_s25, 16, %s4211_s10, [#allocation9]  }
  0x7d   : > { %s3336_s26 = scalar_lea.hbm %s4817_s8, 16 }
  0x7e   : > { %p3337_p9 = scmp.ne.s32.totalorder %s4817_s8, %s3336_s26  ;;  %p3343_p12 = scmp.lt.u32.totalorder %s3336_s26, %s4817_s8 }
  0x80   : > { %p3339_p10 = pnand %p3337_p9, %p4227_p7 }
  0x82   : > { %p3340_p11 = pneg %p3339_p10 }
  0x84   : > { %p3345_p2 = pnand %p3343_p12, %p3340_p11 }
  0x86   : > { %3348 = shalt.err (!%p3345_p2)
}
  0x87   : > { %s3349_s3 = scalar_lea.vmem %s4219_s23, 16  ;;  %s3356_s0 = scalar_lea.vmem %s4219_s23, 32 }
  0x88   : > { %p3350_p13 = scmp.ne.s32.totalorder %s4219_s23, %s3349_s3  ;;  %p3357_p4 = scmp.lt.s32.totalorder %s4219_s23, %s4219_s23 }
  0x89   : > { %p3358_p6 = scmp.lt.s32.totalorder %s3356_s0, %s3349_s3 }
  0x8a   : > { %p3352_p0 = pnand %p3350_p13, %p4227_p7 }
  0x8b   : > { %p3359_p8 = por %p3358_p6, %p3357_p4 }
  0x8c   : > { %p3353_p1 = pneg %p3352_p0 }
  0x8e   : > { %p3360_p9 = pnand %p3359_p8, %p3353_p1 }
  0x90   : > { %3363 = shalt.err (!%p3360_p9)
}
  0x91   : > { %3031 = dma.hbm_to_vmem [thread:$0]  (!%p4215_p5), %s4817_s8, 16, %s4219_s23, [#allocation12]  }
  0x92   : > { %s3364_s10 = scalar_lea.hbm %s4810_s19, 16 }
  0x93   : > { %p3365_p10 = scmp.ne.s32.totalorder %s4810_s19, %s3364_s10  ;;  %p3371_p2 = scmp.lt.u32.totalorder %s3364_s10, %s4810_s19 }
  0x95   : > { %p3367_p11 = pnand %p3365_p10, %p4227_p7 }
  0x97   : > { %p3368_p12 = pneg %p3367_p11 }
  0x99   : > { %p3373_p13 = pnand %p3371_p2, %p3368_p12 }
  0x9b   : > { %3376 = shalt.err (!%p3373_p13)
}
  0x9c   : > { %s3377_s11 = scalar_lea.vmem %s4221_s24, 16  ;;  %s3384_s26 = scalar_lea.vmem %s4221_s24, 32 }
  0x9d   : > { %p3378_p0 = scmp.ne.s32.totalorder %s4221_s24, %s3377_s11  ;;  %p3385_p6 = scmp.lt.s32.totalorder %s4221_s24, %s4221_s24 }
  0x9e   : > { %p3386_p8 = scmp.lt.s32.totalorder %s3384_s26, %s3377_s11 }
  0x9f   : > { %p3380_p1 = pnand %p3378_p0, %p4227_p7 }
  0xa0   : > { %p3387_p9 = por %p3386_p8, %p3385_p6 }
  0xa1   : > { %p3381_p4 = pneg %p3380_p1 }
  0xa3   : > { %p3388_p10 = pnand %p3387_p9, %p3381_p4 }
  0xa5   : > { %3391 = shalt.err (!%p3388_p10)
}
  0xa6   : > { %3037 = dma.hbm_to_vmem [thread:$0]  (!%p4215_p5), %s4810_s19, 16, %s4221_s24, [#allocation15]  }
  0xa7   : > { %s3986_s23 = smov [#allocation17]   ;;  %s3987_s0 = smov [#allocation20]  }
  0xa8   : > { %s900_s3 = sshll.u32 %s3986_s23, 4  ;;  %s925_s10 = sshll.u32 %s3987_s0, 4  ;;  %s901_s3 = int_to_ptr.vmem [resolvable:$true] %s900_s3  ;;  %s926_s10 = int_to_ptr.vmem [resolvable:$true] %s925_s10 }
  0xa9   : > { %s3392_s8 = scalar_lea.hbm %s4079_s30, 16 }
  0xaa   : > { %p3393_p11 = scmp.ne.s32.totalorder %s4079_s30, %s3392_s8  ;;  %p3399_p13 = scmp.lt.u32.totalorder %s3392_s8, %s4079_s30 }
  0xac   : > { %p3395_p12 = pnand %p3393_p11, %p4227_p7 }
  0xae   : > { %p3396_p2 = pneg %p3395_p12 }
  0xb0   : > { %p3401_p0 = pnand %p3399_p13, %p3396_p2 }
  0xb2   : > { %3404 = shalt.err (!%p3401_p0)
}
  0xb3   : > { %s3405_s11 = scalar_lea.vmem %s901_s3, 16  ;;  %s3412_s24 = scalar_lea.vmem %s901_s3, 32 }
  0xb4   : > { %p3406_p1 = scmp.ne.s32.totalorder %s901_s3, %s3405_s11  ;;  %p3413_p8 = scmp.lt.s32.totalorder %s901_s3, %s901_s3 }
  0xb5   : > { %p3414_p9 = scmp.lt.s32.totalorder %s3412_s24, %s3405_s11 }
  0xb6   : > { %p3408_p4 = pnand %p3406_p1, %p4227_p7 }
  0xb7   : > { %p3415_p10 = por %p3414_p9, %p3413_p8 }
  0xb8   : > { %p3409_p6 = pneg %p3408_p4 }
  0xba   : > { %p3416_p3 = pnand %p3415_p10, %p3409_p6 }
  0xbc   : > { %3419 = shalt.err (!%p3416_p3)
}
  0xbd   : > { %3043 = dma.hbm_to_vmem [thread:$0]  (!%p4215_p5), %s4079_s30, 16, %s901_s3, [#allocation18]  }
  0xbe   : > { %s3420_s8 = scalar_lea.hbm %s4094_s20, 16 }
  0xbf   : > { %p3421_p11 = scmp.ne.s32.totalorder %s4094_s20, %s3420_s8  ;;  %p3427_p13 = scmp.lt.u32.totalorder %s3420_s8, %s4094_s20 }
  0xc1   : > { %p3423_p12 = pnand %p3421_p11, %p4227_p7 }
  0xc3   : > { %p3424_p2 = pneg %p3423_p12 }
  0xc5   : > { %p3429_p0 = pnand %p3427_p13, %p3424_p2 }
  0xc7   : > { %3432 = shalt.err (!%p3429_p0)
}
  0xc8   : > { %s3433_s26 = scalar_lea.vmem %s926_s10, 16  ;;  %s3440_s23 = scalar_lea.vmem %s926_s10, 32 }
  0xc9   : > { %p3434_p3 = scmp.ne.s32.totalorder %s926_s10, %s3433_s26  ;;  %p3441_p6 = scmp.lt.s32.totalorder %s926_s10, %s926_s10 }
  0xca   : > { %p3442_p8 = scmp.lt.s32.totalorder %s3440_s23, %s3433_s26 }
  0xcb   : > { %p3436_p1 = pnand %p3434_p3, %p4227_p7 }
  0xcc   : > { %p3443_p9 = por %p3442_p8, %p3441_p6 }
  0xcd   : > { %p3437_p4 = pneg %p3436_p1 }
  0xcf   : > { %p3444_p10 = pnand %p3443_p9, %p3437_p4 }
  0xd1   : > { %3447 = shalt.err (!%p3444_p10)
}
  0xd2   : > { %3049 = dma.hbm_to_vmem [thread:$0]  (!%p4215_p5), %s4094_s20, 16, %s926_s10, [#allocation21]  }
  0xd3   : > { %s3988_s3 = smov [#allocation23]   ;;  %s3989_s11 = smov [#allocation26]  }
  0xd4   : > { %s950_s0 = sshll.u32 %s3988_s3, 4  ;;  %s974_s24 = sshll.u32 %s3989_s11, 4  ;;  %s951_s0 = int_to_ptr.vmem [resolvable:$true] %s950_s0  ;;  %s975_s24 = int_to_ptr.vmem [resolvable:$true] %s974_s24 }
  0xd5   : > { %s3448_s8 = scalar_lea.hbm %s4815_s6, 16 }
  0xd6   : > { %p3449_p11 = scmp.ne.s32.totalorder %s4815_s6, %s3448_s8  ;;  %p3455_p13 = scmp.lt.u32.totalorder %s3448_s8, %s4815_s6 }
  0xd8   : > { %p3451_p12 = pnand %p3449_p11, %p4227_p7 }
  0xda   : > { %p3452_p2 = pneg %p3451_p12 }
  0xdc   : > { %p3457_p0 = pnand %p3455_p13, %p3452_p2 }
  0xde   : > { %3460 = shalt.err (!%p3457_p0)
}
  0xdf   : > { %s3461_s26 = scalar_lea.vmem %s951_s0, 16  ;;  %s3468_s10 = scalar_lea.vmem %s951_s0, 32 }
  0xe0   : > { %p3462_p3 = scmp.ne.s32.totalorder %s951_s0, %s3461_s26  ;;  %p3469_p6 = scmp.lt.s32.totalorder %s951_s0, %s951_s0 }
  0xe1   : > { %p3470_p8 = scmp.lt.s32.totalorder %s3468_s10, %s3461_s26 }
  0xe2   : > { %p3464_p1 = pnand %p3462_p3, %p4227_p7 }
  0xe3   : > { %p3471_p9 = por %p3470_p8, %p3469_p6 }
  0xe4   : > { %p3465_p4 = pneg %p3464_p1 }
  0xe6   : > { %p3472_p10 = pnand %p3471_p9, %p3465_p4 }
  0xe8   : > { %3475 = shalt.err (!%p3472_p10)
}
  0xe9   : > { %3055 = dma.hbm_to_vmem [thread:$0]  (!%p4215_p5), %s4815_s6, 16, %s951_s0, [#allocation24]  }
  0xea   : > { %s3476_s23 = scalar_lea.hbm %s4816_s5, 16 }
  0xeb   : > { %p3477_p11 = scmp.ne.s32.totalorder %s4816_s5, %s3476_s23  ;;  %p3483_p13 = scmp.lt.u32.totalorder %s3476_s23, %s4816_s5 }
  0xed   : > { %p3479_p12 = pnand %p3477_p11, %p4227_p7 }
  0xef   : > { %p3480_p2 = pneg %p3479_p12 }
  0xf1   : > { %p3485_p0 = pnand %p3483_p13, %p3480_p2 }
  0xf3   : > { %3488 = shalt.err (!%p3485_p0)
}
  0xf4   : > { %s3489_s3 = scalar_lea.vmem %s975_s24, 16  ;;  %s3496_s11 = scalar_lea.vmem %s975_s24, 32 }
  0xf5   : > { %p3490_p3 = scmp.ne.s32.totalorder %s975_s24, %s3489_s3  ;;  %p3497_p6 = scmp.lt.s32.totalorder %s975_s24, %s975_s24 }
  0xf6   : > { %p3498_p8 = scmp.lt.s32.totalorder %s3496_s11, %s3489_s3 }
  0xf7   : > { %p3492_p1 = pnand %p3490_p3, %p4227_p7 }
  0xf8   : > { %p3499_p9 = por %p3498_p8, %p3497_p6 }
  0xf9   : > { %p3493_p4 = pneg %p3492_p1 }
  0xfb   : > { %p3500_p10 = pnand %p3499_p9, %p3493_p4 }
  0xfd   : > { %3503 = shalt.err (!%p3500_p10)
}
  0xfe   : > { %3061 = dma.hbm_to_vmem [thread:$0]  (!%p4215_p5), %s4816_s5, 16, %s975_s24, [#allocation27]  }
  0xff   : > { %s3990_s0 = smov [#allocation29]   ;;  %s3991_s26 = smov [#allocation32]  }
 0x100   : > { %s996_s8 = sshll.u32 %s3990_s0, 4  ;;  %s1020_s10 = sshll.u32 %s3991_s26, 4  ;;  %s997_s8 = int_to_ptr.vmem [resolvable:$true] %s996_s8  ;;  %s1021_s10 = int_to_ptr.vmem [resolvable:$true] %s1020_s10 }
 0x101   : > { %s3504_s23 = scalar_lea.hbm %s4811_s17, 16 }
 0x102   : > { %p3505_p11 = scmp.ne.s32.totalorder %s4811_s17, %s3504_s23  ;;  %p3511_p13 = scmp.lt.u32.totalorder %s3504_s23, %s4811_s17 }
 0x104   : > { %p3507_p12 = pnand %p3505_p11, %p4227_p7 }
 0x106   : > { %p3508_p2 = pneg %p3507_p12 }
 0x108   : > { %p3513_p0 = pnand %p3511_p13, %p3508_p2 }
 0x10a   : > { %3516 = shalt.err (!%p3513_p0)
}
 0x10b   : > { %s3517_s3 = scalar_lea.vmem %s997_s8, 16  ;;  %s3524_s24 = scalar_lea.vmem %s997_s8, 32 }
 0x10c   : > { %p3518_p3 = scmp.ne.s32.totalorder %s997_s8, %s3517_s3  ;;  %p3525_p6 = scmp.lt.s32.totalorder %s997_s8, %s997_s8 }
 0x10d   : > { %p3526_p8 = scmp.lt.s32.totalorder %s3524_s24, %s3517_s3 }
 0x10e   : > { %p3520_p1 = pnand %p3518_p3, %p4227_p7 }
 0x10f   : > { %p3527_p9 = por %p3526_p8, %p3525_p6 }
 0x110   : > { %p3521_p4 = pneg %p3520_p1 }
 0x112   : > { %p3528_p10 = pnand %p3527_p9, %p3521_p4 }
 0x114   : > { %3531 = shalt.err (!%p3528_p10)
}
 0x115   : > { %3067 = dma.hbm_to_vmem [thread:$0]  (!%p4215_p5), %s4811_s17, 16, %s997_s8, [#allocation30]  }
 0x116   : > { %s3532_s11 = scalar_lea.hbm %s4139_s27, 16 }
 0x117   : > { %p3533_p11 = scmp.ne.s32.totalorder %s4139_s27, %s3532_s11  ;;  %p3539_p13 = scmp.lt.u32.totalorder %s3532_s11, %s4139_s27 }
 0x119   : > { %p3535_p12 = pnand %p3533_p11, %p4227_p7 }
 0x11b   : > { %p3536_p2 = pneg %p3535_p12 }
 0x11d   : > { %p3541_p0 = pnand %p3539_p13, %p3536_p2 }
 0x11f   : > { %3544 = shalt.err (!%p3541_p0)
}
 0x120   : > { %s3545_s0 = scalar_lea.vmem %s1021_s10, 16  ;;  %s3552_s26 = scalar_lea.vmem %s1021_s10, 32 }
 0x121   : > { %p3546_p3 = scmp.ne.s32.totalorder %s1021_s10, %s3545_s0  ;;  %p3553_p6 = scmp.lt.s32.totalorder %s1021_s10, %s1021_s10 }
 0x122   : > { %p3554_p8 = scmp.lt.s32.totalorder %s3552_s26, %s3545_s0 }
 0x123   : > { %p3548_p1 = pnand %p3546_p3, %p4227_p7 }
 0x124   : > { %p3555_p9 = por %p3554_p8, %p3553_p6 }
 0x125   : > { %p3549_p4 = pneg %p3548_p1 }
 0x127   : > { %p3556_p10 = pnand %p3555_p9, %p3549_p4 }
 0x129   : > { %3559 = shalt.err (!%p3556_p10)
}
 0x12a   : > { %3073 = dma.hbm_to_vmem [thread:$0]  (!%p4215_p5), %s4139_s27, 16, %s1021_s10, [#allocation33]  }
 0x12b   : > { %s92_s8 = sadd.s32 1, %s3942_s18  ;;  %s95_s23 = sadd.s32 1, %s3946_s22 }
 0x12c   : > { %p93_p11 = scmp.ge.s32.totalorder %s92_s8, 2  ;;  %s3992_s3 = smov [#allocation3]  }
 0x12d   : > { %s795_s24 = sshll.u32 %s3992_s3, 4  ;;  %s3993_s11 = smov [#allocation7]   ;;  %s796_s24 = int_to_ptr.vmem [resolvable:$true] %s795_s24 }
 0x12e   : > { %s4856_s8 = smov (%p93_p11, %s92_s8), 0  ;;  %s4858_s23 = smov (!%p93_p11, %s95_s23), %s3946_s22 }
 0x12f   : > { %s820_s0 = sshll.u32 %s3993_s11, 4  ;;  %s3560_s26 = scalar_lea.hbm %s4814_s9, 16  ;;  %s821_s0 = int_to_ptr.vmem [resolvable:$true] %s820_s0 }
 0x130   : > { %p3561_p2 = scmp.ne.s32.totalorder %s4814_s9, %s3560_s26  ;;  %p3567_p3 = scmp.lt.u32.totalorder %s3560_s26, %s4814_s9 }
 0x132   : > { %p3563_p13 = pnand %p3561_p2, %p4227_p7 }
 0x134   : > { %p3564_p0 = pneg %p3563_p13 }
 0x136   : > { %p3569_p1 = pnand %p3567_p3, %p3564_p0 }
 0x138   : > { %3572 = shalt.err (!%p3569_p1)
}
 0x139   : > { %s3573_s10 = scalar_lea.vmem %s796_s24, 16  ;;  %s3580_s5 = scalar_lea.vmem %s796_s24, 32 }
 0x13a   : > { %p3574_p4 = scmp.ne.s32.totalorder %s796_s24, %s3573_s10  ;;  %p3581_p9 = scmp.lt.s32.totalorder %s796_s24, %s796_s24 }
 0x13b   : > { %p3582_p10 = scmp.lt.s32.totalorder %s3580_s5, %s3573_s10 }
 0x13c   : > { %p3576_p6 = pnand %p3574_p4, %p4227_p7 }
 0x13d   : > { %p3583_p11 = por %p3582_p10, %p3581_p9 }
 0x13e   : > { %p3577_p8 = pneg %p3576_p6 }
 0x140   : > { %p3584_p12 = pnand %p3583_p11, %p3577_p8 }
 0x142   : > { %3587 = shalt.err (!%p3584_p12)
}
 0x143   : > { %3016 = dma.hbm_to_vmem [thread:$0]  (!%p4215_p5), %s4814_s9, 16, %s796_s24, [#allocation4]  }
 0x144   : > { %p4823_p2 = scmp.ge.s32.totalorder %s4858_s23, 2  ;;  %s3588_s3 = scalar_lea.hbm %s4039_s21, 16 }
 0x145   : > { %p3589_p13 = scmp.ne.s32.totalorder %s4039_s21, %s3588_s3  ;;  %p3595_p1 = scmp.lt.u32.totalorder %s3588_s3, %s4039_s21 }
 0x146   : > { %s4860_s23 = smov (%p4823_p2, %s4858_s23), 0 }
 0x147   : > { %p3591_p0 = pnand %p3589_p13, %p4227_p7 }
 0x149   : > { %p3592_p3 = pneg %p3591_p0 }
 0x14b   : > { %p3597_p4 = pnand %p3595_p1, %p3592_p3 }
 0x14d   : > { %3600 = shalt.err (!%p3597_p4)
}
 0x14e   : > { %s3601_s5 = scalar_lea.vmem %s821_s0, 16  ;;  %s3608_s11 = scalar_lea.vmem %s821_s0, 32 }
 0x14f   : > { %p3602_p12 = scmp.ne.s32.totalorder %s821_s0, %s3601_s5  ;;  %p3609_p9 = scmp.lt.s32.totalorder %s821_s0, %s821_s0 }
 0x150   : > { %p3610_p10 = scmp.lt.s32.totalorder %s3608_s11, %s3601_s5 }
 0x151   : > { %p3604_p6 = pnand %p3602_p12, %p4227_p7 }
 0x152   : > { %p3611_p11 = por %p3610_p10, %p3609_p9 }
 0x153   : > { %p3605_p8 = pneg %p3604_p6 }
 0x155   : > { %p3612_p2 = pnand %p3611_p11, %p3605_p8 }
 0x157   : > { %3615 = shalt.err (!%p3612_p2)
}
 0x158   : > { %3022 = dma.hbm_to_vmem [thread:$0]  (!%p4215_p5), %s4039_s21, 16, %s821_s0, [#allocation6]  }
 0x159   : > { %s3994_s24 = smov [#allocation10]   ;;  %s3995_s10 = smov [#allocation13]  }
 0x15a   : > { %s842_s26 = sshll.u32 %s3994_s24, 4  ;;  %s867_s3 = sshll.u32 %s3995_s10, 4  ;;  %s843_s26 = int_to_ptr.vmem [resolvable:$true] %s842_s26  ;;  %s868_s3 = int_to_ptr.vmem [resolvable:$true] %s867_s3 }
 0x15b   : > { %s3616_s6 = scalar_lea.hbm %s4049_s29, 16 }
 0x15c   : > { %p3617_p13 = scmp.ne.s32.totalorder %s4049_s29, %s3616_s6  ;;  %p3623_p1 = scmp.lt.u32.totalorder %s3616_s6, %s4049_s29 }
 0x15e   : > { %p3619_p0 = pnand %p3617_p13, %p4227_p7 }
 0x160   : > { %p3620_p3 = pneg %p3619_p0 }
 0x162   : > { %p3625_p4 = pnand %p3623_p1, %p3620_p3 }
 0x164   : > { %3628 = shalt.err (!%p3625_p4)
}
 0x165   : > { %s3629_s5 = scalar_lea.vmem %s843_s26, 16  ;;  %s3636_s0 = scalar_lea.vmem %s843_s26, 32 }
 0x166   : > { %p3630_p12 = scmp.ne.s32.totalorder %s843_s26, %s3629_s5  ;;  %p3637_p9 = scmp.lt.s32.totalorder %s843_s26, %s843_s26 }
 0x167   : > { %p3638_p10 = scmp.lt.s32.totalorder %s3636_s0, %s3629_s5 }
 0x168   : > { %p3632_p6 = pnand %p3630_p12, %p4227_p7 }
 0x169   : > { %p3639_p11 = por %p3638_p10, %p3637_p9 }
 0x16a   : > { %p3633_p8 = pneg %p3632_p6 }
 0x16c   : > { %p3640_p2 = pnand %p3639_p11, %p3633_p8 }
 0x16e   : > { %3643 = shalt.err (!%p3640_p2)
}
 0x16f   : > { %3028 = dma.hbm_to_vmem [thread:$0]  (!%p4215_p5), %s4049_s29, 16, %s843_s26, [#allocation9]  }
 0x170   : > { %s3644_s6 = scalar_lea.hbm %s4812_s14, 64 }
 0x171   : > { %p3645_p13 = scmp.ne.s32.totalorder %s4812_s14, %s3644_s6  ;;  %p3651_p1 = scmp.lt.u32.totalorder %s3644_s6, %s4812_s14 }
 0x173   : > { %p3647_p0 = pnand %p3645_p13, %p4227_p7 }
 0x175   : > { %p3648_p3 = pneg %p3647_p0 }
 0x177   : > { %p3653_p4 = pnand %p3651_p1, %p3648_p3 }
 0x179   : > { %3656 = shalt.err (!%p3653_p4)
}
 0x17a   : > { %s3657_s11 = scalar_lea.vmem %s868_s3, 64  ;;  %p3665_p9 = scmp.lt.s32.totalorder %s868_s3, %s868_s3 }
 0x17b   : > { %p3658_p12 = scmp.ne.s32.totalorder %s868_s3, %s3657_s11  ;;  %p3666_p10 = scmp.lt.s32.totalorder %s3657_s11, %s3657_s11 }
 0x17d   : > { %p3660_p6 = pnand %p3658_p12, %p4227_p7  ;;  %p3667_p11 = por %p3666_p10, %p3665_p9 }
 0x17f   : > { %p3661_p8 = pneg %p3660_p6 }
 0x181   : > { %p3668_p2 = pnand %p3667_p11, %p3661_p8 }
 0x183   : > { %3671 = shalt.err (!%p3668_p2)
}
 0x184   : > { %s4824_s24 = sld [smem:[#allocation54_spill]]  ;;  %s3996_s26 = smov [#allocation16]  }
 0x185   : > { %3034 = dma.hbm_to_vmem [thread:$0]  (!%p4215_p5), %s4812_s14, 64, %s868_s3, [#allocation12]  }
 0x186   : > { %s889_s10 = sshll.u32 %s3996_s26, 4  ;;  %s3997_s5 = smov [#allocation19]   ;;  %s890_s10 = int_to_ptr.vmem [resolvable:$true] %s889_s10 }
 0x187   : > { %s914_s0 = sshll.u32 %s3997_s5, 4  ;;  %s915_s0 = int_to_ptr.vmem [resolvable:$true] %s914_s0 }
 0x18a   : > { %s3672_s6 = scalar_lea.hbm %s4824_s24, 16 }
 0x18b   : > { %p3673_p13 = scmp.ne.s32.totalorder %s4824_s24, %s3672_s6  ;;  %p3679_p1 = scmp.lt.u32.totalorder %s3672_s6, %s4824_s24 }
 0x18d   : > { %p3675_p0 = pnand %p3673_p13, %p4227_p7 }
 0x18f   : > { %p3676_p3 = pneg %p3675_p0 }
 0x191   : > { %p3681_p4 = pnand %p3679_p1, %p3676_p3 }
 0x193   : > { %3684 = shalt.err (!%p3681_p4)
}
 0x194   : > { %s3685_s11 = scalar_lea.vmem %s890_s10, 16  ;;  %s3692_s3 = scalar_lea.vmem %s890_s10, 32 }
 0x195   : > { %p3686_p12 = scmp.ne.s32.totalorder %s890_s10, %s3685_s11  ;;  %p3693_p9 = scmp.lt.s32.totalorder %s890_s10, %s890_s10 }
 0x196   : > { %p3694_p10 = scmp.lt.s32.totalorder %s3692_s3, %s3685_s11 }
 0x197   : > { %p3688_p6 = pnand %p3686_p12, %p4227_p7 }
 0x198   : > { %p3695_p11 = por %p3694_p10, %p3693_p9 }
 0x199   : > { %p3689_p8 = pneg %p3688_p6 }
 0x19b   : > { %p3696_p2 = pnand %p3695_p11, %p3689_p8 }
 0x19d   : > { %3699 = shalt.err (!%p3696_p2)
}
 0x19e   : > { %s4825_s26 = sld [smem:[#allocation56_spill]] }
 0x19f   : > { %3040 = dma.hbm_to_vmem [thread:$0]  (!%p4215_p5), %s4824_s24, 16, %s890_s10, [#allocation15]  }
 0x1a4   : > { %s3700_s5 = scalar_lea.hbm %s4825_s26, 16 }
 0x1a5   : > { %p3701_p13 = scmp.ne.s32.totalorder %s4825_s26, %s3700_s5  ;;  %p3707_p1 = scmp.lt.u32.totalorder %s3700_s5, %s4825_s26 }
 0x1a7   : > { %p3703_p0 = pnand %p3701_p13, %p4227_p7 }
 0x1a9   : > { %p3704_p3 = pneg %p3703_p0 }
 0x1ab   : > { %p3709_p4 = pnand %p3707_p1, %p3704_p3 }
 0x1ad   : > { %3712 = shalt.err (!%p3709_p4)
}
 0x1ae   : > { %s3713_s6 = scalar_lea.vmem %s915_s0, 16  ;;  %s3720_s11 = scalar_lea.vmem %s915_s0, 32 }
 0x1af   : > { %p3714_p12 = scmp.ne.s32.totalorder %s915_s0, %s3713_s6  ;;  %p3721_p9 = scmp.lt.s32.totalorder %s915_s0, %s915_s0 }
 0x1b0   : > { %p3722_p10 = scmp.lt.s32.totalorder %s3720_s11, %s3713_s6 }
 0x1b1   : > { %p3716_p6 = pnand %p3714_p12, %p4227_p7 }
 0x1b2   : > { %p3723_p11 = por %p3722_p10, %p3721_p9 }
 0x1b3   : > { %p3717_p8 = pneg %p3716_p6 }
 0x1b5   : > { %p3724_p2 = pnand %p3723_p11, %p3717_p8 }
 0x1b7   : > { %3727 = shalt.err (!%p3724_p2)
}
 0x1b8   : > { %s4826_s10 = sld [smem:[#allocation57_spill]]  ;;  %s3998_s3 = smov [#allocation22]  }
 0x1b9   : > { %3046 = dma.hbm_to_vmem [thread:$0]  (!%p4215_p5), %s4825_s26, 16, %s915_s0, [#allocation18]  }
 0x1ba   : > { %s936_s5 = sshll.u32 %s3998_s3, 4  ;;  %s3999_s9 = smov [#allocation25]   ;;  %s937_s5 = int_to_ptr.vmem [resolvable:$true] %s936_s5 }
 0x1bb   : > { %s960_s13 = sshll.u32 %s3999_s9, 4  ;;  %s961_s13 = int_to_ptr.vmem [resolvable:$true] %s960_s13 }
 0x1be   : > { %s3728_s14 = scalar_lea.hbm %s4826_s10, 16 }
 0x1bf   : > { %p3729_p13 = scmp.ne.s32.totalorder %s4826_s10, %s3728_s14  ;;  %p3735_p1 = scmp.lt.u32.totalorder %s3728_s14, %s4826_s10 }
 0x1c1   : > { %p3731_p0 = pnand %p3729_p13, %p4227_p7 }
 0x1c3   : > { %p3732_p3 = pneg %p3731_p0 }
 0x1c5   : > { %p3737_p4 = pnand %p3735_p1, %p3732_p3 }
 0x1c7   : > { %3740 = shalt.err (!%p3737_p4)
}
 0x1c8   : > { %s3741_s6 = scalar_lea.vmem %s937_s5, 16  ;;  %s3748_s0 = scalar_lea.vmem %s937_s5, 32 }
 0x1c9   : > { %p3742_p12 = scmp.ne.s32.totalorder %s937_s5, %s3741_s6  ;;  %p3749_p9 = scmp.lt.s32.totalorder %s937_s5, %s937_s5 }
 0x1ca   : > { %p3750_p10 = scmp.lt.s32.totalorder %s3748_s0, %s3741_s6 }
 0x1cb   : > { %p3744_p6 = pnand %p3742_p12, %p4227_p7 }
 0x1cc   : > { %p3751_p11 = por %p3750_p10, %p3749_p9 }
 0x1cd   : > { %p3745_p8 = pneg %p3744_p6 }
 0x1cf   : > { %p3752_p2 = pnand %p3751_p11, %p3745_p8 }
 0x1d1   : > { %3755 = shalt.err (!%p3752_p2)
}
 0x1d2   : > { %s4827_s9 = sld [smem:[#allocation60_spill]] }
 0x1d3   : > { %3052 = dma.hbm_to_vmem [thread:$0]  (!%p4215_p5), %s4826_s10, 16, %s937_s5, [#allocation21]  }
 0x1d8   : > { %s3756_s14 = scalar_lea.hbm %s4827_s9, 128 }
 0x1d9   : > { %p3757_p13 = scmp.ne.s32.totalorder %s4827_s9, %s3756_s14  ;;  %p3763_p1 = scmp.lt.u32.totalorder %s3756_s14, %s4827_s9 }
 0x1db   : > { %p3759_p0 = pnand %p3757_p13, %p4227_p7 }
 0x1dd   : > { %p3760_p3 = pneg %p3759_p0 }
 0x1df   : > { %p3765_p4 = pnand %p3763_p1, %p3760_p3 }
 0x1e1   : > { %3768 = shalt.err (!%p3765_p4)
}
 0x1e2   : > { %s3769_s11 = scalar_lea.vmem %s961_s13, 128  ;;  %p3777_p9 = scmp.lt.s32.totalorder %s961_s13, %s961_s13 }
 0x1e3   : > { %p3770_p12 = scmp.ne.s32.totalorder %s961_s13, %s3769_s11  ;;  %p3778_p10 = scmp.lt.s32.totalorder %s3769_s11, %s3769_s11 }
 0x1e5   : > { %p3772_p6 = pnand %p3770_p12, %p4227_p7  ;;  %p3779_p11 = por %p3778_p10, %p3777_p9 }
 0x1e7   : > { %p3773_p8 = pneg %p3772_p6 }
 0x1e9   : > { %p3780_p2 = pnand %p3779_p11, %p3773_p8 }
 0x1eb   : > { %3783 = shalt.err (!%p3780_p2)
}
 0x1ec   : > { %s4000_s3 = smov 64   ;;  %s4828_s5 = sld [smem:[#allocation62_spill]] }
 0x1ed   : > { %s4001_s6 = smov 4   ;;  %s4002_s0 = smov [#allocation28]  }
 0x1ee   : > { %3058 = dma.hbm_to_vmem [thread:$0]  (!%p4215_p5), %s4827_s9, 128, %s961_s13, [#allocation24], %s4000_s3, %s4000_s3, %s4001_s6  }
 0x1ef   : > { %s985_s14 = sshll.u32 %s4002_s0, 4  ;;  %s4003_s11 = smov [#allocation31]   ;;  %s986_s14 = int_to_ptr.vmem [resolvable:$true] %s985_s14 }
 0x1f0   : > { %s1006_s10 = sshll.u32 %s4003_s11, 4  ;;  %s1007_s10 = int_to_ptr.vmem [resolvable:$true] %s1006_s10 }
 0x1f2   : > { %s3784_s17 = scalar_lea.hbm %s4828_s5, 16 }
 0x1f3   : > { %p3785_p13 = scmp.ne.s32.totalorder %s4828_s5, %s3784_s17  ;;  %p3791_p1 = scmp.lt.u32.totalorder %s3784_s17, %s4828_s5 }
 0x1f5   : > { %p3787_p0 = pnand %p3785_p13, %p4227_p7 }
 0x1f7   : > { %p3788_p3 = pneg %p3787_p0 }
 0x1f9   : > { %p3793_p4 = pnand %p3791_p1, %p3788_p3 }
 0x1fb   : > { %3796 = shalt.err (!%p3793_p4)
}
 0x1fc   : > { %s3797_s19 = scalar_lea.vmem %s986_s14, 16  ;;  %s3804_s13 = scalar_lea.vmem %s986_s14, 32 }
 0x1fd   : > { %p3798_p12 = scmp.ne.s32.totalorder %s986_s14, %s3797_s19  ;;  %p3805_p9 = scmp.lt.s32.totalorder %s986_s14, %s986_s14 }
 0x1fe   : > { %p3806_p10 = scmp.lt.s32.totalorder %s3804_s13, %s3797_s19 }
 0x1ff   : > { %p3800_p6 = pnand %p3798_p12, %p4227_p7 }
 0x200   : > { %p3807_p11 = por %p3806_p10, %p3805_p9 }
 0x201   : > { %p3801_p8 = pneg %p3800_p6 }
 0x203   : > { %p3808_p2 = pnand %p3807_p11, %p3801_p8 }
 0x205   : > { %3811 = shalt.err (!%p3808_p2)
}
 0x206   : > { %s4829_s0 = sld [smem:[#allocation64_spill]] }
 0x207   : > { %3064 = dma.hbm_to_vmem [thread:$0]  (!%p4215_p5), %s4828_s5, 16, %s986_s14, [#allocation27]  }
 0x20c   : > { %s4830_s11 = smov %s4829_s0  ;;  %s3812_s17 = scalar_lea.hbm %s4829_s0, 128 }
 0x20d   : > { %p3813_p13 = scmp.ne.s32.totalorder %s4830_s11, %s3812_s17  ;;  %p3819_p1 = scmp.lt.u32.totalorder %s3812_s17, %s4830_s11 }
 0x20f   : > { %p3815_p0 = pnand %p3813_p13, %p4227_p7 }
 0x211   : > { %p3816_p3 = pneg %p3815_p0 }
 0x213   : > { %p3821_p4 = pnand %p3819_p1, %p3816_p3 }
 0x215   : > { %3824 = shalt.err (!%p3821_p4)
}
 0x216   : > { %s3825_s19 = scalar_lea.vmem %s1007_s10, 128  ;;  %p3833_p9 = scmp.lt.s32.totalorder %s1007_s10, %s1007_s10 }
 0x217   : > { %p3826_p12 = scmp.ne.s32.totalorder %s1007_s10, %s3825_s19  ;;  %p3834_p10 = scmp.lt.s32.totalorder %s3825_s19, %s3825_s19 }
 0x219   : > { %p3828_p6 = pnand %p3826_p12, %p4227_p7  ;;  %p3835_p11 = por %p3834_p10, %p3833_p9 }
 0x21b   : > { %p3829_p8 = pneg %p3828_p6 }
 0x21d   : > { %p3836_p2 = pnand %p3835_p11, %p3829_p8 }
 0x21f   : > { %3839 = shalt.err (!%p3836_p2)
}
 0x220   : > { %s4831_s14 = sld [smem:[#allocation66_spill]]  ;;  %s4004_s13 = smov [#allocation34]  }
 0x221   : > { %3070 = dma.hbm_to_vmem [thread:$0]  (!%p4215_p5), %s4830_s11, 128, %s1007_s10, [#allocation30], %s4000_s3, %s4000_s3, %s4001_s6  }
 0x222   : > { %s1034_s0 = sshll.u32 %s4004_s13, 4  ;;  %s1035_s0 = int_to_ptr.vmem [resolvable:$true] %s1034_s0 }
 0x226   : > { %s3840_s17 = scalar_lea.hbm %s4831_s14, 16 }
 0x227   : > { %p3841_p13 = scmp.ne.s32.totalorder %s4831_s14, %s3840_s17  ;;  %p3847_p1 = scmp.lt.u32.totalorder %s3840_s17, %s4831_s14 }
 0x229   : > { %p3843_p0 = pnand %p3841_p13, %p4227_p7 }
 0x22b   : > { %p3844_p3 = pneg %p3843_p0 }
 0x22d   : > { %p3849_p4 = pnand %p3847_p1, %p3844_p3 }
 0x22f   : > { %3852 = shalt.err (!%p3849_p4)
}
 0x230   : > { %s3853_s19 = scalar_lea.vmem %s1035_s0, 16  ;;  %s3860_s5 = scalar_lea.vmem %s1035_s0, 32 }
 0x231   : > { %p3854_p12 = scmp.ne.s32.totalorder %s1035_s0, %s3853_s19  ;;  %p3861_p9 = scmp.lt.s32.totalorder %s1035_s0, %s1035_s0 }
 0x232   : > { %p3862_p10 = scmp.lt.s32.totalorder %s3860_s5, %s3853_s19 }
 0x233   : > { %p3856_p6 = pnand %p3854_p12, %p4227_p7 }
 0x234   : > { %p3863_p11 = por %p3862_p10, %p3861_p9 }
 0x235   : > { %p3857_p8 = pneg %p3856_p6 }
 0x237   : > { %p3864_p2 = pnand %p3863_p11, %p3857_p8 }
 0x239   : > { %3867 = shalt.err (!%p3864_p2)
}
 0x23a   : > { %3076 = dma.hbm_to_vmem [thread:$0]  (!%p4215_p5), %s4831_s14, 16, %s1035_s0, [#allocation33]  }
 0x23b   : > { %p4832_p13 = scmp.ne.s32.totalorder %s4820_s2, 0 }
 0x23c   : > { %p4833_p0 = scmp.ne.s32.totalorder (!%p4832_p13), %s4819_s1, 0 }
 0x23d   : > { %1059 = sbr.rel (%p4832_p13) target bundleno = 2536 (0x9e8), region = 128 }
 0x244   : > { %3889 = dma.done.wait (%p4833_p0), [#allocation4], 16  }
 0x245   : > { %3891 = vsyncadd (%p4833_p0), [#allocation4], 4294967280 }
 0x246   : > { %3893 = dma.done.wait (%p4833_p0), [#allocation6], 32  }
 0x247   : > { %3895 = vsyncadd (%p4833_p0), [#allocation6], 4294967264 }
 0x248   : > { %3897 = dma.done.wait (%p4833_p0), [#allocation9], 32  }
 0x249   : > { %3899 = vsyncadd (%p4833_p0), [#allocation9], 4294967264 }
 0x24a   : > { %3901 = dma.done.wait (%p4833_p0), [#allocation12], 80  }
 0x24b   : > { %3903 = vsyncadd (%p4833_p0), [#allocation12], 4294967216 }
 0x24c   : > { %3905 = dma.done.wait (%p4833_p0), [#allocation15], 32  }
 0x24d   : > { %3907 = vsyncadd (%p4833_p0), [#allocation15], 4294967264 }
 0x24e   : > { %3909 = dma.done.wait (%p4833_p0), [#allocation18], 32  }
 0x24f   : > { %3911 = vsyncadd (%p4833_p0), [#allocation18], 4294967264 }
 0x250   : > { %3913 = dma.done.wait (%p4833_p0), [#allocation21], 32  }
 0x251   : > { %3915 = vsyncadd (%p4833_p0), [#allocation21], 4294967264 }
 0x252   : > { %3917 = dma.done.wait (%p4833_p0), [#allocation24], 144  }
 0x253   : > { %3919 = vsyncadd (%p4833_p0), [#allocation24], 4294967152 }
 0x254   : > { %3921 = dma.done.wait (%p4833_p0), [#allocation27], 32  }
 0x255   : > { %3923 = vsyncadd (%p4833_p0), [#allocation27], 4294967264 }
 0x256   : > { %3925 = dma.done.wait (%p4833_p0), [#allocation30], 144  }
 0x257   : > { %3927 = vsyncadd (%p4833_p0), [#allocation30], 4294967152 }
 0x258   : > { %3929 = dma.done.wait (%p4833_p0), [#allocation33], 32  }
 0x259   : > { %3931 = vsyncadd (%p4833_p0), [#allocation33], 4294967264  ;;  %s4834_s2 = sld [smem:[#allocation49_spill]]  ;;  %s4835_s28 = sld [smem:[#allocation46_spill]]  ;;  %v1305_v0 = vlaneseq  ;;  %v2772_v2 = vld [vmem:[#allocation3] ss:$0 sm:$0xff] }
 0x25a   : > { %p1238_p5 = scmp.lt.s32.totalorder %s3938_s16, 1  ;;  %p1240_p7 = scmp.lt.s32.totalorder %s3934_s15, 1  ;;  %v2773_v5 = vld [vmem:[#allocation5] ss:$0 sm:$0xff]  ;;  %vm1512_vm2 = vcmask 1043456   ;;  %vm1478_vm5 = vcmask 64512  }
 0x25b   : > { %v4531_v1 = vshrl.u32 %v1305_v0, 7  ;;  %s4005_s17 = smov 8   ;;  %s4006_s19 = smov 16   ;;  %vm1483_vm6 = vcmask 130048   ;;  %vm1505_vm7 = vcmask 195584   ;;  %vm1684_vm8 = vcmask 1041408  }
 0x25c   : > { %s4862_s16 = smov (!%p1238_p5, %s3938_s16), 1  ;;  %vm1645_vm9 = vcmask 97280   ;;  %vm1677_vm10 = vcmask 293888   ;;  %vm4010_vm11 = vmmov 0   ;;  %vm2033_vm14 = vcmask 1045504   ;;  %p2815_p3 = scmp.ne.s32.totalorder %s3934_s15, 0 }
 0x25d   : > { %s4529_s7 = scalar_select %p1240_p7, %s3934_s15, 1  ;;  %v1309_v3 = vadd.s32 24, %v4531_v1  ;;  %vm1429_vm0 = vcmp.lt.s32.totalorder %v4531_v1, 7  ;;  %vm1408_vm1 = vcmp.lt.s32.totalorder %v4531_v1, 1  ;;  %v1314_v43 = vand.u32 31, %v4531_v1 }
 0x25e   : > { %s2766_s1 = sshll.u32 %s4862_s16, 3  ;;  %s4536_s10 = scalar_lea.vmem %s4164_s4, %s4862_s16  ;;  %vm2213_vm15 = vcmask 23552  }
 0x25f   : > { %s2765_s3 = sshll.u32 %s4529_s7, 2  ;;  %s4541_s5 = scalar_lea.vmem %s4169_s12, %s4862_s16  ;;  %v3258_v4 = vld [vmem:[%s4834_s2] sm:$0xff]   ;;  %v3259_v13 = vld [vmem:[%s4834_s2 + $0x8] ss:$0 sps:$4 sm:$0xff]   ;;  %v1335_v15 = vand.u32 31, %v1309_v3  ;;  %vm4586_vm4 = vcmp.ne.s32.totalorder %v1314_v43, 0 }
 0x260   : > { %s1244_s6 = sadd.s32 %s2766_s1, %s2765_s3  ;;  %2846 = vmatprep.subr.bf16.mxu0 %v3258_v4  ;;  %v1514_v19 = vsel %vm1512_vm2, %v3259_v13, 0  ;;  %s4007_s1 = smov 12  }
 0x261   : > { %s2767_s13 = sshll.u32 %s1244_s6, 3  ;;  %2847 = vmatpush3.bf16.msra.mxu0 %v3258_v4  ;;  %vm4563_vm3 = vcmp.ne.s32.totalorder %v1335_v15, 31  ;;  %s4008_s3 = smov 24  }
 0x262   : > { %s1246_s0 = scalar_lea.vmem %s4835_s28, %s2767_s13  ;;  %2926 = vmatprep.subr.msk.bf16.mxu0 %vm1512_vm2, %v3259_v13  ;;  %s4840_s28 = sld [smem:[#allocation50_spill]] }
 0x263   : > { %v4546_v6 = vld [vmem:[%s1246_s0] sm:$0xff]  ;;  %v4548_v7 = vld [vmem:[%s1246_s0 + $0x8] sm:$0xff]  ;;  %v4550_v8 = vld [vmem:[%s1246_s0 + $0x10] sm:$0xff]  ;;  %s4841_s6 = sld [smem:[#allocation55_spill]]  ;;  %s4842_s13 = sld [smem:[#allocation58_spill]] }
 0x264   : > { %v1390_v9 = vmul.f32 %v2772_v2, %v4546_v6  ;;  %v1391_v10 = vmul.f32 %v2772_v2, %v4548_v7  ;;  %v1392_v11 = vmul.f32 %v2772_v2, %v4550_v8  ;;  %v4556_v12 = vld [vmem:[%s1246_s0 + $0x18] sm:$0xff]  ;;  %s4847_s0 = sld [smem:[#allocation65_spill]] }
 0x265   : > { %v1393_v14 = vmul.f32 %v2772_v2, %v4556_v12  ;;  %2849 = vmatpush3.bf16.msra.mxu0 %v1514_v19 }
 0x266   : > { %v1400_v16 = vadd.f32 %v2773_v5, %v1390_v9  ;;  %v1401_v17 = vadd.f32 %v2773_v5, %v1391_v10  ;;  %v1402_v18 = vadd.f32 %v2773_v5, %v1392_v11  ;;  %v2774_v9 = vld [vmem:[#allocation7] ss:$0 sm:$0xff]  ;;  %v2779_v10 = vld [vmem:[#allocation8] ss:$0 sm:$0xff] }
 0x267   : > { %v1403_v20 = vadd.f32 %v2773_v5, %v1393_v14 }
 0x268   : > { %v1405_v21 = vrot.slane %v1401_v17, 7  ;;  %v3218_v22 = vpack.i.bf16 %v1401_v17, %v1400_v16  ;;  %v1404_v23 = vrot.slane %v1400_v16, 7  ;;  %v1425_v24 = vrot.slane %v1400_v16, 1  ;;  %v3260_v5 = vld [vmem:[%s4840_s28] sm:$0xff]   ;;  %v3261_v15 = vld [vmem:[%s4840_s28 + $0x8] sm:$0xff]  }
 0x269   : > { %v1426_v25 = vrot.slane %v1401_v17, 1  ;;  %v1427_v26 = vrot.slane %v1402_v18, 1  ;;  %v1428_v28 = vrot.slane %v1403_v20, 1  ;;  %v3223_v29 = vpack.i.bf16 %v1403_v20, %v1402_v18  ;;  %2854 = vmatprep.subr.bf16.mxu1 %v3260_v5  ;;  %v2780_v16 = vld [vmem:[#allocation10] ss:$0 sm:$0xff] }
 0x26a   : > { %3219 = vrot.lane.b32.xlu0 %v3218_v22, %s4005_s17  ;;  %v1406_v30 = vrot.slane %v1402_v18, 7  ;;  %v1407_v31 = vrot.slane %v1403_v20, 7  ;;  %v1411_v32 = vsel %vm1408_vm1, %v1404_v23, %v1405_v21  ;;  %2855 = vmatpush3.bf16.msra.mxu1 %v3260_v5 }
 0x26b   : > { %v1431_v33 = vsel %vm1429_vm0, %v1426_v25, %v1427_v26  ;;  %v1432_v34 = vsel %vm1429_vm0, %v1425_v24, %v1426_v25  ;;  %v1430_v35 = vsel %vm1429_vm0, %v1427_v26, %v1428_v28  ;;  %v1433_v36 = vsel %vm1429_vm0, %v1428_v28, %v1425_v24  ;;  %2856 = vmatprep.subr.bf16.mxu1 %v3261_v15  ;;  %v3262_v26 = vld [vmem:[%s4840_s28 + $0x10] ss:$0 sps:$4 sm:$0x33]  }
 0x26c   : > { %v3228_v37 = vpack.i.bf16 %v1431_v33, %v1432_v34  ;;  %v1445_v38 = vsel %vm4563_vm3, %v1433_v36, 0.0  ;;  %v1409_v39 = vsel %vm1408_vm1, %v1406_v30, %v1407_v31  ;;  %v1410_v40 = vsel %vm1408_vm1, %v1405_v21, %v1406_v30 }
 0x26d   : > { %v1412_v41 = vsel %vm1408_vm1, %v1407_v31, %v1404_v23  ;;  %v3233_v42 = vpack.i.bf16 %v1445_v38, %v1430_v35 }
 0x26e   : > { %3229 = vrot.lane.b32.xlu1 %v3228_v37, %s4006_s19  ;;  %3224 = vrot.lane.b32.xlu0 %v3223_v29, %s4005_s17  ;;  %v1421_v48 = vsel %vm4586_vm4, %v1412_v41, 0.0  ;;  %s4848_s17 = sld [smem:[#allocation67_spill]] }
 0x26f   : > { %2857 = vmatpush3.bf16.msra.mxu1 %v3261_v15 }
 0x270   : > { %2927 = vmatprep.subr.msk.bf16.mxu1 %vm1684_vm8, %v3262_v26 }
 0x272   : > { %3234 = vrot.lane.b32.xlu1 %v3233_v42, %s4006_s19  ;;  %s2768_s19 = sshll.u32 %s4862_s16, 1  ;;  %s4849_s16 = sld [smem:[#allocation68_spill]] }
 0x2dc   : > { %v3220_v45 = vpop.permute.xlu0 %3219 }
 0x2dd   : > { %v3222_v46 = vunpack.i.h.bf16 %v3220_v45  ;;  %v3221_v47 = vunpack.i.l.bf16 %v3220_v45 }
 0x2df   : > { %v1479_v51 = vsel %vm1478_vm5, %v1421_v48, %v3221_v47  ;;  %v1480_v52 = vsel %vm1478_vm5, %v1411_v32, %v3222_v46  ;;  %v1686_v32 = vsel %vm1684_vm8, %v3262_v26, 0  ;;  %v4009_v26 = vmov 0.0  }
 0x2e0   : > { %v3230_v49 = vpop.permute.xlu1 %3229  ;;  %v3225_v50 = vpop.permute.xlu0 %3224  ;;  %2859 = vmatpush3.bf16.msra.mxu1 %v1686_v32  ;;  %2870 = vmatprep.subr.bf16.mxu0 %v4009_v26 }
 0x2e1   : > { %v3232_v53 = vunpack.i.h.bf16 %v3230_v49  ;;  %v3231_v54 = vunpack.i.l.bf16 %v3230_v49  ;;  %v3227_v55 = vunpack.i.h.bf16 %v3225_v50  ;;  %v3226_v56 = vunpack.i.l.bf16 %v3225_v50 }
 0x2e3   : > { %v1484_v57 = vsel %vm1483_vm6, %v1479_v51, %v3231_v54  ;;  %v1485_v58 = vsel %vm1483_vm6, %v1480_v52, %v3232_v53  ;;  %v1482_v59 = vsel %vm1478_vm5, %v1409_v39, %v3227_v55  ;;  %v1481_v60 = vsel %vm1478_vm5, %v1410_v40, %v3226_v56  ;;  %v1284_v40 = vld [vmem:[#allocation13] sm:$0xf] }
 0x2e4   : > { %v3235_v61 = vpop.permute.xlu1 %3234  ;;  %v1488_v62 = vpack.c.bf16 %v1485_v58, %v1484_v57  ;;  %2928 = vmatprep.subr.msk.bf16.mxu1 %vm1512_vm2, %v1284_v40 }
 0x2e5   : > { %v3237_v63 = vunpack.i.h.bf16 %v3235_v61  ;;  %v3236_v0 = vunpack.i.l.bf16 %v3235_v61 }
 0x2e6   : > { %2850 = vmatprep.mubr.msk.bf16.mxu0 %vm1505_vm7, %v1488_v62 }
 0x2e7   : > { %v1487_v2 = vsel %vm1483_vm6, %v1482_v59, %v3237_v63  ;;  %v1486_v3 = vsel %vm1483_vm6, %v1481_v60, %v3236_v0 }
 0x2e8   : > { %v1489_v4 = vpack.c.bf16 %v1487_v2, %v1486_v3 }
 0x2ea   : > { %2851 = vmatmul.mubr.msk.bf16.vlgmr.msra.gmra.mrb[0].mxu0 %vm1505_vm7, %v1489_v4 }
 0x2eb   : > { %2876 = vmatprep.mubr.msk.bf16.mxu0 %vm4010_vm11, %v4009_v26 }
 0x3bd   : > { %v2852_v11 = vpop.f32.mrb[0].mxu0 }
 0x3be   : > { %v1559_v13 = vadd.f32 %v2852_v11, %v2774_v9  ;;  %v1550_v14 = vpop.f32.mrb[1].mxu0 }
 0x3bf   : > { %v1551_v17 = vadd.f32 %v2774_v9, %v1550_v14  ;;  %v2853_v18 = vpop.f32.mrb[2].mxu0 }
 0x3c0   : > { %v1573_v19 = vmul.f32 %v2779_v10, %v1559_v13  ;;  %v1562_v20 = vadd.f32 %v2853_v18, %v2774_v9  ;;  %v1553_v21 = vpop.f32.mrb[3].mxu0 }
 0x3c1   : > { %v1571_v22 = vmul.f32 %v2779_v10, %v1551_v17  ;;  %v1554_v23 = vadd.f32 %v2774_v9, %v1553_v21 }
 0x3c2   : > { %v1583_v24 = vadd.f32 %v2780_v16, %v1573_v19  ;;  %v1574_v25 = vmul.f32 %v2779_v10, %v1562_v20 }
 0x3c3   : > { %v1581_v28 = vadd.f32 %v2780_v16, %v1571_v22  ;;  %v1572_v29 = vmul.f32 %v2779_v10, %v1554_v23  ;;  %v1737_v22 = vpack.c.bf16 %v4548_v7, %v4546_v6  ;;  %v1752_v23 = vsel %vm1512_vm2, %v1284_v40, 0  ;;  %v3264_v6 = vld [vmem:[%s4841_s6 + $0x8] sm:$0xff]  }
 0x3c4   : > { %v1587_v30 = vmax.f32 %v1583_v24, 0.0  ;;  %v1584_v31 = vadd.f32 %v2780_v16, %v1574_v25  ;;  %v1738_v24 = vpack.c.bf16 %v4556_v12, %v4550_v8  ;;  %v3263_v25 = vld [vmem:[%s4841_s6] sm:$0xff]   ;;  %v2781_v7 = vld [vmem:[#allocation11] ss:$0 sm:$0xff]  ;;  %vm2277_vm2 = vcmask (!%p2815_p3), 90112  }
 0x3c5   : > { %v1585_v33 = vmax.f32 %v1581_v28, 0.0  ;;  %v1582_v34 = vadd.f32 %v2780_v16, %v1572_v29  ;;  %2871 = vmatpush3.bf16.msra.mxu0 %v3263_v25  ;;  %v2787_v28 = vld [vmem:[#allocation14] ss:$0 sm:$0xff] }
 0x3c6   : > { %v1588_v35 = vmax.f32 %v1584_v31, 0.0  ;;  %v1591_v36 = vrot.slane %v1587_v30, 7  ;;  %v1603_v43 = vrot.slane %v1587_v30, 1  ;;  %2872 = vmatprep.subr.bf16.mxu0 %v4009_v26  ;;  %v2914_v29 = vadd.f32 %v2787_v28, %v2781_v7 }
 0x3c7   : > { %v1589_v37 = vrot.slane %v1585_v33, 7  ;;  %v1601_v38 = vrot.slane %v1585_v33, 1  ;;  %v1586_v39 = vmax.f32 %v1582_v34, 0.0 }
 0x3c8   : > { %v1592_v41 = vrot.slane %v1588_v35, 7  ;;  %v3238_v42 = vpack.i.bf16 %v1588_v35, %v1587_v30  ;;  %v1604_v45 = vrot.slane %v1588_v35, 1 }
 0x3c9   : > { %v1590_v46 = vrot.slane %v1586_v39, 7  ;;  %v3243_v47 = vpack.i.bf16 %v1586_v39, %v1585_v33  ;;  %v1602_v48 = vrot.slane %v1586_v39, 1  ;;  %2873 = vmatpush3.bf16.msra.mxu0 %v3264_v6 }
 0x3ca   : > { %3239 = vrot.lane.b32.xlu1 %v3238_v42, %s4007_s1  ;;  %v1605_v49 = vsel %vm1429_vm0, %v1603_v43, %v1604_v45  ;;  %v1608_v50 = vsel %vm1429_vm0, %v1604_v45, %v1601_v38  ;;  %v1593_v51 = vsel %vm1408_vm1, %v1591_v36, %v1592_v41  ;;  %v1596_v52 = vsel %vm1408_vm1, %v1592_v41, %v1589_v37 }
 0x3cb   : > { %3244 = vrot.lane.b32.xlu0 %v3243_v47, %s4007_s1  ;;  %v1612_v53 = vsel %vm4563_vm3, %v1608_v50, 0.0  ;;  %v1606_v54 = vsel %vm1429_vm0, %v1602_v48, %v1603_v43  ;;  %v1607_v55 = vsel %vm1429_vm0, %v1601_v38, %v1602_v48  ;;  %v1594_v56 = vsel %vm1408_vm1, %v1590_v46, %v1591_v36  ;;  %2874 = vmatprep.subr.bf16.mxu0 %v4009_v26  ;;  %v3265_v38 = vld [vmem:[%s4841_s6 + $0x10] ss:$0 sps:$4 sm:$0x33]   ;;  %v2790_v47 = vld [vmem:[#allocation16] ss:$0 sm:$0xff] }
 0x3cc   : > { %v3253_v57 = vpack.i.bf16 %v1612_v53, %v1605_v49  ;;  %v3248_v58 = vpack.i.bf16 %v1606_v54, %v1607_v55  ;;  %v1595_v59 = vsel %vm1408_vm1, %v1589_v37, %v1590_v46  ;;  %v1597_v9 = vsel %vm4586_vm4, %v1596_v52, 0.0  ;;  %v2791_v49 = vld [vmem:[#allocation17] ss:$0 sm:$0xff] }
 0x3cd   : > { %v1879_v39 = vsel %vm1684_vm8, %v3265_v38, 0  ;;  %v1370_v50 = vand.u32 7, %v4531_v1  ;;  %v2809_v53 = vld [vmem:[#allocation32] ss:$0 sm:$0xff]  ;;  %vm2237_vm0 = vcmask 7168   ;;  %vm2275_vm1 = vcmask (!%p2815_p3), 16384  }
 0x3ce   : > { %3254 = vrot.lane.b32.xlu1 %v3253_v57, %s4008_s3  ;;  %2875 = vmatpush3.bf16.msra.mxu0 %v1879_v39 }
 0x3cf   : > { %3249 = vrot.lane.b32.xlu0 %v3248_v58, %s4008_s3  ;;  %2880 = vmatprep.subr.bf16.mxu0 %v4009_v26  ;;  %vm4667_vm12 = vcmp.ne.s32.totalorder %v1370_v50, 7  ;;  %vm4675_vm13 = vcmp.ne.s32.totalorder %v1370_v50, 0 }
 0x43c   : > { %v3240_v27 = vpop.permute.xlu1 %3239 }
 0x43d   : > { %v3245_v60 = vpop.permute.xlu0 %3244  ;;  %v3242_v61 = vunpack.i.h.bf16 %v3240_v27  ;;  %v3241_v62 = vunpack.i.l.bf16 %v3240_v27 }
 0x43e   : > { %v3247_v63 = vunpack.i.h.bf16 %v3245_v60  ;;  %v3246_v0 = vunpack.i.l.bf16 %v3245_v60 }
 0x43f   : > { %v1648_v10 = vsel %vm1645_vm9, %v1594_v56, %v3241_v62  ;;  %v1649_v11 = vsel %vm1645_vm9, %v1593_v51, %v3242_v61  ;;  %v3266_v62 = vld [vmem:[%s4842_s13] sm:$0xff]  }
 0x440   : > { %v3255_v2 = vpop.permute.xlu1 %3254  ;;  %v1646_v17 = vsel %vm1645_vm9, %v1597_v9, %v3246_v0  ;;  %v1647_v18 = vsel %vm1645_vm9, %v1595_v59, %v3247_v63  ;;  %v3267_v63 = vld [vmem:[%s4842_s13 + $0x8] sm:$0xff]   ;;  %v3268_v0 = vld [vmem:[%s4842_s13 + $0x10] ss:$0 sps:$4 sm:$0x33]  }
 0x441   : > { %v3257_v3 = vunpack.i.h.bf16 %v3255_v2  ;;  %v3256_v4 = vunpack.i.l.bf16 %v3255_v2  ;;  %v3250_v5 = vpop.permute.xlu0 %3249  ;;  %v2792_v2 = vld [vmem:[#allocation19] ss:$0 sm:$0xff] }
 0x442   : > { %v3252_v13 = vunpack.i.h.bf16 %v3250_v5  ;;  %v3251_v14 = vunpack.i.l.bf16 %v3250_v5 }
 0x443   : > { %v1653_v15 = vsel %vm1505_vm7, %v1649_v11, %v3257_v3  ;;  %v1652_v16 = vsel %vm1505_vm7, %v1648_v10, %v3256_v4  ;;  %v1976_v3 = vsel %vm1684_vm8, %v3268_v0, 0  ;;  %v2797_v4 = vld [vmem:[#allocation20] ss:$0 sm:$0xff] }
 0x444   : > { %v1655_v19 = vpack.c.bf16 %v1653_v15, %v1652_v16  ;;  %v1650_v20 = vsel %vm1505_vm7, %v1646_v17, %v3251_v14  ;;  %v1651_v44 = vsel %vm1505_vm7, %v1647_v18, %v3252_v13  ;;  %v2798_v13 = vld [vmem:[#allocation22] ss:$0 sm:$0xff] }
 0x445   : > { %v1654_v21 = vpack.c.bf16 %v1651_v44, %v1650_v20 }
 0x447   : > { %2860 = vmatprep.mubr.msk.bf16.mxu1 %vm1677_vm10, %v1654_v21  ;;  %v3269_v21 = vld [vmem:[#allocation25] sm:$0x3f]  }
 0x448   : > { %2861 = vmatmul.mubr.msk.bf16.vlgmr.msra.gmra.mrb[0].mxu1 %vm1677_vm10, %v1655_v19 }
 0x449   : > { %2865 = vmatpush3.bf16.msra.mxu1 %v1752_v23  ;;  %2866 = vmatprep.mubr.msk.bf16.mxu1 %vm1478_vm5, %v1737_v22 }
 0x44a   : > { %2896 = vmatprep.subr.bf16.mxu1 %v4009_v26 }
 0x454   : > { %2867 = vmatmul.mubr.msk.bf16.vlgmr.msra.gmra.mrb[0].mxu1 %vm1478_vm5, %v1738_v24 }
 0x455   : > { %2898 = vmatprep.mubr.msk.bf16.mxu1 %vm4010_vm11, %v4009_v26 }
 0x527   : > { %v2868_v8 = vpop.f32.mrb[0].mxu1 }
 0x528   : > { %v2908_v12 = vadd.f32 %v2868_v8, %v2781_v7  ;;  %v1788_v30 = vpop.f32.mrb[1].mxu1 }
 0x529   : > { %v2910_v31 = vadd.f32 %v2781_v7, %v1788_v30  ;;  %v2869_v32 = vpop.f32.mrb[2].mxu1  ;;  %v2035_v7 = vsel %vm2033_vm14, %v3269_v21, 0  ;;  %v2804_v30 = vld [vmem:[#allocation26] ss:$0 sm:$0xff] }
 0x52a   : > { %v2909_v33 = vadd.f32 %v2908_v12, %v2787_v28  ;;  %v2913_v34 = vadd.f32 %v2914_v29, %v2869_v32  ;;  %v1791_v35 = vpop.f32.mrb[3].mxu1  ;;  %v2799_v12 = vld [vmem:[#allocation23] ss:$0 sm:$0xff] }
 0x52b   : > { %v2911_v36 = vadd.f32 %v2910_v31, %v2787_v28  ;;  %v2915_v37 = vadd.f32 %v2914_v29, %v1791_v35  ;;  %v3270_v29 = vld [vmem:[#allocation31] sm:$0x3f]   ;;  %v2916_v31 = vadd.f32 %v2804_v30, %v2799_v12 }
 0x52c   : > { %1809 = vst.msk [vmem:[#allocation2 + $0x10] sm:$0xff] %vm1645_vm9, %v2909_v33  ;;  %1810 = vst.msk [vmem:[#allocation2 + $0x18] sm:$0xff] %vm1645_vm9, %v2913_v34  ;;  %v2114_v8 = vsel %vm2033_vm14, %v3270_v29, 0  ;;  %v2807_v33 = vld [vmem:[#allocation28] ss:$0 sm:$0xff] }
 0x52d   : > { %1807 = vst.msk [vmem:[#allocation2] sm:$0xff] %vm1645_vm9, %v2911_v36  ;;  %1808 = vst.msk [vmem:[#allocation2 + $0x8] sm:$0xff] %vm1645_vm9, %v2915_v37  ;;  %2897 = vmatpush3.bf16.msra.mxu1 %v2114_v8  ;;  %v2808_v36 = vld [vmem:[#allocation29] ss:$0 sm:$0xff] }
 0x52e   : > { %2902 = vmatprep.subr.bf16.mxu1 %v4009_v26 }
 0x534   : > { %v1811_v40 = vld [vmem:[#allocation2] ss:$4 sm:$0xff]  ;;  %v1813_v41 = vld [vmem:[#allocation2 + $0x1] ss:$4 sm:$0xff]  ;;  %v1815_v42 = vld [vmem:[#allocation2 + $0x2] ss:$4 sm:$0xff] }
 0x535   : > { %v1817_v43 = vld [vmem:[#allocation2 + $0x3] ss:$4 sm:$0xff]  ;;  %v1818_v45 = vmax.f32 %v1811_v40, %v1813_v41 }
 0x536   : > { %v1819_v46 = vmax.f32 %v1815_v42, %v1817_v43  ;;  %v3271_v41 = vld [vmem:[%s4847_s0] sm:$0x3f]  }
 0x538   : > { %v1820_v48 = vmax.f32 %v1818_v45, %v1819_v46  ;;  %v2171_v46 = vsel %vm2033_vm14, %v3271_v41, 0 }
 0x53a   : > { %v1827_v51 = vmul.f32 %v2790_v47, %v1820_v48  ;;  %v2018_v28 = vpack.c.bf16 %v1820_v48, %v1820_v48 }
 0x53c   : > { %v1834_v52 = vadd.f32 %v2791_v49, %v1827_v51 }
 0x53e   : > { %1844 = vrot.lane.b32.xlu0 %v1834_v52, %s4007_s1  ;;  %v1839_v54 = vrot.slane %v1834_v52, 1  ;;  %v1835_v56 = vrot.slane %v1834_v52, 7 }
 0x540   : > { %v1842_v55 = vsel %vm4667_vm12, %v1839_v54, 0.0  ;;  %v1838_v58 = vsel %vm4675_vm13, %v1835_v56, 0.0 }
 0x541   : > { %1848 = vrot.lane.b32.xlu1 %v1842_v55, %s4008_s3 }
 0x5b0   : > { %v1845_v57 = vpop.permute.xlu0 %1844 }
 0x5b1   : > { %v1851_v59 = vsel %vm1645_vm9, %v1838_v58, %v1845_v57 }
 0x5b3   : > { %v1849_v27 = vpop.permute.xlu1 %1848 }
 0x5b4   : > { %v1852_v60 = vsel %vm1505_vm7, %v1851_v59, %v1849_v27  ;;  %v2812_v27 = vld [vmem:[#allocation34] ss:$0 sm:$0xff] }
 0x5b5   : > { %v1853_v61 = vpack.c.bf16 %v1852_v60, %v1852_v60 }
 0x5b7   : > { %2877 = vmatmul.mubr.msk.bf16.vlgmr.msra.gmra.mrb[4].mxu0 %vm1677_vm10, %v1853_v61 }
 0x5b8   : > { %2886 = vmatprep.mubr.msk.bf16.mxu0 %vm4010_vm11, %v4009_v26  ;;  %2881 = vmatpush3.bf16.msra.mxu0 %v3266_v62 }
 0x5b9   : > { %2882 = vmatprep.subr.bf16.mxu0 %v4009_v26 }
 0x5bc   : > { %2883 = vmatpush3.bf16.msra.mxu0 %v3267_v63 }
 0x5bd   : > { %2884 = vmatprep.subr.bf16.mxu0 %v4009_v26 }
 0x5c0   : > { %2885 = vmatpush3.bf16.msra.mxu0 %v1976_v3 }
 0x5c1   : > { %2890 = vmatprep.subr.bf16.mxu0 %v4009_v26 }
 0x68a   : > { %v1915_v5 = vpop.f32.mrb[4].mxu0 }
 0x68b   : > { %v1916_v9 = vadd.f32 %v2792_v2, %v1915_v5  ;;  %v2878_v10 = vpop.f32.mrb[5].mxu0 }
 0x68c   : > { %v1918_v11 = vpop.f32.mrb[6].mxu0 }
 0x68d   : > { %v1927_v14 = vmul.f32 %v2797_v4, %v1916_v9  ;;  %v2879_v15 = vpop.f32.mrb[7].mxu0 }
 0x68f   : > { %v1934_v16 = vadd.f32 %v2798_v13, %v1927_v14 }
 0x691   : > { %v1935_v17 = vmax.f32 %v1934_v16, 0.0 }
 0x693   : > { %1941 = vrot.lane.b32.xlu0 %v1935_v17, %s4007_s1  ;;  %v1938_v18 = vrot.slane %v1935_v17, 1  ;;  %v1936_v20 = vrot.slane %v1935_v17, 7  ;;  %s4719_s1 = sadd.s32 %s2768_s19, %s4529_s7 }
 0x695   : > { %v1939_v19 = vsel %vm4667_vm12, %v1938_v18, 0.0  ;;  %v1937_v22 = vsel %vm4675_vm13, %v1936_v20, 0.0 }
 0x696   : > { %1945 = vrot.lane.b32.xlu1 %v1939_v19, %s4008_s3  ;;  %s2769_s3 = sshll.u32 %s4719_s1, 3 }
 0x697   : > { %s1254_s0 = scalar_lea.vmem %s4848_s17, %s2769_s3  ;;  %s1262_s7 = scalar_lea.vmem %s4849_s16, %s2769_s3 }
 0x705   : > { %v1942_v44 = vpop.permute.xlu0 %1941 }
 0x706   : > { %v1948_v23 = vsel %vm1645_vm9, %v1937_v22, %v1942_v44 }
 0x708   : > { %v1946_v24 = vpop.permute.xlu1 %1945 }
 0x709   : > { %v1949_v25 = vsel %vm1505_vm7, %v1948_v23, %v1946_v24 }
 0x70a   : > { %v1950_v6 = vpack.c.bf16 %v1949_v25, %v1949_v25 }
 0x70c   : > { %2887 = vmatmul.mubr.msk.bf16.vlgmr.msra.gmra.mrb[8].mxu0 %vm1677_vm10, %v1950_v6 }
 0x70d   : > { %2891 = vmatpush3.bf16.msra.mxu0 %v2035_v7  ;;  %2892 = vmatprep.mubr.msk.bf16.mxu0 %vm4010_vm11, %v4009_v26 }
 0x718   : > { %2893 = vmatmul.mubr.msk.bf16.vlgmr.msra.gmra.mrb[8].mxu0 %vm1645_vm9, %v2018_v28 }
 0x7eb   : > { %v2071_v32 = vpop.f32.mrb[8].mxu0 }
 0x7ec   : > { %v2917_v34 = vadd.f32 %v2916_v31, %v2071_v32  ;;  %v2894_v35 = vpop.f32.mrb[9].mxu0 }
 0x7ed   : > { %v2074_v37 = vpop.f32.mrb[10].mxu0 }
 0x7ee   : > { %v2085_v38 = vmul.f32 %v2917_v34, %v2807_v33  ;;  %v2895_v39 = vpop.f32.mrb[11].mxu0 }
 0x7f0   : > { %v2093_v40 = vadd.f32 %v2808_v36, %v2085_v38 }
 0x7f2   : > { %v2094_v42 = vmax.f32 %v2093_v40, 0.0 }
 0x7f4   : > { %v2095_v43 = vpack.c.bf16 %v2094_v42, %v2094_v42  ;;  %v2264_v45 = vsel %vm1645_vm9, %v2094_v42, 0.0 }
 0x7f5   : > { %v2265_v47 = vrot.slane %v2264_v45, 4 }
 0x7f6   : > { %2899 = vmatmul.mubr.msk.bf16.vlgmr.msra.gmra.mrb[4].mxu1 %vm1645_vm9, %v2095_v43 }
 0x7f7   : > { %v2266_v48 = vadd.f32 %v2265_v47, %v2264_v45  ;;  %2903 = vmatpush3.bf16.msra.mxu1 %v2171_v46  ;;  %2904 = vmatprep.mubr.msk.bf16.mxu1 %vm4010_vm11, %v4009_v26 }
 0x7f9   : > { %v2267_v49 = vrot.slane %v2266_v48, 2 }
 0x7fb   : > { %v2268_v50 = vadd.f32 %v2267_v49, %v2266_v48 }
 0x7fd   : > { %v2269_v51 = vrot.slane %v2268_v50, 1 }
 0x7fe   : > { %2905 = vmatmul.mubr.msk.bf16.vlgmr.msra.gmra.mrb[8].mxu1 %vm1645_vm9, %v2095_v43 }
 0x7ff   : > { %v4715_v52 = vadd.f32 %v2269_v51, %v2268_v50 }
 0x801   : > { %2278 = vst.msk [vmem:[%s4541_s5] sm:$0x1] (!%p2815_p3), %vm2277_vm2, %v4715_v52 }
 0x8c9   : > { %v2150_v54 = vpop.f32.mrb[4].mxu1 }
 0x8ca   : > { %v2151_v55 = vadd.f32 %v2809_v53, %v2150_v54  ;;  %v2900_v56 = vpop.f32.mrb[5].mxu1 }
 0x8cb   : > { %v2153_v1 = vpop.f32.mrb[6].mxu1 }
 0x8cc   : > { %v2215_v26 = vsel %vm1645_vm9, %v2151_v55, -inf  ;;  %v2901_v57 = vpop.f32.mrb[7].mxu1 }
 0x8cd   : > { %v2216_v58 = vrot.slane %v2215_v26, 4 }
 0x8cf   : > { %v2217_v59 = vmax.f32 %v2215_v26, %v2216_v58 }
 0x8d1   : > { %v2218_v60 = vrot.slane %v2217_v59, 2  ;;  %v2207_v61 = vpop.f32.mrb[8].mxu1 }
 0x8d2   : > { %v2208_v62 = vadd.f32 %v2812_v27, %v2207_v61  ;;  %v2906_v63 = vpop.f32.mrb[9].mxu1 }
 0x8d3   : > { %v2219_v0 = vmax.f32 %v2217_v59, %v2218_v60  ;;  %v2210_v2 = vpop.f32.mrb[10].mxu1 }
 0x8d4   : > { %2214 = vst.msk [vmem:[%s1254_s0] sm:$0xff] %vm2213_vm15, %v2208_v62  ;;  %v2907_v3 = vpop.f32.mrb[11].mxu1 }
 0x8d5   : > { %v2220_v4 = vrot.slane %v2219_v0, 1 }
 0x8d7   : > { %v2221_v5 = vmax.f32 %v2219_v0, %v2220_v4 }
 0x8d9   : > { %v2222_v9 = vsub.f32 %v2151_v55, %v2221_v5 }
 0x8db   : > { %v2223_v10 = vmul.f32 1.442695, %v2222_v9 }
 0x8dd   : > { %3272 = vpow2.f32 %v2223_v10 }
 0x8e7   : > { %v3273_v11 = vpop.eup %3272 }
 0x8e8   : > { %v2225_v13 = vsel %vm1645_vm9, %v3273_v11, 0.0 }
 0x8e9   : > { %v2226_v14 = vrot.slane %v2225_v13, 4 }
 0x8eb   : > { %v2227_v15 = vadd.f32 %v2226_v14, %v2225_v13 }
 0x8ed   : > { %v2228_v16 = vrot.slane %v2227_v15, 2 }
 0x8ef   : > { %v2229_v17 = vadd.f32 %v2228_v16, %v2227_v15 }
 0x8f1   : > { %v2230_v18 = vrot.slane %v2229_v17, 1 }
 0x8f3   : > { %v2231_v19 = vadd.f32 %v2230_v18, %v2229_v17 }
 0x8f5   : > { %3274 = vrcp.f32 %v2231_v19 }
 0x8ff   : > { %v3275_v20 = vpop.eup %3274 }
 0x900   : > { %v2233_v44 = vmul.f32 %v3275_v20, %v3273_v11 }
 0x902   : > { %v2234_v21 = vsel %vm1645_vm9, %v2233_v44, 0.0 }
 0x903   : > { %2235 = vadd.xlane.f32.xlu0 %v2234_v21 }
 0x990   : > { %v2236_v22 = vpop.xlane.xlu0 %2235 }
 0x991   : > { %2238 = vst.msk [vmem:[%s1262_s7] sm:$0xff] %vm2237_vm0, %v2236_v22  ;;  %v2239_v23 = vrot.slane %v2236_v22, 4 }
 0x993   : > { %v2240_v24 = vmax.f32 %v2236_v22, %v2239_v23 }
 0x995   : > { %v2241_v25 = vrot.slane %v2240_v24, 2 }
 0x997   : > { %v2242_v6 = vmax.f32 %v2240_v24, %v2241_v25 }
 0x999   : > { %v2243_v7 = vrot.slane %v2242_v6, 1 }
 0x99b   : > { %v2244_v28 = vmax.f32 %v2242_v6, %v2243_v7 }
 0x99d   : > { %v2245_v29 = vsub.f32 %v2236_v22, %v2244_v28 }
 0x99f   : > { %v2246_v8 = vmul.f32 1.442695, %v2245_v29 }
 0x9a1   : > { %3276 = vpow2.f32 %v2246_v8 }
 0x9ab   : > { %v3277_v12 = vpop.eup %3276 }
 0x9ac   : > { %v2248_v30 = vrot.slane %v3277_v12, 4 }
 0x9ae   : > { %v2249_v31 = vadd.f32 %v3277_v12, %v2248_v30 }
 0x9b0   : > { %v2250_v32 = vrot.slane %v2249_v31, 2 }
 0x9b2   : > { %v2251_v33 = vadd.f32 %v2250_v32, %v2249_v31 }
 0x9b4   : > { %v2252_v34 = vrot.slane %v2251_v33, 1 }
 0x9b6   : > { %v2253_v35 = vadd.f32 %v2252_v34, %v2251_v33 }
 0x9b8   : > { %3278 = vrcp.f32 %v2253_v35 }
 0x9c2   : > { %v3279_v36 = vpop.eup %3278 }
 0x9c3   : > { %v2255_v37 = vmul.f32 %v3279_v36, %v3277_v12 }
 0x9c5   : > { %v2256_v38 = vmul.f32 %v2255_v37, %v2208_v62 }
 0x9c7   : > { %v2257_v39 = vsel %vm2213_vm15, %v2256_v38, 0.0 }
 0x9c8   : > { %v2258_v40 = vrot.slane %v2257_v39, 4 }
 0x9ca   : > { %v2259_v41 = vadd.f32 %v2258_v40, %v2257_v39 }
 0x9cc   : > { %v2260_v42 = vrot.slane %v2259_v41, 2  ;;  %2274 = sbr.rel (%p2815_p3) target bundleno = 2517 (0x9d5), region = 216 }
 0x9ce   : > { %v2261_v43 = vadd.f32 %v2260_v42, %v2259_v41 }
 0x9d0   : > { %v2262_v45 = vrot.slane %v2261_v43, 1 }
 0x9d2   : > { %v2263_v46 = vadd.f32 %v2262_v45, %v2261_v43 }
 0x9d4   : > { %2276 = vst.msk [vmem:[%s4536_s10] sm:$0x1] %vm2275_vm1, %v2263_v46 }
 0x9d5 PF: > { %p2816_p1 = scmp.le.s32.totalorder %s3934_s15, 0 }
 0x9d6   : > { %vm2285_vm3 = vcmask (!%p2816_p1), 16384   ;;  %v2287_v48 = vld [vmem:[%s4541_s5] sm:$0x1] (!%p2816_p1)  ;;  %vm2289_vm4 = vcmask (!%p2816_p1), 90112  }
 0x9d7   : > { %2282 = sbr.rel (%p2816_p1) target bundleno = 2527 (0x9df), region = 220  ;;  %v2288_v50 = vadd.f32 (!%p2816_p1), %v2287_v48, %v4715_v52 }
 0x9d9   : > { %2290 = vst.msk [vmem:[%s4541_s5] sm:$0x1] (!%p2816_p1), %vm2289_vm4, %v2288_v50 }
 0x9db   : > { %v2283_v47 = vld [vmem:[%s4536_s10] sm:$0x1] (!%p2816_p1) }
 0x9dc   : > { %v2284_v49 = vadd.f32 (!%p2816_p1), %v2283_v47, %v2263_v46 }
 0x9de   : > { %2286 = vst.msk [vmem:[%s4536_s10] sm:$0x1] %vm2285_vm3, %v2284_v49 }
 0x9df PF: > { %p2817_p4 = scmp.ne.s32.totalorder %s3934_s15, 1 }
 0x9e0   : > { %vm2297_vm5 = vcmask (!%p2817_p4), 90112  }
 0x9e1   : > { %2294 = sbr.rel (%p2817_p4) target bundleno = 2536 (0x9e8), region = 224  ;;  %v2295_v51 = vld [vmem:[%s4541_s5] sm:$0x1] (!%p2817_p4) }
 0x9e2   : > { %v2296_v53 = vmul.f32 (!%p2817_p4), 0.0625, %v2295_v51 }
 0x9e4   : > { %2298 = vst.msk [vmem:[%s4541_s5] sm:$0x1] (!%p2817_p4), %vm2297_vm5, %v2296_v53 }
 0x9e8 PF: > { %s4850_s17 = sld [smem:[#allocation69_spill]]  ;;  %s4851_s15 = smov %s3942_s18 }
 0x9e9   : > { %s4852_s16 = smov %s3946_s22  ;;  %s4853_s18 = smov %s4856_s8 }
 0x9ea   : > { %s4854_s22 = smov %s4860_s23 }
 0x9ee   : > { %s83_s0 = sadd.s32 1, %s4850_s17  }
 0x9ef   : > { %p80_p12 = scmp.ge.s32.totalorder %s83_s0, 6  }
 0x9f1   :  { %82 = sbr.rel (!%p80_p12) target bundleno = 69 (0x45), region = 324 }
 0x9f8   :  { %2372 = vsyncpa [#allocation4], 1 }
 0x9f9   :  { %2374 = vsyncpa [#allocation4 + $0x1], 1 }
 0x9fa   :  { %2375 = vsyncpa [#allocation6], 1 }
 0x9fb   :  { %2376 = vsyncpa [#allocation9], 1 }
 0x9fc   :  { %2377 = vsyncpa [#allocation12], 1 }
 0x9fd   :  { %2378 = vsyncpa [#allocation15], 1 }
 0x9fe   :  { %2379 = vsyncpa [#allocation18], 1 }
 0x9ff   :  { %2380 = vsyncpa [#allocation21], 1 }
 0xa00   :  { %2381 = vsyncpa [#allocation24], 1 }
 0xa01   :  { %2382 = vsyncpa [#allocation27], 1 }
 0xa02   :  { %2383 = vsyncpa [#allocation30], 1 }
 0xa03   :  { %2384 = vsyncpa [#allocation33], 1 }

// kernel: net_forward.3
= control target key start
LH: loop header
LB: loop body
LE: loop exit
PB: predicated region body
PF: predicated region fallthrough
CT: control target
= control target key end

     0   :  { %s8247_s0 = inlined_call_operand.vmem [shape: f32[512,4], index: 0, kind: input, shape index: {}]   ;;  %s8248_s1 = inlined_call_operand.vmem [shape: f32[1,4], index: 1, kind: input, shape index: {}]   ;;  %s8249_s2 = inlined_call_operand.vmem [shape: f32[1,4], index: 2, kind: input, shape index: {}]   ;;  %s8250_s3 = inlined_call_operand.vmem [shape: bf16[12,4], index: 3, kind: input, shape index: {}]   ;;  %s8251_s4 = inlined_call_operand.hbm [shape: f32[1,4], index: 4, kind: input, shape index: {}]   ;;  %s8252_s5 = inlined_call_operand.hbm [shape: f32[1,4], index: 5, kind: input, shape index: {}]   ;;  %s8253_s6 = inlined_call_operand.hbm [shape: f32[1,4], index: 6, kind: input, shape index: {}]   ;;  %s8254_s7 = inlined_call_operand.vmem [shape: bf16[12,8], index: 7, kind: input, shape index: {}]   ;;  %s8255_s8 = inlined_call_operand.hbm [shape: f32[1,8], index: 8, kind: input, shape index: {}]   ;;  %s8256_s9 = inlined_call_operand.hbm [shape: f32[1,8], index: 9, kind: input, shape index: {}]   ;;  %s8257_s10 = inlined_call_operand.hbm [shape: f32[1,8], index: 10, kind: input, shape index: {}]   ;;  %s8258_s11 = inlined_call_operand.vmem [shape: bf16[24,8], index: 11, kind: input, shape index: {}]   ;;  %s8259_s12 = inlined_call_operand.hbm [shape: f32[1,8], index: 12, kind: input, shape index: {}]   ;;  %s8260_s13 = inlined_call_operand.hbm [shape: bf16[4,8], index: 13, kind: input, shape index: {}]   ;;  %s8261_s14 = inlined_call_operand.hbm [shape: f32[1,8], index: 14, kind: input, shape index: {}]   ;;  %s8262_s15 = inlined_call_operand.vmem [shape: f32[128,8], index: 15, kind: output, shape index: {}]  }
   0x1   :  { %8274 = sst [smem:[#allocation46_spill]] %s8258_s11 }
   0x2   :  { %8275 = sst [smem:[#allocation47_spill]] %s8262_s15 }
   0x3   :  { %20 = vsyncpa [#allocation4], 0 }
   0x4   :  { %21 = vsyncpa [#allocation6], 0 }
   0x5   :  { %22 = vsyncpa [#allocation9], 0 }
   0x6   :  { %23 = vsyncpa [#allocation12], 0 }
   0x7   :  { %24 = vsyncpa [#allocation15], 0  ;;  %s5707_s18 = smov 0  }
   0x8 LB: > { %8276 = sst [smem:[#allocation22_spill]] %s5613_s18  ;;  %s5615_s19 = smov [#allocation5]   ;;  %s5613_s18 = sphi %s5707_s18, %s30_s18  }
   0x9   : > { %s414_s20 = sshll.u32 %s5615_s19, 4  ;;  %s5713_s21 = sadd.s32 4294967295, %s5613_s18   ;;  %s5718_s20 = int_to_ptr.vmem [resolvable:$true] %s414_s20 }
   0xa   : > { %p4337_p0 = scmp.ge.s32.totalorder %s5613_s18, 1  ;;  %p381_p1 = scmp.lt.s32.totalorder %s5613_s18, 3 }
   0xb   : > { %p8265_p2 = scmp.eq.s32.totalorder %s5713_s21, 0  ;;  %s5616_s23 = smov [#allocation8]  }
   0xc   : > { %p5720_p3 = pnand %p4337_p0, %p381_p1  ;;  %s439_s24 = sshll.u32 %s5616_s23, 4  ;;  %s5726_s24 = int_to_ptr.vmem [resolvable:$true] %s439_s24 }
   0xd   : > { %s5617_s25 = smov [#allocation11]   ;;  %s5618_s28 = smov [#allocation14]  }
   0xe   : > { %s8277_s22 = scalar_select %p5720_p3, 1, 0 }
   0xf   : > { %p4785_p4 = pneg %p5720_p3  ;;  %s461_s26 = sshll.u32 %s5617_s25, 4  ;;  %s5734_s26 = int_to_ptr.vmem [resolvable:$true] %s461_s26 }
  0x10   : > { %s486_s29 = sshll.u32 %s5618_s28, 4  ;;  %s5335_s17 = scalar_lea.hbm %s8252_s5, 16  ;;  %s5736_s29 = int_to_ptr.vmem [resolvable:$true] %s486_s29 }
  0x11   : > { %p5730_p5 = pnand %p8265_p2, %p4785_p4  ;;  %p5336_p6 = scmp.ne.s32.totalorder %s8252_s5, %s5335_s17 }
  0x12   : > { %p5342_p10 = scmp.lt.u32.totalorder %s5335_s17, %s8252_s5 }
  0x13   : > { %p5746_p7 = pneg %p5730_p5 }
  0x15   : > { %p5338_p8 = pnand %p5746_p7, %p5336_p6 }
  0x17   : > { %p5339_p9 = pneg %p5338_p8 }
  0x19   : > { %p5344_p11 = pnand %p5342_p10, %p5339_p9 }
  0x1b   : > { %5347 = shalt.err (!%p5344_p11)
}
  0x1c   : > { %s5348_s30 = scalar_lea.vmem %s5718_s20, 16  ;;  %s5355_s16 = scalar_lea.vmem %s5718_s20, 32 }
  0x1d   : > { %p5349_p12 = scmp.ne.s32.totalorder %s5718_s20, %s5348_s30  ;;  %p5356_p1 = scmp.lt.s32.totalorder %s5718_s20, %s5718_s20 }
  0x1e   : > { %p5357_p4 = scmp.lt.s32.totalorder %s5355_s16, %s5348_s30 }
  0x1f   : > { %p5351_p13 = pnand %p5349_p12, %p5746_p7 }
  0x20   : > { %p5358_p6 = por %p5357_p4, %p5356_p1 }
  0x21   : > { %p5352_p0 = pneg %p5351_p13 }
  0x23   : > { %p5359_p8 = pnand %p5358_p6, %p5352_p0 }
  0x25   : > { %5362 = shalt.err (!%p5359_p8)
}
  0x26   : > { %4791 = dma.hbm_to_vmem [thread:$0]  (!%p5730_p5), %s8252_s5, 16, %s5718_s20, [#allocation6]  }
  0x27   : > { %s5363_s28 = scalar_lea.hbm %s8255_s8, 16 }
  0x28   : > { %p5364_p9 = scmp.ne.s32.totalorder %s8255_s8, %s5363_s28  ;;  %p5370_p12 = scmp.lt.u32.totalorder %s5363_s28, %s8255_s8 }
  0x2a   : > { %p5366_p10 = pnand %p5364_p9, %p5746_p7 }
  0x2c   : > { %p5367_p11 = pneg %p5366_p10 }
  0x2e   : > { %p5372_p13 = pnand %p5370_p12, %p5367_p11 }
  0x30   : > { %5375 = shalt.err (!%p5372_p13)
}
  0x31   : > { %s5376_s20 = scalar_lea.vmem %s5726_s24, 16  ;;  %s5383_s11 = scalar_lea.vmem %s5726_s24, 32 }
  0x32   : > { %p5377_p0 = scmp.ne.s32.totalorder %s5726_s24, %s5376_s20  ;;  %p5384_p6 = scmp.lt.s32.totalorder %s5726_s24, %s5726_s24 }
  0x33   : > { %p5385_p8 = scmp.lt.s32.totalorder %s5383_s11, %s5376_s20 }
  0x34   : > { %p5379_p1 = pnand %p5377_p0, %p5746_p7 }
  0x35   : > { %p5386_p9 = por %p5385_p8, %p5384_p6 }
  0x36   : > { %p5380_p4 = pneg %p5379_p1 }
  0x38   : > { %p5387_p10 = pnand %p5386_p9, %p5380_p4 }
  0x3a   : > { %5390 = shalt.err (!%p5387_p10)
}
  0x3b   : > { %4797 = dma.hbm_to_vmem [thread:$0]  (!%p5730_p5), %s8255_s8, 16, %s5726_s24, [#allocation9]  }
  0x3c   : > { %s5391_s23 = scalar_lea.hbm %s8257_s10, 16 }
  0x3d   : > { %p5392_p11 = scmp.ne.s32.totalorder %s8257_s10, %s5391_s23  ;;  %p5398_p0 = scmp.lt.u32.totalorder %s5391_s23, %s8257_s10 }
  0x3f   : > { %p5394_p12 = pnand %p5392_p11, %p5746_p7 }
  0x41   : > { %p5395_p13 = pneg %p5394_p12 }
  0x43   : > { %p5400_p1 = pnand %p5398_p0, %p5395_p13 }
  0x45   : > { %5403 = shalt.err (!%p5400_p1)
}
  0x46   : > { %s5404_s24 = scalar_lea.vmem %s5734_s26, 16  ;;  %s5411_s11 = scalar_lea.vmem %s5734_s26, 32 }
  0x47   : > { %p5405_p4 = scmp.ne.s32.totalorder %s5734_s26, %s5404_s24  ;;  %p5412_p9 = scmp.lt.s32.totalorder %s5734_s26, %s5734_s26 }
  0x48   : > { %p5413_p10 = scmp.lt.s32.totalorder %s5411_s11, %s5404_s24 }
  0x49   : > { %p5407_p6 = pnand %p5405_p4, %p5746_p7 }
  0x4a   : > { %p5414_p11 = por %p5413_p10, %p5412_p9 }
  0x4b   : > { %p5408_p8 = pneg %p5407_p6 }
  0x4d   : > { %p5415_p12 = pnand %p5414_p11, %p5408_p8 }
  0x4f   : > { %5418 = shalt.err (!%p5415_p12)
}
  0x50   : > { %4803 = dma.hbm_to_vmem [thread:$0]  (!%p5730_p5), %s8257_s10, 16, %s5734_s26, [#allocation12]  }
  0x51   : > { %s5419_s23 = scalar_lea.hbm %s8260_s13, 32 }
  0x52   : > { %p5420_p13 = scmp.ne.s32.totalorder %s8260_s13, %s5419_s23  ;;  %p5426_p4 = scmp.lt.u32.totalorder %s5419_s23, %s8260_s13 }
  0x54   : > { %p5422_p0 = pnand %p5420_p13, %p5746_p7 }
  0x56   : > { %p5423_p1 = pneg %p5422_p0 }
  0x58   : > { %p5428_p6 = pnand %p5426_p4, %p5423_p1 }
  0x5a   : > { %5431 = shalt.err (!%p5428_p6)
}
  0x5b   : > { %s5432_s26 = scalar_lea.vmem %s5736_s29, 32  ;;  %p5440_p11 = scmp.lt.s32.totalorder %s5736_s29, %s5736_s29 }
  0x5c   : > { %p5433_p8 = scmp.ne.s32.totalorder %s5736_s29, %s5432_s26  ;;  %p5441_p12 = scmp.lt.s32.totalorder %s5432_s26, %s5432_s26 }
  0x5e   : > { %p5435_p9 = pnand %p5433_p8, %p5746_p7  ;;  %p5442_p13 = por %p5441_p12, %p5440_p11 }
  0x60   : > { %p5436_p10 = pneg %p5435_p9 }
  0x62   : > { %p5443_p0 = pnand %p5442_p13, %p5436_p10 }
  0x64   : > { %5446 = shalt.err (!%p5443_p0)
}
  0x65   : > { %4809 = dma.hbm_to_vmem [thread:$0]  (!%p5730_p5), %s8260_s13, 32, %s5736_s29, [#allocation15]  }
  0x66   : > { %s5619_s15 = smov [#allocation3]   ;;  %s5620_s17 = smov [#allocation7]  }
  0x67   : > { %s403_s18 = sshll.u32 %s5619_s15, 4  ;;  %s425_s19 = sshll.u32 %s5620_s17, 4  ;;  %s404_s18 = int_to_ptr.vmem [resolvable:$true] %s403_s18  ;;  %s426_s19 = int_to_ptr.vmem [resolvable:$true] %s425_s19 }
  0x68   : > { %s5447_s30 = scalar_lea.hbm %s8251_s4, 16 }
  0x69   : > { %p5448_p1 = scmp.ne.s32.totalorder %s8251_s4, %s5447_s30  ;;  %p5454_p8 = scmp.lt.u32.totalorder %s5447_s30, %s8251_s4 }
  0x6b   : > { %p5450_p4 = pnand %p5448_p1, %p5746_p7 }
  0x6d   : > { %p5451_p6 = pneg %p5450_p4 }
  0x6f   : > { %p5456_p9 = pnand %p5454_p8, %p5451_p6 }
  0x71   : > { %5459 = shalt.err (!%p5456_p9)
}
  0x72   : > { %s5460_s29 = scalar_lea.vmem %s404_s18, 16  ;;  %s5467_s11 = scalar_lea.vmem %s404_s18, 32 }
  0x73   : > { %p5461_p10 = scmp.ne.s32.totalorder %s404_s18, %s5460_s29  ;;  %p5468_p13 = scmp.lt.s32.totalorder %s404_s18, %s404_s18 }
  0x74   : > { %p5469_p0 = scmp.lt.s32.totalorder %s5467_s11, %s5460_s29 }
  0x75   : > { %p5463_p11 = pnand %p5461_p10, %p5746_p7 }
  0x76   : > { %p5470_p2 = por %p5469_p0, %p5468_p13 }
  0x77   : > { %p5464_p12 = pneg %p5463_p11 }
  0x79   : > { %p5471_p3 = pnand %p5470_p2, %p5464_p12 }
  0x7b   : > { %5474 = shalt.err (!%p5471_p3)
}
  0x7c   : > { %4788 = dma.hbm_to_vmem [thread:$0]  (!%p5730_p5), %s8251_s4, 16, %s404_s18, [#allocation4]  }
  0x7d   : > { %s5475_s30 = scalar_lea.hbm %s8253_s6, 16 }
  0x7e   : > { %p5476_p1 = scmp.ne.s32.totalorder %s8253_s6, %s5475_s30  ;;  %p5482_p3 = scmp.lt.u32.totalorder %s5475_s30, %s8253_s6 }
  0x80   : > { %p5478_p4 = pnand %p5476_p1, %p5746_p7 }
  0x82   : > { %p5479_p2 = pneg %p5478_p4 }
  0x84   : > { %p5484_p6 = pnand %p5482_p3, %p5479_p2 }
  0x86   : > { %5487 = shalt.err (!%p5484_p6)
}
  0x87   : > { %s5488_s29 = scalar_lea.vmem %s426_s19, 16  ;;  %s5495_s18 = scalar_lea.vmem %s426_s19, 32 }
  0x88   : > { %p5489_p8 = scmp.ne.s32.totalorder %s426_s19, %s5488_s29  ;;  %p5496_p11 = scmp.lt.s32.totalorder %s426_s19, %s426_s19 }
  0x89   : > { %p5497_p12 = scmp.lt.s32.totalorder %s5495_s18, %s5488_s29 }
  0x8a   : > { %p5491_p9 = pnand %p5489_p8, %p5746_p7 }
  0x8b   : > { %p5498_p13 = por %p5497_p12, %p5496_p11 }
  0x8c   : > { %p5492_p10 = pneg %p5491_p9 }
  0x8e   : > { %p5499_p0 = pnand %p5498_p13, %p5492_p10 }
  0x90   : > { %5502 = shalt.err (!%p5499_p0)
}
  0x91   : > { %4794 = dma.hbm_to_vmem [thread:$0]  (!%p5730_p5), %s8253_s6, 16, %s426_s19, [#allocation6]  }
  0x92   : > { %s5621_s17 = smov [#allocation10]   ;;  %s5622_s28 = smov [#allocation13]  }
  0x93   : > { %s450_s23 = sshll.u32 %s5621_s17, 4  ;;  %s475_s30 = sshll.u32 %s5622_s28, 4  ;;  %s451_s23 = int_to_ptr.vmem [resolvable:$true] %s450_s23  ;;  %s476_s30 = int_to_ptr.vmem [resolvable:$true] %s475_s30 }
  0x94   : > { %s5503_s26 = scalar_lea.hbm %s8256_s9, 16 }
  0x95   : > { %p5504_p1 = scmp.ne.s32.totalorder %s8256_s9, %s5503_s26  ;;  %p5510_p3 = scmp.lt.u32.totalorder %s5503_s26, %s8256_s9 }
  0x97   : > { %p5506_p4 = pnand %p5504_p1, %p5746_p7 }
  0x99   : > { %p5507_p2 = pneg %p5506_p4 }
  0x9b   : > { %p5512_p6 = pnand %p5510_p3, %p5507_p2 }
  0x9d   : > { %5515 = shalt.err (!%p5512_p6)
}
  0x9e   : > { %s5516_s19 = scalar_lea.vmem %s451_s23, 16  ;;  %s5523_s15 = scalar_lea.vmem %s451_s23, 32 }
  0x9f   : > { %p5517_p8 = scmp.ne.s32.totalorder %s451_s23, %s5516_s19  ;;  %p5524_p11 = scmp.lt.s32.totalorder %s451_s23, %s451_s23 }
  0xa0   : > { %p5525_p12 = scmp.lt.s32.totalorder %s5523_s15, %s5516_s19 }
  0xa1   : > { %p5519_p9 = pnand %p5517_p8, %p5746_p7 }
  0xa2   : > { %p5526_p13 = por %p5525_p12, %p5524_p11 }
  0xa3   : > { %p5520_p10 = pneg %p5519_p9 }
  0xa5   : > { %p5527_p0 = pnand %p5526_p13, %p5520_p10 }
  0xa7   : > { %5530 = shalt.err (!%p5527_p0)
}
  0xa8   : > { %4800 = dma.hbm_to_vmem [thread:$0]  (!%p5730_p5), %s8256_s9, 16, %s451_s23, [#allocation9]  }
  0xa9   : > { %s5531_s26 = scalar_lea.hbm %s8259_s12, 16 }
  0xaa   : > { %p5532_p1 = scmp.ne.s32.totalorder %s8259_s12, %s5531_s26  ;;  %p5538_p3 = scmp.lt.u32.totalorder %s5531_s26, %s8259_s12 }
  0xac   : > { %p5534_p4 = pnand %p5532_p1, %p5746_p7 }
  0xae   : > { %p5535_p2 = pneg %p5534_p4 }
  0xb0   : > { %p5540_p6 = pnand %p5538_p3, %p5535_p2 }
  0xb2   : > { %5543 = shalt.err (!%p5540_p6)
}
  0xb3   : > { %s5544_s19 = scalar_lea.vmem %s476_s30, 16  ;;  %s5551_s23 = scalar_lea.vmem %s476_s30, 32 }
  0xb4   : > { %p5545_p8 = scmp.ne.s32.totalorder %s476_s30, %s5544_s19  ;;  %p5552_p11 = scmp.lt.s32.totalorder %s476_s30, %s476_s30 }
  0xb5   : > { %p5553_p12 = scmp.lt.s32.totalorder %s5551_s23, %s5544_s19 }
  0xb6   : > { %p5547_p9 = pnand %p5545_p8, %p5746_p7 }
  0xb7   : > { %p5554_p13 = por %p5553_p12, %p5552_p11 }
  0xb8   : > { %p5548_p10 = pneg %p5547_p9 }
  0xba   : > { %p5555_p0 = pnand %p5554_p13, %p5548_p10 }
  0xbc   : > { %5558 = shalt.err (!%p5555_p0)
}
  0xbd   : > { %4806 = dma.hbm_to_vmem [thread:$0]  (!%p5730_p5), %s8259_s12, 16, %s476_s30, [#allocation12]  }
  0xbe   : > { %s5623_s28 = smov [#allocation16]   ;;  %s5559_s24 = scalar_lea.hbm %s8261_s14, 16 }
  0xbf   : > { %s497_s16 = sshll.u32 %s5623_s28, 4  ;;  %p5560_p1 = scmp.ne.s32.totalorder %s8261_s14, %s5559_s24  ;;  %s498_s16 = int_to_ptr.vmem [resolvable:$true] %s497_s16 }
  0xc0   : > { %p5566_p3 = scmp.lt.u32.totalorder %s5559_s24, %s8261_s14 }
  0xc1   : > { %p5562_p4 = pnand %p5560_p1, %p5746_p7 }
  0xc3   : > { %p5563_p2 = pneg %p5562_p4 }
  0xc5   : > { %p5568_p6 = pnand %p5566_p3, %p5563_p2 }
  0xc7   : > { %5571 = shalt.err (!%p5568_p6)
}
  0xc8   : > { %s5572_s30 = scalar_lea.vmem %s498_s16, 16  ;;  %s5579_s23 = scalar_lea.vmem %s498_s16, 32 }
  0xc9   : > { %p5573_p8 = scmp.ne.s32.totalorder %s498_s16, %s5572_s30  ;;  %p5580_p11 = scmp.lt.s32.totalorder %s498_s16, %s498_s16 }
  0xca   : > { %p5581_p12 = scmp.lt.s32.totalorder %s5579_s23, %s5572_s30 }
  0xcb   : > { %p5575_p9 = pnand %p5573_p8, %p5746_p7 }
  0xcc   : > { %p5582_p13 = por %p5581_p12, %p5580_p11 }
  0xcd   : > { %p5576_p10 = pneg %p5575_p9 }
  0xcf   : > { %p5583_p0 = pnand %p5582_p13, %p5576_p10 }
  0xd1   : > { %5586 = shalt.err (!%p5583_p0)
}
  0xd2   : > { %4812 = dma.hbm_to_vmem [thread:$0]  (!%p5730_p5), %s8261_s14, 16, %s498_s16, [#allocation15]  }
  0xd3   : > { %p8280_p1 = scmp.ne.s32.totalorder %s8277_s22, 0 }
  0xd5   : > { %519 = sbr.rel (%p8280_p1) target bundleno = 1375 (0x55f), region = 80 }
  0xdc   : > { %p8281_p4 = scmp.eq.s32.totalorder %s5713_s21, 0 }
  0xde   : > { %5592 = dma.done.wait (%p8281_p4), [#allocation4], 16   ;;  %p8282_p7 = pmov %p8281_p4 }
  0xdf   : > { %p8283_p2 = pmov %p8281_p4 }
  0xe0   : > { %5594 = vsyncadd (%p8282_p7), [#allocation4], 4294967280 }
  0xe1   : > { %5596 = dma.done.wait (%p8283_p2), [#allocation6], 32   ;;  %p8284_p3 = pmov %p8283_p2 }
  0xe2   : > { %p8285_p6 = pmov %p8283_p2 }
  0xe3   : > { %5598 = vsyncadd (%p8284_p3), [#allocation6], 4294967264 }
  0xe4   : > { %5600 = dma.done.wait (%p8285_p6), [#allocation9], 32   ;;  %p8286_p5 = pmov %p8283_p2 }
  0xe5   : > { %p8287_p8 = pmov %p8283_p2 }
  0xe6   : > { %5602 = vsyncadd (%p8286_p5), [#allocation9], 4294967264 }
  0xe7   : > { %5604 = dma.done.wait (%p8287_p8), [#allocation12], 32   ;;  %p8288_p9 = pmov %p8283_p2 }
  0xe8   : > { %p8289_p10 = pmov %p8283_p2 }
  0xe9   : > { %5606 = vsyncadd (%p8288_p9), [#allocation12], 4294967264 }
  0xea   : > { %5608 = dma.done.wait (%p8289_p10), [#allocation15], 48   ;;  %p8290_p11 = pmov %p8283_p2 }
  0xeb   : > { %s4358_s22 = sshll.u32 %s5713_s21, 5  ;;  %v612_v0 = vlaneseq  ;;  %v5962_v3 = vld [vmem:[%s8248_s1] ss:$0 sm:$0xff]  ;;  %s5624_s18 = smov 4   ;;  %vm1926_vm1 = vcmask 1045504   ;;  %vm1784_vm6 = vcmask 31744  }
  0xec   : > { %5610 = vsyncadd (%p8290_p11), [#allocation15], 4294967248  ;;  %p600_p12 = scmp.lt.s32.totalorder %s4358_s22, 63  ;;  %v5969_v6 = vld [vmem:[%s8249_s2] ss:$0 sm:$0xff]  ;;  %s5625_s11 = smov 8  }
  0xed   : > { %v5971_v7 = vshrl.u32 %v612_v0, 7  ;;  %v6059_v60 = vld [vmem:[%s8250_s3] sm:$0x3f]   ;;  %vm1817_vm7 = vcmask 64512   ;;  %vm1877_vm8 = vcmask 97280   ;;  %vm3867_vm10 = vcmask 1041408  }
  0xee   : > { %s8424_s22 = smov (!%p600_p12, %s4358_s22), 63  ;;  %4745 = vmatprep.subr.msk.bf16.mxu0 %vm1926_vm1, %v6059_v60  ;;  %vm3632_vm11 = vcmask 1043456   ;;  %vm3519_vm12 = vcmask 130048   ;;  %vm3583_vm13 = vcmask 195584   ;;  %s4360_s20 = sshll.u32 %s5713_s21, 3 }
  0xef   : > { %s4359_s27 = sshll.u32 %s8424_s22, 3  ;;  %vm1399_vm0 = vcmp.lt.s32.totalorder %v5971_v7, 7  ;;  %vm1238_vm3 = vcmp.lt.s32.totalorder %v5971_v7, 1  ;;  %p606_p13 = scmp.lt.s32.totalorder %s4360_s20, 15 }
  0xf0   : > { %s5955_s16 = scalar_lea.vmem %s8247_s0, %s4359_s27  ;;  %s8350_s27 = sld [smem:[#allocation46_spill]] }
  0xf1   : > { %v1093_v1 = vld [vmem:[%s5955_s16] sm:$0xff]  ;;  %v1094_v2 = vld [vmem:[%s5955_s16 + $0x8] sm:$0xff]  ;;  %v1095_v8 = vld [vmem:[%s5955_s16 + $0x10] sm:$0xff]  ;;  %s8426_s20 = smov (!%p606_p13, %s4360_s20), 15  ;;  %s8398_s29 = sld [smem:[#allocation47_spill]] }
  0xf2   : > { %v1132_v4 = vmul.f32 %v5962_v3, %v1093_v1  ;;  %v1133_v5 = vmul.f32 %v5962_v3, %v1094_v2  ;;  %v1096_v9 = vld [vmem:[%s5955_s16 + $0x18] sm:$0xff]  ;;  %v1134_v10 = vmul.f32 %v5962_v3, %v1095_v8  ;;  %v1097_v12 = vld [vmem:[%s5955_s16 + $0x20] sm:$0xff]  ;;  %v1098_v13 = vld [vmem:[%s5955_s16 + $0x28] sm:$0xff]  ;;  %s4361_s21 = sshll.u32 %s8426_s20, 3 }
  0xf3   : > { %v1135_v11 = vmul.f32 %v5962_v3, %v1096_v9  ;;  %v1099_v14 = vld [vmem:[%s5955_s16 + $0x30] sm:$0xff]  ;;  %v1136_v17 = vmul.f32 %v5962_v3, %v1097_v12  ;;  %v1137_v18 = vmul.f32 %v5962_v3, %v1098_v13  ;;  %v1100_v19 = vld [vmem:[%s5955_s16 + $0x38] sm:$0xff]  ;;  %v1101_v26 = vld [vmem:[%s5955_s16 + $0x40] sm:$0xff] }
  0xf4   : > { %v5981_v15 = vadd.f32 %v5969_v6, %v1132_v4  ;;  %v5984_v16 = vadd.f32 %v5969_v6, %v1133_v5  ;;  %v5990_v20 = vadd.f32 %v5969_v6, %v1134_v10  ;;  %v1138_v22 = vmul.f32 %v5962_v3, %v1099_v14  ;;  %v1102_v39 = vld [vmem:[%s5955_s16 + $0x48] sm:$0xff]  ;;  %v1103_v40 = vld [vmem:[%s5955_s16 + $0x50] sm:$0xff]  ;;  %v1104_v44 = vld [vmem:[%s5955_s16 + $0x58] sm:$0xff] }
  0xf5   : > { %v5993_v21 = vadd.f32 %v5969_v6, %v1135_v11  ;;  %v1139_v23 = vmul.f32 %v5962_v3, %v1100_v19  ;;  %v6007_v30 = vadd.f32 %v5969_v6, %v1136_v17  ;;  %v6012_v32 = vadd.f32 %v5969_v6, %v1137_v18  ;;  %v1105_v49 = vld [vmem:[%s5955_s16 + $0x60] sm:$0xff]  ;;  %v1106_v54 = vld [vmem:[%s5955_s16 + $0x68] sm:$0xff]  ;;  %v1107_v59 = vld [vmem:[%s5955_s16 + $0x70] sm:$0xff] }
  0xf6   : > { %v4851_v24 = vpack.i.bf16 %v5984_v16, %v5981_v15  ;;  %v1367_v25 = vrot.slane %v5981_v15, 1  ;;  %v1368_v27 = vrot.slane %v5984_v16, 1  ;;  %v1369_v28 = vrot.slane %v5990_v20, 1  ;;  %v1108_v5 = vld [vmem:[%s5955_s16 + $0x78] sm:$0xff]  ;;  %v1109_v13 = vld [vmem:[%s5955_s16 + $0x80] sm:$0xff] }
  0xf7   : > { %v4856_v29 = vpack.i.bf16 %v5993_v21, %v5990_v20  ;;  %v1370_v31 = vrot.slane %v5993_v21, 1  ;;  %v6015_v33 = vadd.f32 %v5969_v6, %v1138_v22  ;;  %v6018_v34 = vadd.f32 %v5969_v6, %v1139_v23  ;;  %v1110_v22 = vld [vmem:[%s5955_s16 + $0x88] sm:$0xff]  ;;  %v1111_v23 = vld [vmem:[%s5955_s16 + $0x90] sm:$0xff] }
  0xf8   : > { %4852 = vrot.lane.b32.xlu0 %v4851_v24, %s5624_s18  ;;  %v1429_v35 = vsel %vm1399_vm0, %v1368_v27, %v1369_v28  ;;  %v1430_v36 = vsel %vm1399_vm0, %v1367_v25, %v1368_v27  ;;  %v1371_v37 = vrot.slane %v6007_v30, 1  ;;  %v1140_v38 = vmul.f32 %v5962_v3, %v1101_v26 }
  0xf9   : > { %v4866_v41 = vpack.i.bf16 %v1429_v35, %v1430_v36  ;;  %v1428_v42 = vsel %vm1399_vm0, %v1369_v28, %v1370_v31  ;;  %v4861_v43 = vpack.i.bf16 %v6012_v32, %v6007_v30  ;;  %v1372_v46 = vrot.slane %v6012_v32, 1 }
  0xfa   : > { %v1427_v45 = vsel %vm1399_vm0, %v1370_v31, %v1371_v37  ;;  %v1373_v47 = vrot.slane %v6015_v33, 1  ;;  %v6040_v48 = vadd.f32 %v5969_v6, %v1140_v38  ;;  %v1374_v51 = vrot.slane %v6018_v34, 1 }
  0xfb   : > { %4867 = vrot.lane.b32.xlu1 %v4866_v41, %s5625_s11  ;;  %v4871_v50 = vpack.i.bf16 %v1427_v45, %v1428_v42  ;;  %v1141_v52 = vmul.f32 %v5962_v3, %v1102_v39  ;;  %v1142_v53 = vmul.f32 %v5962_v3, %v1103_v40  ;;  %v1426_v56 = vsel %vm1399_vm0, %v1371_v37, %v1372_v46  ;;  %v1112_v39 = vld [vmem:[%s5955_s16 + $0x98] sm:$0xff]  ;;  %v1113_v41 = vld [vmem:[%s5955_s16 + $0xa0] sm:$0xff] }
  0xfc   : > { %4857 = vrot.lane.b32.xlu0 %v4856_v29, %s5624_s18  ;;  %v1425_v55 = vsel %vm1399_vm0, %v1372_v46, %v1373_v47  ;;  %v1375_v57 = vrot.slane %v6040_v48, 1  ;;  %v1143_v58 = vmul.f32 %v5962_v3, %v1104_v44  ;;  %v1424_v61 = vsel %vm1399_vm0, %v1373_v47, %v1374_v51 }
  0xfd   : > { %v6064_v62 = vadd.f32 %v5969_v6, %v1141_v52  ;;  %v6067_v63 = vadd.f32 %v5969_v6, %v1142_v53  ;;  %v1144_v2 = vmul.f32 %v5962_v3, %v1105_v49  ;;  %v1145_v4 = vmul.f32 %v5962_v3, %v1106_v54  ;;  %v1114_v53 = vld [vmem:[%s5955_s16 + $0xa8] sm:$0xff]  ;;  %v1115_v54 = vld [vmem:[%s5955_s16 + $0xb0] sm:$0xff] }
  0xfe   : > { %v1423_v0 = vsel %vm1399_vm0, %v1374_v51, %v1375_v57  ;;  %v6072_v1 = vadd.f32 %v5969_v6, %v1143_v58  ;;  %v4876_v8 = vpack.i.bf16 %v6018_v34, %v6015_v33  ;;  %v4881_v9 = vpack.i.bf16 %v1425_v55, %v1426_v56 }
  0xff   : > { %4872 = vrot.lane.b32.xlu1 %v4871_v50, %s5625_s11  ;;  %v1376_v10 = vrot.slane %v6064_v62, 1  ;;  %v1377_v11 = vrot.slane %v6067_v63, 1  ;;  %v6086_v12 = vadd.f32 %v5969_v6, %v1144_v2  ;;  %v4891_v14 = vpack.i.bf16 %v1423_v0, %v1424_v61 }
 0x100   : > { %4862 = vrot.lane.b32.xlu0 %v4861_v43, %s5624_s18  ;;  %v1146_v17 = vmul.f32 %v5962_v3, %v1107_v59  ;;  %v1147_v18 = vmul.f32 %v5962_v3, %v1108_v5  ;;  %v628_v19 = vadd.s32 120, %v5971_v7  ;;  %v4886_v24 = vpack.i.bf16 %v6064_v62, %v6040_v48 }
 0x101   : > { %v1421_v26 = vsel %vm1399_vm0, %v1376_v10, %v1377_v11  ;;  %v1378_v27 = vrot.slane %v6072_v1, 1  ;;  %v6100_v28 = vadd.f32 %v5969_v6, %v1145_v4  ;;  %v1422_v29 = vsel %vm1399_vm0, %v1375_v57, %v1376_v10  ;;  %v1117_v10 = vld [vmem:[%s5955_s16 + $0xc0] sm:$0xff] }
 0x102   : > { %v1379_v31 = vrot.slane %v6086_v12, 1  ;;  %v6108_v35 = vadd.f32 %v5969_v6, %v1146_v17  ;;  %v1148_v36 = vmul.f32 %v5962_v3, %v1109_v13  ;;  %v6112_v37 = vadd.f32 %v5969_v6, %v1147_v18  ;;  %v1118_v18 = vld [vmem:[%s5955_s16 + $0xc8] sm:$0xff] }
 0x103   : > { %4877 = vrot.lane.b32.xlu1 %v4876_v8, %s5624_s18  ;;  %v1149_v38 = vmul.f32 %v5962_v3, %v1110_v22  ;;  %v1150_v40 = vmul.f32 %v5962_v3, %v1111_v23  ;;  %v4896_v42 = vpack.i.bf16 %v6072_v1, %v6067_v63  ;;  %v754_v43 = vand.u32 127, %v628_v19  ;;  %v1116_v8 = vld [vmem:[%s5955_s16 + $0xb8] sm:$0xff] }
 0x104   : > { %4882 = vrot.lane.b32.xlu0 %v4881_v9, %s5625_s11  ;;  %v4901_v44 = vpack.i.bf16 %v1421_v26, %v1422_v29  ;;  %v1420_v45 = vsel %vm1399_vm0, %v1377_v11, %v1378_v27  ;;  %v1380_v46 = vrot.slane %v6100_v28, 1  ;;  %v6124_v47 = vadd.f32 %v5969_v6, %v1148_v36  ;;  %v1119_v26 = vld [vmem:[%s5955_s16 + $0xd0] sm:$0xff] }
 0x105   : > { %v1419_v49 = vsel %vm1399_vm0, %v1378_v27, %v1379_v31  ;;  %v1381_v50 = vrot.slane %v6108_v35, 1  ;;  %v1151_v51 = vmul.f32 %v5962_v3, %v1112_v39  ;;  %v1152_v52 = vmul.f32 %v5962_v3, %v1113_v41  ;;  %v1121_v39 = vld [vmem:[%s5955_s16 + $0xe0] sm:$0xff] }
 0x106   : > { %v1382_v55 = vrot.slane %v6112_v37, 1  ;;  %v1383_v56 = vrot.slane %v6124_v47, 1  ;;  %v6138_v57 = vadd.f32 %v5969_v6, %v1149_v38  ;;  %v6141_v58 = vadd.f32 %v5969_v6, %v1150_v40  ;;  %v1120_v38 = vld [vmem:[%s5955_s16 + $0xd8] sm:$0xff] }
 0x107   : > { %4892 = vrot.lane.b32.xlu1 %v4891_v14, %s5625_s11  ;;  %v4911_v59 = vpack.i.bf16 %v6100_v28, %v6086_v12  ;;  %vm6145_vm2 = vcmp.ne.s32.totalorder %v754_v43, 127  ;;  %v6150_v0 = vadd.s32 248, %v5971_v7  ;;  %v4906_v2 = vpack.i.bf16 %v1419_v49, %v1420_v45 }
 0x108   : > { %4887 = vrot.lane.b32.xlu0 %v4886_v24, %s5624_s18  ;;  %v1418_v4 = vsel %vm1399_vm0, %v1379_v31, %v1380_v46  ;;  %v1153_v5 = vmul.f32 %v5962_v3, %v1114_v53  ;;  %v1154_v9 = vmul.f32 %v5962_v3, %v1115_v54  ;;  %v1207_v11 = vrot.slane %v5984_v16, 7 }
 0x109   : > { %v1417_v13 = vsel %vm1399_vm0, %v1380_v46, %v1381_v50  ;;  %v6164_v14 = vadd.f32 %v5969_v6, %v1151_v51  ;;  %v6167_v17 = vadd.f32 %v5969_v6, %v1152_v52  ;;  %v4916_v19 = vpack.i.bf16 %v6112_v37, %v6108_v35 }
 0x10a   : > { %v1415_v22 = vsel %vm1399_vm0, %v1382_v55, %v1383_v56  ;;  %v1384_v23 = vrot.slane %v6138_v57, 1  ;;  %v1385_v24 = vrot.slane %v6141_v58, 1  ;;  %v6178_v27 = vadd.f32 %v5969_v6, %v1153_v5 }
 0x10b   : > { %4897 = vrot.lane.b32.xlu1 %v4896_v42, %s5624_s18  ;;  %v1155_v29 = vmul.f32 %v5962_v3, %v1116_v8  ;;  %v6182_v31 = vadd.f32 %v5969_v6, %v1154_v9  ;;  %v1156_v36 = vmul.f32 %v5962_v3, %v1117_v10  ;;  %v4921_v40 = vpack.i.bf16 %v1417_v13, %v1418_v4 }
 0x10c   : > { %4902 = vrot.lane.b32.xlu0 %v4901_v44, %s5625_s11  ;;  %v1416_v41 = vsel %vm1399_vm0, %v1381_v50, %v1382_v55  ;;  %v4931_v42 = vpack.i.bf16 %v6138_v57, %v6124_v47  ;;  %v1157_v43 = vmul.f32 %v5962_v3, %v1118_v18  ;;  %v1511_v44 = vsel %vm6145_vm2, %v1415_v22, 0.0 }
 0x10d   : > { %v1386_v45 = vrot.slane %v6164_v14, 1  ;;  %v1387_v46 = vrot.slane %v6167_v17, 1  ;;  %v1158_v49 = vmul.f32 %v5962_v3, %v1119_v26  ;;  %v6201_v50 = vadd.f32 %v5969_v6, %v1155_v29 }
 0x10e   : > { %v6204_v51 = vadd.f32 %v5969_v6, %v1156_v36  ;;  %v1159_v52 = vmul.f32 %v5962_v3, %v1120_v38  ;;  %v1160_v53 = vmul.f32 %v5962_v3, %v1121_v39  ;;  %v1413_v54 = vsel %vm1399_vm0, %v1384_v23, %v1385_v24 }
 0x10f   : > { %4907 = vrot.lane.b32.xlu1 %v4906_v2, %s5625_s11  ;;  %v1388_v55 = vrot.slane %v6178_v27, 1  ;;  %v6213_v2 = vadd.f32 %v5969_v6, %v1157_v43  ;;  %v4926_v4 = vpack.i.bf16 %v1511_v44, %v1416_v41  ;;  %v1414_v5 = vsel %vm1399_vm0, %v1383_v56, %v1384_v23  ;;  %v1122_v43 = vld [vmem:[%s5955_s16 + $0xe8] sm:$0xff] }
 0x110   : > { %4912 = vrot.lane.b32.xlu0 %v4911_v59, %s5624_s18  ;;  %v1389_v59 = vrot.slane %v6182_v31, 1  ;;  %v6218_v8 = vadd.f32 %v5969_v6, %v1158_v49  ;;  %v6221_v9 = vadd.f32 %v5969_v6, %v1159_v52  ;;  %v1206_v10 = vrot.slane %v5981_v15, 7  ;;  %v1123_v49 = vld [vmem:[%s5955_s16 + $0xf0] sm:$0xff] }
 0x111   : > { %v1411_v13 = vsel %vm1399_vm0, %v1386_v45, %v1387_v46  ;;  %v1412_v18 = vsel %vm1399_vm0, %v1385_v24, %v1386_v45  ;;  %v6231_v56 = vadd.f32 %v5969_v6, %v1160_v53  ;;  %v4936_v22 = vpack.i.bf16 %v6164_v14, %v6141_v58 }
 0x112   : > { %v1390_v23 = vrot.slane %v6201_v50, 1  ;;  %v1391_v26 = vrot.slane %v6204_v51, 1  ;;  %v4941_v29 = vpack.i.bf16 %v1413_v54, %v1414_v5  ;;  %v6240_v36 = vsel %vm1399_vm0, %v1388_v55, %v1389_v59 }
 0x113   : > { %4917 = vrot.lane.b32.xlu1 %v4916_v19, %s5624_s18  ;;  %v1208_v19 = vrot.slane %v5990_v20, 7  ;;  %v6244_v24 = vsel %vm1399_vm0, %v1387_v46, %v1388_v55  ;;  %v1392_v38 = vrot.slane %v6213_v2, 1  ;;  %v4946_v39 = vpack.i.bf16 %v1411_v13, %v1412_v18  ;;  %v1124_v18 = vld [vmem:[%s5955_s16 + $0xf8] sm:$0xff]  ;;  %s5626_s16 = smov 16  }
 0x114   : > { %4922 = vrot.lane.b32.xlu0 %v4921_v40, %s5625_s11  ;;  %v1393_v40 = vrot.slane %v6218_v8, 1  ;;  %v1394_v41 = vrot.slane %v6221_v9, 1  ;;  %v1209_v44 = vrot.slane %v5993_v21, 7  ;;  %v4951_v20 = vpack.i.bf16 %v6178_v27, %v6167_v17 }
 0x115   : > { %v4956_v45 = vpack.i.bf16 %v6201_v50, %v6182_v31  ;;  %v1395_v46 = vrot.slane %v6231_v56, 1  ;;  %v1210_v52 = vrot.slane %v6007_v30, 7  ;;  %v4961_v53 = vpack.i.bf16 %v6240_v36, %v6244_v24 }
 0x116   : > { %v6264_v21 = vsel %vm1399_vm0, %v1390_v23, %v1391_v26  ;;  %v6272_v54 = vsel %vm1238_vm3, %v1208_v19, %v1209_v44  ;;  %v6276_v55 = vsel %vm1399_vm0, %v1391_v26, %v1392_v38  ;;  %v1161_v30 = vmul.f32 %v5962_v3, %v1122_v43 }
 0x117   : > { %4927 = vrot.lane.b32.xlu1 %v4926_v4, %s5625_s11  ;;  %v6283_v4 = vsel %vm1238_vm3, %v1207_v11, %v1208_v19  ;;  %v1211_v5 = vrot.slane %v6012_v32, 7  ;;  %v6292_v13 = vsel %vm1399_vm0, %v1393_v40, %v1394_v41  ;;  %v6298_v26 = vsel %vm1238_vm3, %v1209_v44, %v1210_v52 }
 0x118   : > { %4932 = vrot.lane.b32.xlu0 %v4931_v42, %s5624_s18  ;;  %v6268_v42 = vsel %vm1399_vm0, %v1389_v59, %v1390_v23  ;;  %v6288_v59 = vsel %vm1399_vm0, %v1392_v38, %v1393_v40  ;;  %v1162_v23 = vmul.f32 %v5962_v3, %v1123_v49  ;;  %v6306_v32 = vsel %vm1399_vm0, %v1394_v41, %v1395_v46 }
 0x119   : > { %v866_v19 = vand.u32 127, %v6150_v0  ;;  %v6311_v36 = vsel %vm1238_vm3, %v1210_v52, %v1211_v5  ;;  %v4971_v24 = vpack.i.bf16 %v6213_v2, %v6204_v51  ;;  %v4976_v38 = vpack.i.bf16 %v6221_v9, %v6218_v8 }
 0x11a   : > { %v1928_v40 = vsel %vm1926_vm1, %v6059_v60, 0  ;;  %v4981_v16 = vpack.i.bf16 %v6288_v59, %v6276_v55  ;;  %v6332_v41 = vadd.f32 %v5969_v6, %v1161_v30  ;;  %v1212_v43 = vrot.slane %v6015_v33, 7 }
 0x11b   : > { %4937 = vrot.lane.b32.xlu1 %v4936_v22, %s5624_s18  ;;  %v6319_v22 = vsel %vm1238_vm3, %v1206_v10, %v1207_v11  ;;  %v1163_v11 = vmul.f32 %v5962_v3, %v1124_v18  ;;  %4512 = vmatpush3.bf16.msra.mxu0 %v1928_v40  ;;  %v4986_v44 = vpack.i.bf16 %v6306_v32, %v6292_v13  ;;  %v1213_v52 = vrot.slane %v6018_v34, 7 }
 0x11c   : > { %4942 = vrot.lane.b32.xlu0 %v4941_v29, %s5625_s11  ;;  %v4966_v29 = vpack.i.bf16 %v6264_v21, %v6268_v42  ;;  %v6339_v49 = vadd.f32 %v5969_v6, %v1162_v23  ;;  %v1214_v60 = vrot.slane %v6040_v48, 7  ;;  %v6347_v3 = vsel %vm1238_vm3, %v1211_v5, %v1212_v43 }
 0x11d   : > { %v1215_v33 = vrot.slane %v6064_v62, 7  ;;  %v1216_v21 = vrot.slane %v6067_v63, 7  ;;  %v1217_v42 = vrot.slane %v6072_v1, 7  ;;  %v6354_v30 = vsel %vm1238_vm3, %v1212_v43, %v1213_v52 }
 0x11e   : > { %v6358_v34 = vsel %vm1238_vm3, %v1213_v52, %v1214_v60  ;;  %v1218_v48 = vrot.slane %v6086_v12, 7  ;;  %v1220_v1 = vrot.slane %v6108_v35, 7  ;;  %v6376_v5 = vadd.f32 %v5969_v6, %v1163_v11 }
 0x11f   : > { %4947 = vrot.lane.b32.xlu1 %v4946_v39, %s5625_s11  ;;  %v1219_v39 = vrot.slane %v6100_v28, 7  ;;  %v6368_v62 = vsel %vm1238_vm3, %v1216_v21, %v1217_v42  ;;  %v6372_v63 = vsel %vm1238_vm3, %v1215_v33, %v1216_v21  ;;  %v1221_v18 = vrot.slane %v6112_v37, 7 }
 0x120   : > { %4952 = vrot.lane.b32.xlu0 %v4951_v20, %s5624_s18  ;;  %v6364_v20 = vsel %vm1238_vm3, %v1214_v60, %v1215_v33  ;;  %v6384_v28 = vsel %vm1238_vm3, %v1217_v42, %v1218_v48  ;;  %v1222_v6 = vrot.slane %v6124_v47, 7  ;;  %v1223_v23 = vrot.slane %v6138_v57, 7 }
 0x121   : > { %v6380_v12 = vsel %vm1238_vm3, %v1218_v48, %v1219_v39  ;;  %v6391_v35 = vsel %vm1238_vm3, %v1219_v39, %v1220_v1  ;;  %v1224_v40 = vrot.slane %v6141_v58, 7  ;;  %v1396_v11 = vrot.slane %v6332_v41, 1 }
 0x122   : > { %v6399_v43 = vsel %vm1238_vm3, %v1220_v1, %v1221_v18  ;;  %v1225_v37 = vrot.slane %v6164_v14, 7  ;;  %v6409_v47 = vsel %vm1238_vm3, %v1221_v18, %v1222_v6  ;;  %v1227_v58 = vrot.slane %v6178_v27, 7 }
 0x123   : > { %4957 = vrot.lane.b32.xlu1 %v4956_v45, %s5624_s18  ;;  %v1226_v45 = vrot.slane %v6167_v17, 7  ;;  %v6413_v57 = vsel %vm1238_vm3, %v1223_v23, %v1224_v40  ;;  %v1397_v52 = vrot.slane %v6339_v49, 1  ;;  %v1228_v60 = vrot.slane %v6182_v31, 7 }
 0x124   : > { %4962 = vrot.lane.b32.xlu0 %v4961_v53, %s5625_s11  ;;  %v6405_v53 = vsel %vm1238_vm3, %v1222_v6, %v1223_v23  ;;  %v6419_v14 = vsel %vm1238_vm3, %v1224_v40, %v1225_v37  ;;  %v1398_v33 = vrot.slane %v6376_v5, 1  ;;  %v1229_v21 = vrot.slane %v6201_v50, 7 }
 0x125   : > { %v6423_v17 = vsel %vm1238_vm3, %v1225_v37, %v1226_v45  ;;  %v6431_v27 = vsel %vm1238_vm3, %v1226_v45, %v1227_v58  ;;  %v1230_v42 = vrot.slane %v6204_v51, 7  ;;  %v6437_v48 = vsel %vm1238_vm3, %v1227_v58, %v1228_v60 }
 0x126   : > { %v1231_v31 = vrot.slane %v6213_v2, 7  ;;  %v6444_v39 = vsel %vm1238_vm3, %v1228_v60, %v1229_v21  ;;  %v1234_v50 = vrot.slane %v6231_v56, 7  ;;  %v1235_v51 = vrot.slane %v6332_v41, 7 }
 0x127   : > { %4967 = vrot.lane.b32.xlu1 %v4966_v29, %s5625_s11  ;;  %v1232_v29 = vrot.slane %v6218_v8, 7  ;;  %v6448_v1 = vsel %vm1238_vm3, %v1229_v21, %v1230_v42  ;;  %v1236_v23 = vrot.slane %v6339_v49, 7  ;;  %v4991_v40 = vpack.i.bf16 %v6332_v41, %v6231_v56 }
 0x128   : > { %4972 = vrot.lane.b32.xlu0 %v4971_v24, %s5624_s18  ;;  %v1233_v24 = vrot.slane %v6221_v9, 7  ;;  %v6454_v18 = vsel %vm1238_vm3, %v1230_v42, %v1231_v31  ;;  %v6477_v37 = vsel %vm1238_vm3, %v1234_v50, %v1235_v51  ;;  %v1401_v8 = vsel %vm1399_vm0, %v1396_v11, %v1397_v52 }
 0x129   : > { %v6462_v6 = vsel %vm1238_vm3, %v1231_v31, %v1232_v29  ;;  %v1402_v9 = vsel %vm1399_vm0, %v1395_v46, %v1396_v11  ;;  %v6493_v55 = vsel %vm1238_vm3, %v1235_v51, %v1236_v23  ;;  %vm6497_vm4 = vcmp.ne.s32.totalorder %v866_v19, 127 }
 0x12a   : > { %v6458_v2 = vsel %vm1238_vm3, %v1232_v29, %v1233_v24  ;;  %v6481_v45 = vsel %vm1238_vm3, %v1233_v24, %v1234_v50  ;;  %v1431_v56 = vsel %vm1399_vm0, %v1398_v33, %v1367_v25  ;;  %v4996_v46 = vpack.i.bf16 %v6376_v5, %v6339_v49 }
 0x12b   : > { %4977 = vrot.lane.b32.xlu1 %v4976_v38, %s5624_s18  ;;  %v5001_v0 = vpack.i.bf16 %v1401_v8, %v1402_v9  ;;  %v1400_v19 = vsel %vm1399_vm0, %v1397_v52, %v1398_v33  ;;  %v1527_v38 = vsel %vm6497_vm4, %v1431_v56, 0.0  ;;  %v649_v13 = vand.u32 127, %v5971_v7 }
 0x12c   : > { %4982 = vrot.lane.b32.xlu0 %v4981_v16, %s5625_s11  ;;  %v5006_v25 = vpack.i.bf16 %v1527_v38, %v1400_v19  ;;  %v1237_v32 = vrot.slane %v6376_v5, 7 }
 0x12d   : > { %vm6521_vm5 = vcmp.ne.s32.totalorder %v649_v13, 0 }
 0x12e   : > { %v1270_v41 = vsel %vm1238_vm3, %v1237_v32, %v1206_v10 }
 0x12f   : > { %4987 = vrot.lane.b32.xlu1 %v4986_v44, %s5625_s11  ;;  %v1335_v52 = vsel %vm6521_vm5, %v1270_v41, 0.0 }
 0x130   : > { %4992 = vrot.lane.b32.xlu0 %v4991_v40, %s5624_s18 }
 0x133   : > { %4997 = vrot.lane.b32.xlu1 %v4996_v46, %s5624_s18 }
 0x134   : > { %5002 = vrot.lane.b32.xlu0 %v5001_v0, %s5625_s11 }
 0x137   : > { %5007 = vrot.lane.b32.xlu1 %v5006_v25, %s5625_s11 }
 0x16a   : > { %v4853_v44 = vpop.permute.xlu0 %4852 }
 0x16b   : > { %v4855_v11 = vunpack.i.h.bf16 %v4853_v44  ;;  %v4854_v58 = vunpack.i.l.bf16 %v4853_v44 }
 0x16d   : > { %v4868_v60 = vpop.permute.xlu1 %4867  ;;  %v1785_v21 = vsel %vm1784_vm6, %v1335_v52, %v4854_v58  ;;  %v1786_v15 = vsel %vm1784_vm6, %v6319_v22, %v4855_v11 }
 0x16e   : > { %v4858_v33 = vpop.permute.xlu0 %4857  ;;  %v4870_v42 = vunpack.i.h.bf16 %v4868_v60  ;;  %v4869_v31 = vunpack.i.l.bf16 %v4868_v60 }
 0x16f   : > { %v4860_v29 = vunpack.i.h.bf16 %v4858_v33  ;;  %v4859_v24 = vunpack.i.l.bf16 %v4858_v33 }
 0x170   : > { %v1818_v10 = vsel %vm1817_vm7, %v1785_v21, %v4869_v31  ;;  %v1819_v50 = vsel %vm1817_vm7, %v1786_v15, %v4870_v42 }
 0x171   : > { %v1788_v51 = vsel %vm1784_vm6, %v6272_v54, %v4860_v29  ;;  %v1787_v40 = vsel %vm1784_vm6, %v6283_v4, %v4859_v24  ;;  %v4873_v8 = vpop.permute.xlu1 %4872  ;;  %v1850_v56 = vpack.c.bf16 %v1819_v50, %v1818_v10 }
 0x172   : > { %v4863_v9 = vpop.permute.xlu0 %4862  ;;  %v4875_v46 = vunpack.i.h.bf16 %v4873_v8  ;;  %v4874_v22 = vunpack.i.l.bf16 %v4873_v8 }
 0x173   : > { %v4865_v0 = vunpack.i.h.bf16 %v4863_v9  ;;  %v4864_v19 = vunpack.i.l.bf16 %v4863_v9  ;;  %4513 = vmatprep.mubr.msk.bf16.mxu0 %vm1877_vm8, %v1850_v56 }
 0x174   : > { %v1821_v38 = vsel %vm1817_vm7, %v1788_v51, %v4875_v46  ;;  %v1820_v25 = vsel %vm1817_vm7, %v1787_v40, %v4874_v22 }
 0x175   : > { %v1851_v13 = vpack.c.bf16 %v1821_v38, %v1820_v25  ;;  %v1790_v54 = vsel %vm1784_vm6, %v6311_v36, %v4865_v0  ;;  %v1789_v4 = vsel %vm1784_vm6, %v6298_v26, %v4864_v19  ;;  %v4878_v41 = vpop.permute.xlu1 %4877 }
 0x176   : > { %v4883_v44 = vpop.permute.xlu0 %4882  ;;  %v4880_v52 = vunpack.i.h.bf16 %v4878_v41  ;;  %v4879_v60 = vunpack.i.l.bf16 %v4878_v41 }
 0x177   : > { %v4885_v11 = vunpack.i.h.bf16 %v4883_v44  ;;  %v4884_v58 = vunpack.i.l.bf16 %v4883_v44  ;;  %4514 = vmatmul.mubr.msk.bf16.vlgmr.msra.gmra.mrb[0].mxu0 %vm1877_vm8, %v1851_v13 }
 0x178   : > { %v1792_v26 = vsel %vm1784_vm6, %v6354_v30, %v4880_v52  ;;  %v1791_v50 = vsel %vm1784_vm6, %v6347_v3, %v4879_v60  ;;  %v629_v30 = vadd.s32 128, %v5971_v7 }
 0x179   : > { %v1822_v33 = vsel %vm1817_vm7, %v1789_v4, %v4884_v58  ;;  %v1823_v21 = vsel %vm1817_vm7, %v1790_v54, %v4885_v11  ;;  %v4893_v42 = vpop.permute.xlu1 %4892 }
 0x17a   : > { %v1852_v15 = vpack.c.bf16 %v1823_v21, %v1822_v33  ;;  %v4888_v31 = vpop.permute.xlu0 %4887  ;;  %v4895_v29 = vunpack.i.h.bf16 %v4893_v42  ;;  %v4894_v36 = vunpack.i.l.bf16 %v4893_v42  ;;  %v761_v41 = vand.u32 127, %v629_v30 }
 0x17b   : > { %v4890_v24 = vunpack.i.h.bf16 %v4888_v31  ;;  %v4889_v10 = vunpack.i.l.bf16 %v4888_v31 }
 0x17c   : > { %4517 = vmatprep.mubr.msk.bf16.mxu0 %vm1877_vm8, %v1852_v15  ;;  %v1824_v51 = vsel %vm1817_vm7, %v1791_v50, %v4894_v36  ;;  %v1825_v40 = vsel %vm1817_vm7, %v1792_v26, %v4895_v29  ;;  %vm6578_vm9 = vcmp.ne.s32.totalorder %v761_v41, 0 }
 0x17d   : > { %v1853_v8 = vpack.c.bf16 %v1825_v40, %v1824_v51  ;;  %v1794_v9 = vsel %vm1784_vm6, %v6364_v20, %v4890_v24  ;;  %v1793_v56 = vsel %vm1784_vm6, %v6358_v34, %v4889_v10  ;;  %v4898_v46 = vpop.permute.xlu1 %4897 }
 0x17e   : > { %v4903_v22 = vpop.permute.xlu0 %4902  ;;  %v4900_v3 = vunpack.i.h.bf16 %v4898_v46  ;;  %v4899_v38 = vunpack.i.l.bf16 %v4898_v46 }
 0x17f   : > { %v4905_v0 = vunpack.i.h.bf16 %v4903_v22  ;;  %v4904_v19 = vunpack.i.l.bf16 %v4903_v22  ;;  %4518 = vmatmul.mubr.msk.bf16.gmra.mrb[4].mxu0 %vm1877_vm8, %v1853_v8 }
 0x180   : > { %v1796_v52 = vsel %vm1784_vm6, %v6368_v62, %v4900_v3  ;;  %v1795_v60 = vsel %vm1784_vm6, %v6372_v63, %v4899_v38 }
 0x181   : > { %v1826_v25 = vsel %vm1817_vm7, %v1793_v56, %v4904_v19  ;;  %v1827_v13 = vsel %vm1817_vm7, %v1794_v9, %v4905_v0  ;;  %v4908_v4 = vpop.permute.xlu1 %4907 }
 0x182   : > { %v1854_v54 = vpack.c.bf16 %v1827_v13, %v1826_v25  ;;  %v4913_v20 = vpop.permute.xlu0 %4912  ;;  %v4910_v44 = vunpack.i.h.bf16 %v4908_v4  ;;  %v4909_v34 = vunpack.i.l.bf16 %v4908_v4 }
 0x183   : > { %v4915_v11 = vunpack.i.h.bf16 %v4913_v20  ;;  %v4914_v58 = vunpack.i.l.bf16 %v4913_v20 }
 0x184   : > { %4521 = vmatprep.mubr.msk.bf16.mxu0 %vm1877_vm8, %v1854_v54  ;;  %v1828_v33 = vsel %vm1817_vm7, %v1795_v60, %v4909_v34  ;;  %v1829_v21 = vsel %vm1817_vm7, %v1796_v52, %v4910_v44 }
 0x185   : > { %v1855_v15 = vpack.c.bf16 %v1829_v21, %v1828_v33  ;;  %v1798_v42 = vsel %vm1784_vm6, %v6380_v12, %v4915_v11  ;;  %v1797_v31 = vsel %vm1784_vm6, %v6384_v28, %v4914_v58  ;;  %v4918_v29 = vpop.permute.xlu1 %4917  ;;  %v1351_v28 = vsel %vm6578_vm9, %v6409_v47, 0.0 }
 0x186   : > { %v4923_v36 = vpop.permute.xlu0 %4922  ;;  %v4920_v63 = vunpack.i.h.bf16 %v4918_v29  ;;  %v4919_v26 = vunpack.i.l.bf16 %v4918_v29 }
 0x187   : > { %v4925_v24 = vunpack.i.h.bf16 %v4923_v36  ;;  %v4924_v62 = vunpack.i.l.bf16 %v4923_v36  ;;  %4522 = vmatmul.mubr.msk.bf16.gmra.mrb[8].mxu0 %vm1877_vm8, %v1855_v15 }
 0x188   : > { %v1800_v30 = vsel %vm1784_vm6, %v6399_v43, %v4920_v63  ;;  %v1799_v0 = vsel %vm1784_vm6, %v6391_v35, %v4919_v26 }
 0x189   : > { %v1830_v50 = vsel %vm1817_vm7, %v1797_v31, %v4924_v62  ;;  %v1831_v51 = vsel %vm1817_vm7, %v1798_v42, %v4925_v24  ;;  %v4928_v40 = vpop.permute.xlu1 %4927 }
 0x18a   : > { %v1856_v12 = vpack.c.bf16 %v1831_v51, %v1830_v50  ;;  %v4933_v8 = vpop.permute.xlu0 %4932  ;;  %v4930_v9 = vunpack.i.h.bf16 %v4928_v40  ;;  %v4929_v56 = vunpack.i.l.bf16 %v4928_v40 }
 0x18b   : > { %v4935_v46 = vunpack.i.h.bf16 %v4933_v8  ;;  %v4934_v22 = vunpack.i.l.bf16 %v4933_v8 }
 0x18c   : > { %4525 = vmatprep.mubr.msk.bf16.mxu0 %vm1877_vm8, %v1856_v12  ;;  %v1832_v19 = vsel %vm1817_vm7, %v1799_v0, %v4929_v56  ;;  %v1833_v3 = vsel %vm1817_vm7, %v1800_v30, %v4930_v9 }
 0x18d   : > { %v1857_v38 = vpack.c.bf16 %v1833_v3, %v1832_v19  ;;  %v1802_v47 = vsel %vm1784_vm6, %v6405_v53, %v4935_v46  ;;  %v1801_v25 = vsel %vm1784_vm6, %v1351_v28, %v4934_v22  ;;  %v4938_v13 = vpop.permute.xlu1 %4937 }
 0x18e   : > { %v4943_v54 = vpop.permute.xlu0 %4942  ;;  %v4940_v43 = vunpack.i.h.bf16 %v4938_v13  ;;  %v4939_v41 = vunpack.i.l.bf16 %v4938_v13 }
 0x18f   : > { %v4945_v4 = vunpack.i.h.bf16 %v4943_v54  ;;  %v4944_v20 = vunpack.i.l.bf16 %v4943_v54  ;;  %4526 = vmatmul.mubr.msk.bf16.gmra.mrb[12].mxu0 %vm1877_vm8, %v1857_v38 }
 0x190   : > { %v1804_v21 = vsel %vm1784_vm6, %v6419_v14, %v4940_v43  ;;  %v1803_v15 = vsel %vm1784_vm6, %v6413_v57, %v4939_v41 }
 0x191   : > { %v1834_v35 = vsel %vm1817_vm7, %v1801_v25, %v4944_v20  ;;  %v1835_v44 = vsel %vm1817_vm7, %v1802_v47, %v4945_v4  ;;  %v4948_v11 = vpop.permute.xlu1 %4947 }
 0x192   : > { %v1858_v34 = vpack.c.bf16 %v1835_v44, %v1834_v35  ;;  %v4953_v58 = vpop.permute.xlu0 %4952  ;;  %v4950_v52 = vunpack.i.h.bf16 %v4948_v11  ;;  %v4949_v60 = vunpack.i.l.bf16 %v4948_v11 }
 0x193   : > { %v4955_v53 = vunpack.i.h.bf16 %v4953_v58  ;;  %v4954_v33 = vunpack.i.l.bf16 %v4953_v58 }
 0x194   : > { %4529 = vmatprep.mubr.msk.bf16.mxu0 %vm1877_vm8, %v1858_v34  ;;  %v1836_v42 = vsel %vm1817_vm7, %v1803_v15, %v4949_v60  ;;  %v1837_v31 = vsel %vm1817_vm7, %v1804_v21, %v4950_v52 }
 0x195   : > { %v1859_v29 = vpack.c.bf16 %v1837_v31, %v1836_v42  ;;  %v1806_v36 = vsel %vm1784_vm6, %v6431_v27, %v4955_v53  ;;  %v1805_v24 = vsel %vm1784_vm6, %v6423_v17, %v4954_v33  ;;  %v4958_v62 = vpop.permute.xlu1 %4957  ;;  %v1239_v33 = vsel %vm1238_vm3, %v1236_v23, %v1237_v32 }
 0x196   : > { %v4963_v63 = vpop.permute.xlu0 %4962  ;;  %v4960_v50 = vunpack.i.h.bf16 %v4958_v62  ;;  %v4959_v51 = vunpack.i.l.bf16 %v4958_v62 }
 0x197   : > { %v4965_v26 = vunpack.i.h.bf16 %v4963_v63  ;;  %v4964_v14 = vunpack.i.l.bf16 %v4963_v63  ;;  %4530 = vmatmul.mubr.msk.bf16.gmra.mrb[16].mxu0 %vm1877_vm8, %v1859_v29 }
 0x198   : > { %v1808_v17 = vsel %vm1784_vm6, %v6444_v39, %v4960_v50  ;;  %v1807_v22 = vsel %vm1784_vm6, %v6437_v48, %v4959_v51  ;;  %v2102_v50 = vld [vmem:[#allocation14] sm:$0x3] }
 0x199   : > { %v1838_v57 = vsel %vm1817_vm7, %v1805_v24, %v4964_v14  ;;  %v1839_v12 = vsel %vm1817_vm7, %v1806_v36, %v4965_v26  ;;  %v4968_v28 = vpop.permute.xlu1 %4967  ;;  %4748 = vmatprep.subr.msk.bf16.mxu0 %vm3867_vm10, %v2102_v50  ;;  %v3869_v51 = vsel %vm3867_vm10, %v2102_v50, 0 }
 0x19a   : > { %v1860_v40 = vpack.c.bf16 %v1839_v12, %v1838_v57  ;;  %v4973_v8 = vpop.permute.xlu0 %4972  ;;  %v4970_v9 = vunpack.i.h.bf16 %v4968_v28  ;;  %v4969_v27 = vunpack.i.l.bf16 %v4968_v28  ;;  %4616 = vmatpush3.bf16.msra.mxu0 %v3869_v51  ;;  %v6656_v57 = vld [vmem:[#allocation3] ss:$0 sm:$0xff]  ;;  %v6658_v12 = vld [vmem:[#allocation5] ss:$0 sm:$0xff] }
 0x19b   : > { %v4975_v56 = vunpack.i.h.bf16 %v4973_v8  ;;  %v4974_v46 = vunpack.i.l.bf16 %v4973_v8  ;;  %v6661_v8 = vld [vmem:[#allocation7] ss:$0 sm:$0xff] }
 0x19c   : > { %4533 = vmatprep.mubr.msk.bf16.mxu0 %vm1877_vm8, %v1860_v40  ;;  %v1840_v30 = vsel %vm1817_vm7, %v1807_v22, %v4969_v27  ;;  %v1841_v0 = vsel %vm1817_vm7, %v1808_v17, %v4970_v9 }
 0x19d   : > { %v1861_v19 = vpack.c.bf16 %v1841_v0, %v1840_v30  ;;  %v1810_v3 = vsel %vm1784_vm6, %v6454_v18, %v4975_v56  ;;  %v1809_v38 = vsel %vm1784_vm6, %v6448_v1, %v4974_v46  ;;  %v4978_v47 = vpop.permute.xlu1 %4977 }
 0x19e   : > { %v4983_v25 = vpop.permute.xlu0 %4982  ;;  %v4980_v13 = vunpack.i.h.bf16 %v4978_v47  ;;  %v4979_v39 = vunpack.i.l.bf16 %v4978_v47 }
 0x19f   : > { %v4985_v54 = vunpack.i.h.bf16 %v4983_v25  ;;  %v4984_v4 = vunpack.i.l.bf16 %v4983_v25  ;;  %4534 = vmatmul.mubr.msk.bf16.gmra.mrb[20].mxu0 %vm1877_vm8, %v1861_v19 }
 0x1a0   : > { %v1812_v43 = vsel %vm1784_vm6, %v6458_v2, %v4980_v13  ;;  %v1811_v18 = vsel %vm1784_vm6, %v6462_v6, %v4979_v39 }
 0x1a1   : > { %v1842_v48 = vsel %vm1817_vm7, %v1809_v38, %v4984_v4  ;;  %v1843_v20 = vsel %vm1817_vm7, %v1810_v3, %v4985_v54  ;;  %v4988_v1 = vpop.permute.xlu1 %4987 }
 0x1a2   : > { %v1862_v41 = vpack.c.bf16 %v1843_v20, %v1842_v48  ;;  %v4993_v35 = vpop.permute.xlu0 %4992  ;;  %v4990_v44 = vunpack.i.h.bf16 %v4988_v1  ;;  %v4989_v34 = vunpack.i.l.bf16 %v4988_v1 }
 0x1a3   : > { %v4995_v11 = vunpack.i.h.bf16 %v4993_v35  ;;  %v4994_v58 = vunpack.i.l.bf16 %v4993_v35 }
 0x1a4   : > { %4537 = vmatprep.mubr.msk.bf16.mxu0 %vm1877_vm8, %v1862_v41  ;;  %v1844_v52 = vsel %vm1817_vm7, %v1811_v18, %v4989_v34  ;;  %v1845_v60 = vsel %vm1817_vm7, %v1812_v43, %v4990_v44 }
 0x1a5   : > { %v1863_v53 = vpack.c.bf16 %v1845_v60, %v1844_v52  ;;  %v1814_v2 = vsel %vm1784_vm6, %v6477_v37, %v4995_v11  ;;  %v1813_v6 = vsel %vm1784_vm6, %v6481_v45, %v4994_v58  ;;  %v4998_v21 = vpop.permute.xlu1 %4997 }
 0x1a6   : > { %v5003_v15 = vpop.permute.xlu0 %5002  ;;  %v5000_v42 = vunpack.i.h.bf16 %v4998_v21  ;;  %v4999_v31 = vunpack.i.l.bf16 %v4998_v21 }
 0x1a7   : > { %v5005_v29 = vunpack.i.h.bf16 %v5003_v15  ;;  %v5004_v36 = vunpack.i.l.bf16 %v5003_v15  ;;  %4538 = vmatmul.mubr.msk.bf16.gmra.mrb[24].mxu0 %vm1877_vm8, %v1863_v53 }
 0x1a8   : > { %v1816_v45 = vsel %vm1784_vm6, %v1239_v33, %v5000_v42  ;;  %v1815_v49 = vsel %vm1784_vm6, %v6493_v55, %v4999_v31 }
 0x1a9   : > { %v1846_v37 = vsel %vm1817_vm7, %v1813_v6, %v5004_v36  ;;  %v1847_v24 = vsel %vm1817_vm7, %v1814_v2, %v5005_v29  ;;  %v5008_v62 = vpop.permute.xlu1 %5007  ;;  %v5332_v36 = vld [vmem:[%s8254_s7] sm:$0x3f]  }
 0x1aa   : > { %v1864_v5 = vpack.c.bf16 %v1847_v24, %v1846_v37  ;;  %v5010_v23 = vunpack.i.h.bf16 %v5008_v62  ;;  %v5009_v32 = vunpack.i.l.bf16 %v5008_v62  ;;  %4746 = vmatprep.subr.msk.bf16.mxu1 %vm1926_vm1, %v5332_v36 }
 0x1ac   : > { %4541 = vmatprep.mubr.msk.bf16.mxu0 %vm1877_vm8, %v1864_v5  ;;  %v1848_v63 = vsel %vm1817_vm7, %v1815_v49, %v5009_v32  ;;  %v1849_v26 = vsel %vm1817_vm7, %v1816_v45, %v5010_v23 }
 0x1ad   : > { %v1865_v14 = vpack.c.bf16 %v1849_v26, %v1848_v63 }
 0x1af   : > { %4542 = vmatmul.mubr.msk.bf16.gmra.mrb[28].mxu0 %vm1877_vm8, %v1865_v14 }
 0x24a   : > { %v4515_v55 = vpop.f32.mrb[0].mxu0 }
 0x24b   : > { %v1973_v40 = vadd.f32 %v4515_v55, %v6656_v57  ;;  %v1964_v28 = vpop.f32.mrb[1].mxu0 }
 0x24c   : > { %v1965_v9 = vadd.f32 %v6656_v57, %v1964_v28  ;;  %v4516_v27 = vpop.f32.mrb[2].mxu0 }
 0x24d   : > { %v2112_v56 = vmul.f32 %v6658_v12, %v1973_v40  ;;  %v1976_v46 = vadd.f32 %v4516_v27, %v6656_v57  ;;  %v1967_v17 = vpop.f32.mrb[3].mxu0 }
 0x24e   : > { %v2110_v22 = vmul.f32 %v6658_v12, %v1965_v9  ;;  %v1968_v30 = vadd.f32 %v6656_v57, %v1967_v17 }
 0x24f   : > { %v2150_v0 = vadd.f32 %v6661_v8, %v2112_v56  ;;  %v2113_v19 = vmul.f32 %v6658_v12, %v1976_v46  ;;  %v3798_v3 = vpack.c.bf16 %v1976_v46, %v1973_v40  ;;  %v2768_v40 = vsel %vm1926_vm1, %v5332_v36, 0 }
 0x250   : > { %v6671_v38 = vadd.f32 %v6661_v8, %v2110_v22  ;;  %v2111_v47 = vmul.f32 %v6658_v12, %v1968_v30  ;;  %v3797_v25 = vpack.c.bf16 %v1968_v30, %v1965_v9  ;;  %4546 = vmatpush3.bf16.msra.mxu1 %v2768_v40 }
 0x251   : > { %v2182_v13 = vrot.slane %v2150_v0, 7  ;;  %v6675_v39 = vadd.f32 %v6661_v8, %v2113_v19  ;;  %v2278_v54 = vrot.slane %v2150_v0, 1 }
 0x252   : > { %v8267_v4 = vrot.slane %v6671_v38, 7  ;;  %v8268_v48 = vrot.slane %v6671_v38, 1  ;;  %v2149_v20 = vadd.f32 %v6661_v8, %v2111_v47  ;;  %v4519_v43 = vpop.f32.mrb[4].mxu0  ;;  %4617 = vmatprep.mubr.msk.bf16.mxu0 %vm1784_vm6, %v3797_v25 }
 0x253   : > { %v2183_v18 = vrot.slane %v6675_v39, 7  ;;  %v2279_v41 = vrot.slane %v6675_v39, 1  ;;  %v1989_v1 = vadd.f32 %v4519_v43, %v6656_v57  ;;  %v1980_v35 = vpop.f32.mrb[5].mxu0  ;;  %4618 = vmatmul.mubr.msk.bf16.vlgmr.msra.gmra.mrb[32].mxu0 %vm1784_vm6, %v3798_v3  ;;  %v5011_v44 = vpack.i.bf16 %v6675_v39, %v2150_v0 }
 0x254   : > { %v2181_v34 = vrot.slane %v2149_v20, 7  ;;  %v2277_v11 = vrot.slane %v2149_v20, 1  ;;  %v1981_v58 = vadd.f32 %v6656_v57, %v1980_v35  ;;  %v4520_v52 = vpop.f32.mrb[6].mxu0  ;;  %v5016_v60 = vpack.i.bf16 %v2149_v20, %v6671_v38 }
 0x255   : > { %v2116_v53 = vmul.f32 %v6658_v12, %v1989_v1  ;;  %v1992_v2 = vadd.f32 %v4520_v52, %v6656_v57  ;;  %5012 = vrot.lane.b32.xlu1 %v5011_v44, %s5624_s18  ;;  %v1983_v6 = vpop.f32.mrb[7].mxu0  ;;  %v2336_v33 = vsel %vm1399_vm0, %v2278_v54, %v2279_v41  ;;  %v6697_v21 = vsel %vm1238_vm3, %v2182_v13, %v2183_v18 }
 0x256   : > { %v2114_v15 = vmul.f32 %v6658_v12, %v1981_v58  ;;  %v1984_v42 = vadd.f32 %v6656_v57, %v1983_v6  ;;  %5017 = vrot.lane.b32.xlu0 %v5016_v60, %s5624_s18  ;;  %v2337_v31 = vsel %vm1399_vm0, %v2277_v11, %v2278_v54  ;;  %v2338_v29 = vsel %vm1399_vm0, %v8268_v48, %v2277_v11 }
 0x257   : > { %v6712_v37 = vadd.f32 %v6661_v8, %v2116_v53  ;;  %v2117_v24 = vmul.f32 %v6658_v12, %v1992_v2  ;;  %v3800_v45 = vpack.c.bf16 %v1992_v2, %v1989_v1  ;;  %v5021_v49 = vpack.i.bf16 %v2337_v31, %v2338_v29 }
 0x258   : > { %v2152_v5 = vadd.f32 %v6661_v8, %v2114_v15  ;;  %v2115_v62 = vmul.f32 %v6658_v12, %v1984_v42  ;;  %v3799_v23 = vpack.c.bf16 %v1984_v42, %v1981_v58  ;;  %v6719_v32 = vsel %vm1238_vm3, %v2181_v34, %v2182_v13 }
 0x259   : > { %v6723_v63 = vadd.f32 %v6661_v8, %v2117_v24  ;;  %v6729_v26 = vsel %vm1238_vm3, %v8267_v4, %v2181_v34  ;;  %v2282_v14 = vrot.slane %v6712_v37, 1  ;;  %v2186_v2 = vrot.slane %v6712_v37, 7 }
 0x25a   : > { %v2280_v50 = vrot.slane %v2152_v5, 1  ;;  %v6733_v51 = vadd.f32 %v6661_v8, %v2115_v62  ;;  %v4523_v55 = vpop.f32.mrb[8].mxu0  ;;  %4621 = vmatprep.mubr.msk.bf16.mxu0 %vm1784_vm6, %v3799_v23  ;;  %5022 = vrot.lane.b32.xlu0 %v5021_v49, %s5625_s11  ;;  %v2184_v28 = vrot.slane %v2152_v5, 7 }
 0x25b   : > { %v2283_v9 = vrot.slane %v6723_v63, 1  ;;  %v2005_v27 = vadd.f32 %v4523_v55, %v6656_v57  ;;  %v1996_v56 = vpop.f32.mrb[9].mxu0  ;;  %4622 = vmatmul.mubr.msk.bf16.gmra.mrb[36].mxu0 %vm1784_vm6, %v3800_v45  ;;  %v5036_v46 = vpack.i.bf16 %v6723_v63, %v6712_v37  ;;  %v2187_v6 = vrot.slane %v6723_v63, 7 }
 0x25c   : > { %v2185_v17 = vrot.slane %v6733_v51, 7  ;;  %v2281_v22 = vrot.slane %v6733_v51, 1  ;;  %v1997_v30 = vadd.f32 %v6656_v57, %v1996_v56  ;;  %v4524_v0 = vpop.f32.mrb[10].mxu0  ;;  %v5026_v19 = vpack.i.bf16 %v6733_v51, %v2152_v5 }
 0x25d   : > { %v2120_v3 = vmul.f32 %v6658_v12, %v2005_v27  ;;  %v2008_v47 = vadd.f32 %v4524_v0, %v6656_v57  ;;  %v1999_v25 = vpop.f32.mrb[11].mxu0  ;;  %v2335_v13 = vsel %vm1399_vm0, %v2279_v41, %v2280_v50  ;;  %v2332_v54 = vsel %vm1399_vm0, %v2282_v14, %v2283_v9 }
 0x25e   : > { %v2118_v20 = vmul.f32 %v6658_v12, %v1997_v30  ;;  %v2000_v43 = vadd.f32 %v6656_v57, %v1999_v25  ;;  %5027 = vrot.lane.b32.xlu0 %v5026_v19, %s5624_s18  ;;  %v5031_v1 = vpack.i.bf16 %v2335_v13, %v2336_v33  ;;  %v2333_v35 = vsel %vm1399_vm0, %v2281_v22, %v2282_v14 }
 0x25f   : > { %v6759_v44 = vadd.f32 %v6661_v8, %v2120_v3  ;;  %v2121_v34 = vmul.f32 %v6658_v12, %v2008_v47  ;;  %v3802_v11 = vpack.c.bf16 %v2008_v47, %v2005_v27  ;;  %v2334_v41 = vsel %vm1399_vm0, %v2280_v50, %v2281_v22 }
 0x260   : > { %v6765_v58 = vadd.f32 %v6661_v8, %v2118_v20  ;;  %v2119_v52 = vmul.f32 %v6658_v12, %v2000_v43  ;;  %v3801_v60 = vpack.c.bf16 %v2000_v43, %v1997_v30  ;;  %5032 = vrot.lane.b32.xlu1 %v5031_v1, %s5625_s11  ;;  %v5041_v53 = vpack.i.bf16 %v2333_v35, %v2334_v41 }
 0x261   : > { %v6772_v33 = vadd.f32 %v6661_v8, %v2121_v34  ;;  %v6778_v15 = vsel %vm1238_vm3, %v2184_v28, %v2185_v17  ;;  %v2190_v42 = vrot.slane %v6759_v44, 7  ;;  %v6791_v37 = vsel %vm1238_vm3, %v2183_v18, %v2184_v28 }
 0x262   : > { %v2284_v31 = vrot.slane %v6765_v58, 1  ;;  %v6783_v29 = vadd.f32 %v6661_v8, %v2119_v52  ;;  %v4527_v36 = vpop.f32.mrb[12].mxu0  ;;  %4625 = vmatprep.mubr.msk.bf16.mxu0 %vm1784_vm6, %v3801_v60  ;;  %5042 = vrot.lane.b32.xlu0 %v5041_v53, %s5625_s11  ;;  %v2286_v24 = vrot.slane %v6759_v44, 1  ;;  %v2188_v23 = vrot.slane %v6765_v58, 7 }
 0x263   : > { %v2287_v45 = vrot.slane %v6772_v33, 1  ;;  %v2021_v49 = vadd.f32 %v4527_v36, %v6656_v57  ;;  %v2012_v5 = vpop.f32.mrb[13].mxu0  ;;  %4626 = vmatmul.mubr.msk.bf16.gmra.mrb[40].mxu0 %vm1784_vm6, %v3802_v11  ;;  %v5056_v62 = vpack.i.bf16 %v6772_v33, %v6759_v44  ;;  %v8270_v43 = vrot.slane %v6772_v33, 7 }
 0x264   : > { %v2285_v39 = vrot.slane %v6783_v29, 1  ;;  %v2013_v14 = vadd.f32 %v6656_v57, %v2012_v5  ;;  %5037 = vrot.lane.b32.xlu1 %v5036_v46, %s5624_s18  ;;  %v4528_v18 = vpop.f32.mrb[14].mxu0  ;;  %v5046_v50 = vpack.i.bf16 %v6783_v29, %v6765_v58  ;;  %v2331_v27 = vsel %vm1399_vm0, %v2283_v9, %v2284_v31 }
 0x265   : > { %v2124_v55 = vmul.f32 %v6658_v12, %v2021_v49  ;;  %v2024_v40 = vadd.f32 %v4528_v18, %v6656_v57  ;;  %v2015_v28 = vpop.f32.mrb[15].mxu0  ;;  %v2328_v56 = vsel %vm1399_vm0, %v2286_v24, %v2287_v45  ;;  %v5051_v46 = vpack.i.bf16 %v2331_v27, %v2332_v54 }
 0x266   : > { %v2122_v22 = vmul.f32 %v6658_v12, %v2013_v14  ;;  %v2016_v30 = vadd.f32 %v6656_v57, %v2015_v28  ;;  %5047 = vrot.lane.b32.xlu0 %v5046_v50, %s5624_s18  ;;  %v2329_v0 = vsel %vm1399_vm0, %v2285_v39, %v2286_v24  ;;  %v2330_v9 = vsel %vm1399_vm0, %v2284_v31, %v2285_v39 }
 0x267   : > { %v6817_v19 = vadd.f32 %v6661_v8, %v2124_v55  ;;  %v2125_v3 = vmul.f32 %v6658_v12, %v2024_v40  ;;  %v3804_v47 = vpack.c.bf16 %v2024_v40, %v2021_v49  ;;  %v5061_v54 = vpack.i.bf16 %v2329_v0, %v2330_v9 }
 0x268   : > { %v6823_v25 = vadd.f32 %v6661_v8, %v2122_v22  ;;  %v2123_v13 = vmul.f32 %v6658_v12, %v2016_v30  ;;  %v3803_v20 = vpack.c.bf16 %v2016_v30, %v2013_v14  ;;  %5052 = vrot.lane.b32.xlu1 %v5051_v46, %s5625_s11  ;;  %v2189_v1 = vrot.slane %v6783_v29, 7 }
 0x269   : > { %v6830_v35 = vadd.f32 %v6661_v8, %v2125_v3  ;;  %v6836_v34 = vsel %vm1238_vm3, %v2186_v2, %v2187_v6  ;;  %v6849_v53 = vsel %vm1238_vm3, %v2185_v17, %v2186_v2  ;;  %v2290_v31 = vrot.slane %v6817_v19, 1 }
 0x26a   : > { %v2288_v41 = vrot.slane %v6823_v25, 1  ;;  %v6841_v52 = vadd.f32 %v6661_v8, %v2123_v13  ;;  %v4531_v60 = vpop.f32.mrb[16].mxu0  ;;  %4629 = vmatprep.mubr.msk.bf16.mxu0 %vm1784_vm6, %v3803_v20  ;;  %5062 = vrot.lane.b32.xlu0 %v5061_v54, %s5625_s11  ;;  %v2192_v39 = vrot.slane %v6823_v25, 7 }
 0x26b   : > { %v2291_v36 = vrot.slane %v6830_v35, 1  ;;  %v2037_v24 = vadd.f32 %v4531_v60, %v6656_v57  ;;  %v2028_v49 = vpop.f32.mrb[17].mxu0  ;;  %4630 = vmatmul.mubr.msk.bf16.gmra.mrb[44].mxu0 %vm1784_vm6, %v3804_v47  ;;  %v5076_v5 = vpack.i.bf16 %v6830_v35, %v6817_v19 }
 0x26c   : > { %v2289_v51 = vrot.slane %v6841_v52, 1  ;;  %v2029_v14 = vadd.f32 %v6656_v57, %v2028_v49  ;;  %5057 = vrot.lane.b32.xlu1 %v5056_v62, %s5624_s18  ;;  %v4532_v17 = vpop.f32.mrb[18].mxu0  ;;  %v5066_v2 = vpack.i.bf16 %v6841_v52, %v6823_v25  ;;  %v2327_v40 = vsel %vm1399_vm0, %v2287_v45, %v2288_v41 }
 0x26d   : > { %v2128_v18 = vmul.f32 %v6658_v12, %v2037_v24  ;;  %v2040_v50 = vadd.f32 %v4532_v17, %v6656_v57  ;;  %v2031_v55 = vpop.f32.mrb[19].mxu0  ;;  %v2324_v28 = vsel %vm1399_vm0, %v2290_v31, %v2291_v36  ;;  %v5071_v62 = vpack.i.bf16 %v2327_v40, %v2328_v56 }
 0x26e   : > { %v2126_v27 = vmul.f32 %v6658_v12, %v2029_v14  ;;  %v2032_v22 = vadd.f32 %v6656_v57, %v2031_v55  ;;  %5067 = vrot.lane.b32.xlu0 %v5066_v2, %s5624_s18  ;;  %v2325_v30 = vsel %vm1399_vm0, %v2289_v51, %v2290_v31  ;;  %v2326_v45 = vsel %vm1399_vm0, %v2288_v41, %v2289_v51 }
 0x26f   : > { %v6875_v46 = vadd.f32 %v6661_v8, %v2128_v18  ;;  %v2129_v0 = vmul.f32 %v6658_v12, %v2040_v50  ;;  %v3806_v3 = vpack.c.bf16 %v2040_v50, %v2037_v24  ;;  %v5081_v56 = vpack.i.bf16 %v2325_v30, %v2326_v45 }
 0x270   : > { %v6881_v47 = vadd.f32 %v6661_v8, %v2126_v27  ;;  %v2127_v9 = vmul.f32 %v6658_v12, %v2032_v22  ;;  %v3805_v13 = vpack.c.bf16 %v2032_v22, %v2029_v14  ;;  %5072 = vrot.lane.b32.xlu1 %v5071_v62, %s5625_s11  ;;  %v8269_v54 = vrot.slane %v6841_v52, 7 }
 0x271   : > { %v6888_v60 = vadd.f32 %v6661_v8, %v2129_v0  ;;  %v6896_v41 = vsel %vm1238_vm3, %v2188_v23, %v2189_v1  ;;  %v6911_v14 = vsel %vm1238_vm3, %v2187_v6, %v2188_v23  ;;  %v2294_v17 = vrot.slane %v6875_v46, 1 }
 0x272   : > { %v2292_v24 = vrot.slane %v6881_v47, 1  ;;  %v6901_v49 = vadd.f32 %v6661_v8, %v2127_v9  ;;  %v4535_v51 = vpop.f32.mrb[20].mxu0  ;;  %4633 = vmatprep.mubr.msk.bf16.mxu0 %vm1784_vm6, %v3805_v13  ;;  %5082 = vrot.lane.b32.xlu0 %v5081_v56, %s5625_s11  ;;  %v7028_v44 = vsel %vm1238_vm3, %v2192_v39, %v8269_v54 }
 0x273   : > { %v2295_v2 = vrot.slane %v6888_v60, 1  ;;  %v2053_v18 = vadd.f32 %v4535_v51, %v6656_v57  ;;  %v2044_v50 = vpop.f32.mrb[21].mxu0  ;;  %4634 = vmatmul.mubr.msk.bf16.gmra.mrb[48].mxu0 %vm1784_vm6, %v3806_v3  ;;  %v5096_v55 = vpack.i.bf16 %v6888_v60, %v6875_v46 }
 0x274   : > { %v2293_v63 = vrot.slane %v6901_v49, 1  ;;  %v2045_v40 = vadd.f32 %v6656_v57, %v2044_v50  ;;  %5077 = vrot.lane.b32.xlu1 %v5076_v5, %s5624_s18  ;;  %v4536_v6 = vpop.f32.mrb[22].mxu0  ;;  %v5086_v23 = vpack.i.bf16 %v6901_v49, %v6881_v47  ;;  %v2323_v30 = vsel %vm1399_vm0, %v2291_v36, %v2292_v24 }
 0x275   : > { %v2132_v27 = vmul.f32 %v6658_v12, %v2053_v18  ;;  %v2056_v22 = vadd.f32 %v4536_v6, %v6656_v57  ;;  %v2047_v62 = vpop.f32.mrb[23].mxu0  ;;  %v2320_v0 = vsel %vm1399_vm0, %v2294_v17, %v2295_v2  ;;  %v2355_v5 = vsel %vm6145_vm2, %v2323_v30, 0.0 }
 0x276   : > { %v2130_v3 = vmul.f32 %v6658_v12, %v2045_v40  ;;  %v2048_v45 = vadd.f32 %v6656_v57, %v2047_v62  ;;  %5087 = vrot.lane.b32.xlu0 %v5086_v23, %s5624_s18  ;;  %v2321_v9 = vsel %vm1399_vm0, %v2293_v63, %v2294_v17  ;;  %v5091_v51 = vpack.i.bf16 %v2355_v5, %v2324_v28 }
 0x277   : > { %v6939_v13 = vadd.f32 %v6661_v8, %v2132_v27  ;;  %v2133_v36 = vmul.f32 %v6658_v12, %v2056_v22  ;;  %v3808_v56 = vpack.c.bf16 %v2056_v22, %v2053_v18  ;;  %v2322_v23 = vsel %vm1399_vm0, %v2292_v24, %v2293_v63 }
 0x278   : > { %v6943_v50 = vadd.f32 %v6661_v8, %v2130_v3  ;;  %v2131_v6 = vmul.f32 %v6658_v12, %v2048_v45  ;;  %v3807_v62 = vpack.c.bf16 %v2048_v45, %v2045_v40  ;;  %5092 = vrot.lane.b32.xlu1 %v5091_v51, %s5625_s11  ;;  %v5101_v18 = vpack.i.bf16 %v2321_v9, %v2322_v23 }
 0x279   : > { %v6951_v27 = vadd.f32 %v6661_v8, %v2133_v36  ;;  %v6966_v24 = vsel %vm1238_vm3, %v2190_v42, %v8270_v43  ;;  %v2298_v63 = vrot.slane %v6939_v13, 1 }
 0x27a   : > { %v2296_v22 = vrot.slane %v6943_v50, 1  ;;  %v6957_v3 = vadd.f32 %v6661_v8, %v2131_v6  ;;  %v4539_v40 = vpop.f32.mrb[24].mxu0  ;;  %4637 = vmatprep.mubr.msk.bf16.mxu0 %vm1784_vm6, %v3807_v62  ;;  %5102 = vrot.lane.b32.xlu0 %v5101_v18, %s5625_s11 }
 0x27b   : > { %v2299_v45 = vrot.slane %v6951_v27, 1  ;;  %v2069_v5 = vadd.f32 %v4539_v40, %v6656_v57  ;;  %v2060_v9 = vpop.f32.mrb[25].mxu0  ;;  %4638 = vmatmul.mubr.msk.bf16.gmra.mrb[52].mxu0 %vm1784_vm6, %v3808_v56  ;;  %v5116_v36 = vpack.i.bf16 %v6951_v27, %v6939_v13 }
 0x27c   : > { %v2297_v6 = vrot.slane %v6957_v3, 1  ;;  %v2061_v62 = vadd.f32 %v6656_v57, %v2060_v9  ;;  %v4540_v23 = vpop.f32.mrb[26].mxu0  ;;  %v5111_v28 = vpack.i.bf16 %v6957_v3, %v6943_v50  ;;  %5097 = vrot.lane.b32.xlu1 %v5096_v55, %s5624_s18  ;;  %v2319_v31 = vsel %vm1399_vm0, %v2295_v2, %v2296_v22 }
 0x27d   : > { %v2136_v40 = vmul.f32 %v6658_v12, %v2069_v5  ;;  %v2072_v18 = vadd.f32 %v4540_v23, %v6656_v57  ;;  %v2063_v56 = vpop.f32.mrb[27].mxu0  ;;  %v2316_v51 = vsel %vm1399_vm0, %v2298_v63, %v2299_v45  ;;  %v5106_v58 = vpack.i.bf16 %v2319_v31, %v2320_v0 }
 0x27e   : > { %v2134_v30 = vmul.f32 %v6658_v12, %v2061_v62  ;;  %v2064_v9 = vadd.f32 %v6656_v57, %v2063_v56  ;;  %v2317_v17 = vsel %vm1399_vm0, %v2297_v6, %v2298_v63  ;;  %5112 = vrot.lane.b32.xlu0 %v5111_v28, %s5624_s18  ;;  %v2318_v2 = vsel %vm1399_vm0, %v2296_v22, %v2297_v6 }
 0x27f   : > { %v6992_v4 = vadd.f32 %v6661_v8, %v2136_v40  ;;  %v2137_v55 = vmul.f32 %v6658_v12, %v2072_v18  ;;  %v3810_v23 = vpack.c.bf16 %v2072_v18, %v2069_v5  ;;  %v5121_v0 = vpack.i.bf16 %v2317_v17, %v2318_v2 }
 0x280   : > { %v6999_v48 = vadd.f32 %v6661_v8, %v2134_v30  ;;  %v2135_v56 = vmul.f32 %v6658_v12, %v2064_v9  ;;  %v3809_v31 = vpack.c.bf16 %v2064_v9, %v2061_v62  ;;  %5107 = vrot.lane.b32.xlu1 %v5106_v58, %s5625_s11  ;;  %v7014_v30 = vsel %vm1238_vm3, %v2189_v1, %v2190_v42 }
 0x281   : > { %v7005_v11 = vadd.f32 %v6661_v8, %v2137_v55  ;;  %v2302_v42 = vrot.slane %v6992_v4, 1 }
 0x282   : > { %v2300_v17 = vrot.slane %v6999_v48, 1  ;;  %v7019_v22 = vadd.f32 %v6661_v8, %v2135_v56  ;;  %v4543_v5 = vpop.f32.mrb[28].mxu0  ;;  %4641 = vmatprep.mubr.msk.bf16.mxu0 %vm1784_vm6, %v3809_v31  ;;  %5122 = vrot.lane.b32.xlu0 %v5121_v0, %s5625_s11 }
 0x283   : > { %v2303_v29 = vrot.slane %v7005_v11, 1  ;;  %v2085_v1 = vadd.f32 %v4543_v5, %v6656_v57  ;;  %v2076_v58 = vpop.f32.mrb[29].mxu0  ;;  %4642 = vmatmul.mubr.msk.bf16.gmra.mrb[56].mxu0 %vm1784_vm6, %v3810_v23  ;;  %v5136_v6 = vpack.i.bf16 %v7005_v11, %v6992_v4 }
 0x284   : > { %v2301_v18 = vrot.slane %v7019_v22, 1  ;;  %v2077_v9 = vadd.f32 %v6656_v57, %v2076_v58  ;;  %v4544_v55 = vpop.f32.mrb[30].mxu0  ;;  %v5126_v2 = vpack.i.bf16 %v7019_v22, %v6999_v48  ;;  %5117 = vrot.lane.b32.xlu1 %v5116_v36, %s5624_s18  ;;  %v2315_v0 = vsel %vm1399_vm0, %v2299_v45, %v2300_v17 }
 0x285   : > { %v2140_v56 = vmul.f32 %v6658_v12, %v2085_v1  ;;  %v2088_v31 = vadd.f32 %v4544_v55, %v6656_v57  ;;  %v2079_v23 = vpop.f32.mrb[31].mxu0  ;;  %v2312_v5 = vsel %vm1399_vm0, %v2302_v42, %v2303_v29  ;;  %v5131_v62 = vpack.i.bf16 %v2315_v0, %v2316_v51 }
 0x286   : > { %v2138_v28 = vmul.f32 %v6658_v12, %v2077_v9  ;;  %v2080_v58 = vadd.f32 %v6656_v57, %v2079_v23  ;;  %v2313_v63 = vsel %vm1399_vm0, %v2301_v18, %v2302_v42  ;;  %5127 = vrot.lane.b32.xlu0 %v5126_v2, %s5624_s18  ;;  %v2314_v45 = vsel %vm1399_vm0, %v2300_v17, %v2301_v18 }
 0x287   : > { %v2178_v40 = vadd.f32 %v6661_v8, %v2140_v56  ;;  %v2141_v55 = vmul.f32 %v6658_v12, %v2088_v31  ;;  %v3812_v36 = vpack.c.bf16 %v2088_v31, %v2085_v1  ;;  %v5141_v57 = vpack.i.bf16 %v2313_v63, %v2314_v45 }
 0x288   : > { %v2176_v54 = vadd.f32 %v6661_v8, %v2138_v28  ;;  %v2139_v20 = vmul.f32 %v6658_v12, %v2080_v58  ;;  %v3811_v43 = vpack.c.bf16 %v2080_v58, %v2077_v9  ;;  %v2207_v51 = vrot.slane %v7005_v11, 7  ;;  %5132 = vrot.lane.b32.xlu1 %v5131_v62, %s5625_s11 }
 0x289   : > { %v2205_v42 = vrot.slane %v7019_v22, 7  ;;  %v2179_v56 = vadd.f32 %v6661_v8, %v2141_v55  ;;  %v8299_v1 = vrot.slane %v6772_v33, 7  ;;  %v2306_v28 = vrot.slane %v2178_v40, 1 }
 0x28a   : > { %v2304_v12 = vrot.slane %v2176_v54, 1  ;;  %v2177_v63 = vadd.f32 %v6661_v8, %v2139_v20  ;;  %4645 = vmatprep.mubr.msk.bf16.mxu0 %vm1784_vm6, %v3811_v43  ;;  %v8300_v11 = vrot.slane %v6830_v35, 7  ;;  %v8301_v22 = vrot.slane %v6817_v19, 7  ;;  %5142 = vrot.lane.b32.xlu0 %v5141_v57, %s5625_s11 }
 0x28b   : > { %v7070_v17 = vsel %vm1238_vm3, %v8299_v1, %v2192_v39  ;;  %v2211_v25 = vrot.slane %v2179_v56, 7  ;;  %v2307_v33 = vrot.slane %v2179_v56, 1  ;;  %4646 = vmatmul.mubr.msk.bf16.gmra.mrb[60].mxu0 %vm1784_vm6, %v3812_v36  ;;  %v5156_v39 = vpack.i.bf16 %v2179_v56, %v2178_v40 }
 0x28c   : > { %v7080_v62 = vsel %vm1238_vm3, %v8301_v22, %v8300_v11  ;;  %v8302_v18 = vmov %v8301_v22  ;;  %v8303_v8 = vrot.slane %v6841_v52, 7  ;;  %v2208_v20 = vrot.slane %v2176_v54, 7  ;;  %5137 = vrot.lane.b32.xlu1 %v5136_v6, %s5624_s18 }
 0x28d   : > { %v2305_v9 = vrot.slane %v2177_v63, 1  ;;  %v5146_v2 = vpack.i.bf16 %v2177_v63, %v2176_v54  ;;  %v2311_v31 = vsel %vm1399_vm0, %v2303_v29, %v2304_v12  ;;  %v2308_v0 = vsel %vm1399_vm0, %v2306_v28, %v2307_v33 }
 0x28e   : > { %v7090_v43 = vsel %vm1238_vm3, %v8303_v8, %v8302_v18  ;;  %v5151_v23 = vpack.i.bf16 %v2311_v31, %v2312_v5  ;;  %v8304_v19 = vrot.slane %v6671_v38, 1  ;;  %v8305_v58 = vrot.slane %v6671_v38, 7 }
 0x28f   : > { %v2209_v54 = vrot.slane %v2177_v63, 7  ;;  %v2309_v29 = vsel %vm1399_vm0, %v2305_v9, %v2306_v28  ;;  %v2310_v6 = vsel %vm1399_vm0, %v2304_v12, %v2305_v9  ;;  %5147 = vrot.lane.b32.xlu0 %v5146_v2, %s5624_s18  ;;  %v8306_v57 = vrot.slane %v6901_v49, 7 }
 0x290   : > { %v2339_v52 = vsel %vm1399_vm0, %v2307_v33, %v8304_v19  ;;  %v2243_v55 = vsel %vm1238_vm3, %v2211_v25, %v8305_v58  ;;  %v5161_v36 = vpack.i.bf16 %v2309_v29, %v2310_v6  ;;  %v8307_v38 = vrot.slane %v6881_v47, 7  ;;  %5152 = vrot.lane.b32.xlu1 %v5151_v23, %s5625_s11 }
 0x291   : > { %v2371_v5 = vsel %vm6497_vm4, %v2339_v52, 0.0  ;;  %v8309_v28 = vmov %v8300_v11  ;;  %v2210_v63 = vrot.slane %v2178_v40, 7  ;;  %v8310_v11 = vrot.slane %v6888_v60, 7 }
 0x292   : > { %v5166_v45 = vpack.i.bf16 %v2371_v5, %v2308_v0  ;;  %v7118_v56 = vsel %vm1238_vm3, %v8307_v38, %v8306_v57  ;;  %v8308_v1 = vmov %v8307_v38  ;;  %v8311_v22 = vrot.slane %v6875_v46, 7 }
 0x293   : > { %v7126_v12 = vsel %vm1238_vm3, %v8309_v28, %v8308_v1  ;;  %v8313_v8 = vmov %v8306_v57  ;;  %v8314_v47 = vrot.slane %v6957_v3, 7  ;;  %v8315_v40 = vrot.slane %v6943_v50, 7  ;;  %5162 = vrot.lane.b32.xlu0 %v5161_v36, %s5625_s11 }
 0x294   : > { %v7134_v33 = vsel %vm1238_vm3, %v8311_v22, %v8310_v11  ;;  %v8312_v18 = vmov %v8311_v22  ;;  %v8317_v46 = vmov %v8310_v11  ;;  %v8318_v31 = vrot.slane %v6951_v27, 7  ;;  %5157 = vrot.lane.b32.xlu1 %v5156_v39, %s5624_s18  ;;  %s8131_s18 = scalar_lea.vmem %s8398_s29, %s4361_s21 }
 0x295   : > { %v7142_v35 = vsel %vm1238_vm3, %v8313_v8, %v8312_v18  ;;  %v7150_v9 = vsel %vm1238_vm3, %v8315_v40, %v8314_v47  ;;  %v8316_v2 = vmov %v8315_v40  ;;  %v8319_v0 = vrot.slane %v6939_v13, 7 }
 0x296   : > { %v7159_v49 = vsel %vm1238_vm3, %v8317_v46, %v8316_v2  ;;  %v8321_v23 = vmov %v8314_v47  ;;  %v8322_v60 = vrot.slane %v6999_v48, 7  ;;  %v8324_v6 = vmov %v8318_v31 }
 0x297   : > { %v7167_v19 = vsel %vm1238_vm3, %v8319_v0, %v8318_v31  ;;  %v8320_v52 = vmov %v8319_v0  ;;  %v8325_v13 = vrot.slane %v6992_v4, 7  ;;  %v7205_v48 = vsel %vm1238_vm3, %v2208_v20, %v2209_v54 }
 0x298   : > { %v7175_v50 = vsel %vm1238_vm3, %v8321_v23, %v8320_v52  ;;  %v7181_v58 = vsel %vm1238_vm3, %v8322_v60, %v2205_v42  ;;  %v8323_v29 = vmov %v8322_v60  ;;  %v7210_v27 = vsel %vm1238_vm3, %v2207_v51, %v2208_v20  ;;  %5167 = vrot.lane.b32.xlu1 %v5166_v45, %s5625_s11 }
 0x299   : > { %v7189_v5 = vsel %vm1238_vm3, %v8324_v6, %v8323_v29  ;;  %v7195_v3 = vsel %vm1238_vm3, %v8325_v13, %v2207_v51  ;;  %v8326_v57 = vmov %v8325_v13  ;;  %v7214_v1 = vsel %vm1238_vm3, %v2210_v63, %v2211_v25 }
 0x29a   : > { %v7201_v38 = vsel %vm1238_vm3, %v2205_v42, %v8326_v57  ;;  %v7218_v4 = vsel %vm1238_vm3, %v2209_v54, %v2210_v63  ;;  %v2244_v20 = vsel %vm6521_vm5, %v2243_v55, 0.0 }
 0x2c7   : > { %v5013_v22 = vpop.permute.xlu1 %5012 }
 0x2c8   : > { %v5018_v42 = vpop.permute.xlu0 %5017  ;;  %v5015_v45 = vunpack.i.h.bf16 %v5013_v22  ;;  %v5014_v8 = vunpack.i.l.bf16 %v5013_v22 }
 0x2c9   : > { %v5020_v28 = vunpack.i.h.bf16 %v5018_v42  ;;  %v5019_v11 = vunpack.i.l.bf16 %v5018_v42 }
 0x2ca   : > { %v2630_v52 = vsel %vm1784_vm6, %v6719_v32, %v5014_v8 }
 0x2cb   : > { %v2628_v25 = vsel %vm1784_vm6, %v2244_v20, %v5019_v11  ;;  %v2629_v54 = vsel %vm1784_vm6, %v6729_v26, %v5020_v28  ;;  %v2631_v26 = vsel %vm1784_vm6, %v6697_v21, %v5015_v45 }
 0x2cc   : > { %v5023_v36 = vpop.permute.xlu0 %5022 }
 0x2cd   : > { %v5025_v18 = vunpack.i.h.bf16 %v5023_v36  ;;  %v5024_v51 = vunpack.i.l.bf16 %v5023_v36 }
 0x2cf   : > { %v2660_v63 = vsel %vm1817_vm7, %v2628_v25, %v5024_v51  ;;  %v2661_v39 = vsel %vm1817_vm7, %v2629_v54, %v5025_v18 }
 0x2d0   : > { %v5028_v47 = vpop.permute.xlu0 %5027  ;;  %v2692_v40 = vpack.c.bf16 %v2661_v39, %v2660_v63 }
 0x2d1   : > { %v5030_v2 = vunpack.i.h.bf16 %v5028_v47  ;;  %v5029_v46 = vunpack.i.l.bf16 %v5028_v47 }
 0x2d2   : > { %v5033_v31 = vpop.permute.xlu1 %5032  ;;  %4547 = vmatprep.mubr.msk.bf16.mxu1 %vm1877_vm8, %v2692_v40 }
 0x2d3   : > { %v5035_v0 = vunpack.i.h.bf16 %v5033_v31  ;;  %v5034_v55 = vunpack.i.l.bf16 %v5033_v31  ;;  %v2633_v57 = vsel %vm1784_vm6, %v6778_v15, %v5030_v2  ;;  %v2632_v42 = vsel %vm1784_vm6, %v6791_v37, %v5029_v46 }
 0x2d4   : > { %v5043_v23 = vpop.permute.xlu0 %5042 }
 0x2d5   : > { %v2663_v60 = vsel %vm1817_vm7, %v2631_v26, %v5035_v0  ;;  %v2662_v29 = vsel %vm1817_vm7, %v2630_v52, %v5034_v55  ;;  %v5045_v6 = vunpack.i.h.bf16 %v5043_v23  ;;  %v5044_v13 = vunpack.i.l.bf16 %v5043_v23 }
 0x2d6   : > { %v2693_v28 = vpack.c.bf16 %v2663_v60, %v2662_v29  ;;  %v5038_v11 = vpop.permute.xlu1 %5037 }
 0x2d7   : > { %v2664_v32 = vsel %vm1817_vm7, %v2632_v42, %v5044_v13  ;;  %v2665_v36 = vsel %vm1817_vm7, %v2633_v57, %v5045_v6  ;;  %v5040_v22 = vunpack.i.h.bf16 %v5038_v11  ;;  %v5039_v18 = vunpack.i.l.bf16 %v5038_v11 }
 0x2d8   : > { %v2694_v21 = vpack.c.bf16 %v2665_v36, %v2664_v32  ;;  %4548 = vmatmul.mubr.msk.bf16.vlgmr.msra.gmra.mrb[0].mxu1 %vm1877_vm8, %v2693_v28  ;;  %v5048_v51 = vpop.permute.xlu0 %5047 }
 0x2d9   : > { %v5050_v20 = vunpack.i.h.bf16 %v5048_v51  ;;  %v5049_v25 = vunpack.i.l.bf16 %v5048_v51  ;;  %v2635_v37 = vsel %vm1784_vm6, %v6836_v34, %v5040_v22  ;;  %v2634_v39 = vsel %vm1784_vm6, %v6849_v53, %v5039_v18 }
 0x2da   : > { %v5053_v54 = vpop.permute.xlu1 %5052  ;;  %4551 = vmatprep.mubr.msk.bf16.mxu1 %vm1877_vm8, %v2694_v21 }
 0x2db   : > { %v5055_v15 = vunpack.i.h.bf16 %v5053_v54  ;;  %v5054_v63 = vunpack.i.l.bf16 %v5053_v54  ;;  %v2637_v46 = vsel %vm1784_vm6, %v6896_v41, %v5050_v20  ;;  %v2636_v31 = vsel %vm1784_vm6, %v6911_v14, %v5049_v25 }
 0x2dc   : > { %v5063_v45 = vpop.permute.xlu0 %5062 }
 0x2dd   : > { %v2666_v8 = vsel %vm1817_vm7, %v2634_v39, %v5054_v63  ;;  %v2667_v47 = vsel %vm1817_vm7, %v2635_v37, %v5055_v15  ;;  %v5065_v40 = vunpack.i.h.bf16 %v5063_v45  ;;  %v5064_v2 = vunpack.i.l.bf16 %v5063_v45 }
 0x2de   : > { %v2695_v0 = vpack.c.bf16 %v2667_v47, %v2666_v8  ;;  %v5058_v55 = vpop.permute.xlu1 %5057 }
 0x2df   : > { %v2668_v34 = vsel %vm1817_vm7, %v2636_v31, %v5064_v2  ;;  %v2669_v52 = vsel %vm1817_vm7, %v2637_v46, %v5065_v40  ;;  %v5060_v26 = vunpack.i.h.bf16 %v5058_v55  ;;  %v5059_v23 = vunpack.i.l.bf16 %v5058_v55 }
 0x2e0   : > { %v2696_v53 = vpack.c.bf16 %v2669_v52, %v2668_v34  ;;  %4552 = vmatmul.mubr.msk.bf16.gmra.mrb[4].mxu1 %vm1877_vm8, %v2695_v0  ;;  %v5068_v60 = vpop.permute.xlu0 %5067  ;;  %v2260_v40 = vsel %vm6578_vm9, %v7126_v12, 0.0 }
 0x2e1   : > { %v5070_v29 = vunpack.i.h.bf16 %v5068_v60  ;;  %v5069_v6 = vunpack.i.l.bf16 %v5068_v60  ;;  %v2639_v14 = vsel %vm1784_vm6, %v6966_v24, %v5060_v26  ;;  %v2638_v42 = vsel %vm1784_vm6, %v7014_v30, %v5059_v23 }
 0x2e2   : > { %v5073_v13 = vpop.permute.xlu1 %5072  ;;  %4555 = vmatprep.mubr.msk.bf16.mxu1 %vm1877_vm8, %v2696_v53 }
 0x2e3   : > { %v5075_v41 = vunpack.i.h.bf16 %v5073_v13  ;;  %v5074_v57 = vunpack.i.l.bf16 %v5073_v13  ;;  %v2641_v22 = vsel %vm1784_vm6, %v7028_v44, %v5070_v29  ;;  %v2640_v18 = vsel %vm1784_vm6, %v7070_v17, %v5069_v6 }
 0x2e4   : > { %v5083_v28 = vpop.permute.xlu0 %5082 }
 0x2e5   : > { %v2670_v11 = vsel %vm1817_vm7, %v2638_v42, %v5074_v57  ;;  %v2671_v32 = vsel %vm1817_vm7, %v2639_v14, %v5075_v41  ;;  %v5085_v36 = vunpack.i.h.bf16 %v5083_v28  ;;  %v5084_v21 = vunpack.i.l.bf16 %v5083_v28 }
 0x2e6   : > { %v2697_v51 = vpack.c.bf16 %v2671_v32, %v2670_v11  ;;  %v5078_v20 = vpop.permute.xlu1 %5077 }
 0x2e7   : > { %v2672_v24 = vsel %vm1817_vm7, %v2640_v18, %v5084_v21  ;;  %v2673_v25 = vsel %vm1817_vm7, %v2641_v22, %v5085_v36  ;;  %v5080_v15 = vunpack.i.h.bf16 %v5078_v20  ;;  %v5079_v63 = vunpack.i.l.bf16 %v5078_v20 }
 0x2e8   : > { %v2698_v30 = vpack.c.bf16 %v2673_v25, %v2672_v24  ;;  %4556 = vmatmul.mubr.msk.bf16.gmra.mrb[8].mxu1 %vm1877_vm8, %v2697_v51  ;;  %v5088_v54 = vpop.permute.xlu0 %5087 }
 0x2e9   : > { %v5090_v37 = vunpack.i.h.bf16 %v5088_v54  ;;  %v5089_v39 = vunpack.i.l.bf16 %v5088_v54  ;;  %v2643_v17 = vsel %vm1784_vm6, %v7080_v62, %v5080_v15  ;;  %v2642_v47 = vsel %vm1784_vm6, %v7090_v43, %v5079_v63 }
 0x2ea   : > { %4559 = vmatprep.mubr.msk.bf16.mxu1 %vm1877_vm8, %v2698_v30  ;;  %v5093_v44 = vpop.permute.xlu1 %5092 }
 0x2eb   : > { %v5095_v45 = vunpack.i.h.bf16 %v5093_v44  ;;  %v5094_v8 = vunpack.i.l.bf16 %v5093_v44  ;;  %v2645_v34 = vsel %vm1784_vm6, %v7118_v56, %v5090_v37  ;;  %v2644_v52 = vsel %vm1784_vm6, %v2260_v40, %v5089_v39 }
 0x2ec   : > { %v5103_v2 = vpop.permute.xlu0 %5102 }
 0x2ed   : > { %v2674_v46 = vsel %vm1817_vm7, %v2642_v47, %v5094_v8  ;;  %v2675_v31 = vsel %vm1817_vm7, %v2643_v17, %v5095_v45  ;;  %v5105_v0 = vunpack.i.h.bf16 %v5103_v2  ;;  %v5104_v55 = vunpack.i.l.bf16 %v5103_v2 }
 0x2ee   : > { %v2699_v62 = vpack.c.bf16 %v2675_v31, %v2674_v46  ;;  %v5098_v53 = vpop.permute.xlu1 %5097 }
 0x2ef   : > { %v2676_v43 = vsel %vm1817_vm7, %v2644_v52, %v5104_v55  ;;  %v2677_v26 = vsel %vm1817_vm7, %v2645_v34, %v5105_v0  ;;  %v5100_v12 = vunpack.i.h.bf16 %v5098_v53  ;;  %v5099_v60 = vunpack.i.l.bf16 %v5098_v53 }
 0x2f0   : > { %v2700_v23 = vpack.c.bf16 %v2677_v26, %v2676_v43  ;;  %v5113_v29 = vpop.permute.xlu0 %5112  ;;  %4560 = vmatmul.mubr.msk.bf16.gmra.mrb[12].mxu1 %vm1877_vm8, %v2699_v62 }
 0x2f1   : > { %v5115_v6 = vunpack.i.h.bf16 %v5113_v29  ;;  %v5114_v13 = vunpack.i.l.bf16 %v5113_v29  ;;  %v2647_v14 = vsel %vm1784_vm6, %v7134_v33, %v5100_v12  ;;  %v2646_v42 = vsel %vm1784_vm6, %v7142_v35, %v5099_v60 }
 0x2f2   : > { %v5108_v41 = vpop.permute.xlu1 %5107  ;;  %4563 = vmatprep.mubr.msk.bf16.mxu1 %vm1877_vm8, %v2700_v23 }
 0x2f3   : > { %v5110_v56 = vunpack.i.h.bf16 %v5108_v41  ;;  %v5109_v57 = vunpack.i.l.bf16 %v5108_v41  ;;  %v2649_v22 = vsel %vm1784_vm6, %v7150_v9, %v5115_v6  ;;  %v2648_v18 = vsel %vm1784_vm6, %v7159_v49, %v5114_v13 }
 0x2f4   : > { %v5123_v28 = vpop.permute.xlu0 %5122 }
 0x2f5   : > { %v2678_v11 = vsel %vm1817_vm7, %v2646_v42, %v5109_v57  ;;  %v2679_v32 = vsel %vm1817_vm7, %v2647_v14, %v5110_v56  ;;  %v5125_v36 = vunpack.i.h.bf16 %v5123_v28  ;;  %v5124_v21 = vunpack.i.l.bf16 %v5123_v28 }
 0x2f6   : > { %v2701_v51 = vpack.c.bf16 %v2679_v32, %v2678_v11  ;;  %v5118_v20 = vpop.permute.xlu1 %5117 }
 0x2f7   : > { %v2680_v33 = vsel %vm1817_vm7, %v2648_v18, %v5124_v21  ;;  %v2681_v24 = vsel %vm1817_vm7, %v2649_v22, %v5125_v36  ;;  %v5120_v25 = vunpack.i.h.bf16 %v5118_v20  ;;  %v5119_v30 = vunpack.i.l.bf16 %v5118_v20 }
 0x2f8   : > { %v2702_v35 = vpack.c.bf16 %v2681_v24, %v2680_v33  ;;  %v5128_v54 = vpop.permute.xlu0 %5127  ;;  %4564 = vmatmul.mubr.msk.bf16.gmra.mrb[16].mxu1 %vm1877_vm8, %v2701_v51 }
 0x2f9   : > { %v5130_v15 = vunpack.i.h.bf16 %v5128_v54  ;;  %v5129_v63 = vunpack.i.l.bf16 %v5128_v54  ;;  %v2651_v49 = vsel %vm1784_vm6, %v7167_v19, %v5120_v25  ;;  %v2650_v44 = vsel %vm1784_vm6, %v7175_v50, %v5119_v30 }
 0x2fa   : > { %v5133_v37 = vpop.permute.xlu1 %5132  ;;  %4567 = vmatprep.mubr.msk.bf16.mxu1 %vm1877_vm8, %v2702_v35 }
 0x2fb   : > { %v5135_v9 = vunpack.i.h.bf16 %v5133_v37  ;;  %v5134_v39 = vunpack.i.l.bf16 %v5133_v37  ;;  %v2653_v2 = vsel %vm1784_vm6, %v7181_v58, %v5130_v15  ;;  %v2652_v46 = vsel %vm1784_vm6, %v7189_v5, %v5129_v63 }
 0x2fc   : > { %v5143_v45 = vpop.permute.xlu0 %5142 }
 0x2fd   : > { %v2682_v8 = vsel %vm1817_vm7, %v2650_v44, %v5134_v39  ;;  %v2683_v17 = vsel %vm1817_vm7, %v2651_v49, %v5135_v9  ;;  %v5145_v47 = vunpack.i.h.bf16 %v5143_v45  ;;  %v5144_v40 = vunpack.i.l.bf16 %v5143_v45 }
 0x2fe   : > { %v2703_v31 = vpack.c.bf16 %v2683_v17, %v2682_v8  ;;  %v5138_v0 = vpop.permute.xlu1 %5137 }
 0x2ff   : > { %v2684_v19 = vsel %vm1817_vm7, %v2652_v46, %v5144_v40  ;;  %v2685_v55 = vsel %vm1817_vm7, %v2653_v2, %v5145_v47  ;;  %v5140_v34 = vunpack.i.h.bf16 %v5138_v0  ;;  %v5139_v52 = vunpack.i.l.bf16 %v5138_v0 }
 0x300   : > { %v2704_v50 = vpack.c.bf16 %v2685_v55, %v2684_v19  ;;  %4568 = vmatmul.mubr.msk.bf16.gmra.mrb[20].mxu1 %vm1877_vm8, %v2703_v31 }
 0x301   : > { %v5148_v62 = vpop.permute.xlu0 %5147  ;;  %v2655_v5 = vsel %vm1784_vm6, %v7195_v3, %v5140_v34  ;;  %v2654_v12 = vsel %vm1784_vm6, %v7201_v38, %v5139_v52 }
 0x302   : > { %v5150_v53 = vunpack.i.h.bf16 %v5148_v62  ;;  %v5149_v43 = vunpack.i.l.bf16 %v5148_v62  ;;  %v5153_v26 = vpop.permute.xlu1 %5152  ;;  %4571 = vmatprep.mubr.msk.bf16.mxu1 %vm1877_vm8, %v2704_v50 }
 0x303   : > { %v5155_v58 = vunpack.i.h.bf16 %v5153_v26  ;;  %v5154_v23 = vunpack.i.l.bf16 %v5153_v26  ;;  %v5333_v26 = vld [vmem:[%s8350_s27] sm:$0xff]  }
 0x304   : > { %v2657_v56 = vsel %vm1784_vm6, %v7205_v48, %v5150_v53  ;;  %v2656_v57 = vsel %vm1784_vm6, %v7210_v27, %v5149_v43  ;;  %4579 = vmatprep.subr.bf16.mxu1 %v5333_v26 }
 0x305   : > { %v5163_v60 = vpop.permute.xlu0 %5162  ;;  %v2686_v29 = vsel %vm1817_vm7, %v2654_v12, %v5154_v23  ;;  %v2687_v6 = vsel %vm1817_vm7, %v2655_v5, %v5155_v58  ;;  %4580 = vmatpush3.bf16.msra.mxu1 %v5333_v26  ;;  %v5334_v58 = vld [vmem:[%s8350_s27 + $0x8] ss:$0 sps:$4 sm:$0xff]   ;;  %v7407_v5 = vld [vmem:[#allocation8] ss:$0 sm:$0xff] }
 0x306   : > { %v5165_v13 = vunpack.i.h.bf16 %v5163_v60  ;;  %v5164_v41 = vunpack.i.l.bf16 %v5163_v60  ;;  %v2705_v14 = vpack.c.bf16 %v2687_v6, %v2686_v29  ;;  %v5158_v42 = vpop.permute.xlu1 %5157  ;;  %4747 = vmatprep.subr.msk.bf16.mxu1 %vm3632_vm11, %v5334_v58  ;;  %v3634_v23 = vsel %vm3632_vm11, %v5334_v58, 0  ;;  %v7409_v12 = vld [vmem:[#allocation10] ss:$0 sm:$0xff] }
 0x307   : > { %v5160_v11 = vunpack.i.h.bf16 %v5158_v42  ;;  %v5159_v32 = vunpack.i.l.bf16 %v5158_v42 }
 0x308   : > { %v2688_v3 = vsel %vm1817_vm7, %v2656_v57, %v5164_v41  ;;  %v2689_v28 = vsel %vm1817_vm7, %v2657_v56, %v5165_v13  ;;  %4572 = vmatmul.mubr.msk.bf16.gmra.mrb[24].mxu1 %vm1877_vm8, %v2705_v14  ;;  %v7412_v13 = vld [vmem:[#allocation11] ss:$0 sm:$0xff] }
 0x309   : > { %v2706_v38 = vpack.c.bf16 %v2689_v28, %v2688_v3  ;;  %v2659_v48 = vsel %vm1784_vm6, %v7214_v1, %v5160_v11  ;;  %v2658_v27 = vsel %vm1784_vm6, %v7218_v4, %v5159_v32  ;;  %4582 = vmatpush3.bf16.msra.mxu1 %v3634_v23 }
 0x30a   : > { %v5168_v36 = vpop.permute.xlu1 %5167 }
 0x30b   : > { %4575 = vmatprep.mubr.msk.bf16.mxu1 %vm1877_vm8, %v2706_v38  ;;  %v5170_v21 = vunpack.i.h.bf16 %v5168_v36  ;;  %v5169_v22 = vunpack.i.l.bf16 %v5168_v36 }
 0x30d   : > { %v2691_v18 = vsel %vm1817_vm7, %v2659_v48, %v5170_v21  ;;  %v2690_v51 = vsel %vm1817_vm7, %v2658_v27, %v5169_v22 }
 0x30e   : > { %v2707_v20 = vpack.c.bf16 %v2691_v18, %v2690_v51 }
 0x310   : > { %4576 = vmatmul.mubr.msk.bf16.gmra.mrb[28].mxu1 %vm1877_vm8, %v2707_v20 }
 0x326   : > { %v7337_v33 = vpop.f32.mrb[32].mxu0 }
 0x327   : > { %v7339_v24 = vpop.f32.mrb[33].mxu0 }
 0x328   : > { %v7341_v35 = vpop.f32.mrb[34].mxu0 }
 0x329   : > { %v7343_v25 = vpop.f32.mrb[35].mxu0 }
 0x32e   : > { %v7345_v30 = vpop.f32.mrb[36].mxu0 }
 0x32f   : > { %v7347_v1 = vpop.f32.mrb[37].mxu0 }
 0x330   : > { %v7349_v4 = vpop.f32.mrb[38].mxu0 }
 0x331   : > { %v7351_v54 = vpop.f32.mrb[39].mxu0 }
 0x336   : > { %v7353_v15 = vpop.f32.mrb[40].mxu0 }
 0x337   : > { %v7355_v63 = vpop.f32.mrb[41].mxu0 }
 0x338   : > { %8327 = vst [vmem:[#allocation23_spill] sm:$0xff] %v7355_v63  ;;  %v7357_v37 = vpop.f32.mrb[42].mxu0 }
 0x339   : > { %8328 = vst [vmem:[#allocation24_spill] sm:$0xff] %v7357_v37  ;;  %v7359_v9 = vpop.f32.mrb[43].mxu0 }
 0x33a   : > { %8329 = vst [vmem:[#allocation25_spill] sm:$0xff] %v7359_v9 }
 0x33e   : > { %v7361_v39 = vpop.f32.mrb[44].mxu0 }
 0x33f   : > { %8330 = vst [vmem:[#allocation26_spill] sm:$0xff] %v7361_v39  ;;  %v7363_v49 = vpop.f32.mrb[45].mxu0 }
 0x340   : > { %8331 = vst [vmem:[#allocation27_spill] sm:$0xff] %v7363_v49  ;;  %v7365_v44 = vpop.f32.mrb[46].mxu0 }
 0x341   : > { %8332 = vst [vmem:[#allocation28_spill] sm:$0xff] %v7365_v44  ;;  %v7367_v45 = vpop.f32.mrb[47].mxu0 }
 0x342   : > { %8333 = vst [vmem:[#allocation29_spill] sm:$0xff] %v7367_v45 }
 0x346   : > { %v7369_v8 = vpop.f32.mrb[48].mxu0 }
 0x347   : > { %8334 = vst [vmem:[#allocation30_spill] sm:$0xff] %v7369_v8  ;;  %v7371_v17 = vpop.f32.mrb[49].mxu0 }
 0x348   : > { %8335 = vst [vmem:[#allocation31_spill] sm:$0xff] %v7371_v17  ;;  %v7373_v47 = vpop.f32.mrb[50].mxu0 }
 0x349   : > { %8336 = vst [vmem:[#allocation32_spill] sm:$0xff] %v7373_v47  ;;  %v7375_v40 = vpop.f32.mrb[51].mxu0 }
 0x34a   : > { %8337 = vst [vmem:[#allocation33_spill] sm:$0xff] %v7375_v40 }
 0x34e   : > { %v7377_v2 = vpop.f32.mrb[52].mxu0 }
 0x34f   : > { %8338 = vst [vmem:[#allocation34_spill] sm:$0xff] %v7377_v2  ;;  %v7379_v46 = vpop.f32.mrb[53].mxu0 }
 0x350   : > { %8339 = vst [vmem:[#allocation35_spill] sm:$0xff] %v7379_v46  ;;  %v7381_v31 = vpop.f32.mrb[54].mxu0 }
 0x351   : > { %8340 = vst [vmem:[#allocation36_spill] sm:$0xff] %v7381_v31  ;;  %v7383_v0 = vpop.f32.mrb[55].mxu0 }
 0x352   : > { %8341 = vst [vmem:[#allocation37_spill] sm:$0xff] %v7383_v0 }
 0x356   : > { %v7385_v19 = vpop.f32.mrb[56].mxu0 }
 0x357   : > { %8342 = vst [vmem:[#allocation38_spill] sm:$0xff] %v7385_v19  ;;  %v7387_v55 = vpop.f32.mrb[57].mxu0 }
 0x358   : > { %8343 = vst [vmem:[#allocation39_spill] sm:$0xff] %v7387_v55  ;;  %v7389_v50 = vpop.f32.mrb[58].mxu0 }
 0x359   : > { %8344 = vst [vmem:[#allocation40_spill] sm:$0xff] %v7389_v50  ;;  %v7391_v34 = vpop.f32.mrb[59].mxu0 }
 0x35a   : > { %8345 = vst [vmem:[#allocation41_spill] sm:$0xff] %v7391_v34 }
 0x35e   : > { %v7393_v52 = vpop.f32.mrb[60].mxu0 }
 0x35f   : > { %8346 = vst [vmem:[#allocation42_spill] sm:$0xff] %v7393_v52  ;;  %v7395_v62 = vpop.f32.mrb[61].mxu0 }
 0x360   : > { %8347 = vst [vmem:[#allocation43_spill] sm:$0xff] %v7395_v62  ;;  %v7397_v53 = vpop.f32.mrb[62].mxu0 }
 0x361   : > { %8348 = vst [vmem:[#allocation44_spill] sm:$0xff] %v7397_v53  ;;  %v7399_v43 = vpop.f32.mrb[63].mxu0 }
 0x362   : > { %8349 = vst [vmem:[#allocation45_spill] sm:$0xff] %v7399_v43 }
 0x3ab   : > { %v4549_v60 = vpop.f32.mrb[0].mxu1 }
 0x3ac   : > { %v2813_v29 = vadd.f32 %v4549_v60, %v7407_v5  ;;  %v2804_v6 = vpop.f32.mrb[1].mxu1 }
 0x3ad   : > { %v2805_v41 = vadd.f32 %v7407_v5, %v2804_v6  ;;  %v4550_v56 = vpop.f32.mrb[2].mxu1 }
 0x3ae   : > { %v2939_v57 = vmul.f32 %v7409_v12, %v2813_v29  ;;  %v2816_v14 = vadd.f32 %v4550_v56, %v7407_v5  ;;  %v2807_v42 = vpop.f32.mrb[3].mxu1 }
 0x3af   : > { %v2937_v3 = vmul.f32 %v7409_v12, %v2805_v41  ;;  %v2808_v28 = vadd.f32 %v7407_v5, %v2807_v42 }
 0x3b0   : > { %v2977_v38 = vadd.f32 %v7412_v13, %v2939_v57  ;;  %v2940_v11 = vmul.f32 %v7409_v12, %v2816_v14 }
 0x3b1   : > { %v2975_v32 = vadd.f32 %v7412_v13, %v2937_v3  ;;  %v2938_v36 = vmul.f32 %v7409_v12, %v2808_v28 }
 0x3b2   : > { %v3009_v21 = vmax.f32 %v2977_v38, 0.0  ;;  %v2978_v22 = vadd.f32 %v7412_v13, %v2940_v11 }
 0x3b3   : > { %v7424_v48 = vmax.f32 %v2975_v32, 0.0  ;;  %v2976_v27 = vadd.f32 %v7412_v13, %v2938_v36  ;;  %v4553_v18 = vpop.f32.mrb[4].mxu1 }
 0x3b4   : > { %v3041_v51 = vrot.slane %v3009_v21, 7  ;;  %v7427_v20 = vmax.f32 %v2978_v22, 0.0  ;;  %v2829_v26 = vadd.f32 %v4553_v18, %v7407_v5  ;;  %v2820_v58 = vpop.f32.mrb[5].mxu1  ;;  %v3137_v41 = vrot.slane %v3009_v21, 1 }
 0x3b5   : > { %v7430_v23 = vmax.f32 %v2976_v27, 0.0  ;;  %v2821_v60 = vadd.f32 %v7407_v5, %v2820_v58  ;;  %v4554_v29 = vpop.f32.mrb[6].mxu1  ;;  %v8273_v6 = vrot.slane %v7424_v48, 1 }
 0x3b6   : > { %v8271_v56 = vrot.slane %v7427_v20, 7  ;;  %v2943_v57 = vmul.f32 %v7409_v12, %v2829_v26  ;;  %v2832_v14 = vadd.f32 %v4554_v29, %v7407_v5  ;;  %v2823_v42 = vpop.f32.mrb[7].mxu1  ;;  %v5171_v3 = vpack.i.bf16 %v7427_v20, %v3009_v21 }
 0x3b7   : > { %v8272_v28 = vrot.slane %v7430_v23, 7  ;;  %v2941_v38 = vmul.f32 %v7409_v12, %v2821_v60  ;;  %v2824_v11 = vadd.f32 %v7407_v5, %v2823_v42  ;;  %v5176_v32 = vpack.i.bf16 %v7430_v23, %v7424_v48 }
 0x3b8   : > { %v2981_v36 = vadd.f32 %v7412_v13, %v2943_v57  ;;  %v2944_v22 = vmul.f32 %v7409_v12, %v2832_v14  ;;  %5172 = vrot.lane.b32.xlu1 %v5171_v3, %s5625_s11  ;;  %v3136_v27 = vrot.slane %v7430_v23, 1  ;;  %v3138_v18 = vrot.slane %v7427_v20, 1 }
 0x3b9   : > { %v2979_v21 = vadd.f32 %v7412_v13, %v2941_v38  ;;  %v2942_v26 = vmul.f32 %v7409_v12, %v2824_v11  ;;  %5177 = vrot.lane.b32.xlu0 %v5176_v32, %s5625_s11  ;;  %v7455_v58 = vsel %vm1238_vm3, %v3041_v51, %v8271_v56  ;;  %v7461_v60 = vsel %vm1238_vm3, %v8272_v28, %v3041_v51 }
 0x3ba   : > { %v7463_v29 = vmax.f32 %v2981_v36, 0.0  ;;  %v2982_v57 = vadd.f32 %v7412_v13, %v2944_v22  ;;  %v3196_v14 = vsel %vm1399_vm0, %v3136_v27, %v3137_v41  ;;  %v3197_v42 = vsel %vm1399_vm0, %v8273_v6, %v3136_v27 }
 0x3bb   : > { %v7472_v3 = vmax.f32 %v2979_v21, 0.0  ;;  %v2980_v38 = vadd.f32 %v7412_v13, %v2942_v26  ;;  %v4557_v11 = vpop.f32.mrb[8].mxu1  ;;  %v5181_v32 = vpack.i.bf16 %v3196_v14, %v3197_v42  ;;  %v3195_v51 = vsel %vm1399_vm0, %v3137_v41, %v3138_v18 }
 0x3bc   : > { %v7477_v36 = vmax.f32 %v2982_v57, 0.0  ;;  %v2845_v22 = vadd.f32 %v4557_v11, %v7407_v5  ;;  %v2836_v56 = vpop.f32.mrb[9].mxu1  ;;  %v8351_v50 = vrot.slane %v7430_v23, 7 }
 0x3bd   : > { %v7481_v43 = vmax.f32 %v2980_v38, 0.0  ;;  %v2837_v27 = vadd.f32 %v7407_v5, %v2836_v56  ;;  %v4558_v21 = vpop.f32.mrb[10].mxu1  ;;  %5182 = vrot.lane.b32.xlu0 %v5181_v32, %s5626_s16  ;;  %v3139_v26 = vrot.slane %v7472_v3, 1  ;;  %v3141_v32 = vrot.slane %v7463_v29, 1 }
 0x3be   : > { %v2947_v41 = vmul.f32 %v7409_v12, %v2845_v22  ;;  %v2848_v57 = vadd.f32 %v4558_v21, %v7407_v5  ;;  %v2839_v42 = vpop.f32.mrb[11].mxu1  ;;  %v5196_v11 = vpack.i.bf16 %v7477_v36, %v7463_v29  ;;  %v3142_v62 = vrot.slane %v7477_v36, 1 }
 0x3bf   : > { %v2945_v38 = vmul.f32 %v7409_v12, %v2837_v27  ;;  %v2840_v56 = vadd.f32 %v7407_v5, %v2839_v42  ;;  %v5186_v6 = vpack.i.bf16 %v7481_v43, %v7472_v3  ;;  %v3194_v22 = vsel %vm1399_vm0, %v3138_v18, %v3139_v26 }
 0x3c0   : > { %v2985_v28 = vadd.f32 %v7412_v13, %v2947_v41  ;;  %v2948_v14 = vmul.f32 %v7409_v12, %v2848_v57  ;;  %v3140_v21 = vrot.slane %v7481_v43, 1  ;;  %v5191_v42 = vpack.i.bf16 %v3194_v22, %v3195_v51 }
 0x3c1   : > { %v2983_v53 = vadd.f32 %v7412_v13, %v2945_v38  ;;  %v2946_v27 = vmul.f32 %v7409_v12, %v2840_v56  ;;  %5187 = vrot.lane.b32.xlu0 %v5186_v6, %s5625_s11  ;;  %v3191_v51 = vsel %vm1399_vm0, %v3141_v32, %v3142_v62 }
 0x3c2   : > { %v7505_v52 = vmax.f32 %v2985_v28, 0.0  ;;  %v2986_v41 = vadd.f32 %v7412_v13, %v2948_v14  ;;  %v3192_v57 = vsel %vm1399_vm0, %v3140_v21, %v3141_v32  ;;  %v3193_v18 = vsel %vm1399_vm0, %v3139_v26, %v3140_v21  ;;  %5192 = vrot.lane.b32.xlu1 %v5191_v42, %s5626_s16 }
 0x3c3   : > { %v7512_v34 = vmax.f32 %v2983_v53, 0.0  ;;  %v2984_v38 = vadd.f32 %v7412_v13, %v2946_v27  ;;  %v5201_v6 = vpack.i.bf16 %v3192_v57, %v3193_v18  ;;  %v3043_v28 = vrot.slane %v7472_v3, 7  ;;  %v4561_v22 = vpop.f32.mrb[12].mxu1 }
 0x3c4   : > { %v7520_v56 = vmax.f32 %v2986_v41, 0.0  ;;  %v8352_v53 = vrot.slane %v7424_v48, 7  ;;  %v2861_v32 = vadd.f32 %v4561_v22, %v7407_v5  ;;  %v2852_v3 = vpop.f32.mrb[13].mxu1  ;;  %v3145_v41 = vrot.slane %v7505_v52, 1 }
 0x3c5   : > { %v7531_v27 = vmax.f32 %v2984_v38, 0.0  ;;  %5202 = vrot.lane.b32.xlu0 %v5201_v6, %s5626_s16  ;;  %v3143_v42 = vrot.slane %v7512_v34, 1  ;;  %v2853_v23 = vadd.f32 %v7407_v5, %v2852_v3  ;;  %v4562_v57 = vpop.f32.mrb[14].mxu1 }
 0x3c6   : > { %v7528_v26 = vsel %vm1238_vm3, %v8352_v53, %v8351_v50  ;;  %v5216_v50 = vpack.i.bf16 %v7520_v56, %v7505_v52  ;;  %v3146_v18 = vrot.slane %v7520_v56, 1  ;;  %v2951_v38 = vmul.f32 %v7409_v12, %v2861_v32  ;;  %5197 = vrot.lane.b32.xlu1 %v5196_v11, %s5625_s11  ;;  %v2855_v22 = vpop.f32.mrb[15].mxu1 }
 0x3c7   : > { %v2864_v53 = vadd.f32 %v4562_v57, %v7407_v5  ;;  %v5206_v6 = vpack.i.bf16 %v7531_v27, %v7512_v34  ;;  %v2949_v3 = vmul.f32 %v7409_v12, %v2853_v23  ;;  %v2856_v14 = vadd.f32 %v7407_v5, %v2855_v22 }
 0x3c8   : > { %v3190_v21 = vsel %vm1399_vm0, %v3142_v62, %v3143_v42  ;;  %v3144_v55 = vrot.slane %v7531_v27, 1  ;;  %v2989_v32 = vadd.f32 %v7412_v13, %v2951_v38  ;;  %v3187_v19 = vsel %vm1399_vm0, %v3145_v41, %v3146_v18 }
 0x3c9   : > { %v2952_v57 = vmul.f32 %v7409_v12, %v2864_v53  ;;  %5207 = vrot.lane.b32.xlu0 %v5206_v6, %s5625_s11  ;;  %v5211_v11 = vpack.i.bf16 %v3190_v21, %v3191_v51  ;;  %v2987_v0 = vadd.f32 %v7412_v13, %v2949_v3  ;;  %v2950_v23 = vmul.f32 %v7409_v12, %v2856_v14 }
 0x3ca   : > { %v3188_v22 = vsel %vm1399_vm0, %v3144_v55, %v3145_v41  ;;  %v3189_v62 = vsel %vm1399_vm0, %v3143_v42, %v3144_v55  ;;  %v7563_v31 = vmax.f32 %v2989_v32, 0.0  ;;  %v8353_v21 = vrot.slane %v7481_v43, 7 }
 0x3cb   : > { %v2990_v38 = vadd.f32 %v7412_v13, %v2952_v57  ;;  %5212 = vrot.lane.b32.xlu1 %v5211_v11, %s5626_s16  ;;  %v5221_v51 = vpack.i.bf16 %v3188_v22, %v3189_v62  ;;  %v7574_v6 = vmax.f32 %v2987_v0, 0.0  ;;  %v2988_v41 = vadd.f32 %v7412_v13, %v2950_v23  ;;  %v4565_v55 = vpop.f32.mrb[16].mxu1 }
 0x3cc   : > { %v7571_v53 = vsel %vm1238_vm3, %v3043_v28, %v8353_v21  ;;  %v8354_v42 = vrot.slane %v7427_v20, 7  ;;  %v2877_v22 = vadd.f32 %v4565_v55, %v7407_v5  ;;  %v2868_v62 = vpop.f32.mrb[17].mxu1  ;;  %v3149_v55 = vrot.slane %v7563_v31, 1 }
 0x3cd   : > { %v7585_v11 = vmax.f32 %v2990_v38, 0.0  ;;  %5222 = vrot.lane.b32.xlu0 %v5221_v51, %s5626_s16  ;;  %v7590_v23 = vmax.f32 %v2988_v41, 0.0  ;;  %v2869_v20 = vadd.f32 %v7407_v5, %v2868_v62  ;;  %v4566_v21 = vpop.f32.mrb[18].mxu1 }
 0x3ce   : > { %v7581_v3 = vsel %vm1238_vm3, %v8354_v42, %v3043_v28  ;;  %v3147_v28 = vrot.slane %v7574_v6, 1  ;;  %v2955_v42 = vmul.f32 %v7409_v12, %v2877_v22  ;;  %v2880_v32 = vadd.f32 %v4566_v21, %v7407_v5  ;;  %v2871_v38 = vpop.f32.mrb[19].mxu1 }
 0x3cf   : > { %5217 = vrot.lane.b32.xlu1 %v5216_v50, %s5625_s11  ;;  %v5236_v51 = vpack.i.bf16 %v7585_v11, %v7563_v31  ;;  %v2953_v0 = vmul.f32 %v7409_v12, %v2869_v20  ;;  %v2872_v62 = vadd.f32 %v7407_v5, %v2871_v38  ;;  %v5226_v14 = vpack.i.bf16 %v7590_v23, %v7574_v6 }
 0x3d0   : > { %v2993_v22 = vadd.f32 %v7412_v13, %v2955_v42  ;;  %v2956_v21 = vmul.f32 %v7409_v12, %v2880_v32  ;;  %v3186_v50 = vsel %vm1399_vm0, %v3146_v18, %v3147_v28  ;;  %v3148_v57 = vrot.slane %v7590_v23, 1 }
 0x3d1   : > { %v2991_v46 = vadd.f32 %v7412_v13, %v2953_v0  ;;  %v2954_v41 = vmul.f32 %v7409_v12, %v2872_v62  ;;  %5227 = vrot.lane.b32.xlu0 %v5226_v14, %s5625_s11  ;;  %v5231_v20 = vpack.i.bf16 %v3186_v50, %v3187_v19  ;;  %v3150_v38 = vrot.slane %v7585_v11, 1 }
 0x3d2   : > { %v7614_v2 = vmax.f32 %v2993_v22, 0.0  ;;  %v2994_v42 = vadd.f32 %v7412_v13, %v2956_v21  ;;  %v3184_v32 = vsel %vm1399_vm0, %v3148_v57, %v3149_v55  ;;  %v3185_v18 = vsel %vm1399_vm0, %v3147_v28, %v3148_v57 }
 0x3d3   : > { %v7621_v40 = vmax.f32 %v2991_v46, 0.0  ;;  %v2992_v0 = vadd.f32 %v7412_v13, %v2954_v41  ;;  %5232 = vrot.lane.b32.xlu1 %v5231_v20, %s5626_s16  ;;  %v4569_v14 = vpop.f32.mrb[20].mxu1  ;;  %v5241_v19 = vpack.i.bf16 %v3184_v32, %v3185_v18  ;;  %v3183_v62 = vsel %vm1399_vm0, %v3149_v55, %v3150_v38 }
 0x3d4   : > { %v7629_v50 = vmax.f32 %v2994_v42, 0.0  ;;  %v2893_v47 = vadd.f32 %v4569_v14, %v7407_v5  ;;  %v2884_v57 = vpop.f32.mrb[21].mxu1  ;;  %v3153_v22 = vrot.slane %v7614_v2, 1 }
 0x3d5   : > { %v3151_v28 = vrot.slane %v7621_v40, 1  ;;  %v7634_v41 = vmax.f32 %v2992_v0, 0.0  ;;  %v2885_v20 = vadd.f32 %v7407_v5, %v2884_v57  ;;  %v4570_v32 = vpop.f32.mrb[22].mxu1  ;;  %5242 = vrot.lane.b32.xlu0 %v5241_v19, %s5626_s16 }
 0x3d6   : > { %v2959_v55 = vmul.f32 %v7409_v12, %v2893_v47  ;;  %v2896_v18 = vadd.f32 %v4570_v32, %v7407_v5  ;;  %v2887_v42 = vpop.f32.mrb[23].mxu1  ;;  %v5256_v14 = vpack.i.bf16 %v7629_v50, %v7614_v2 }
 0x3d7   : > { %v2957_v0 = vmul.f32 %v7409_v12, %v2885_v20  ;;  %v2888_v21 = vadd.f32 %v7407_v5, %v2887_v42  ;;  %5237 = vrot.lane.b32.xlu1 %v5236_v51, %s5625_s11  ;;  %v5246_v19 = vpack.i.bf16 %v7634_v41, %v7621_v40  ;;  %v3182_v32 = vsel %vm1399_vm0, %v3150_v38, %v3151_v28 }
 0x3d8   : > { %v2997_v47 = vadd.f32 %v7412_v13, %v2959_v55  ;;  %v2960_v57 = vmul.f32 %v7409_v12, %v2896_v18  ;;  %v3152_v17 = vrot.slane %v7634_v41, 1  ;;  %v3214_v51 = vsel %vm6145_vm2, %v3182_v32, 0.0 }
 0x3d9   : > { %v2995_v46 = vadd.f32 %v7412_v13, %v2957_v0  ;;  %v2958_v20 = vmul.f32 %v7409_v12, %v2888_v21  ;;  %5247 = vrot.lane.b32.xlu0 %v5246_v19, %s5625_s11  ;;  %v3154_v42 = vrot.slane %v7629_v50, 1  ;;  %v5251_v18 = vpack.i.bf16 %v3214_v51, %v3183_v62 }
 0x3da   : > { %v7660_v8 = vmax.f32 %v2997_v47, 0.0  ;;  %v2998_v55 = vadd.f32 %v7412_v13, %v2960_v57  ;;  %v3180_v38 = vsel %vm1399_vm0, %v3152_v17, %v3153_v22  ;;  %v3181_v19 = vsel %vm1399_vm0, %v3151_v28, %v3152_v17 }
 0x3db   : > { %v7665_v45 = vmax.f32 %v2995_v46, 0.0  ;;  %v2996_v0 = vadd.f32 %v7412_v13, %v2958_v20  ;;  %v4573_v21 = vpop.f32.mrb[24].mxu1  ;;  %v3179_v61 = vsel %vm1399_vm0, %v3153_v22, %v3154_v42  ;;  %5252 = vrot.lane.b32.xlu1 %v5251_v18, %s5626_s16  ;;  %v5261_v46 = vpack.i.bf16 %v3180_v38, %v3181_v19 }
 0x3dc   : > { %v2909_v62 = vadd.f32 %v4573_v21, %v7407_v5  ;;  %v2900_v57 = vpop.f32.mrb[25].mxu1  ;;  %v7676_v51 = vmax.f32 %v2998_v55, 0.0  ;;  %v3157_v19 = vrot.slane %v7660_v8, 1 }
 0x3dd   : > { %v7678_v20 = vmax.f32 %v2996_v0, 0.0  ;;  %v2901_v44 = vadd.f32 %v7407_v5, %v2900_v57  ;;  %v4574_v17 = vpop.f32.mrb[26].mxu1  ;;  %v3155_v28 = vrot.slane %v7665_v45, 1  ;;  %5262 = vrot.lane.b32.xlu0 %v5261_v46, %s5626_s16 }
 0x3de   : > { %v2963_v32 = vmul.f32 %v7409_v12, %v2909_v62  ;;  %v2912_v21 = vadd.f32 %v4574_v17, %v7407_v5  ;;  %v2903_v18 = vpop.f32.mrb[27].mxu1  ;;  %v5276_v47 = vpack.i.bf16 %v7676_v51, %v7660_v8 }
 0x3df   : > { %v2961_v55 = vmul.f32 %v7409_v12, %v2901_v44  ;;  %v2904_v38 = vadd.f32 %v7407_v5, %v2903_v18  ;;  %v5266_v0 = vpack.i.bf16 %v7678_v20, %v7665_v45  ;;  %5257 = vrot.lane.b32.xlu1 %v5256_v14, %s5625_s11  ;;  %v3178_v62 = vsel %vm1399_vm0, %v3154_v42, %v3155_v28 }
 0x3e0   : > { %v3001_v57 = vadd.f32 %v7412_v13, %v2963_v32  ;;  %v2964_v22 = vmul.f32 %v7409_v12, %v2912_v21  ;;  %v3156_v46 = vrot.slane %v7678_v20, 1  ;;  %v5271_v18 = vpack.i.bf16 %v3178_v62, %v3179_v61 }
 0x3e1   : > { %v2999_v44 = vadd.f32 %v7412_v13, %v2961_v55  ;;  %v2962_v17 = vmul.f32 %v7409_v12, %v2904_v38  ;;  %5267 = vrot.lane.b32.xlu0 %v5266_v0, %s5625_s11  ;;  %v3158_v62 = vrot.slane %v7676_v51, 1 }
 0x3e2   : > { %v7702_v49 = vmax.f32 %v3001_v57, 0.0  ;;  %v3002_v32 = vadd.f32 %v7412_v13, %v2964_v22  ;;  %v3176_v14 = vsel %vm1399_vm0, %v3156_v46, %v3157_v19  ;;  %v3177_v42 = vsel %vm1399_vm0, %v3155_v28, %v3156_v46 }
 0x3e3   : > { %v7710_v21 = vmax.f32 %v2999_v44, 0.0  ;;  %v3000_v55 = vadd.f32 %v7412_v13, %v2962_v17  ;;  %v4577_v61 = vpop.f32.mrb[28].mxu1  ;;  %v5281_v38 = vpack.i.bf16 %v3176_v14, %v3177_v42  ;;  %5272 = vrot.lane.b32.xlu1 %v5271_v18, %s5626_s16  ;;  %v3175_v18 = vsel %vm1399_vm0, %v3157_v19, %v3158_v62 }
 0x3e4   : > { %v2925_v39 = vadd.f32 %v4577_v61, %v7407_v5  ;;  %v2916_v9 = vpop.f32.mrb[29].mxu1  ;;  %v7719_v28 = vmax.f32 %v3002_v32, 0.0  ;;  %v3161_v32 = vrot.slane %v7702_v49, 1 }
 0x3e5   : > { %v7721_v46 = vmax.f32 %v3000_v55, 0.0  ;;  %v2917_v44 = vadd.f32 %v7407_v5, %v2916_v9  ;;  %v4578_v17 = vpop.f32.mrb[30].mxu1  ;;  %v3159_v14 = vrot.slane %v7710_v21, 1  ;;  %5282 = vrot.lane.b32.xlu0 %v5281_v38, %s5626_s16 }
 0x3e6   : > { %v2967_v42 = vmul.f32 %v7409_v12, %v2925_v39  ;;  %v2928_v57 = vadd.f32 %v4578_v17, %v7407_v5  ;;  %v2919_v0 = vpop.f32.mrb[31].mxu1 }
 0x3e7   : > { %v2965_v61 = vmul.f32 %v7409_v12, %v2917_v44  ;;  %v2920_v9 = vadd.f32 %v7407_v5, %v2919_v0  ;;  %v5286_v22 = vpack.i.bf16 %v7721_v46, %v7710_v21  ;;  %5277 = vrot.lane.b32.xlu1 %v5276_v47, %s5625_s11  ;;  %v3174_v19 = vsel %vm1399_vm0, %v3158_v62, %v3159_v14 }
 0x3e8   : > { %v3005_v39 = vadd.f32 %v7412_v13, %v2967_v42  ;;  %v2968_v17 = vmul.f32 %v7409_v12, %v2928_v57  ;;  %v3160_v38 = vrot.slane %v7721_v46, 1  ;;  %v5291_v37 = vpack.i.bf16 %v3174_v19, %v3175_v18 }
 0x3e9   : > { %v3003_v55 = vadd.f32 %v7412_v13, %v2965_v61  ;;  %v2966_v44 = vmul.f32 %v7409_v12, %v2920_v9  ;;  %v5296_v5 = vpack.i.bf16 %v7719_v28, %v7702_v49  ;;  %5287 = vrot.lane.b32.xlu0 %v5286_v22, %s5625_s11  ;;  %v3162_v18 = vrot.slane %v7719_v28, 1 }
 0x3ea   : > { %v7746_v0 = vmax.f32 %v3005_v39, 0.0  ;;  %v3006_v42 = vadd.f32 %v7412_v13, %v2968_v17  ;;  %v3172_v47 = vsel %vm1399_vm0, %v3160_v38, %v3161_v32  ;;  %v3173_v62 = vsel %vm1399_vm0, %v3159_v14, %v3160_v38 }
 0x3eb   : > { %v3035_v57 = vmax.f32 %v3003_v55, 0.0  ;;  %v3004_v61 = vadd.f32 %v7412_v13, %v2966_v44  ;;  %v5301_v12 = vpack.i.bf16 %v3172_v47, %v3173_v62  ;;  %v3066_v9 = vrot.slane %v7719_v28, 7  ;;  %5292 = vrot.lane.b32.xlu1 %v5291_v37, %s5626_s16 }
 0x3ec   : > { %v3064_v39 = vrot.slane %v7721_v46, 7  ;;  %v3038_v19 = vmax.f32 %v3006_v42, 0.0  ;;  %v8355_v22 = vrot.slane %v7477_v36, 7  ;;  %v8356_v17 = vrot.slane %v7463_v29, 7 }
 0x3ed   : > { %v3036_v55 = vmax.f32 %v3004_v61, 0.0  ;;  %v3163_v13 = vrot.slane %v3035_v57, 1  ;;  %v3171_v38 = vsel %vm1399_vm0, %v3161_v32, %v3162_v18  ;;  %v3165_v28 = vrot.slane %v7746_v0, 1  ;;  %5302 = vrot.lane.b32.xlu0 %v5301_v12, %s5626_s16 }
 0x3ee   : > { %v7765_v14 = vsel %vm1238_vm3, %v8356_v17, %v8355_v22  ;;  %v3070_v44 = vrot.slane %v3038_v19, 7  ;;  %v5316_v37 = vpack.i.bf16 %v3038_v19, %v7746_v0  ;;  %v3166_v46 = vrot.slane %v3038_v19, 1 }
 0x3ef   : > { %v8357_v42 = vmov %v8356_v17  ;;  %v8358_v47 = vrot.slane %v7481_v43, 7  ;;  %v3067_v61 = vrot.slane %v3035_v57, 7  ;;  %v5306_v22 = vpack.i.bf16 %v3036_v55, %v3035_v57  ;;  %5297 = vrot.lane.b32.xlu1 %v5296_v5, %s5625_s11 }
 0x3f0   : > { %v3170_v32 = vsel %vm1399_vm0, %v3162_v18, %v3163_v13  ;;  %v3164_v17 = vrot.slane %v3036_v55, 1  ;;  %v3167_v19 = vsel %vm1399_vm0, %v3165_v28, %v3166_v46  ;;  %v8359_v29 = vrot.slane %v7424_v48, 1 }
 0x3f1   : > { %v7778_v62 = vsel %vm1238_vm3, %v8358_v47, %v8357_v42  ;;  %v5311_v12 = vpack.i.bf16 %v3170_v32, %v3171_v38  ;;  %v8360_v42 = vrot.slane %v7424_v48, 7  ;;  %v3068_v47 = vrot.slane %v3036_v55, 7  ;;  %5307 = vrot.lane.b32.xlu0 %v5306_v22, %s5625_s11 }
 0x3f2   : > { %v3198_v43 = vsel %vm1399_vm0, %v3166_v46, %v8359_v29  ;;  %v3168_v18 = vsel %vm1399_vm0, %v3164_v17, %v3165_v28  ;;  %v3169_v5 = vsel %vm1399_vm0, %v3163_v13, %v3164_v17  ;;  %v8361_v46 = vrot.slane %v7531_v27, 7 }
 0x3f3   : > { %v3102_v57 = vsel %vm1238_vm3, %v3070_v44, %v8360_v42  ;;  %v3230_v38 = vsel %vm6497_vm4, %v3198_v43, 0.0  ;;  %v5321_v32 = vpack.i.bf16 %v3168_v18, %v3169_v5  ;;  %v8362_v48 = vrot.slane %v7512_v34, 7  ;;  %5312 = vrot.lane.b32.xlu1 %v5311_v12, %s5626_s16 }
 0x3f4   : > { %v5326_v63 = vpack.i.bf16 %v3230_v38, %v3167_v19  ;;  %v8364_v29 = vrot.slane %v7477_v36, 7  ;;  %v8365_v13 = vrot.slane %v7520_v56, 7  ;;  %v8366_v22 = vrot.slane %v7505_v52, 7 }
 0x3f5   : > { %v7806_v55 = vsel %vm1238_vm3, %v8362_v48, %v8361_v46  ;;  %v8363_v28 = vmov %v8362_v48  ;;  %v8368_v43 = vmov %v8361_v46  ;;  %v8369_v36 = vrot.slane %v7590_v23, 7  ;;  %5322 = vrot.lane.b32.xlu0 %v5321_v32, %s5626_s16 }
 0x3f6   : > { %v7814_v59 = vsel %vm1238_vm3, %v8364_v29, %v8363_v28  ;;  %v7822_v17 = vsel %vm1238_vm3, %v8366_v22, %v8365_v13  ;;  %v8367_v19 = vmov %v8366_v22  ;;  %v8370_v42 = vrot.slane %v7574_v6, 7 }
 0x3f7   : > { %v7830_v34 = vsel %vm1238_vm3, %v8368_v43, %v8367_v19  ;;  %v8372_v38 = vmov %v8365_v13  ;;  %v8373_v27 = vrot.slane %v7585_v11, 7  ;;  %v8374_v46 = vrot.slane %v7563_v31, 7  ;;  %5317 = vrot.lane.b32.xlu1 %v5316_v37, %s5625_s11 }
 0x3f8   : > { %v7838_v18 = vsel %vm1238_vm3, %v8370_v42, %v8369_v36  ;;  %v8371_v5 = vmov %v8370_v42  ;;  %v8376_v6 = vmov %v8369_v36  ;;  %v8377_v29 = vrot.slane %v7634_v41, 7 }
 0x3f9   : > { %v7846_v52 = vsel %vm1238_vm3, %v8372_v38, %v8371_v5  ;;  %v7855_v48 = vsel %vm1238_vm3, %v8374_v46, %v8373_v27  ;;  %v8375_v28 = vmov %v8374_v46  ;;  %v8378_v12 = vrot.slane %v7621_v40, 7 }
 0x3fa   : > { %v7863_v56 = vsel %vm1238_vm3, %v8376_v6, %v8375_v28  ;;  %v8380_v19 = vmov %v8373_v27  ;;  %v3069_v23 = vrot.slane %v7746_v0, 7  ;;  %v8381_v43 = vrot.slane %v7629_v50, 7 }
 0x3fb   : > { %v7871_v13 = vsel %vm1238_vm3, %v8378_v12, %v8377_v29  ;;  %v8379_v22 = vmov %v8378_v12  ;;  %v8382_v36 = vrot.slane %v7614_v2, 7  ;;  %v8384_v40 = vmov %v8377_v29  ;;  %5327 = vrot.lane.b32.xlu1 %v5326_v63, %s5626_s16 }
 0x3fc   : > { %v7879_v31 = vsel %vm1238_vm3, %v8380_v19, %v8379_v22  ;;  %v8385_v38 = vrot.slane %v7678_v20, 7  ;;  %v8386_v0 = vrot.slane %v7665_v45, 7  ;;  %v8388_v2 = vmov %v8381_v43 }
 0x3fd   : > { %v7888_v42 = vsel %vm1238_vm3, %v8382_v36, %v8381_v43  ;;  %v8383_v5 = vmov %v8382_v36  ;;  %v8389_v28 = vrot.slane %v7676_v51, 7  ;;  %v8390_v6 = vrot.slane %v7660_v8, 7 }
 0x3fe   : > { %v7896_v11 = vsel %vm1238_vm3, %v8384_v40, %v8383_v5  ;;  %v7904_v27 = vsel %vm1238_vm3, %v8386_v0, %v8385_v38  ;;  %v8387_v46 = vmov %v8386_v0  ;;  %v8392_v32 = vmov %v8385_v38 }
 0x3ff   : > { %v7913_v41 = vsel %vm1238_vm3, %v8388_v2, %v8387_v46  ;;  %v7921_v29 = vsel %vm1238_vm3, %v8390_v6, %v8389_v28  ;;  %v8391_v12 = vmov %v8390_v6  ;;  %v8393_v50 = vrot.slane %v7710_v21, 7 }
 0x400   : > { %v7929_v45 = vsel %vm1238_vm3, %v8392_v32, %v8391_v12  ;;  %v8395_v43 = vmov %v8389_v28  ;;  %v8396_v8 = vrot.slane %v7702_v49, 7  ;;  %v7959_v21 = vsel %vm1238_vm3, %v3067_v61, %v3068_v47 }
 0x401   : > { %v7935_v22 = vsel %vm1238_vm3, %v8393_v50, %v3064_v39  ;;  %v8394_v19 = vmov %v8393_v50  ;;  %v7964_v51 = vsel %vm1238_vm3, %v3066_v9, %v3067_v61  ;;  %v7968_v38 = vsel %vm1238_vm3, %v3069_v23, %v3070_v44 }
 0x402   : > { %v7943_v36 = vsel %vm1238_vm3, %v8395_v43, %v8394_v19  ;;  %v7949_v20 = vsel %vm1238_vm3, %v8396_v8, %v3066_v9  ;;  %v8397_v5 = vmov %v8396_v8  ;;  %v7972_v49 = vsel %vm1238_vm3, %v3068_v47, %v3069_v23 }
 0x403   : > { %v7955_v40 = vsel %vm1238_vm3, %v3064_v39, %v8397_v5  ;;  %v3103_v9 = vsel %vm6521_vm5, %v3102_v57, 0.0 }
 0x42a   : > { %v5173_v37 = vpop.permute.xlu1 %5172 }
 0x42b   : > { %v5178_v39 = vpop.permute.xlu0 %5177  ;;  %v5175_v23 = vunpack.i.h.bf16 %v5173_v37  ;;  %v5174_v6 = vunpack.i.l.bf16 %v5173_v37 }
 0x42c   : > { %v5180_v0 = vunpack.i.h.bf16 %v5178_v39  ;;  %v5179_v46 = vunpack.i.l.bf16 %v5178_v39 }
 0x42d   : > { %v3489_v8 = vsel %vm1817_vm7, %v7461_v60, %v5174_v6 }
 0x42e   : > { %v3487_v44 = vsel %vm1817_vm7, %v3103_v9, %v5179_v46  ;;  %v3488_v7 = vsel %vm1817_vm7, %v7528_v26, %v5180_v0  ;;  %v3490_v26 = vsel %vm1817_vm7, %v7455_v58, %v5175_v23 }
 0x42f   : > { %v5183_v2 = vpop.permute.xlu0 %5182 }
 0x430   : > { %v5185_v61 = vunpack.i.h.bf16 %v5183_v2  ;;  %v5184_v28 = vunpack.i.l.bf16 %v5183_v2 }
 0x432   : > { %v3520_v47 = vsel %vm3519_vm12, %v3487_v44, %v5184_v28  ;;  %v3521_v63 = vsel %vm3519_vm12, %v3488_v7, %v5185_v61 }
 0x433   : > { %v3552_v12 = vpack.c.bf16 %v3521_v63, %v3520_v47  ;;  %v5188_v32 = vpop.permute.xlu0 %5187 }
 0x434   : > { %v5190_v50 = vunpack.i.h.bf16 %v5188_v32  ;;  %v5189_v19 = vunpack.i.l.bf16 %v5188_v32  ;;  %v5193_v16 = vpop.permute.xlu1 %5192 }
 0x435   : > { %4583 = vmatprep.mubr.msk.bf16.mxu1 %vm3583_vm13, %v3552_v12  ;;  %v5195_v57 = vunpack.i.h.bf16 %v5193_v16  ;;  %v5194_v43 = vunpack.i.l.bf16 %v5193_v16 }
 0x436   : > { %v3492_v37 = vsel %vm1817_vm7, %v7571_v53, %v5190_v50  ;;  %v3491_v9 = vsel %vm1817_vm7, %v7581_v3, %v5189_v19 }
 0x437   : > { %v5203_v5 = vpop.permute.xlu0 %5202  ;;  %v3523_v39 = vsel %vm3519_vm12, %v3490_v26, %v5195_v57  ;;  %v3522_v0 = vsel %vm3519_vm12, %v3489_v8, %v5194_v43 }
 0x438   : > { %v5205_v46 = vunpack.i.h.bf16 %v5203_v5  ;;  %v5204_v2 = vunpack.i.l.bf16 %v5203_v5  ;;  %v3553_v61 = vpack.c.bf16 %v3523_v39, %v3522_v0  ;;  %v5198_v28 = vpop.permute.xlu1 %5197 }
 0x439   : > { %v5200_v7 = vunpack.i.h.bf16 %v5198_v28  ;;  %v5199_v47 = vunpack.i.l.bf16 %v5198_v28 }
 0x43a   : > { %v3524_v60 = vsel %vm3519_vm12, %v3491_v9, %v5204_v2  ;;  %v3525_v44 = vsel %vm3519_vm12, %v3492_v37, %v5205_v46  ;;  %4584 = vmatmul.mubr.msk.bf16.vlgmr.msra.gmra.mrb[32].mxu1 %vm3583_vm13, %v3553_v61 }
 0x43b   : > { %v3554_v58 = vpack.c.bf16 %v3525_v44, %v3524_v60  ;;  %v5208_v63 = vpop.permute.xlu0 %5207  ;;  %v3494_v3 = vsel %vm1817_vm7, %v7765_v14, %v5200_v7  ;;  %v3493_v50 = vsel %vm1817_vm7, %v7778_v62, %v5199_v47 }
 0x43c   : > { %v5210_v23 = vunpack.i.h.bf16 %v5208_v63  ;;  %v5209_v6 = vunpack.i.l.bf16 %v5208_v63 }
 0x43d   : > { %v5213_v12 = vpop.permute.xlu1 %5212  ;;  %4587 = vmatprep.mubr.msk.bf16.mxu1 %vm3583_vm13, %v3554_v58 }
 0x43e   : > { %v5215_v53 = vunpack.i.h.bf16 %v5213_v12  ;;  %v5214_v32 = vunpack.i.l.bf16 %v5213_v12  ;;  %v3496_v26 = vsel %vm1817_vm7, %v7806_v55, %v5210_v23  ;;  %v3495_v5 = vsel %vm1817_vm7, %v7814_v59, %v5209_v6 }
 0x43f   : > { %v5223_v19 = vpop.permute.xlu0 %5222 }
 0x440   : > { %v3526_v16 = vsel %vm3519_vm12, %v3493_v50, %v5214_v32  ;;  %v3527_v57 = vsel %vm3519_vm12, %v3494_v3, %v5215_v53  ;;  %v5225_v43 = vunpack.i.h.bf16 %v5223_v19  ;;  %v5224_v8 = vunpack.i.l.bf16 %v5223_v19 }
 0x441   : > { %v3555_v39 = vpack.c.bf16 %v3527_v57, %v3526_v16  ;;  %v5218_v0 = vpop.permute.xlu1 %5217 }
 0x442   : > { %v3528_v14 = vsel %vm3519_vm12, %v3495_v5, %v5224_v8  ;;  %v3529_v46 = vsel %vm3519_vm12, %v3496_v26, %v5225_v43  ;;  %v5220_v2 = vunpack.i.h.bf16 %v5218_v0  ;;  %v5219_v37 = vunpack.i.l.bf16 %v5218_v0 }
 0x443   : > { %v3556_v62 = vpack.c.bf16 %v3529_v46, %v3528_v14  ;;  %4588 = vmatmul.mubr.msk.bf16.gmra.mrb[36].mxu1 %vm3583_vm13, %v3555_v39  ;;  %v5228_v9 = vpop.permute.xlu0 %5227  ;;  %v3119_v0 = vsel %vm6578_vm9, %v7879_v31, 0.0 }
 0x444   : > { %v5230_v61 = vunpack.i.h.bf16 %v5228_v9  ;;  %v5229_v28 = vunpack.i.l.bf16 %v5228_v9  ;;  %v3498_v59 = vsel %vm1817_vm7, %v7822_v17, %v5220_v2  ;;  %v3497_v58 = vsel %vm1817_vm7, %v7830_v34, %v5219_v37 }
 0x445   : > { %4591 = vmatprep.mubr.msk.bf16.mxu1 %vm3583_vm13, %v3556_v62  ;;  %v5233_v55 = vpop.permute.xlu1 %5232 }
 0x446   : > { %v5235_v60 = vunpack.i.h.bf16 %v5233_v55  ;;  %v5234_v44 = vunpack.i.l.bf16 %v5233_v55  ;;  %v3500_v12 = vsel %vm1817_vm7, %v7838_v18, %v5230_v61  ;;  %v3499_v53 = vsel %vm1817_vm7, %v7846_v52, %v5229_v28 }
 0x447   : > { %v5243_v7 = vpop.permute.xlu0 %5242 }
 0x448   : > { %v3530_v47 = vsel %vm3519_vm12, %v3497_v58, %v5234_v44  ;;  %v3531_v63 = vsel %vm3519_vm12, %v3498_v59, %v5235_v60  ;;  %v5245_v23 = vunpack.i.h.bf16 %v5243_v7  ;;  %v5244_v6 = vunpack.i.l.bf16 %v5243_v7 }
 0x449   : > { %v3557_v32 = vpack.c.bf16 %v3531_v63, %v3530_v47  ;;  %v5238_v3 = vpop.permute.xlu1 %5237 }
 0x44a   : > { %v3532_v17 = vsel %vm3519_vm12, %v3499_v53, %v5244_v6  ;;  %v3533_v50 = vsel %vm3519_vm12, %v3500_v12, %v5245_v23  ;;  %v5240_v16 = vunpack.i.h.bf16 %v5238_v3  ;;  %v5239_v57 = vunpack.i.l.bf16 %v5238_v3 }
 0x44b   : > { %v3558_v34 = vpack.c.bf16 %v3533_v50, %v3532_v17  ;;  %4592 = vmatmul.mubr.msk.bf16.gmra.mrb[40].mxu1 %vm3583_vm13, %v3557_v32  ;;  %v5248_v19 = vpop.permute.xlu0 %5247 }
 0x44c   : > { %v5250_v43 = vunpack.i.h.bf16 %v5248_v19  ;;  %v5249_v8 = vunpack.i.l.bf16 %v5248_v19  ;;  %v3502_v52 = vsel %vm1817_vm7, %v7855_v48, %v5240_v16  ;;  %v3501_v39 = vsel %vm1817_vm7, %v7863_v56, %v5239_v57 }
 0x44d   : > { %4595 = vmatprep.mubr.msk.bf16.mxu1 %vm3583_vm13, %v3558_v34  ;;  %v5253_v18 = vpop.permute.xlu1 %5252 }
 0x44e   : > { %v5255_v26 = vunpack.i.h.bf16 %v5253_v18  ;;  %v5254_v5 = vunpack.i.l.bf16 %v5253_v18  ;;  %v3504_v9 = vsel %vm1817_vm7, %v7871_v13, %v5250_v43  ;;  %v3503_v61 = vsel %vm1817_vm7, %v3119_v0, %v5249_v8 }
 0x44f   : > { %v5263_v14 = vpop.permute.xlu0 %5262 }
 0x450   : > { %v3534_v46 = vsel %vm3519_vm12, %v3501_v39, %v5254_v5  ;;  %v3535_v62 = vsel %vm3519_vm12, %v3502_v52, %v5255_v26  ;;  %v5265_v2 = vunpack.i.h.bf16 %v5263_v14  ;;  %v5264_v37 = vunpack.i.l.bf16 %v5263_v14 }
 0x451   : > { %v3559_v48 = vpack.c.bf16 %v3535_v62, %v3534_v46  ;;  %v5258_v28 = vpop.permute.xlu1 %5257 }
 0x452   : > { %v3536_v56 = vsel %vm3519_vm12, %v3503_v61, %v5264_v37  ;;  %v3537_v55 = vsel %vm3519_vm12, %v3504_v9, %v5265_v2  ;;  %v5260_v31 = vunpack.i.h.bf16 %v5258_v28  ;;  %v5259_v60 = vunpack.i.l.bf16 %v5258_v28 }
 0x453   : > { %v3560_v10 = vpack.c.bf16 %v3537_v55, %v3536_v56  ;;  %v5268_v44 = vpop.permute.xlu0 %5267  ;;  %4596 = vmatmul.mubr.msk.bf16.gmra.mrb[44].mxu1 %vm3583_vm13, %v3559_v48 }
 0x454   : > { %v5270_v59 = vunpack.i.h.bf16 %v5268_v44  ;;  %v5269_v58 = vunpack.i.l.bf16 %v5268_v44  ;;  %v3506_v63 = vsel %vm1817_vm7, %v7888_v42, %v5260_v31  ;;  %v3505_v23 = vsel %vm1817_vm7, %v7896_v11, %v5259_v60 }
 0x455   : > { %v5273_v7 = vpop.permute.xlu1 %5272  ;;  %4599 = vmatprep.mubr.msk.bf16.mxu1 %vm3583_vm13, %v3560_v10 }
 0x456   : > { %v5275_v13 = vunpack.i.h.bf16 %v5273_v7  ;;  %v5274_v47 = vunpack.i.l.bf16 %v5273_v7  ;;  %v3508_v17 = vsel %vm1817_vm7, %v7904_v27, %v5270_v59  ;;  %v3507_v50 = vsel %vm1817_vm7, %v7913_v41, %v5269_v58 }
 0x457   : > { %v5283_v6 = vpop.permute.xlu0 %5282 }
 0x458   : > { %v3538_v12 = vsel %vm3519_vm12, %v3505_v23, %v5274_v47  ;;  %v3539_v53 = vsel %vm3519_vm12, %v3506_v63, %v5275_v13  ;;  %v5285_v32 = vunpack.i.h.bf16 %v5283_v6  ;;  %v5284_v3 = vunpack.i.l.bf16 %v5283_v6 }
 0x459   : > { %v3561_v34 = vpack.c.bf16 %v3539_v53, %v3538_v12  ;;  %v5278_v19 = vpop.permute.xlu1 %5277 }
 0x45a   : > { %v3540_v42 = vsel %vm3519_vm12, %v3507_v50, %v5284_v3  ;;  %v3541_v16 = vsel %vm3519_vm12, %v3508_v17, %v5285_v32  ;;  %v5280_v57 = vunpack.i.h.bf16 %v5278_v19  ;;  %v5279_v43 = vunpack.i.l.bf16 %v5278_v19 }
 0x45b   : > { %v3562_v11 = vpack.c.bf16 %v3541_v16, %v3540_v42  ;;  %v5288_v8 = vpop.permute.xlu0 %5287  ;;  %4600 = vmatmul.mubr.msk.bf16.gmra.mrb[48].mxu1 %vm3583_vm13, %v3561_v34 }
 0x45c   : > { %v5290_v18 = vunpack.i.h.bf16 %v5288_v8  ;;  %v5289_v26 = vunpack.i.l.bf16 %v5288_v8  ;;  %v3510_v41 = vsel %vm1817_vm7, %v7921_v29, %v5280_v57  ;;  %v3509_v39 = vsel %vm1817_vm7, %v7929_v45, %v5279_v43  ;;  %v8090_v43 = vld [vmem:[#allocation13] ss:$0 sm:$0xff] }
 0x45d   : > { %v5293_v5 = vpop.permute.xlu1 %5292  ;;  %4603 = vmatprep.mubr.msk.bf16.mxu1 %vm3583_vm13, %v3562_v11 }
 0x45e   : > { %v5295_v27 = vunpack.i.h.bf16 %v5293_v5  ;;  %v5294_v52 = vunpack.i.l.bf16 %v5293_v5  ;;  %v3512_v37 = vsel %vm1817_vm7, %v7935_v22, %v5290_v18  ;;  %v3511_v9 = vsel %vm1817_vm7, %v7943_v36, %v5289_v26  ;;  %v8093_v5 = vld [vmem:[#allocation16] ss:$0 sm:$0xff] }
 0x45f   : > { %v5303_v0 = vpop.permute.xlu0 %5302 }
 0x460   : > { %v3542_v14 = vsel %vm3519_vm12, %v3509_v39, %v5294_v52  ;;  %v3543_v46 = vsel %vm3519_vm12, %v3510_v41, %v5295_v27  ;;  %v5305_v62 = vunpack.i.h.bf16 %v5303_v0  ;;  %v5304_v2 = vunpack.i.l.bf16 %v5303_v0 }
 0x461   : > { %v3563_v61 = vpack.c.bf16 %v3543_v46, %v3542_v14  ;;  %v5298_v48 = vpop.permute.xlu1 %5297 }
 0x462   : > { %v3544_v29 = vsel %vm3519_vm12, %v3511_v9, %v5304_v2  ;;  %v3545_v28 = vsel %vm3519_vm12, %v3512_v37, %v5305_v62  ;;  %v5300_v56 = vunpack.i.h.bf16 %v5298_v48  ;;  %v5299_v55 = vunpack.i.l.bf16 %v5298_v48 }
 0x463   : > { %v3564_v45 = vpack.c.bf16 %v3545_v28, %v3544_v29  ;;  %v5308_v10 = vpop.permute.xlu0 %5307  ;;  %4604 = vmatmul.mubr.msk.bf16.gmra.mrb[52].mxu1 %vm3583_vm13, %v3563_v61 }
 0x464   : > { %v5310_v31 = vunpack.i.h.bf16 %v5308_v10  ;;  %v5309_v60 = vunpack.i.l.bf16 %v5308_v10  ;;  %v3514_v36 = vsel %vm1817_vm7, %v7949_v20, %v5300_v56  ;;  %v3513_v58 = vsel %vm1817_vm7, %v7955_v40, %v5299_v55 }
 0x465   : > { %v5313_v44 = vpop.permute.xlu1 %5312  ;;  %4607 = vmatprep.mubr.msk.bf16.mxu1 %vm3583_vm13, %v3564_v45 }
 0x466   : > { %v5315_v22 = vunpack.i.h.bf16 %v5313_v44  ;;  %v5314_v59 = vunpack.i.l.bf16 %v5313_v44  ;;  %v3516_v6 = vsel %vm1817_vm7, %v7959_v21, %v5310_v31  ;;  %v3515_v12 = vsel %vm1817_vm7, %v7964_v51, %v5309_v60 }
 0x467   : > { %v5323_v7 = vpop.permute.xlu0 %5322 }
 0x468   : > { %v3546_v13 = vsel %vm3519_vm12, %v3513_v58, %v5314_v59  ;;  %v3547_v47 = vsel %vm3519_vm12, %v3514_v36, %v5315_v22  ;;  %v5325_v63 = vunpack.i.h.bf16 %v5323_v7  ;;  %v5324_v23 = vunpack.i.l.bf16 %v5323_v7 }
 0x469   : > { %v3565_v53 = vpack.c.bf16 %v3547_v47, %v3546_v13  ;;  %v5318_v32 = vpop.permute.xlu1 %5317 }
 0x46a   : > { %v3548_v20 = vsel %vm3519_vm12, %v3515_v12, %v5324_v23  ;;  %v3549_v3 = vsel %vm3519_vm12, %v3516_v6, %v5325_v63  ;;  %v5320_v17 = vunpack.i.h.bf16 %v5318_v32  ;;  %v5319_v50 = vunpack.i.l.bf16 %v5318_v32 }
 0x46b   : > { %v3566_v40 = vpack.c.bf16 %v3549_v3, %v3548_v20  ;;  %4608 = vmatmul.mubr.msk.bf16.gmra.mrb[56].mxu1 %vm3583_vm13, %v3565_v53 }
 0x46c   : > { %v3518_v21 = vsel %vm1817_vm7, %v7968_v38, %v5320_v17  ;;  %v3517_v51 = vsel %vm1817_vm7, %v7972_v49, %v5319_v50  ;;  %v8399_v17 = vld [vmem:[#allocation23_spill] sm:$0xff] }
 0x46d   : > { %v5328_v34 = vpop.permute.xlu1 %5327  ;;  %4611 = vmatprep.mubr.msk.bf16.mxu1 %vm3583_vm13, %v3566_v40 }
 0x46e   : > { %v5330_v19 = vunpack.i.h.bf16 %v5328_v34  ;;  %v5329_v42 = vunpack.i.l.bf16 %v5328_v34 }
 0x470   : > { %v3551_v16 = vsel %vm3519_vm12, %v3518_v21, %v5330_v19  ;;  %v3550_v11 = vsel %vm3519_vm12, %v3517_v51, %v5329_v42  ;;  %v8400_v51 = vld [vmem:[#allocation24_spill] sm:$0xff] }
 0x471   : > { %v3567_v57 = vpack.c.bf16 %v3551_v16, %v3550_v11 }
 0x473   : > { %4612 = vmatmul.mubr.msk.bf16.gmra.mrb[60].mxu1 %vm3583_vm13, %v3567_v57 }
 0x50d   : > { %v4585_v8 = vpop.f32.mrb[32].mxu1 }
 0x50e   : > { %v3679_v18 = vadd.f32 %v4585_v8, %v8090_v43  ;;  %v3670_v26 = vpop.f32.mrb[33].mxu1  ;;  %v8401_v8 = vld [vmem:[#allocation25_spill] sm:$0xff] }
 0x50f   : > { %v3671_v38 = vadd.f32 %v8090_v43, %v3670_v26  ;;  %v4586_v27 = vpop.f32.mrb[34].mxu1 }
 0x510   : > { %v4650_v49 = vadd.f32 %v7337_v33, %v3679_v18  ;;  %v3682_v52 = vadd.f32 %v4586_v27, %v8090_v43  ;;  %v3673_v41 = vpop.f32.mrb[35].mxu1 }
 0x511   : > { %v4653_v39 = vadd.f32 %v7339_v24, %v3671_v38  ;;  %v3674_v0 = vadd.f32 %v8090_v43, %v3673_v41 }
 0x512   : > { %v4651_v14 = vadd.f32 %v4650_v49, %v8093_v5  ;;  %v4656_v46 = vadd.f32 %v8093_v5, %v3682_v52 }
 0x513   : > { %v4654_v62 = vadd.f32 %v4653_v39, %v8093_v5  ;;  %v4659_v2 = vadd.f32 %v8093_v5, %v3674_v0 }
 0x514   : > { %4066 = vst.msk [vmem:[#allocation2 + $0x10] sm:$0xff] %vm1817_vm7, %v4651_v14  ;;  %v4657_v33 = vadd.f32 %v4656_v46, %v7341_v35 }
 0x515   : > { %4064 = vst.msk [vmem:[#allocation2] sm:$0xff] %vm1817_vm7, %v4654_v62  ;;  %v4660_v24 = vadd.f32 %v4659_v2, %v7343_v25  ;;  %v8402_v2 = vld [vmem:[#allocation26_spill] sm:$0xff] }
 0x516   : > { %v4589_v37 = vpop.f32.mrb[36].mxu1  ;;  %4067 = vst.msk [vmem:[#allocation2 + $0x18] sm:$0xff] %vm1817_vm7, %v4657_v33 }
 0x517   : > { %v3695_v9 = vadd.f32 %v4589_v37, %v8090_v43  ;;  %v3686_v61 = vpop.f32.mrb[37].mxu1  ;;  %4065 = vst.msk [vmem:[#allocation2 + $0x8] sm:$0xff] %vm1817_vm7, %v4660_v24  ;;  %v8403_v37 = vld [vmem:[#allocation27_spill] sm:$0xff] }
 0x518   : > { %v3687_v48 = vadd.f32 %v8090_v43, %v3686_v61  ;;  %v4590_v29 = vpop.f32.mrb[38].mxu1 }
 0x519   : > { %v4662_v28 = vadd.f32 %v8093_v5, %v3695_v9  ;;  %v3698_v35 = vadd.f32 %v4590_v29, %v8090_v43  ;;  %v3689_v45 = vpop.f32.mrb[39].mxu1 }
 0x51a   : > { %v4665_v56 = vadd.f32 %v8093_v5, %v3687_v48  ;;  %v3690_v25 = vadd.f32 %v8090_v43, %v3689_v45  ;;  %v8404_v48 = vld [vmem:[#allocation28_spill] sm:$0xff] }
 0x51b   : > { %v4663_v55 = vadd.f32 %v4662_v28, %v7345_v30  ;;  %v4668_v10 = vadd.f32 %v8093_v5, %v3698_v35  ;;  %v8405_v28 = vld [vmem:[#allocation29_spill] sm:$0xff] }
 0x51c   : > { %v4666_v31 = vadd.f32 %v4665_v56, %v7347_v1  ;;  %v4671_v60 = vadd.f32 %v8093_v5, %v3690_v25 }
 0x51d   : > { %4070 = vst.msk [vmem:[#allocation2 + $0x30] sm:$0xff] %vm1817_vm7, %v4663_v55  ;;  %v4669_v44 = vadd.f32 %v4668_v10, %v7349_v4 }
 0x51e   : > { %4068 = vst.msk [vmem:[#allocation2 + $0x20] sm:$0xff] %vm1817_vm7, %v4666_v31  ;;  %v4672_v22 = vadd.f32 %v4671_v60, %v7351_v54  ;;  %v4096_v59 = vld [vmem:[#allocation2] ss:$4 sm:$0xff]  ;;  %v4112_v36 = vld [vmem:[#allocation2 + $0x1] ss:$4 sm:$0xff]  ;;  %v4593_v1 = vpop.f32.mrb[40].mxu1 }
 0x51f   : > { %v4128_v58 = vld [vmem:[#allocation2 + $0x2] ss:$4 sm:$0xff]  ;;  %4071 = vst.msk [vmem:[#allocation2 + $0x38] sm:$0xff] %vm1817_vm7, %v4669_v44  ;;  %v4144_v30 = vld [vmem:[#allocation2 + $0x3] ss:$4 sm:$0xff]  ;;  %v4159_v7 = vmax.f32 %v4096_v59, %v4112_v36  ;;  %v3711_v47 = vadd.f32 %v4593_v1, %v8090_v43  ;;  %v3702_v63 = vpop.f32.mrb[41].mxu1 }
 0x520   : > { %4069 = vst.msk [vmem:[#allocation2 + $0x28] sm:$0xff] %vm1817_vm7, %v4672_v22  ;;  %v4167_v13 = vmax.f32 %v4128_v58, %v4144_v30  ;;  %v3703_v4 = vadd.f32 %v8090_v43, %v3702_v63  ;;  %v4594_v54 = vpop.f32.mrb[42].mxu1 }
 0x521   : > { %v4674_v6 = vadd.f32 %v8093_v5, %v3711_v47  ;;  %v3714_v12 = vadd.f32 %v4594_v54, %v8090_v43  ;;  %v3705_v53 = vpop.f32.mrb[43].mxu1 }
 0x522   : > { %v4175_v23 = vmax.f32 %v4159_v7, %v4167_v13  ;;  %v4677_v32 = vadd.f32 %v8093_v5, %v3703_v4  ;;  %v3706_v20 = vadd.f32 %v8090_v43, %v3705_v53  ;;  %v8406_v13 = vld [vmem:[#allocation30_spill] sm:$0xff]  ;;  %v8408_v53 = vld [vmem:[#allocation32_spill] sm:$0xff] }
 0x523   : > { %v4675_v3 = vadd.f32 %v4674_v6, %v7353_v15  ;;  %v4680_v40 = vadd.f32 %v8093_v5, %v3714_v12 }
 0x524   : > { %4183 = vst.msk [vmem:[%s8131_s18] sm:$0xff] %vm1817_vm7, %v4175_v23  ;;  %v4678_v50 = vadd.f32 %v4677_v32, %v8399_v17  ;;  %v4683_v34 = vadd.f32 %v8093_v5, %v3706_v20  ;;  %v8407_v23 = vld [vmem:[#allocation31_spill] sm:$0xff] }
 0x525   : > { %4074 = vst.msk [vmem:[#allocation2 + $0x50] sm:$0xff] %vm1817_vm7, %v4675_v3  ;;  %v4681_v16 = vadd.f32 %v4680_v40, %v8400_v51 }
 0x526   : > { %4072 = vst.msk [vmem:[#allocation2 + $0x40] sm:$0xff] %vm1817_vm7, %v4678_v50  ;;  %v4684_v15 = vadd.f32 %v4683_v34, %v8401_v8  ;;  %v4597_v18 = vpop.f32.mrb[44].mxu1  ;;  %v8409_v50 = vld [vmem:[#allocation33_spill] sm:$0xff] }
 0x527   : > { %v4098_v19 = vld [vmem:[#allocation2 + $0x20] ss:$4 sm:$0xff]  ;;  %v4114_v42 = vld [vmem:[#allocation2 + $0x21] ss:$4 sm:$0xff]  ;;  %v4130_v21 = vld [vmem:[#allocation2 + $0x22] ss:$4 sm:$0xff]  ;;  %v3727_v38 = vadd.f32 %v4597_v18, %v8090_v43 }
 0x528   : > { %v4146_v11 = vld [vmem:[#allocation2 + $0x23] ss:$4 sm:$0xff]  ;;  %v4160_v57 = vmax.f32 %v4098_v19, %v4114_v42  ;;  %4075 = vst.msk [vmem:[#allocation2 + $0x58] sm:$0xff] %vm1817_vm7, %v4681_v16  ;;  %v3718_v27 = vpop.f32.mrb[45].mxu1  ;;  %4073 = vst.msk [vmem:[#allocation2 + $0x48] sm:$0xff] %vm1817_vm7, %v4684_v15 }
 0x529   : > { %v4168_v26 = vmax.f32 %v4130_v21, %v4146_v11  ;;  %v3719_v49 = vadd.f32 %v8090_v43, %v3718_v27  ;;  %v4598_v52 = vpop.f32.mrb[46].mxu1  ;;  %v4686_v39 = vadd.f32 %v8093_v5, %v3727_v38  ;;  %v8410_v38 = vld [vmem:[#allocation34_spill] sm:$0xff] }
 0x52a   : > { %v3730_v0 = vadd.f32 %v4598_v52, %v8090_v43  ;;  %v3721_v14 = vpop.f32.mrb[47].mxu1 }
 0x52b   : > { %v4176_v41 = vmax.f32 %v4160_v57, %v4168_v26  ;;  %v4689_v46 = vadd.f32 %v8093_v5, %v3719_v49  ;;  %v3722_v62 = vadd.f32 %v8090_v43, %v3721_v14  ;;  %v4687_v33 = vadd.f32 %v4686_v39, %v8402_v2  ;;  %v8411_v39 = vld [vmem:[#allocation35_spill] sm:$0xff] }
 0x52c   : > { %v4692_v24 = vadd.f32 %v8093_v5, %v3730_v0 }
 0x52d   : > { %4184 = vst.msk [vmem:[%s8131_s18 + $0x8] sm:$0xff] %vm1817_vm7, %v4176_v41  ;;  %v4690_v9 = vadd.f32 %v4689_v46, %v8403_v37  ;;  %v4695_v61 = vadd.f32 %v8093_v5, %v3722_v62  ;;  %4078 = vst.msk [vmem:[#allocation2 + $0x70] sm:$0xff] %vm1817_vm7, %v4687_v33  ;;  %v8412_v46 = vld [vmem:[#allocation36_spill] sm:$0xff]  ;;  %v8413_v33 = vld [vmem:[#allocation37_spill] sm:$0xff] }
 0x52e   : > { %v4693_v29 = vadd.f32 %v4692_v24, %v8404_v48  ;;  %v4601_v45 = vpop.f32.mrb[48].mxu1 }
 0x52f   : > { %4076 = vst.msk [vmem:[#allocation2 + $0x60] sm:$0xff] %vm1817_vm7, %v4690_v9  ;;  %v4696_v35 = vadd.f32 %v4695_v61, %v8405_v28  ;;  %v4100_v56 = vld [vmem:[#allocation2 + $0x40] ss:$4 sm:$0xff]  ;;  %v4116_v25 = vld [vmem:[#allocation2 + $0x41] ss:$4 sm:$0xff]  ;;  %v3743_v10 = vadd.f32 %v4601_v45, %v8090_v43  ;;  %v3734_v44 = vpop.f32.mrb[49].mxu1 }
 0x530   : > { %v4132_v55 = vld [vmem:[#allocation2 + $0x42] ss:$4 sm:$0xff]  ;;  %4079 = vst.msk [vmem:[#allocation2 + $0x78] sm:$0xff] %vm1817_vm7, %v4693_v29  ;;  %v4148_v31 = vld [vmem:[#allocation2 + $0x43] ss:$4 sm:$0xff]  ;;  %v4161_v60 = vmax.f32 %v4100_v56, %v4116_v25  ;;  %v3735_v36 = vadd.f32 %v8090_v43, %v3734_v44  ;;  %v4602_v58 = vpop.f32.mrb[50].mxu1 }
 0x531   : > { %4077 = vst.msk [vmem:[#allocation2 + $0x68] sm:$0xff] %vm1817_vm7, %v4696_v35  ;;  %v4169_v22 = vmax.f32 %v4132_v55, %v4148_v31  ;;  %v4698_v59 = vadd.f32 %v8093_v5, %v3743_v10  ;;  %v3746_v30 = vadd.f32 %v4602_v58, %v8090_v43  ;;  %v3737_v7 = vpop.f32.mrb[51].mxu1  ;;  %v8414_v44 = vld [vmem:[#allocation38_spill] sm:$0xff]  ;;  %v8415_v58 = vld [vmem:[#allocation39_spill] sm:$0xff] }
 0x532   : > { %v4701_v63 = vadd.f32 %v8093_v5, %v3735_v36  ;;  %v3738_v4 = vadd.f32 %v8090_v43, %v3737_v7 }
 0x533   : > { %v4177_v1 = vmax.f32 %v4161_v60, %v4169_v22  ;;  %v4699_v47 = vadd.f32 %v4698_v59, %v8406_v13  ;;  %v4704_v54 = vadd.f32 %v8093_v5, %v3746_v30  ;;  %v8416_v13 = vld [vmem:[#allocation40_spill] sm:$0xff] }
 0x534   : > { %v4702_v6 = vadd.f32 %v4701_v63, %v8407_v23  ;;  %v4707_v12 = vadd.f32 %v8093_v5, %v3738_v4  ;;  %v8417_v4 = vld [vmem:[#allocation41_spill] sm:$0xff] }
 0x535   : > { %4185 = vst.msk [vmem:[%s8131_s18 + $0x10] sm:$0xff] %vm1817_vm7, %v4177_v1  ;;  %4082 = vst.msk [vmem:[#allocation2 + $0x90] sm:$0xff] %vm1817_vm7, %v4699_v47  ;;  %v4705_v32 = vadd.f32 %v4704_v54, %v8408_v53 }
 0x536   : > { %v4605_v20 = vpop.f32.mrb[52].mxu1  ;;  %4080 = vst.msk [vmem:[#allocation2 + $0x80] sm:$0xff] %vm1817_vm7, %v4702_v6  ;;  %v4708_v34 = vadd.f32 %v4707_v12, %v8409_v50 }
 0x537   : > { %v3759_v19 = vadd.f32 %v4605_v20, %v8090_v43  ;;  %4083 = vst.msk [vmem:[#allocation2 + $0x98] sm:$0xff] %vm1817_vm7, %v4705_v32  ;;  %v3750_v51 = vpop.f32.mrb[53].mxu1 }
 0x538   : > { %v4102_v3 = vld [vmem:[#allocation2 + $0x60] ss:$4 sm:$0xff]  ;;  %v4118_v40 = vld [vmem:[#allocation2 + $0x61] ss:$4 sm:$0xff]  ;;  %v4134_v17 = vld [vmem:[#allocation2 + $0x62] ss:$4 sm:$0xff]  ;;  %v3751_v57 = vadd.f32 %v8090_v43, %v3750_v51 }
 0x539   : > { %v4150_v42 = vld [vmem:[#allocation2 + $0x63] ss:$4 sm:$0xff]  ;;  %v4162_v21 = vmax.f32 %v4102_v3, %v4118_v40  ;;  %4081 = vst.msk [vmem:[#allocation2 + $0x88] sm:$0xff] %vm1817_vm7, %v4708_v34  ;;  %v4710_v11 = vadd.f32 %v8093_v5, %v3759_v19  ;;  %v4606_v8 = vpop.f32.mrb[54].mxu1 }
 0x53a   : > { %v4170_v16 = vmax.f32 %v4134_v17, %v4150_v42  ;;  %v3762_v15 = vadd.f32 %v4606_v8, %v8090_v43  ;;  %v3753_v18 = vpop.f32.mrb[55].mxu1  ;;  %v4713_v49 = vadd.f32 %v8093_v5, %v3751_v57  ;;  %v8418_v51 = vld [vmem:[#allocation42_spill] sm:$0xff]  ;;  %v8419_v8 = vld [vmem:[#allocation43_spill] sm:$0xff] }
 0x53b   : > { %v4711_v27 = vadd.f32 %v4710_v11, %v8410_v38  ;;  %v3754_v52 = vadd.f32 %v8090_v43, %v3753_v18  ;;  %v8420_v38 = vld [vmem:[#allocation44_spill] sm:$0xff] }
 0x53c   : > { %v4178_v26 = vmax.f32 %v4162_v21, %v4170_v16  ;;  %v4716_v41 = vadd.f32 %v8093_v5, %v3762_v15  ;;  %v4714_v0 = vadd.f32 %v4713_v49, %v8411_v39  ;;  %v8421_v49 = vld [vmem:[#allocation45_spill] sm:$0xff] }
 0x53d   : > { %4086 = vst.msk [vmem:[#allocation2 + $0xb0] sm:$0xff] %vm1817_vm7, %v4711_v27  ;;  %v4719_v14 = vadd.f32 %v8093_v5, %v3754_v52 }
 0x53e   : > { %4186 = vst.msk [vmem:[%s8131_s18 + $0x18] sm:$0xff] %vm1817_vm7, %v4178_v26  ;;  %v4717_v62 = vadd.f32 %v4716_v41, %v8412_v46  ;;  %v4609_v2 = vpop.f32.mrb[56].mxu1  ;;  %4084 = vst.msk [vmem:[#allocation2 + $0xa0] sm:$0xff] %vm1817_vm7, %v4714_v0 }
 0x53f   : > { %v4720_v24 = vadd.f32 %v4719_v14, %v8413_v33  ;;  %v3775_v37 = vadd.f32 %v4609_v2, %v8090_v43  ;;  %v3766_v9 = vpop.f32.mrb[57].mxu1 }
 0x540   : > { %v4104_v61 = vld [vmem:[#allocation2 + $0x80] ss:$4 sm:$0xff]  ;;  %v4120_v48 = vld [vmem:[#allocation2 + $0x81] ss:$4 sm:$0xff]  ;;  %v4136_v29 = vld [vmem:[#allocation2 + $0x82] ss:$4 sm:$0xff]  ;;  %v3767_v28 = vadd.f32 %v8090_v43, %v3766_v9 }
 0x541   : > { %4087 = vst.msk [vmem:[#allocation2 + $0xb8] sm:$0xff] %vm1817_vm7, %v4717_v62  ;;  %v4152_v35 = vld [vmem:[#allocation2 + $0x83] ss:$4 sm:$0xff]  ;;  %v4163_v45 = vmax.f32 %v4104_v61, %v4120_v48  ;;  %4085 = vst.msk [vmem:[#allocation2 + $0xa8] sm:$0xff] %vm1817_vm7, %v4720_v24  ;;  %v4722_v56 = vadd.f32 %v8093_v5, %v3775_v37  ;;  %v4610_v25 = vpop.f32.mrb[58].mxu1 }
 0x542   : > { %v4171_v55 = vmax.f32 %v4136_v29, %v4152_v35  ;;  %v4725_v10 = vadd.f32 %v8093_v5, %v3767_v28  ;;  %v3778_v31 = vadd.f32 %v4610_v25, %v8090_v43  ;;  %v3769_v60 = vpop.f32.mrb[59].mxu1 }
 0x543   : > { %v4723_v22 = vadd.f32 %v4722_v56, %v8414_v44  ;;  %v3770_v59 = vadd.f32 %v8090_v43, %v3769_v60 }
 0x544   : > { %v4179_v36 = vmax.f32 %v4163_v45, %v4171_v55  ;;  %v4726_v30 = vadd.f32 %v4725_v10, %v8415_v58  ;;  %v4728_v7 = vadd.f32 %v8093_v5, %v3778_v31 }
 0x545   : > { %4090 = vst.msk [vmem:[#allocation2 + $0xd0] sm:$0xff] %vm1817_vm7, %v4723_v22  ;;  %v4731_v1 = vadd.f32 %v8093_v5, %v3770_v59 }
 0x546   : > { %4187 = vst.msk [vmem:[%s8131_s18 + $0x20] sm:$0xff] %vm1817_vm7, %v4179_v36  ;;  %4088 = vst.msk [vmem:[#allocation2 + $0xc0] sm:$0xff] %vm1817_vm7, %v4726_v30  ;;  %v4729_v47 = vadd.f32 %v4728_v7, %v8416_v13  ;;  %v4613_v63 = vpop.f32.mrb[60].mxu1 }
 0x547   : > { %v4732_v54 = vadd.f32 %v4731_v1, %v8417_v4  ;;  %v3791_v23 = vadd.f32 %v4613_v63, %v8090_v43  ;;  %v3782_v6 = vpop.f32.mrb[61].mxu1 }
 0x548   : > { %v4106_v12 = vld [vmem:[#allocation2 + $0xa0] ss:$4 sm:$0xff]  ;;  %v4122_v53 = vld [vmem:[#allocation2 + $0xa1] ss:$4 sm:$0xff]  ;;  %v4138_v32 = vld [vmem:[#allocation2 + $0xa2] ss:$4 sm:$0xff]  ;;  %v3783_v20 = vadd.f32 %v8090_v43, %v3782_v6 }
 0x549   : > { %4091 = vst.msk [vmem:[#allocation2 + $0xd8] sm:$0xff] %vm1817_vm7, %v4729_v47  ;;  %v4154_v3 = vld [vmem:[#allocation2 + $0xa3] ss:$4 sm:$0xff]  ;;  %v4164_v40 = vmax.f32 %v4106_v12, %v4122_v53  ;;  %4089 = vst.msk [vmem:[#allocation2 + $0xc8] sm:$0xff] %vm1817_vm7, %v4732_v54  ;;  %v4734_v17 = vadd.f32 %v8093_v5, %v3791_v23  ;;  %v4614_v50 = vpop.f32.mrb[62].mxu1 }
 0x54a   : > { %v4172_v34 = vmax.f32 %v4138_v32, %v4154_v3  ;;  %v4737_v19 = vadd.f32 %v8093_v5, %v3783_v20  ;;  %v3794_v42 = vadd.f32 %v4614_v50, %v8090_v43  ;;  %v3785_v21 = vpop.f32.mrb[63].mxu1 }
 0x54b   : > { %v4735_v16 = vadd.f32 %v4734_v17, %v8418_v51  ;;  %v3786_v11 = vadd.f32 %v8090_v43, %v3785_v21 }
 0x54c   : > { %v4180_v57 = vmax.f32 %v4164_v40, %v4172_v34  ;;  %v4738_v15 = vadd.f32 %v4737_v19, %v8419_v8  ;;  %v4740_v18 = vadd.f32 %v8093_v5, %v3794_v42 }
 0x54d   : > { %4094 = vst.msk [vmem:[#allocation2 + $0xf0] sm:$0xff] %vm1817_vm7, %v4735_v16  ;;  %v4743_v26 = vadd.f32 %v8093_v5, %v3786_v11 }
 0x54e   : > { %4188 = vst.msk [vmem:[%s8131_s18 + $0x28] sm:$0xff] %vm1817_vm7, %v4180_v57  ;;  %4092 = vst.msk [vmem:[#allocation2 + $0xe0] sm:$0xff] %vm1817_vm7, %v4738_v15  ;;  %v4741_v27 = vadd.f32 %v4740_v18, %v8420_v38 }
 0x54f   : > { %v4744_v52 = vadd.f32 %v4743_v26, %v8421_v49 }
 0x550   : > { %v4108_v41 = vld [vmem:[#allocation2 + $0xc0] ss:$4 sm:$0xff]  ;;  %v4124_v43 = vld [vmem:[#allocation2 + $0xc1] ss:$4 sm:$0xff]  ;;  %v4140_v39 = vld [vmem:[#allocation2 + $0xc2] ss:$4 sm:$0xff] }
 0x551   : > { %4095 = vst.msk [vmem:[#allocation2 + $0xf8] sm:$0xff] %vm1817_vm7, %v4741_v27  ;;  %v4156_v0 = vld [vmem:[#allocation2 + $0xc3] ss:$4 sm:$0xff]  ;;  %v4165_v14 = vmax.f32 %v4108_v41, %v4124_v43  ;;  %4093 = vst.msk [vmem:[#allocation2 + $0xe8] sm:$0xff] %vm1817_vm7, %v4744_v52 }
 0x552   : > { %v4173_v46 = vmax.f32 %v4140_v39, %v4156_v0 }
 0x554   : > { %v4181_v5 = vmax.f32 %v4165_v14, %v4173_v46 }
 0x556   : > { %4189 = vst.msk [vmem:[%s8131_s18 + $0x30] sm:$0xff] %vm1817_vm7, %v4181_v5 }
 0x558   : > { %v4110_v62 = vld [vmem:[#allocation2 + $0xe0] ss:$4 sm:$0xff]  ;;  %v4126_v2 = vld [vmem:[#allocation2 + $0xe1] ss:$4 sm:$0xff]  ;;  %v4142_v33 = vld [vmem:[#allocation2 + $0xe2] ss:$4 sm:$0xff] }
 0x559   : > { %v4158_v24 = vld [vmem:[#allocation2 + $0xe3] ss:$4 sm:$0xff]  ;;  %v4166_v37 = vmax.f32 %v4110_v62, %v4126_v2 }
 0x55a   : > { %v4174_v9 = vmax.f32 %v4142_v33, %v4158_v24 }
 0x55c   : > { %v4182_v61 = vmax.f32 %v4166_v37, %v4174_v9 }
 0x55e   : > { %4190 = vst.msk [vmem:[%s8131_s18 + $0x38] sm:$0xff] %vm1817_vm7, %v4182_v61 }
 0x55f PF: > { %s8422_s11 = sld [smem:[#allocation22_spill]] }
 0x565   : > { %s30_s18 = sadd.s32 1, %s8422_s11  }
 0x566   : > { %p27_p0 = scmp.ge.s32.totalorder %s30_s18, 4  }
 0x568   :  { %29 = sbr.rel (!%p27_p0) target bundleno = 8 (0x8), region = 178 }
 0x56f   :  { %4213 = vsyncpa [#allocation4], 1 }
 0x570   :  { %4215 = vsyncpa [#allocation4 + $0x1], 1 }
 0x571   :  { %4216 = vsyncpa [#allocation6], 1 }
 0x572   :  { %4217 = vsyncpa [#allocation9], 1 }
 0x573   :  { %4218 = vsyncpa [#allocation12], 1 }
 0x574   :  { %4219 = vsyncpa [#allocation15], 1 }

// kernel: net_forward.5
= control target key start
LH: loop header
LB: loop body
LE: loop exit
PB: predicated region body
PF: predicated region fallthrough
CT: control target
= control target key end

     0   :  { %17 = vsyncpa [#allocation3], 0  ;;  %s6818_s0 = inlined_call_operand.vmem [shape: f32[2,12], index: 0, kind: input, shape index: {}]   ;;  %s6819_s1 = inlined_call_operand.hbm [shape: bf16[12,1024], index: 1, kind: input, shape index: {}]   ;;  %s6820_s2 = inlined_call_operand.hbm [shape: f32[1,1024], index: 2, kind: input, shape index: {}]   ;;  %s6821_s3 = inlined_call_operand.hbm [shape: f32[1,1024], index: 3, kind: input, shape index: {}]   ;;  %s6822_s4 = inlined_call_operand.hbm [shape: f32[1,1024], index: 4, kind: input, shape index: {}]   ;;  %s6823_s5 = inlined_call_operand.hbm [shape: bf16[1024,1024], index: 5, kind: input, shape index: {}]   ;;  %s6824_s6 = inlined_call_operand.hbm [shape: f32[1,1024], index: 6, kind: input, shape index: {}]   ;;  %s6825_s7 = inlined_call_operand.hbm [shape: f32[1,1024], index: 7, kind: input, shape index: {}]   ;;  %s6826_s8 = inlined_call_operand.hbm [shape: f32[1,1024], index: 8, kind: input, shape index: {}]   ;;  %s6827_s9 = inlined_call_operand.vmem [shape: bf16[1024,3], index: 9, kind: input, shape index: {}]   ;;  %s6828_s10 = inlined_call_operand.hbm [shape: f32[1,3], index: 10, kind: input, shape index: {}]   ;;  %s6829_s11 = inlined_call_operand.vmem [shape: f32[2,3], index: 11, kind: input, shape index: {}]   ;;  %s6830_s12 = inlined_call_operand.hbm [shape: f32[2,3], index: 12, kind: output, shape index: {}]  }
   0x1   :  { %18 = vsyncpa [#allocation6], 0 }
   0x2   :  { %19 = vsyncpa [#allocation9], 0 }
   0x3   :  { %20 = vsyncpa [#allocation12], 0 }
   0x4   :  { %21 = vsyncpa [#allocation15], 0 }
   0x5   :  { %22 = vsyncpa [#allocation4], 0  ;;  %s6182_s21 = smov [#allocation5]   ;;  %s6183_s23 = smov [#allocation8]  }
   0x6   :  { %s43_s22 = sshll.u32 %s6182_s21, 4  ;;  %s63_s24 = sshll.u32 %s6183_s23, 4  ;;  %s44_s22 = int_to_ptr.vmem [resolvable:$true] %s43_s22  ;;  %s64_s24 = int_to_ptr.vmem [resolvable:$true] %s63_s24 }
   0x7   :  { %s5950_s27 = scalar_lea.hbm %s6820_s2, 128 }
   0x8   :  { %p5951_p0 = scmp.ne.s32.totalorder %s6820_s2, %s5950_s27  ;;  %p5954_p1 = scmp.lt.u32.totalorder %s5950_s27, %s6820_s2 }
   0xa   :  { %p5956_p2 = pnand %p5954_p1, %p5951_p0 }
   0xc   :  { %5959 = shalt.err (!%p5956_p2)
}
   0xd   :  { %s5960_s14 = scalar_lea.vmem %s44_s22, 128  ;;  %p5965_p4 = scmp.lt.s32.totalorder %s44_s22, %s44_s22 }
   0xe   :  { %p5961_p3 = scmp.ne.s32.totalorder %s44_s22, %s5960_s14  ;;  %p5966_p5 = scmp.lt.s32.totalorder %s5960_s14, %s5960_s14 }
  0x10   :  { %p5967_p6 = por %p5966_p5, %p5965_p4 }
  0x12   :  { %p5968_p7 = pnand %p5967_p6, %p5961_p3 }
  0x14   :  { %5971 = shalt.err (!%p5968_p7)
}
  0x15   :  { %46 = dma.hbm_to_vmem [thread:$0]  %s6820_s2, 128, %s44_s22, [#allocation6]  }
  0x16   :  { %s5972_s19 = scalar_lea.hbm %s6822_s4, 128 }
  0x17   :  { %p5973_p8 = scmp.ne.s32.totalorder %s6822_s4, %s5972_s19  ;;  %p5976_p9 = scmp.lt.u32.totalorder %s5972_s19, %s6822_s4 }
  0x19   :  { %p5978_p10 = pnand %p5976_p9, %p5973_p8 }
  0x1b   :  { %5981 = shalt.err (!%p5978_p10)
}
  0x1c   :  { %s5982_s26 = scalar_lea.vmem %s64_s24, 128  ;;  %p5987_p12 = scmp.lt.s32.totalorder %s64_s24, %s64_s24 }
  0x1d   :  { %p5983_p11 = scmp.ne.s32.totalorder %s64_s24, %s5982_s26  ;;  %p5988_p13 = scmp.lt.s32.totalorder %s5982_s26, %s5982_s26 }
  0x1f   :  { %p5989_p0 = por %p5988_p13, %p5987_p12 }
  0x21   :  { %p5990_p1 = pnand %p5989_p0, %p5983_p11 }
  0x23   :  { %5993 = shalt.err (!%p5990_p1)
}
  0x24   :  { %66 = dma.hbm_to_vmem [thread:$0]  %s6822_s4, 128, %s64_s24, [#allocation9]  }
  0x25   :  { %s6184_s27 = smov [#allocation11]   ;;  %s6185_s29 = smov [#allocation14]  }
  0x26   :  { %s85_s28 = sshll.u32 %s6184_s27, 4  ;;  %s105_s30 = sshll.u32 %s6185_s29, 4  ;;  %s86_s28 = int_to_ptr.vmem [resolvable:$true] %s85_s28  ;;  %s106_s30 = int_to_ptr.vmem [resolvable:$true] %s105_s30 }
  0x27   :  { %s5994_s15 = scalar_lea.hbm %s6824_s6, 128 }
  0x28   :  { %p5995_p2 = scmp.ne.s32.totalorder %s6824_s6, %s5994_s15  ;;  %p5998_p3 = scmp.lt.u32.totalorder %s5994_s15, %s6824_s6 }
  0x2a   :  { %p6000_p4 = pnand %p5998_p3, %p5995_p2 }
  0x2c   :  { %6003 = shalt.err (!%p6000_p4)
}
  0x2d   :  { %s6004_s4 = scalar_lea.vmem %s86_s28, 128  ;;  %p6009_p6 = scmp.lt.s32.totalorder %s86_s28, %s86_s28 }
  0x2e   :  { %p6005_p5 = scmp.ne.s32.totalorder %s86_s28, %s6004_s4  ;;  %p6010_p7 = scmp.lt.s32.totalorder %s6004_s4, %s6004_s4 }
  0x30   :  { %p6011_p8 = por %p6010_p7, %p6009_p6 }
  0x32   :  { %p6012_p9 = pnand %p6011_p8, %p6005_p5 }
  0x34   :  { %6015 = shalt.err (!%p6012_p9)
}
  0x35   :  { %88 = dma.hbm_to_vmem [thread:$0]  %s6824_s6, 128, %s86_s28, [#allocation12]  }
  0x36   :  { %s6016_s25 = scalar_lea.hbm %s6826_s8, 128 }
  0x37   :  { %p6017_p10 = scmp.ne.s32.totalorder %s6826_s8, %s6016_s25  ;;  %p6020_p11 = scmp.lt.u32.totalorder %s6016_s25, %s6826_s8 }
  0x39   :  { %p6022_p12 = pnand %p6020_p11, %p6017_p10 }
  0x3b   :  { %6025 = shalt.err (!%p6022_p12)
}
  0x3c   :  { %s6026_s29 = scalar_lea.vmem %s106_s30, 128  ;;  %p6031_p0 = scmp.lt.s32.totalorder %s106_s30, %s106_s30 }
  0x3d   :  { %p6027_p13 = scmp.ne.s32.totalorder %s106_s30, %s6026_s29  ;;  %p6032_p1 = scmp.lt.s32.totalorder %s6026_s29, %s6026_s29 }
  0x3f   :  { %p6033_p2 = por %p6032_p1, %p6031_p0 }
  0x41   :  { %p6034_p3 = pnand %p6033_p2, %p6027_p13 }
  0x43   :  { %6037 = shalt.err (!%p6034_p3)
}
  0x44   :  { %108 = dma.hbm_to_vmem [thread:$0]  %s6826_s8, 128, %s106_s30, [#allocation15]  }
  0x45   :  { %s6186_s13 = smov [#allocation2]   ;;  %s6038_s17 = scalar_lea.hbm %s6819_s1, 1024 }
  0x46   :  { %s30_s14 = sshll.u32 %s6186_s13, 4  ;;  %p6039_p4 = scmp.ne.s32.totalorder %s6819_s1, %s6038_s17  ;;  %s31_s14 = int_to_ptr.vmem [resolvable:$true] %s30_s14 }
  0x47   :  { %p6042_p5 = scmp.lt.u32.totalorder %s6038_s17, %s6819_s1 }
  0x49   :  { %p6044_p6 = pnand %p6042_p5, %p6039_p4 }
  0x4b   :  { %6047 = shalt.err (!%p6044_p6)
}
  0x4c   :  { %s6048_s20 = scalar_lea.vmem %s31_s14, 1024  ;;  %p6053_p8 = scmp.lt.s32.totalorder %s31_s14, %s31_s14 }
  0x4d   :  { %p6049_p7 = scmp.ne.s32.totalorder %s31_s14, %s6048_s20  ;;  %p6054_p9 = scmp.lt.s32.totalorder %s6048_s20, %s6048_s20 }
  0x4f   :  { %p6055_p10 = por %p6054_p9, %p6053_p8 }
  0x51   :  { %p6056_p11 = pnand %p6055_p10, %p6049_p7 }
  0x53   :  { %6059 = shalt.err (!%p6056_p11)
}
  0x54   :  { %s6187_s8 = smov 512   ;;  %s6188_s30 = smov 32  }
  0x55   :  { %36 = dma.hbm_to_vmem [thread:$0]  %s6819_s1, 1024, %s31_s14, [#allocation3], %s6187_s8, %s6187_s8, %s6188_s30  }
  0x56   :  { %s6189_s25 = smov [#allocation7]   ;;  %s6190_s2 = smov [#allocation10]  }
  0x57   :  { %s53_s26 = sshll.u32 %s6189_s25, 4  ;;  %s72_s22 = sshll.u32 %s6190_s2, 4  ;;  %s54_s26 = int_to_ptr.vmem [resolvable:$true] %s53_s26  ;;  %s73_s22 = int_to_ptr.vmem [resolvable:$true] %s72_s22 }
  0x58   :  { %s6060_s6 = scalar_lea.hbm %s6821_s3, 128 }
  0x59   :  { %p6061_p12 = scmp.ne.s32.totalorder %s6821_s3, %s6060_s6  ;;  %p6064_p13 = scmp.lt.u32.totalorder %s6060_s6, %s6821_s3 }
  0x5b   :  { %p6066_p0 = pnand %p6064_p13, %p6061_p12 }
  0x5d   :  { %6069 = shalt.err (!%p6066_p0)
}
  0x5e   :  { %s6070_s1 = scalar_lea.vmem %s54_s26, 128  ;;  %p6075_p2 = scmp.lt.s32.totalorder %s54_s26, %s54_s26 }
  0x5f   :  { %p6071_p1 = scmp.ne.s32.totalorder %s54_s26, %s6070_s1  ;;  %p6076_p3 = scmp.lt.s32.totalorder %s6070_s1, %s6070_s1 }
  0x61   :  { %p6077_p4 = por %p6076_p3, %p6075_p2 }
  0x63   :  { %p6078_p5 = pnand %p6077_p4, %p6071_p1 }
  0x65   :  { %6081 = shalt.err (!%p6078_p5)
}
  0x66   :  { %56 = dma.hbm_to_vmem [thread:$0]  %s6821_s3, 128, %s54_s26, [#allocation6]  }
  0x67   :  { %s6082_s4 = scalar_lea.hbm %s6823_s5, 65536 }
  0x68   :  { %p6083_p6 = scmp.ne.s32.totalorder %s6823_s5, %s6082_s4  ;;  %p6086_p7 = scmp.lt.u32.totalorder %s6082_s4, %s6823_s5 }
  0x6a   :  { %p6088_p8 = pnand %p6086_p7, %p6083_p6 }
  0x6c   :  { %6091 = shalt.err (!%p6088_p8)
}
  0x6d   :  { %s6092_s25 = scalar_lea.vmem %s73_s22, 65536  ;;  %p6097_p10 = scmp.lt.s32.totalorder %s73_s22, %s73_s22 }
  0x6e   :  { %p6093_p9 = scmp.ne.s32.totalorder %s73_s22, %s6092_s25  ;;  %p6098_p11 = scmp.lt.s32.totalorder %s6092_s25, %s6092_s25 }
  0x70   :  { %p6099_p12 = por %p6098_p11, %p6097_p10 }
  0x72   :  { %p6100_p13 = pnand %p6099_p12, %p6093_p9 }
  0x74   :  { %6103 = shalt.err (!%p6100_p13)
}
  0x75   :  { %78 = dma.hbm_to_vmem [thread:$0]  %s6823_s5, 65536, %s73_s22, [#allocation9], %s6187_s8, %s6187_s8, %s6188_s30  }
  0x76   :  { %s6191_s2 = smov [#allocation13]   ;;  %s6192_s29 = smov [#allocation16]  }
  0x77   :  { %s95_s27 = sshll.u32 %s6191_s2, 4  ;;  %s117_s6 = sshll.u32 %s6192_s29, 4  ;;  %s96_s27 = int_to_ptr.vmem [resolvable:$true] %s95_s27  ;;  %s118_s6 = int_to_ptr.vmem [resolvable:$true] %s117_s6 }
  0x78   :  { %s6104_s15 = scalar_lea.hbm %s6825_s7, 128 }
  0x79   :  { %p6105_p0 = scmp.ne.s32.totalorder %s6825_s7, %s6104_s15  ;;  %p6108_p1 = scmp.lt.u32.totalorder %s6104_s15, %s6825_s7 }
  0x7b   :  { %p6110_p2 = pnand %p6108_p1, %p6105_p0 }
  0x7d   :  { %6113 = shalt.err (!%p6110_p2)
}
  0x7e   :  { %s6114_s5 = scalar_lea.vmem %s96_s27, 128  ;;  %p6119_p4 = scmp.lt.s32.totalorder %s96_s27, %s96_s27 }
  0x7f   :  { %p6115_p3 = scmp.ne.s32.totalorder %s96_s27, %s6114_s5  ;;  %p6120_p5 = scmp.lt.s32.totalorder %s6114_s5, %s6114_s5 }
  0x81   :  { %p6121_p6 = por %p6120_p5, %p6119_p4 }
  0x83   :  { %p6122_p7 = pnand %p6121_p6, %p6115_p3 }
  0x85   :  { %6125 = shalt.err (!%p6122_p7)
}
  0x86   :  { %98 = dma.hbm_to_vmem [thread:$0]  %s6825_s7, 128, %s96_s27, [#allocation12]  }
  0x87   :  { %s6126_s19 = scalar_lea.hbm %s6828_s10, 16 }
  0x88   :  { %p6127_p8 = scmp.ne.s32.totalorder %s6828_s10, %s6126_s19  ;;  %p6130_p9 = scmp.lt.u32.totalorder %s6126_s19, %s6828_s10 }
  0x8a   :  { %p6132_p10 = pnand %p6130_p9, %p6127_p8 }
  0x8c   :  { %6135 = shalt.err (!%p6132_p10)
}
  0x8d   :  { %s6136_s23 = scalar_lea.vmem %s118_s6, 16  ;;  %s6140_s25 = scalar_lea.vmem %s118_s6, 32 }
  0x8e   :  { %p6137_p11 = scmp.ne.s32.totalorder %s118_s6, %s6136_s23  ;;  %p6141_p12 = scmp.lt.s32.totalorder %s118_s6, %s118_s6 }
  0x8f   :  { %p6142_p13 = scmp.lt.s32.totalorder %s6140_s25, %s6136_s23 }
  0x91   :  { %p6143_p0 = por %p6142_p13, %p6141_p12 }
  0x93   :  { %p6144_p1 = pnand %p6143_p0, %p6137_p11 }
  0x95   :  { %6147 = shalt.err (!%p6144_p1)
}
  0x96   :  { %120 = dma.hbm_to_vmem [thread:$0]  %s6828_s10, 16, %s118_s6, [#allocation15]  }
  0x97   :  { %6170 = dma.done.wait [#allocation3], 1024  }
  0x98   :  { %6171 = vsyncadd [#allocation3], 4294966272 }
  0x99   :  { %6172 = dma.done.wait [#allocation6], 256  }
  0x9a   :  { %6173 = vsyncadd [#allocation6], 4294967040 }
  0x9b   :  { %6174 = dma.done.wait [#allocation9], 65664  }
  0x9c   :  { %6175 = vsyncadd [#allocation9], 4294901632 }
  0x9d   :  { %6176 = dma.done.wait [#allocation12], 256  }
  0x9e   :  { %6177 = vsyncadd [#allocation12], 4294967040 }
  0x9f   :  { %6178 = dma.done.wait [#allocation15], 144  }
  0xa0   :  { %6179 = vsyncadd [#allocation15], 4294967152  ;;  %v6193_v0 = vmov 0   ;;  %v153_v1 = vld [vmem:[#allocation2] sm:$0xff]  ;;  %vm239_vm0 = vcmask 1045504   ;;  %v154_v6 = vld [vmem:[#allocation2 + $0x8] sm:$0xff] }
  0xa1   :  { %296 = vmatprep.mubr.bf16.mxu0 %v6193_v0  ;;  %337 = vmatprep.mubr.bf16.mxu1 %v6193_v0  ;;  %v157_v2 = vld [vmem:[#allocation2 + $0x20] sm:$0x33]  ;;  %v158_v7 = vld [vmem:[#allocation2 + $0x28] sm:$0x33]  ;;  %v155_v8 = vld [vmem:[#allocation2 + $0x10] sm:$0xff]  ;;  %vm235_vm1 = vcmask 97280  }
  0xa2   :  { %v151_v3 = vld [vmem:[%s6818_s0] sm:$0x3]  ;;  %v5134_v4 = vcombine.high %v153_v1, %v157_v2  ;;  %v5133_v5 = vcombine.low %v153_v1, %v157_v2  ;;  %v5136_v10 = vcombine.high %v154_v6, %v158_v7  ;;  %v5135_v11 = vcombine.low %v154_v6, %v158_v7  ;;  %v159_v12 = vld [vmem:[#allocation2 + $0x30] sm:$0x33]  ;;  %v156_v13 = vld [vmem:[#allocation2 + $0x18] sm:$0xff]  ;;  %s6194_s19 = smov [#allocation17]  }
  0xa3   :  { %v152_v9 = vpack.c.bf16 %v151_v3, %v151_v3  ;;  %v160_v14 = vld [vmem:[#allocation2 + $0x38] sm:$0x33]  ;;  %v5138_v16 = vcombine.high %v155_v8, %v159_v12  ;;  %v5137_v17 = vcombine.low %v155_v8, %v159_v12  ;;  %v545_v23 = vld [vmem:[#allocation10 + $0x8] sm:$0xff]  ;;  %s5120_s4 = sshll.u32 %s6194_s19, 4  ;;  %vm5112_vm2 = vcmask 17408   ;;  %s5121_s4 = int_to_ptr.vmem [resolvable:$true] %s5120_s4 }
  0xa4   :  { %5141 = vmatprep.subr.msk.bf16.mxu0 %vm239_vm0, %v5134_v4  ;;  %v241_v15 = vsel %vm239_vm0, %v5133_v5, 0  ;;  %v5140_v18 = vcombine.high %v156_v13, %v160_v14  ;;  %v544_v19 = vld [vmem:[#allocation10] sm:$0xff]  ;;  %5143 = vmatprep.subr.msk.bf16.mxu1 %vm239_vm0, %v5136_v10  ;;  %v247_v21 = vsel %vm239_vm0, %v5135_v11, 0  ;;  %v5139_v22 = vcombine.low %v156_v13, %v160_v14  ;;  %v549_v24 = vld [vmem:[#allocation10 + $0x28] sm:$0xff]  ;;  %s6148_s24 = scalar_lea.vmem %s5121_s4, 32  ;;  %p6153_p3 = scmp.lt.s32.totalorder %s5121_s4, %s5121_s4 }
  0xa5   :  { %v548_v20 = vld [vmem:[#allocation10 + $0x20] sm:$0xff]  ;;  %265 = vmatpush1.bf16.msra.mxu0 %v241_v15  ;;  %306 = vmatpush1.bf16.msra.mxu1 %v247_v21  ;;  %v253_v25 = vsel %vm239_vm0, %v5137_v17, 0  ;;  %v5152_v28 = vcombine.high %v545_v23, %v549_v24  ;;  %v553_v31 = vld [vmem:[#allocation10 + $0x48] sm:$0xff]  ;;  %v5151_v34 = vcombine.low %v545_v23, %v549_v24  ;;  %p6149_p2 = scmp.ne.s32.totalorder %s5121_s4, %s6148_s24  ;;  %p6154_p4 = scmp.lt.s32.totalorder %s6148_s24, %s6148_s24 }
  0xa6   :  { %5145 = vmatprep.subr.msk.bf16.mxu0 %vm239_vm0, %v5138_v16  ;;  %5147 = vmatprep.subr.msk.bf16.mxu1 %vm239_vm0, %v5140_v18  ;;  %v259_v26 = vsel %vm239_vm0, %v5139_v22, 0  ;;  %v5150_v27 = vcombine.high %v544_v19, %v548_v20  ;;  %v552_v29 = vld [vmem:[#allocation10 + $0x40] sm:$0xff]  ;;  %v557_v32 = vld [vmem:[#allocation10 + $0x68] sm:$0xff]  ;;  %v5149_v33 = vcombine.low %v544_v19, %v548_v20 }
  0xa7   :  { %v556_v30 = vld [vmem:[#allocation10 + $0x60] sm:$0xff]  ;;  %v5160_v36 = vcombine.high %v553_v31, %v557_v32  ;;  %v561_v39 = vld [vmem:[#allocation10 + $0x88] sm:$0xff]  ;;  %v5159_v42 = vcombine.low %v553_v31, %v557_v32  ;;  %p6155_p5 = por %p6154_p4, %p6153_p3 }
  0xa8   :  { %5142 = vmatmul.mubr.msk.bf16.vlgmr.msra.gmra.mrb[0].mxu0 %vm235_vm1, %v152_v9  ;;  %5144 = vmatmul.mubr.msk.bf16.vlgmr.msra.gmra.mrb[0].mxu1 %vm235_vm1, %v152_v9  ;;  %v5158_v35 = vcombine.high %v552_v29, %v556_v30  ;;  %v560_v37 = vld [vmem:[#allocation10 + $0x80] sm:$0xff]  ;;  %v565_v40 = vld [vmem:[#allocation10 + $0xa8] sm:$0xff]  ;;  %v5157_v41 = vcombine.low %v552_v29, %v556_v30 }
  0xa9   :  { %347 = vmatpush1.bf16.msra.mxu0 %v253_v25  ;;  %378 = vmatprep.mubr.bf16.mxu0 %v6193_v0  ;;  %v564_v38 = vld [vmem:[#allocation10 + $0xa0] sm:$0xff]  ;;  %v5168_v44 = vcombine.high %v561_v39, %v565_v40  ;;  %v569_v47 = vld [vmem:[#allocation10 + $0xc8] sm:$0xff]  ;;  %v5167_v52 = vcombine.low %v561_v39, %v565_v40  ;;  %p6156_p6 = pnand %p6155_p5, %p6149_p2 }
  0xaa   :  { %388 = vmatpush1.bf16.msra.mxu1 %v259_v26  ;;  %419 = vmatprep.mubr.bf16.mxu1 %v6193_v0  ;;  %v5166_v43 = vcombine.high %v560_v37, %v564_v38  ;;  %v568_v45 = vld [vmem:[#allocation10 + $0xc0] sm:$0xff]  ;;  %v573_v48 = vld [vmem:[#allocation10 + $0xe8] sm:$0xff]  ;;  %v5165_v49 = vcombine.low %v560_v37, %v564_v38 }
  0xab   :  { %3658 = vmatprep.subr.bf16.mxu0 %v5150_v27  ;;  %3822 = vmatprep.subr.bf16.mxu1 %v5152_v28  ;;  %v572_v46 = vld [vmem:[#allocation10 + $0xe0] sm:$0xff]  ;;  %v577_v54 = vld [vmem:[#allocation10 + $0x108] sm:$0xff]  ;;  %v5176_v56 = vcombine.high %v569_v47, %v573_v48  ;;  %v5175_v60 = vcombine.low %v569_v47, %v573_v48 }
  0xac   :  { %v576_v50 = vld [vmem:[#allocation10 + $0x100] sm:$0xff]  ;;  %v5174_v53 = vcombine.high %v568_v45, %v572_v46  ;;  %v581_v55 = vld [vmem:[#allocation10 + $0x128] sm:$0xff]  ;;  %v5173_v57 = vcombine.low %v568_v45, %v572_v46 }
  0xad   :  { %v580_v51 = vld [vmem:[#allocation10 + $0x120] sm:$0xff]  ;;  %v585_v62 = vld [vmem:[#allocation10 + $0x148] sm:$0xff]  ;;  %v5184_v0 = vcombine.high %v577_v54, %v581_v55  ;;  %v5183_v4 = vcombine.low %v577_v54, %v581_v55 }
  0xae   :  { %v584_v58 = vld [vmem:[#allocation10 + $0x140] sm:$0xff]  ;;  %v5182_v61 = vcombine.high %v576_v50, %v580_v51  ;;  %v589_v63 = vld [vmem:[#allocation10 + $0x168] sm:$0xff]  ;;  %v5181_v1 = vcombine.low %v576_v50, %v580_v51 }
  0xaf   :  { %v588_v59 = vld [vmem:[#allocation10 + $0x160] sm:$0xff]  ;;  %v593_v6 = vld [vmem:[#allocation10 + $0x188] sm:$0xff]  ;;  %v5192_v8 = vcombine.high %v585_v62, %v589_v63  ;;  %v5191_v12 = vcombine.low %v585_v62, %v589_v63 }
  0xb0   :  { %5146 = vmatmul.mubr.msk.bf16.vlgmr.msra.gmra.mrb[4].mxu0 %vm235_vm1, %v152_v9  ;;  %5148 = vmatmul.mubr.msk.bf16.vlgmr.msra.gmra.mrb[4].mxu1 %vm235_vm1, %v152_v9  ;;  %v592_v2 = vld [vmem:[#allocation10 + $0x180] sm:$0xff]  ;;  %v5190_v5 = vcombine.high %v584_v58, %v588_v59  ;;  %v597_v7 = vld [vmem:[#allocation10 + $0x1a8] sm:$0xff]  ;;  %v5189_v9 = vcombine.low %v584_v58, %v588_v59 }
  0xb1   :  { %3659 = vmatpush1.bf16.msra.mxu0 %v5149_v33  ;;  %3823 = vmatpush1.bf16.msra.mxu1 %v5151_v34  ;;  %v596_v3 = vld [vmem:[#allocation10 + $0x1a0] sm:$0xff]  ;;  %v601_v14 = vld [vmem:[#allocation10 + $0x1c8] sm:$0xff]  ;;  %v5200_v16 = vcombine.high %v593_v6, %v597_v7  ;;  %v5199_v20 = vcombine.low %v593_v6, %v597_v7 }
  0xb2   :  { %3660 = vmatprep.subr.bf16.mxu0 %v5158_v35  ;;  %3824 = vmatprep.subr.bf16.mxu1 %v5160_v36  ;;  %v600_v10 = vld [vmem:[#allocation10 + $0x1c0] sm:$0xff]  ;;  %v5198_v13 = vcombine.high %v592_v2, %v596_v3  ;;  %v605_v15 = vld [vmem:[#allocation10 + $0x1e8] sm:$0xff]  ;;  %v5197_v17 = vcombine.low %v592_v2, %v596_v3 }
  0xb3   :  { %v604_v11 = vld [vmem:[#allocation10 + $0x1e0] sm:$0xff]  ;;  %v609_v22 = vld [vmem:[#allocation10 + $0x208] sm:$0xff]  ;;  %v5208_v24 = vcombine.high %v601_v14, %v605_v15  ;;  %v5207_v28 = vcombine.low %v601_v14, %v605_v15 }
  0xb4   :  { %v608_v18 = vld [vmem:[#allocation10 + $0x200] sm:$0xff]  ;;  %v5206_v21 = vcombine.high %v600_v10, %v604_v11  ;;  %v613_v23 = vld [vmem:[#allocation10 + $0x228] sm:$0xff]  ;;  %v5205_v25 = vcombine.low %v600_v10, %v604_v11 }
  0xb5   :  { %3661 = vmatpush1.bf16.msra.mxu0 %v5157_v41  ;;  %3825 = vmatpush1.bf16.msra.mxu1 %v5159_v42  ;;  %v612_v19 = vld [vmem:[#allocation10 + $0x220] sm:$0xff]  ;;  %v617_v30 = vld [vmem:[#allocation10 + $0x248] sm:$0xff]  ;;  %v5216_v32 = vcombine.high %v609_v22, %v613_v23  ;;  %v5215_v36 = vcombine.low %v609_v22, %v613_v23 }
  0xb6   :  { %3662 = vmatprep.subr.bf16.mxu0 %v5166_v43  ;;  %3826 = vmatprep.subr.bf16.mxu1 %v5168_v44  ;;  %v616_v26 = vld [vmem:[#allocation10 + $0x240] sm:$0xff]  ;;  %v5214_v29 = vcombine.high %v608_v18, %v612_v19  ;;  %v621_v31 = vld [vmem:[#allocation10 + $0x268] sm:$0xff]  ;;  %v5213_v33 = vcombine.low %v608_v18, %v612_v19 }
  0xb7   :  { %v620_v27 = vld [vmem:[#allocation10 + $0x260] sm:$0xff]  ;;  %v625_v38 = vld [vmem:[#allocation10 + $0x288] sm:$0xff]  ;;  %v5224_v40 = vcombine.high %v617_v30, %v621_v31  ;;  %v5223_v44 = vcombine.low %v617_v30, %v621_v31  ;;  %v163_v31 = vlaneseq }
  0xb8   :  { %v624_v34 = vld [vmem:[#allocation10 + $0x280] sm:$0xff]  ;;  %v5222_v37 = vcombine.high %v616_v26, %v620_v27  ;;  %v629_v39 = vld [vmem:[#allocation10 + $0x2a8] sm:$0xff]  ;;  %v5221_v41 = vcombine.low %v616_v26, %v620_v27 }
  0xb9   :  { %3663 = vmatpush1.bf16.msra.mxu0 %v5165_v49  ;;  %3827 = vmatpush1.bf16.msra.mxu1 %v5167_v52  ;;  %v628_v35 = vld [vmem:[#allocation10 + $0x2a0] sm:$0xff]  ;;  %v633_v46 = vld [vmem:[#allocation10 + $0x2c8] sm:$0xff]  ;;  %v5232_v48 = vcombine.high %v625_v38, %v629_v39  ;;  %v5231_v52 = vcombine.low %v625_v38, %v629_v39  ;;  %v6422_v39 = vld [vmem:[#allocation8] sm:$0xff] }
  0xba   :  { %3664 = vmatprep.subr.bf16.mxu0 %v5174_v53  ;;  %3828 = vmatprep.subr.bf16.mxu1 %v5176_v56  ;;  %v632_v42 = vld [vmem:[#allocation10 + $0x2c0] sm:$0xff]  ;;  %v5230_v45 = vcombine.high %v624_v34, %v628_v35  ;;  %v637_v47 = vld [vmem:[#allocation10 + $0x2e8] sm:$0xff]  ;;  %v5229_v49 = vcombine.low %v624_v34, %v628_v35 }
  0xbb   :  { %v636_v43 = vld [vmem:[#allocation10 + $0x2e0] sm:$0xff]  ;;  %v641_v54 = vld [vmem:[#allocation10 + $0x308] sm:$0xff]  ;;  %v5240_v56 = vcombine.high %v633_v46, %v637_v47  ;;  %v5239_v58 = vcombine.low %v633_v46, %v637_v47 }
  0xbc   :  { %v640_v50 = vld [vmem:[#allocation10 + $0x300] sm:$0xff]  ;;  %v5238_v53 = vcombine.high %v632_v42, %v636_v43  ;;  %v645_v55 = vld [vmem:[#allocation10 + $0x328] sm:$0xff] }
  0xbd   :  { %3665 = vmatpush1.bf16.msra.mxu0 %v5173_v57  ;;  %3829 = vmatpush1.bf16.msra.mxu1 %v5175_v60  ;;  %v644_v51 = vld [vmem:[#allocation10 + $0x320] sm:$0xff]  ;;  %v5237_v57 = vcombine.low %v632_v42, %v636_v43  ;;  %v5248_v60 = vcombine.high %v641_v54, %v645_v55  ;;  %v5247_v62 = vcombine.low %v641_v54, %v645_v55  ;;  %v653_v3 = vld [vmem:[#allocation10 + $0x368] sm:$0xff] }
  0xbe   :  { %3666 = vmatprep.subr.bf16.mxu0 %v5182_v61  ;;  %3830 = vmatprep.subr.bf16.mxu1 %v5184_v0  ;;  %v5246_v59 = vcombine.high %v640_v50, %v644_v51  ;;  %v5245_v61 = vcombine.low %v640_v50, %v644_v51  ;;  %v648_v63 = vld [vmem:[#allocation10 + $0x340] sm:$0xff]  ;;  %v661_v11 = vld [vmem:[#allocation10 + $0x3a8] sm:$0xff] }
  0xbf   :  { %v652_v0 = vld [vmem:[#allocation10 + $0x360] sm:$0xff]  ;;  %v669_v19 = vld [vmem:[#allocation10 + $0x3e8] sm:$0xff] }
  0xc0   :  { %v5254_v2 = vcombine.high %v648_v63, %v652_v0  ;;  %v656_v7 = vld [vmem:[#allocation10 + $0x380] sm:$0xff]  ;;  %v6397_v27 = vld [vmem:[#allocation10 + $0x428] sm:$0xff] }
  0xc1   :  { %3667 = vmatpush1.bf16.msra.mxu0 %v5181_v1  ;;  %3831 = vmatpush1.bf16.msra.mxu1 %v5183_v4  ;;  %v649_v1 = vld [vmem:[#allocation10 + $0x348] sm:$0xff]  ;;  %v5253_v4 = vcombine.low %v648_v63, %v652_v0  ;;  %v664_v15 = vld [vmem:[#allocation10 + $0x3c0] sm:$0xff] }
  0xc2   :  { %3668 = vmatprep.subr.bf16.mxu0 %v5190_v5  ;;  %3832 = vmatprep.subr.bf16.mxu1 %v5192_v8  ;;  %v5255_v5 = vcombine.low %v649_v1, %v653_v3  ;;  %v5256_v6 = vcombine.high %v649_v1, %v653_v3  ;;  %v660_v8 = vld [vmem:[#allocation10 + $0x3a0] sm:$0xff]  ;;  %v6410_v34 = vld [vmem:[#allocation5] sm:$0xff] }
  0xc3   :  { %v5262_v10 = vcombine.high %v656_v7, %v660_v8  ;;  %v6389_v23 = vld [vmem:[#allocation10 + $0x400] sm:$0xff] }
  0xc4   :  { %v680_v1 = vld [vmem:[#allocation10 + $0x440] sm:$0xff] }
  0xc5   :  { %3669 = vmatpush1.bf16.msra.mxu0 %v5189_v9  ;;  %3833 = vmatpush1.bf16.msra.mxu1 %v5191_v12  ;;  %v657_v9 = vld [vmem:[#allocation10 + $0x388] sm:$0xff]  ;;  %v5261_v12 = vcombine.low %v656_v7, %v660_v8 }
  0xc6   :  { %3670 = vmatprep.subr.bf16.mxu0 %v5198_v13  ;;  %3834 = vmatprep.subr.bf16.mxu1 %v5200_v16  ;;  %v5263_v13 = vcombine.low %v657_v9, %v661_v11  ;;  %v5264_v14 = vcombine.high %v657_v9, %v661_v11  ;;  %v668_v16 = vld [vmem:[#allocation10 + $0x3e0] sm:$0xff] }
  0xc7   :  { %v5270_v18 = vcombine.high %v664_v15, %v668_v16 }
  0xc9   :  { %3671 = vmatpush1.bf16.msra.mxu0 %v5197_v17  ;;  %3835 = vmatpush1.bf16.msra.mxu1 %v5199_v20  ;;  %v665_v17 = vld [vmem:[#allocation10 + $0x3c8] sm:$0xff]  ;;  %v5269_v20 = vcombine.low %v664_v15, %v668_v16  ;;  %v688_v15 = vld [vmem:[#allocation10 + $0x480] sm:$0xff] }
  0xca   :  { %3672 = vmatprep.subr.bf16.mxu0 %v5206_v21  ;;  %3836 = vmatprep.subr.bf16.mxu1 %v5208_v24  ;;  %v5271_v21 = vcombine.low %v665_v17, %v669_v19  ;;  %v5272_v22 = vcombine.high %v665_v17, %v669_v19  ;;  %v6391_v24 = vld [vmem:[#allocation10 + $0x420] sm:$0xff]  ;;  %v693_v19 = vld [vmem:[#allocation10 + $0x4a8] sm:$0xff] }
  0xcb   :  { %v5278_v26 = vcombine.high %v6389_v23, %v6391_v24  ;;  %v692_v17 = vld [vmem:[#allocation10 + $0x4a0] sm:$0xff] }
  0xcd   :  { %3673 = vmatpush1.bf16.msra.mxu0 %v5205_v25  ;;  %3837 = vmatpush1.bf16.msra.mxu1 %v5207_v28  ;;  %v6393_v25 = vld [vmem:[#allocation10 + $0x408] sm:$0xff]  ;;  %v5277_v28 = vcombine.low %v6389_v23, %v6391_v24  ;;  %v5294_v23 = vcombine.high %v688_v15, %v692_v17 }
  0xce   :  { %3674 = vmatprep.subr.bf16.mxu0 %v5214_v29  ;;  %3838 = vmatprep.subr.bf16.mxu1 %v5216_v32  ;;  %v5279_v29 = vcombine.low %v6393_v25, %v6397_v27  ;;  %v5280_v30 = vcombine.high %v6393_v25, %v6397_v27  ;;  %v6405_v32 = vshrl.u32 %v163_v31, 7  ;;  %v696_v25 = vld [vmem:[#allocation10 + $0x4c0] sm:$0xff]  ;;  %v697_v27 = vld [vmem:[#allocation10 + $0x4c8] sm:$0xff]  ;;  %v5293_v31 = vcombine.low %v688_v15, %v692_v17 }
  0xcf   :  { %v736_v17 = vld [vmem:[#allocation10 + $0x600] sm:$0xff] }
  0xd0   :  { %v6413_v35 = vsub.s32 1, %v6405_v32 }
  0xd1   :  { %3675 = vmatpush1.bf16.msra.mxu0 %v5213_v33  ;;  %3839 = vmatpush1.bf16.msra.mxu1 %v5215_v36  ;;  %v6408_v33 = vsub.s32 0, %v6405_v32  ;;  %v6416_v36 = vsub.s32 3, %v6405_v32 }
  0xd2   :  { %3676 = vmatprep.subr.bf16.mxu0 %v5222_v37  ;;  %3840 = vmatprep.subr.bf16.mxu1 %v5224_v40  ;;  %v6418_v37 = vld [vmem:[#allocation7] sm:$0xff]  ;;  %v170_v40 = vrot.slane %v6410_v34, %v6413_v35  ;;  %v487_v51 = vrot.slane %v6422_v39, %v6413_v35 }
  0xd3   :  { %v166_v38 = vrot.slane %v6410_v34, %v6408_v33  ;;  %v178_v42 = vrot.slane %v6410_v34, %v6416_v36  ;;  %v483_v46 = vrot.slane %v6422_v39, %v6408_v33 }
  0xd5   :  { %3677 = vmatpush1.bf16.msra.mxu0 %v5221_v41  ;;  %3841 = vmatpush1.bf16.msra.mxu1 %v5223_v44  ;;  %v433_v41 = vrot.slane %v6418_v37, %v6408_v33  ;;  %v437_v44 = vrot.slane %v6418_v37, %v6413_v35 }
  0xd6   :  { %3678 = vmatprep.subr.bf16.mxu0 %v5230_v45  ;;  %3842 = vmatprep.subr.bf16.mxu1 %v5232_v48 }
  0xd9   :  { %3679 = vmatpush1.bf16.msra.mxu0 %v5229_v49  ;;  %3843 = vmatpush1.bf16.msra.mxu1 %v5231_v52  ;;  %v445_v49 = vrot.slane %v6418_v37, %v6416_v36 }
  0xda   :  { %3680 = vmatprep.subr.bf16.mxu0 %v5238_v53  ;;  %3844 = vmatprep.subr.bf16.mxu1 %v5240_v56 }
  0xdd   :  { %3681 = vmatpush1.bf16.msra.mxu0 %v5237_v57  ;;  %3845 = vmatpush1.bf16.msra.mxu1 %v5239_v58  ;;  %v495_v57 = vrot.slane %v6422_v39, %v6416_v36 }
  0xde   :  { %3682 = vmatprep.subr.bf16.mxu0 %v5246_v59  ;;  %3846 = vmatprep.subr.bf16.mxu1 %v5248_v60 }
  0xe1   :  { %3683 = vmatpush1.bf16.msra.mxu0 %v5245_v61  ;;  %3847 = vmatpush1.bf16.msra.mxu1 %v5247_v62 }
  0xe2   :  { %3684 = vmatprep.subr.bf16.mxu0 %v5254_v2  ;;  %3848 = vmatprep.subr.bf16.mxu1 %v5256_v6  ;;  %v685_v6 = vld [vmem:[#allocation10 + $0x468] sm:$0xff] }
  0xe5   :  { %3685 = vmatpush1.bf16.msra.mxu0 %v5253_v4  ;;  %3849 = vmatpush1.bf16.msra.mxu1 %v5255_v5  ;;  %v684_v4 = vld [vmem:[#allocation10 + $0x460] sm:$0xff]  ;;  %v681_v5 = vld [vmem:[#allocation10 + $0x448] sm:$0xff] }
  0xe6   :  { %3686 = vmatprep.subr.bf16.mxu0 %v5262_v10  ;;  %3850 = vmatprep.subr.bf16.mxu1 %v5264_v14  ;;  %v5288_v14 = vcombine.high %v681_v5, %v685_v6 }
  0xe9   :  { %3687 = vmatpush1.bf16.msra.mxu0 %v5261_v12  ;;  %3851 = vmatpush1.bf16.msra.mxu1 %v5263_v13  ;;  %v5286_v13 = vcombine.high %v680_v1, %v684_v4 }
  0xea   :  { %3688 = vmatprep.subr.bf16.mxu0 %v5270_v18  ;;  %3852 = vmatprep.subr.bf16.mxu1 %v5272_v22  ;;  %v689_v18 = vld [vmem:[#allocation10 + $0x488] sm:$0xff]  ;;  %v5287_v22 = vcombine.low %v681_v5, %v685_v6 }
  0xeb   :  { %v5296_v24 = vcombine.high %v689_v18, %v693_v19  ;;  %v729_v5 = vld [vmem:[#allocation10 + $0x5c8] sm:$0xff] }
  0xec   :  { %v733_v6 = vld [vmem:[#allocation10 + $0x5e8] sm:$0xff] }
  0xed   :  { %3689 = vmatpush1.bf16.msra.mxu0 %v5269_v20  ;;  %3853 = vmatpush1.bf16.msra.mxu1 %v5271_v21  ;;  %v5285_v21 = vcombine.low %v680_v1, %v684_v4  ;;  %v732_v4 = vld [vmem:[#allocation10 + $0x5e0] sm:$0xff] }
  0xee   :  { %3699 = vmatprep.subr.bf16.mxu0 %v5278_v26  ;;  %3863 = vmatprep.subr.bf16.mxu1 %v5280_v30  ;;  %v700_v26 = vld [vmem:[#allocation10 + $0x4e0] sm:$0xff]  ;;  %v701_v30 = vld [vmem:[#allocation10 + $0x4e8] sm:$0xff] }
 0x17b   :  { %v298_v43 = vpop.f32.mrb[0].mxu0  ;;  %v6434_v48 = vpop.f32.mrb[0].mxu1 }
 0x17c   :  { %v299_v45 = vadd.f32 %v298_v43, %v166_v38  ;;  %v300_v47 = vpop.f32.mrb[1].mxu0  ;;  %v341_v53 = vpop.f32.mrb[1].mxu1  ;;  %v5295_v38 = vcombine.low %v689_v18, %v693_v19  ;;  %v709_v43 = vld [vmem:[#allocation10 + $0x528] sm:$0xff]  ;;  %v740_v18 = vld [vmem:[#allocation10 + $0x620] sm:$0xff] }
 0x17d   :  { %v301_v50 = vadd.f32 %v300_v47, %v170_v40  ;;  %v302_v52 = vpop.f32.mrb[2].mxu0  ;;  %v342_v56 = vadd.f32 %v341_v53, %v178_v42  ;;  %v343_v58 = vpop.f32.mrb[2].mxu1  ;;  %v704_v40 = vld [vmem:[#allocation10 + $0x500] sm:$0xff]  ;;  %v705_v42 = vld [vmem:[#allocation10 + $0x508] sm:$0xff] }
 0x17e   :  { %v470_v54 = vmul.f32 %v433_v41, %v299_v45  ;;  %v303_v55 = vpop.f32.mrb[3].mxu0  ;;  %v344_v60 = vpop.f32.mrb[3].mxu1  ;;  %v708_v41 = vld [vmem:[#allocation10 + $0x520] sm:$0xff]  ;;  %v5303_v45 = vcombine.low %v697_v27, %v701_v30  ;;  %v5312_v47 = vcombine.high %v705_v42, %v709_v43  ;;  %v717_v52 = vld [vmem:[#allocation10 + $0x568] sm:$0xff] }
 0x17f   :  { %v471_v59 = vmul.f32 %v437_v44, %v301_v50  ;;  %v473_v62 = vmul.f32 %v445_v49, %v342_v56  ;;  %v5301_v44 = vcombine.low %v696_v25, %v700_v26  ;;  %v712_v49 = vld [vmem:[#allocation10 + $0x540] sm:$0xff]  ;;  %v5309_v53 = vcombine.low %v704_v40, %v708_v41  ;;  %v725_v60 = vld [vmem:[#allocation10 + $0x5a8] sm:$0xff] }
 0x180   :  { %v520_v61 = vadd.f32 %v483_v46, %v470_v54  ;;  %v5310_v46 = vcombine.high %v704_v40, %v708_v41  ;;  %v716_v50 = vld [vmem:[#allocation10 + $0x560] sm:$0xff]  ;;  %v5311_v54 = vcombine.low %v705_v42, %v709_v43  ;;  %v737_v19 = vld [vmem:[#allocation10 + $0x608] sm:$0xff] }
 0x181   :  { %v521_v63 = vadd.f32 %v487_v51, %v471_v59  ;;  %v523_v2 = vadd.f32 %v495_v57, %v473_v62  ;;  %v713_v51 = vld [vmem:[#allocation10 + $0x548] sm:$0xff]  ;;  %v5318_v55 = vcombine.high %v712_v49, %v716_v50  ;;  %v720_v57 = vld [vmem:[#allocation10 + $0x580] sm:$0xff] }
 0x182   :  { %v528_v0 = vmax.f32 %v520_v61, 0.0  ;;  %v5320_v56 = vcombine.high %v713_v51, %v717_v52  ;;  %v724_v58 = vld [vmem:[#allocation10 + $0x5a0] sm:$0xff]  ;;  %v721_v59 = vld [vmem:[#allocation10 + $0x588] sm:$0xff]  ;;  %v5317_v61 = vcombine.low %v712_v49, %v716_v50  ;;  %v5319_v62 = vcombine.low %v713_v51, %v717_v52 }
 0x183   :  { %v529_v3 = vmax.f32 %v521_v63, 0.0  ;;  %v6442_v7 = vpop.f32.mrb[4].mxu0  ;;  %v531_v8 = vmax.f32 %v523_v2, 0.0  ;;  %v6458_v63 = vpop.f32.mrb[4].mxu1  ;;  %v5328_v1 = vcombine.high %v721_v59, %v725_v60  ;;  %v728_v2 = vld [vmem:[#allocation10 + $0x5c0] sm:$0xff]  ;;  %v753_v43 = vld [vmem:[#allocation10 + $0x688] sm:$0xff] }
 0x184   :  { %v6444_v9 = vpop.f32.mrb[5].mxu0  ;;  %v6448_v12 = vpack.c.bf16 %v528_v0, %v528_v0  ;;  %v5326_v0 = vcombine.high %v720_v57, %v724_v58  ;;  %v5334_v15 = vcombine.high %v728_v2, %v732_v4  ;;  %v752_v41 = vld [vmem:[#allocation10 + $0x680] sm:$0xff]  ;;  %v761_v52 = vld [vmem:[#allocation10 + $0x6c8] sm:$0xff] }
 0x185   :  { %v6446_v10 = vpack.c.bf16 %v529_v3, %v529_v3  ;;  %v384_v11 = vpop.f32.mrb[6].mxu0  ;;  %v6452_v20 = vpack.c.bf16 %v531_v8, %v531_v8  ;;  %v6460_v3 = vpop.f32.mrb[5].mxu1  ;;  %v756_v42 = vld [vmem:[#allocation10 + $0x6a0] sm:$0xff] }
 0x186   :  { %v385_v16 = vpop.f32.mrb[7].mxu0  ;;  %v425_v8 = vpop.f32.mrb[6].mxu1  ;;  %v760_v50 = vld [vmem:[#allocation10 + $0x6c0] sm:$0xff] }
 0x187   :  { %3690 = vmatprep.mubr.bf16.mxu0 %v6446_v10  ;;  %3854 = vmatprep.mubr.bf16.mxu1 %v6446_v10  ;;  %v426_v11 = vpop.f32.mrb[7].mxu1  ;;  %v5336_v16 = vcombine.high %v729_v5, %v733_v6  ;;  %v764_v51 = vld [vmem:[#allocation10 + $0x6e0] sm:$0xff] }
 0x188   :  { %3691 = vmatmul.mubr.bf16.vlgmr.msra.gmra.mrb[8].mxu0 %v6448_v12  ;;  %3855 = vmatmul.mubr.bf16.vlgmr.msra.gmra.mrb[8].mxu1 %v6448_v12  ;;  %v776_v8 = vld [vmem:[#allocation10 + $0x740] sm:$0xff] }
 0x189   :  { %3700 = vmatpush1.bf16.msra.mxu0 %v5277_v28  ;;  %3864 = vmatpush1.bf16.msra.mxu1 %v5279_v29  ;;  %v5302_v28 = vcombine.high %v696_v25, %v700_v26  ;;  %v5304_v29 = vcombine.high %v697_v27, %v701_v30  ;;  %v744_v26 = vld [vmem:[#allocation10 + $0x640] sm:$0xff]  ;;  %v745_v30 = vld [vmem:[#allocation10 + $0x648] sm:$0xff] }
 0x18a   :  { %3701 = vmatprep.subr.bf16.mxu0 %v5286_v13  ;;  %3865 = vmatprep.subr.bf16.mxu1 %v5288_v14  ;;  %v5325_v13 = vcombine.low %v720_v57, %v724_v58  ;;  %v5327_v14 = vcombine.low %v721_v59, %v725_v60  ;;  %v748_v27 = vld [vmem:[#allocation10 + $0x660] sm:$0xff]  ;;  %v5366_v57 = vcombine.high %v760_v50, %v764_v51 }
 0x18b   :  { %3731 = vmatprep.mubr.bf16.mxu0 %v6452_v20  ;;  %3895 = vmatprep.mubr.bf16.mxu1 %v6452_v20  ;;  %v768_v59 = vld [vmem:[#allocation10 + $0x700] sm:$0xff] }
 0x18c   :  { %v772_v60 = vld [vmem:[#allocation10 + $0x720] sm:$0xff] }
 0x18d   :  { %3702 = vmatpush1.bf16.msra.mxu0 %v5285_v21  ;;  %3866 = vmatpush1.bf16.msra.mxu1 %v5287_v22  ;;  %v741_v21 = vld [vmem:[#allocation10 + $0x628] sm:$0xff]  ;;  %v5333_v22 = vcombine.low %v728_v2, %v732_v4  ;;  %v5365_v2 = vcombine.low %v760_v50, %v764_v51  ;;  %v780_v11 = vld [vmem:[#allocation10 + $0x760] sm:$0xff] }
 0x18e   :  { %3703 = vmatprep.subr.bf16.mxu0 %v5294_v23  ;;  %3867 = vmatprep.subr.bf16.mxu1 %v5296_v24  ;;  %v5335_v23 = vcombine.low %v729_v5, %v733_v6  ;;  %v5342_v24 = vcombine.high %v736_v17, %v740_v18  ;;  %v5344_v25 = vcombine.high %v737_v19, %v741_v21 }
 0x18f   :  { %v5374_v5 = vcombine.high %v768_v59, %v772_v60 }
 0x191   :  { %3704 = vmatpush1.bf16.msra.mxu0 %v5293_v31  ;;  %3868 = vmatpush1.bf16.msra.mxu1 %v5295_v38  ;;  %v749_v31 = vld [vmem:[#allocation10 + $0x668] sm:$0xff]  ;;  %v5341_v38 = vcombine.low %v736_v17, %v740_v18  ;;  %v5373_v18 = vcombine.low %v768_v59, %v772_v60 }
 0x192   :  { %3705 = vmatprep.subr.bf16.mxu0 %v5302_v28  ;;  %3869 = vmatprep.subr.bf16.mxu1 %v5304_v29  ;;  %v5343_v28 = vcombine.low %v737_v19, %v741_v21  ;;  %v5350_v29 = vcombine.high %v744_v26, %v748_v27  ;;  %v5352_v40 = vcombine.high %v745_v30, %v749_v31 }
 0x193   :  { %v5382_v21 = vcombine.high %v776_v8, %v780_v11 }
 0x195   :  { %3706 = vmatpush1.bf16.msra.mxu0 %v5301_v44  ;;  %3870 = vmatpush1.bf16.msra.mxu1 %v5303_v45  ;;  %v757_v44 = vld [vmem:[#allocation10 + $0x6a8] sm:$0xff]  ;;  %v5349_v45 = vcombine.low %v744_v26, %v748_v27 }
 0x196   :  { %3707 = vmatprep.subr.bf16.mxu0 %v5310_v46  ;;  %3871 = vmatprep.subr.bf16.mxu1 %v5312_v47  ;;  %v5351_v46 = vcombine.low %v745_v30, %v749_v31  ;;  %v5358_v47 = vcombine.high %v752_v41, %v756_v42  ;;  %v5360_v49 = vcombine.high %v753_v43, %v757_v44  ;;  %v789_v26 = vld [vmem:[#allocation10 + $0x7a8] sm:$0xff] }
 0x199   :  { %3708 = vmatpush1.bf16.msra.mxu0 %v5309_v53  ;;  %3872 = vmatpush1.bf16.msra.mxu1 %v5311_v54  ;;  %v765_v53 = vld [vmem:[#allocation10 + $0x6e8] sm:$0xff]  ;;  %v6463_v54 = vsub.s32 2, %v6405_v32 }
 0x19a   :  { %3709 = vmatprep.subr.bf16.mxu0 %v5318_v55  ;;  %3873 = vmatprep.subr.bf16.mxu1 %v5320_v56  ;;  %v5357_v55 = vcombine.low %v752_v41, %v756_v42  ;;  %v5359_v56 = vcombine.low %v753_v43, %v757_v44  ;;  %v5368_v58 = vcombine.high %v761_v52, %v765_v53  ;;  %v792_v41 = vld [vmem:[#allocation10 + $0x7c0] sm:$0xff]  ;;  %v793_v43 = vld [vmem:[#allocation10 + $0x7c8] sm:$0xff] }
 0x19b   :  { %v5367_v4 = vcombine.low %v761_v52, %v765_v53  ;;  %v441_v17 = vrot.slane %v6418_v37, %v6463_v54  ;;  %v491_v31 = vrot.slane %v6422_v39, %v6463_v54  ;;  %v796_v42 = vld [vmem:[#allocation10 + $0x7e0] sm:$0xff]  ;;  %v797_v44 = vld [vmem:[#allocation10 + $0x7e8] sm:$0xff] }
 0x19c   :  { %v5398_v50 = vcombine.high %v792_v41, %v796_v42  ;;  %v5400_v51 = vcombine.high %v793_v43, %v797_v44  ;;  %v800_v52 = vld [vmem:[#allocation10 + $0x800] sm:$0xff]  ;;  %v5397_v59 = vcombine.low %v792_v41, %v796_v42  ;;  %v5399_v60 = vcombine.low %v793_v43, %v797_v44  ;;  %v833_v42 = vld [vmem:[#allocation10 + $0x908] sm:$0xff] }
 0x19d   :  { %3710 = vmatpush1.bf16.msra.mxu0 %v5317_v61  ;;  %3874 = vmatpush1.bf16.msra.mxu1 %v5319_v62  ;;  %v769_v61 = vld [vmem:[#allocation10 + $0x708] sm:$0xff]  ;;  %v804_v53 = vld [vmem:[#allocation10 + $0x820] sm:$0xff] }
 0x19e   :  { %3711 = vmatprep.subr.bf16.mxu0 %v5326_v0  ;;  %3875 = vmatprep.subr.bf16.mxu1 %v5328_v1  ;;  %v773_v62 = vld [vmem:[#allocation10 + $0x728] sm:$0xff]  ;;  %v6466_v0 = vsub.s32 5, %v6405_v32  ;;  %v174_v1 = vrot.slane %v6410_v34, %v6463_v54  ;;  %v836_v41 = vld [vmem:[#allocation10 + $0x920] sm:$0xff] }
 0x19f   :  { %v5376_v6 = vcombine.high %v769_v61, %v773_v62  ;;  %v5375_v19 = vcombine.low %v769_v61, %v773_v62  ;;  %v5406_v61 = vcombine.high %v800_v52, %v804_v53  ;;  %v837_v43 = vld [vmem:[#allocation10 + $0x928] sm:$0xff] }
 0x1a1   :  { %3712 = vmatpush1.bf16.msra.mxu0 %v5325_v13  ;;  %3876 = vmatpush1.bf16.msra.mxu1 %v5327_v14  ;;  %v777_v13 = vld [vmem:[#allocation10 + $0x748] sm:$0xff] }
 0x1a2   :  { %3713 = vmatprep.subr.bf16.mxu0 %v5334_v15  ;;  %3877 = vmatprep.subr.bf16.mxu1 %v5336_v16  ;;  %v781_v14 = vld [vmem:[#allocation10 + $0x768] sm:$0xff]  ;;  %v186_v15 = vrot.slane %v6410_v34, %v6466_v0  ;;  %v340_v16 = vadd.f32 %v6434_v48, %v174_v1  ;;  %v453_v48 = vrot.slane %v6418_v37, %v6466_v0  ;;  %v808_v1 = vld [vmem:[#allocation10 + $0x840] sm:$0xff] }
 0x1a4   :  { %v383_v27 = vadd.f32 %v6444_v9, %v186_v15  ;;  %v472_v30 = vmul.f32 %v441_v17, %v340_v16  ;;  %v816_v16 = vld [vmem:[#allocation10 + $0x880] sm:$0xff] }
 0x1a5   :  { %3714 = vmatpush1.bf16.msra.mxu0 %v5333_v22  ;;  %3878 = vmatpush1.bf16.msra.mxu1 %v5335_v23  ;;  %v5384_v22 = vcombine.high %v777_v13, %v781_v14  ;;  %v784_v23 = vld [vmem:[#allocation10 + $0x780] sm:$0xff] }
 0x1a6   :  { %3715 = vmatprep.subr.bf16.mxu0 %v5342_v24  ;;  %3879 = vmatprep.subr.bf16.mxu1 %v5344_v25  ;;  %v788_v24 = vld [vmem:[#allocation10 + $0x7a0] sm:$0xff]  ;;  %v785_v25 = vld [vmem:[#allocation10 + $0x788] sm:$0xff]  ;;  %v475_v9 = vmul.f32 %v453_v48, %v383_v27 }
 0x1a7   :  { %v820_v17 = vld [vmem:[#allocation10 + $0x8a0] sm:$0xff]  ;;  %v825_v48 = vld [vmem:[#allocation10 + $0x8c8] sm:$0xff] }
 0x1a8   :  { %v828_v27 = vld [vmem:[#allocation10 + $0x8e0] sm:$0xff] }
 0x1a9   :  { %3716 = vmatpush1.bf16.msra.mxu0 %v5341_v38  ;;  %3880 = vmatpush1.bf16.msra.mxu1 %v5343_v28  ;;  %v5381_v38 = vcombine.low %v776_v8, %v780_v11  ;;  %v5383_v28 = vcombine.low %v777_v13, %v781_v14  ;;  %v5405_v11 = vcombine.low %v800_v52, %v804_v53 }
 0x1aa   :  { %3717 = vmatprep.subr.bf16.mxu0 %v5350_v29  ;;  %3881 = vmatprep.subr.bf16.mxu1 %v5352_v40  ;;  %v5390_v29 = vcombine.high %v784_v23, %v788_v24  ;;  %v5392_v40 = vcombine.high %v785_v25, %v789_v26  ;;  %v5439_v53 = vcombine.low %v833_v42, %v837_v43 }
 0x1ad   :  { %3718 = vmatpush1.bf16.msra.mxu0 %v5349_v45  ;;  %3882 = vmatpush1.bf16.msra.mxu1 %v5351_v46  ;;  %v503_v45 = vrot.slane %v6422_v39, %v6466_v0  ;;  %v522_v46 = vadd.f32 %v491_v31, %v472_v30  ;;  %v829_v30 = vld [vmem:[#allocation10 + $0x8e8] sm:$0xff]  ;;  %v5421_v31 = vcombine.low %v816_v16, %v820_v17 }
 0x1ae   :  { %3719 = vmatprep.subr.bf16.mxu0 %v5358_v47  ;;  %3883 = vmatprep.subr.bf16.mxu1 %v5360_v49  ;;  %v5389_v47 = vcombine.low %v784_v23, %v788_v24  ;;  %v5391_v49 = vcombine.low %v785_v25, %v789_v26  ;;  %v5422_v24 = vcombine.high %v816_v16, %v820_v17  ;;  %v824_v26 = vld [vmem:[#allocation10 + $0x8c0] sm:$0xff] }
 0x1af   :  { %v5429_v44 = vcombine.low %v824_v26, %v828_v27  ;;  %v864_v17 = vld [vmem:[#allocation10 + $0xa00] sm:$0xff] }
 0x1b1   :  { %3720 = vmatpush1.bf16.msra.mxu0 %v5357_v55  ;;  %3884 = vmatpush1.bf16.msra.mxu1 %v5359_v56  ;;  %v801_v55 = vld [vmem:[#allocation10 + $0x808] sm:$0xff] }
 0x1b2   :  { %3721 = vmatprep.subr.bf16.mxu0 %v5366_v57  ;;  %3885 = vmatprep.subr.bf16.mxu1 %v5368_v58  ;;  %v805_v56 = vld [vmem:[#allocation10 + $0x828] sm:$0xff]  ;;  %v525_v57 = vadd.f32 %v503_v45, %v475_v9  ;;  %v530_v58 = vmax.f32 %v522_v46, 0.0  ;;  %v5431_v9 = vcombine.low %v825_v48, %v829_v30  ;;  %v5440_v46 = vcombine.high %v833_v42, %v837_v43  ;;  %v884_v42 = vld [vmem:[#allocation10 + $0xaa0] sm:$0xff] }
 0x1b3   :  { %v5408_v62 = vcombine.high %v801_v55, %v805_v56  ;;  %v5407_v13 = vcombine.low %v801_v55, %v805_v56  ;;  %v881_v43 = vld [vmem:[#allocation10 + $0xa88] sm:$0xff] }
 0x1b4   :  { %v6482_v8 = vpack.c.bf16 %v530_v58, %v530_v58  ;;  %v852_v58 = vld [vmem:[#allocation10 + $0x9a0] sm:$0xff] }
 0x1b5   :  { %3722 = vmatpush1.bf16.msra.mxu0 %v5365_v2  ;;  %3886 = vmatpush1.bf16.msra.mxu1 %v5367_v4  ;;  %v812_v2 = vld [vmem:[#allocation10 + $0x860] sm:$0xff]  ;;  %v809_v4 = vld [vmem:[#allocation10 + $0x848] sm:$0xff] }
 0x1b6   :  { %3723 = vmatprep.subr.bf16.mxu0 %v5374_v5  ;;  %3887 = vmatprep.subr.bf16.mxu1 %v5376_v6  ;;  %v813_v5 = vld [vmem:[#allocation10 + $0x868] sm:$0xff]  ;;  %v533_v6 = vmax.f32 %v525_v57, 0.0  ;;  %v5414_v14 = vcombine.high %v808_v1, %v812_v2  ;;  %v848_v57 = vld [vmem:[#allocation10 + $0x980] sm:$0xff] }
 0x1b7   :  { %v5416_v15 = vcombine.high %v809_v4, %v813_v5  ;;  %v5415_v23 = vcombine.low %v809_v4, %v813_v5  ;;  %v856_v4 = vld [vmem:[#allocation10 + $0x9c0] sm:$0xff] }
 0x1b8   :  { %v860_v5 = vld [vmem:[#allocation10 + $0x9e0] sm:$0xff] }
 0x1b9   :  { %3724 = vmatpush1.bf16.msra.mxu0 %v5373_v18  ;;  %3888 = vmatpush1.bf16.msra.mxu1 %v5375_v19  ;;  %v817_v18 = vld [vmem:[#allocation10 + $0x888] sm:$0xff] }
 0x1ba   :  { %3725 = vmatprep.subr.bf16.mxu0 %v5382_v21  ;;  %3889 = vmatprep.subr.bf16.mxu1 %v5384_v22  ;;  %v821_v19 = vld [vmem:[#allocation10 + $0x8a8] sm:$0xff]  ;;  %v6484_v21 = vpack.c.bf16 %v533_v6, %v533_v6  ;;  %v5413_v22 = vcombine.low %v808_v1, %v812_v2  ;;  %v5454_v1 = vcombine.high %v848_v57, %v852_v58 }
 0x1bb   :  { %v5424_v25 = vcombine.high %v817_v18, %v821_v19  ;;  %v857_v6 = vld [vmem:[#allocation10 + $0x9c8] sm:$0xff] }
 0x1bd   :  { %3726 = vmatpush1.bf16.msra.mxu0 %v5381_v38  ;;  %3890 = vmatpush1.bf16.msra.mxu1 %v5383_v28  ;;  %v5423_v38 = vcombine.low %v817_v18, %v821_v19  ;;  %v5430_v28 = vcombine.high %v824_v26, %v828_v27  ;;  %v868_v18 = vld [vmem:[#allocation10 + $0xa20] sm:$0xff]  ;;  %v865_v19 = vld [vmem:[#allocation10 + $0xa08] sm:$0xff] }
 0x1be   :  { %3727 = vmatprep.subr.bf16.mxu0 %v5390_v29  ;;  %3891 = vmatprep.subr.bf16.mxu1 %v5392_v40  ;;  %v5432_v29 = vcombine.high %v825_v48, %v829_v30  ;;  %v832_v40 = vld [vmem:[#allocation10 + $0x900] sm:$0xff]  ;;  %v873_v30 = vld [vmem:[#allocation10 + $0xa48] sm:$0xff] }
 0x1bf   :  { %v5438_v45 = vcombine.high %v832_v40, %v836_v41  ;;  %v5437_v52 = vcombine.low %v832_v40, %v836_v41  ;;  %v872_v27 = vld [vmem:[#allocation10 + $0xa40] sm:$0xff] }
 0x1c0   :  { %v876_v48 = vld [vmem:[#allocation10 + $0xa60] sm:$0xff] }
 0x1c1   :  { %3728 = vmatpush1.bf16.msra.mxu0 %v5389_v47  ;;  %3892 = vmatpush1.bf16.msra.mxu1 %v5391_v49  ;;  %v840_v47 = vld [vmem:[#allocation10 + $0x940] sm:$0xff] }
 0x1c2   :  { %3729 = vmatprep.subr.bf16.mxu0 %v5398_v50  ;;  %3893 = vmatprep.subr.bf16.mxu1 %v5400_v51  ;;  %v844_v49 = vld [vmem:[#allocation10 + $0x960] sm:$0xff]  ;;  %v841_v50 = vld [vmem:[#allocation10 + $0x948] sm:$0xff] }
 0x1c3   :  { %v845_v51 = vld [vmem:[#allocation10 + $0x968] sm:$0xff]  ;;  %v5446_v55 = vcombine.high %v840_v47, %v844_v49  ;;  %v880_v41 = vld [vmem:[#allocation10 + $0xa80] sm:$0xff] }
 0x1c4   :  { %v5448_v56 = vcombine.high %v841_v50, %v845_v51 }
 0x1c5   :  { %3730 = vmatpush1.bf16.msra.mxu0 %v5397_v59  ;;  %3894 = vmatpush1.bf16.msra.mxu1 %v5399_v60  ;;  %v849_v59 = vld [vmem:[#allocation10 + $0x988] sm:$0xff] }
 0x1c6   :  { %3740 = vmatprep.subr.bf16.mxu0 %v5406_v61  ;;  %3904 = vmatprep.subr.bf16.mxu1 %v5408_v62  ;;  %v853_v60 = vld [vmem:[#allocation10 + $0x9a8] sm:$0xff]  ;;  %v5445_v61 = vcombine.low %v840_v47, %v844_v49  ;;  %v5447_v62 = vcombine.low %v841_v50, %v845_v51  ;;  %v888_v49 = vld [vmem:[#allocation10 + $0xac0] sm:$0xff] }
 0x1c7   :  { %v5456_v2 = vcombine.high %v849_v59, %v853_v60  ;;  %v892_v50 = vld [vmem:[#allocation10 + $0xae0] sm:$0xff]  ;;  %v889_v51 = vld [vmem:[#allocation10 + $0xac8] sm:$0xff] }
 0x1c8   :  { %3732 = vmatmul.mubr.bf16.vlgmr.msra.gmra.mrb[8].mxu0 %v6482_v8  ;;  %3896 = vmatmul.mubr.bf16.vlgmr.msra.gmra.mrb[8].mxu1 %v6482_v8 }
 0x1c9   :  { %3741 = vmatpush1.bf16.msra.mxu0 %v5405_v11  ;;  %3905 = vmatpush1.bf16.msra.mxu1 %v5407_v13  ;;  %v861_v11 = vld [vmem:[#allocation10 + $0x9e8] sm:$0xff]  ;;  %v5453_v13 = vcombine.low %v848_v57, %v852_v58  ;;  %v5494_v57 = vcombine.high %v888_v49, %v892_v50 }
 0x1ca   :  { %3742 = vmatprep.subr.bf16.mxu0 %v5414_v14  ;;  %3906 = vmatprep.subr.bf16.mxu1 %v5416_v15  ;;  %v5455_v14 = vcombine.low %v849_v59, %v853_v60  ;;  %v5462_v15 = vcombine.high %v856_v4, %v860_v5  ;;  %v5464_v16 = vcombine.high %v857_v6, %v861_v11  ;;  %v896_v59 = vld [vmem:[#allocation10 + $0xb00] sm:$0xff] }
 0x1cb   :  { %3772 = vmatprep.mubr.bf16.mxu0 %v6484_v21  ;;  %3936 = vmatprep.mubr.bf16.mxu1 %v6484_v21  ;;  %v900_v60 = vld [vmem:[#allocation10 + $0xb20] sm:$0xff] }
 0x1cd   :  { %3743 = vmatpush1.bf16.msra.mxu0 %v5413_v22  ;;  %3907 = vmatpush1.bf16.msra.mxu1 %v5415_v23  ;;  %v869_v22 = vld [vmem:[#allocation10 + $0xa28] sm:$0xff]  ;;  %v5461_v23 = vcombine.low %v856_v4, %v860_v5  ;;  %v5493_v4 = vcombine.low %v888_v49, %v892_v50 }
 0x1ce   :  { %3744 = vmatprep.subr.bf16.mxu0 %v5422_v24  ;;  %3908 = vmatprep.subr.bf16.mxu1 %v5424_v25  ;;  %v5463_v24 = vcombine.low %v857_v6, %v861_v11  ;;  %v5470_v25 = vcombine.high %v864_v17, %v868_v18  ;;  %v5472_v26 = vcombine.high %v865_v19, %v869_v22 }
 0x1cf   :  { %v5502_v6 = vcombine.high %v896_v59, %v900_v60 }
 0x1d1   :  { %3745 = vmatpush1.bf16.msra.mxu0 %v5421_v31  ;;  %3909 = vmatpush1.bf16.msra.mxu1 %v5423_v38  ;;  %v877_v31 = vld [vmem:[#allocation10 + $0xa68] sm:$0xff]  ;;  %v5469_v38 = vcombine.low %v864_v17, %v868_v18 }
 0x1d2   :  { %3746 = vmatprep.subr.bf16.mxu0 %v5430_v28  ;;  %3910 = vmatprep.subr.bf16.mxu1 %v5432_v29  ;;  %v5471_v28 = vcombine.low %v865_v19, %v869_v22  ;;  %v5478_v29 = vcombine.high %v872_v27, %v876_v48  ;;  %v5480_v40 = vcombine.high %v873_v30, %v877_v31 }
 0x1d3   :  { %v5501_v22 = vcombine.low %v896_v59, %v900_v60 }
 0x1d5   :  { %3747 = vmatpush1.bf16.msra.mxu0 %v5429_v44  ;;  %3911 = vmatpush1.bf16.msra.mxu1 %v5431_v9  ;;  %v885_v44 = vld [vmem:[#allocation10 + $0xaa8] sm:$0xff]  ;;  %v5477_v9 = vcombine.low %v872_v27, %v876_v48  ;;  %v916_v27 = vld [vmem:[#allocation10 + $0xba0] sm:$0xff] }
 0x1d6   :  { %3748 = vmatprep.subr.bf16.mxu0 %v5438_v45  ;;  %3912 = vmatprep.subr.bf16.mxu1 %v5440_v46  ;;  %v5479_v45 = vcombine.low %v873_v30, %v877_v31  ;;  %v5486_v46 = vcombine.high %v880_v41, %v884_v42  ;;  %v5488_v47 = vcombine.high %v881_v43, %v885_v44  ;;  %v913_v48 = vld [vmem:[#allocation10 + $0xb88] sm:$0xff] }
 0x1d7   :  { %v917_v30 = vld [vmem:[#allocation10 + $0xba8] sm:$0xff] }
 0x1d9   :  { %3749 = vmatpush1.bf16.msra.mxu0 %v5437_v52  ;;  %3913 = vmatpush1.bf16.msra.mxu1 %v5439_v53  ;;  %v893_v52 = vld [vmem:[#allocation10 + $0xae8] sm:$0xff]  ;;  %v6491_v53 = vsub.s32 4, %v6405_v32 }
 0x1da   :  { %3750 = vmatprep.subr.bf16.mxu0 %v5446_v55  ;;  %3914 = vmatprep.subr.bf16.mxu1 %v5448_v56  ;;  %v5485_v55 = vcombine.low %v880_v41, %v884_v42  ;;  %v5487_v56 = vcombine.low %v881_v43, %v885_v44  ;;  %v5496_v58 = vcombine.high %v889_v51, %v893_v52  ;;  %v920_v42 = vld [vmem:[#allocation10 + $0xbc0] sm:$0xff]  ;;  %v921_v44 = vld [vmem:[#allocation10 + $0xbc8] sm:$0xff] }
 0x1db   :  { %v5495_v5 = vcombine.low %v889_v51, %v893_v52  ;;  %v449_v19 = vrot.slane %v6418_v37, %v6491_v53  ;;  %v5520_v41 = vcombine.high %v913_v48, %v917_v30  ;;  %v924_v43 = vld [vmem:[#allocation10 + $0xbe0] sm:$0xff] }
 0x1dc   :  { %v5526_v49 = vcombine.high %v920_v42, %v924_v43  ;;  %v928_v51 = vld [vmem:[#allocation10 + $0xc00] sm:$0xff]  ;;  %v5525_v59 = vcombine.low %v920_v42, %v924_v43  ;;  %v961_v42 = vld [vmem:[#allocation10 + $0xd08] sm:$0xff] }
 0x1dd   :  { %3751 = vmatpush1.bf16.msra.mxu0 %v5445_v61  ;;  %3915 = vmatpush1.bf16.msra.mxu1 %v5447_v62  ;;  %v897_v61 = vld [vmem:[#allocation10 + $0xb08] sm:$0xff]  ;;  %v932_v52 = vld [vmem:[#allocation10 + $0xc20] sm:$0xff] }
 0x1de   :  { %3752 = vmatprep.subr.bf16.mxu0 %v5454_v1  ;;  %3916 = vmatprep.subr.bf16.mxu1 %v5456_v2  ;;  %v901_v62 = vld [vmem:[#allocation10 + $0xb28] sm:$0xff]  ;;  %v6494_v1 = vsub.s32 7, %v6405_v32  ;;  %v182_v2 = vrot.slane %v6410_v34, %v6491_v53 }
 0x1df   :  { %v5504_v11 = vcombine.high %v897_v61, %v901_v62  ;;  %v965_v43 = vld [vmem:[#allocation10 + $0xd28] sm:$0xff] }
 0x1e0   :  { %v194_v17 = vrot.slane %v6410_v34, %v6494_v1  ;;  %v381_v18 = vadd.f32 %v6442_v7, %v182_v2  ;;  %v461_v34 = vrot.slane %v6418_v37, %v6494_v1  ;;  %v511_v37 = vrot.slane %v6422_v39, %v6494_v1  ;;  %v940_v2 = vld [vmem:[#allocation10 + $0xc60] sm:$0xff] }
 0x1e1   :  { %3753 = vmatpush1.bf16.msra.mxu0 %v5453_v13  ;;  %3917 = vmatpush1.bf16.msra.mxu1 %v5455_v14  ;;  %v904_v13 = vld [vmem:[#allocation10 + $0xb40] sm:$0xff] }
 0x1e2   :  { %3754 = vmatprep.subr.bf16.mxu0 %v5462_v15  ;;  %3918 = vmatprep.subr.bf16.mxu1 %v5464_v16  ;;  %v908_v14 = vld [vmem:[#allocation10 + $0xb60] sm:$0xff]  ;;  %v905_v15 = vld [vmem:[#allocation10 + $0xb48] sm:$0xff]  ;;  %v424_v31 = vadd.f32 %v6460_v3, %v194_v17  ;;  %v474_v7 = vmul.f32 %v449_v19, %v381_v18 }
 0x1e3   :  { %v909_v16 = vld [vmem:[#allocation10 + $0xb68] sm:$0xff]  ;;  %v944_v17 = vld [vmem:[#allocation10 + $0xc80] sm:$0xff] }
 0x1e4   :  { %v477_v3 = vmul.f32 %v461_v34, %v424_v31  ;;  %v948_v18 = vld [vmem:[#allocation10 + $0xca0] sm:$0xff]  ;;  %v945_v19 = vld [vmem:[#allocation10 + $0xc88] sm:$0xff] }
 0x1e5   :  { %3755 = vmatpush1.bf16.msra.mxu0 %v5461_v23  ;;  %3919 = vmatpush1.bf16.msra.mxu1 %v5463_v24  ;;  %v5503_v23 = vcombine.low %v897_v61, %v901_v62  ;;  %v5510_v24 = vcombine.high %v904_v13, %v908_v14  ;;  %v936_v62 = vld [vmem:[#allocation10 + $0xc40] sm:$0xff]  ;;  %v953_v31 = vld [vmem:[#allocation10 + $0xcc8] sm:$0xff] }
 0x1e6   :  { %3756 = vmatprep.subr.bf16.mxu0 %v5470_v25  ;;  %3920 = vmatprep.subr.bf16.mxu1 %v5472_v26  ;;  %v5512_v25 = vcombine.high %v905_v15, %v909_v16  ;;  %v912_v26 = vld [vmem:[#allocation10 + $0xb80] sm:$0xff]  ;;  %v957_v34 = vld [vmem:[#allocation10 + $0xce8] sm:$0xff] }
 0x1e9   :  { %3757 = vmatpush1.bf16.msra.mxu0 %v5469_v38  ;;  %3921 = vmatpush1.bf16.msra.mxu1 %v5471_v28  ;;  %v499_v38 = vrot.slane %v6422_v39, %v6491_v53  ;;  %v5509_v28 = vcombine.low %v904_v13, %v908_v14  ;;  %v5534_v39 = vcombine.high %v928_v51, %v932_v52 }
 0x1ea   :  { %3758 = vmatprep.subr.bf16.mxu0 %v5478_v29  ;;  %3922 = vmatprep.subr.bf16.mxu1 %v5480_v40  ;;  %v5511_v29 = vcombine.low %v905_v15, %v909_v16  ;;  %v5518_v40 = vcombine.high %v912_v26, %v916_v27  ;;  %v5533_v13 = vcombine.low %v928_v51, %v932_v52 }
 0x1eb   :  { %v5542_v15 = vcombine.high %v936_v62, %v940_v2  ;;  %v5567_v51 = vcombine.low %v961_v42, %v965_v43 }
 0x1ed   :  { %3759 = vmatpush1.bf16.msra.mxu0 %v5477_v9  ;;  %3923 = vmatpush1.bf16.msra.mxu1 %v5479_v45  ;;  %v925_v9 = vld [vmem:[#allocation10 + $0xbe8] sm:$0xff]  ;;  %v524_v45 = vadd.f32 %v499_v38, %v474_v7  ;;  %v5549_v7 = vcombine.low %v944_v17, %v948_v18 }
 0x1ee   :  { %3760 = vmatprep.subr.bf16.mxu0 %v5486_v46  ;;  %3924 = vmatprep.subr.bf16.mxu1 %v5488_v47  ;;  %v5517_v46 = vcombine.low %v912_v26, %v916_v27  ;;  %v5519_v47 = vcombine.low %v913_v48, %v917_v30  ;;  %v5528_v50 = vcombine.high %v921_v44, %v925_v9  ;;  %v952_v48 = vld [vmem:[#allocation10 + $0xcc0] sm:$0xff] }
 0x1ef   :  { %v5527_v60 = vcombine.low %v921_v44, %v925_v9  ;;  %v5550_v26 = vcombine.high %v944_v17, %v948_v18  ;;  %v956_v30 = vld [vmem:[#allocation10 + $0xce0] sm:$0xff]  ;;  %v5559_v9 = vcombine.low %v953_v31, %v957_v34 }
 0x1f0   :  { %v5557_v44 = vcombine.low %v952_v48, %v956_v30  ;;  %v992_v17 = vld [vmem:[#allocation10 + $0xe00] sm:$0xff] }
 0x1f1   :  { %3761 = vmatpush1.bf16.msra.mxu0 %v5485_v55  ;;  %3925 = vmatpush1.bf16.msra.mxu1 %v5487_v56  ;;  %v929_v55 = vld [vmem:[#allocation10 + $0xc08] sm:$0xff]  ;;  %v996_v18 = vld [vmem:[#allocation10 + $0xe20] sm:$0xff] }
 0x1f2   :  { %3762 = vmatprep.subr.bf16.mxu0 %v5494_v57  ;;  %3926 = vmatprep.subr.bf16.mxu1 %v5496_v58  ;;  %v933_v56 = vld [vmem:[#allocation10 + $0xc28] sm:$0xff]  ;;  %v527_v57 = vadd.f32 %v511_v37, %v477_v3  ;;  %v532_v58 = vmax.f32 %v524_v45, 0.0  ;;  %v5568_v37 = vcombine.high %v961_v42, %v965_v43  ;;  %v968_v45 = vld [vmem:[#allocation10 + $0xd40] sm:$0xff] }
 0x1f3   :  { %v5536_v61 = vcombine.high %v929_v55, %v933_v56  ;;  %v5535_v14 = vcombine.low %v929_v55, %v933_v56  ;;  %v976_v56 = vld [vmem:[#allocation10 + $0xd80] sm:$0xff]  ;;  %v1009_v42 = vld [vmem:[#allocation10 + $0xe88] sm:$0xff] }
 0x1f4   :  { %v1013_v43 = vld [vmem:[#allocation10 + $0xea8] sm:$0xff] }
 0x1f5   :  { %3763 = vmatpush1.bf16.msra.mxu0 %v5493_v4  ;;  %3927 = vmatpush1.bf16.msra.mxu1 %v5495_v5  ;;  %v937_v4 = vld [vmem:[#allocation10 + $0xc48] sm:$0xff] }
 0x1f6   :  { %3764 = vmatprep.subr.bf16.mxu0 %v5502_v6  ;;  %3928 = vmatprep.subr.bf16.mxu1 %v5504_v11  ;;  %v941_v5 = vld [vmem:[#allocation10 + $0xc68] sm:$0xff]  ;;  %v535_v6 = vmax.f32 %v527_v57, 0.0  ;;  %v6510_v11 = vpack.c.bf16 %v532_v58, %v532_v58  ;;  %v980_v57 = vld [vmem:[#allocation10 + $0xda0] sm:$0xff] }
 0x1f7   :  { %v5544_v16 = vcombine.high %v937_v4, %v941_v5  ;;  %v977_v58 = vld [vmem:[#allocation10 + $0xd88] sm:$0xff] }
 0x1f9   :  { %3765 = vmatpush1.bf16.msra.mxu0 %v5501_v22  ;;  %3929 = vmatpush1.bf16.msra.mxu1 %v5503_v23  ;;  %v949_v22 = vld [vmem:[#allocation10 + $0xca8] sm:$0xff]  ;;  %v6512_v23 = vpack.c.bf16 %v535_v6, %v535_v6 }
 0x1fa   :  { %3766 = vmatprep.subr.bf16.mxu0 %v5510_v24  ;;  %3930 = vmatprep.subr.bf16.mxu1 %v5512_v25  ;;  %v5541_v24 = vcombine.low %v936_v62, %v940_v2  ;;  %v5543_v25 = vcombine.low %v937_v4, %v941_v5  ;;  %v5552_v27 = vcombine.high %v945_v19, %v949_v22  ;;  %v984_v2 = vld [vmem:[#allocation10 + $0xdc0] sm:$0xff]  ;;  %v985_v5 = vld [vmem:[#allocation10 + $0xdc8] sm:$0xff] }
 0x1fb   :  { %v5551_v38 = vcombine.low %v945_v19, %v949_v22  ;;  %v988_v4 = vld [vmem:[#allocation10 + $0xde0] sm:$0xff]  ;;  %v989_v6 = vld [vmem:[#allocation10 + $0xde8] sm:$0xff] }
 0x1fc   :  { %v993_v19 = vld [vmem:[#allocation10 + $0xe08] sm:$0xff] }
 0x1fd   :  { %3767 = vmatpush1.bf16.msra.mxu0 %v5509_v28  ;;  %3931 = vmatpush1.bf16.msra.mxu1 %v5511_v29  ;;  %v5558_v28 = vcombine.high %v952_v48, %v956_v30  ;;  %v5560_v29 = vcombine.high %v953_v31, %v957_v34  ;;  %v997_v22 = vld [vmem:[#allocation10 + $0xe28] sm:$0xff]  ;;  %v1000_v48 = vld [vmem:[#allocation10 + $0xe40] sm:$0xff] }
 0x1fe   :  { %3768 = vmatprep.subr.bf16.mxu0 %v5518_v40  ;;  %3932 = vmatprep.subr.bf16.mxu1 %v5520_v41  ;;  %v960_v40 = vld [vmem:[#allocation10 + $0xd00] sm:$0xff]  ;;  %v1001_v31 = vld [vmem:[#allocation10 + $0xe48] sm:$0xff] }
 0x1ff   :  { %v964_v41 = vld [vmem:[#allocation10 + $0xd20] sm:$0xff]  ;;  %v1005_v34 = vld [vmem:[#allocation10 + $0xe68] sm:$0xff] }
 0x200   :  { %v5566_v3 = vcombine.high %v960_v40, %v964_v41  ;;  %v1004_v30 = vld [vmem:[#allocation10 + $0xe60] sm:$0xff] }
 0x201   :  { %3769 = vmatpush1.bf16.msra.mxu0 %v5517_v46  ;;  %3933 = vmatpush1.bf16.msra.mxu1 %v5519_v47  ;;  %v972_v46 = vld [vmem:[#allocation10 + $0xd60] sm:$0xff]  ;;  %v969_v47 = vld [vmem:[#allocation10 + $0xd48] sm:$0xff] }
 0x202   :  { %3770 = vmatprep.subr.bf16.mxu0 %v5526_v49  ;;  %3934 = vmatprep.subr.bf16.mxu1 %v5528_v50  ;;  %v973_v49 = vld [vmem:[#allocation10 + $0xd68] sm:$0xff]  ;;  %v5565_v50 = vcombine.low %v960_v40, %v964_v41  ;;  %v5574_v52 = vcombine.high %v968_v45, %v972_v46  ;;  %v1008_v40 = vld [vmem:[#allocation10 + $0xe80] sm:$0xff] }
 0x203   :  { %v5576_v55 = vcombine.high %v969_v47, %v973_v49  ;;  %v1012_v41 = vld [vmem:[#allocation10 + $0xea0] sm:$0xff] }
 0x205   :  { %3771 = vmatpush1.bf16.msra.mxu0 %v5525_v59  ;;  %3935 = vmatpush1.bf16.msra.mxu1 %v5527_v60  ;;  %v981_v59 = vld [vmem:[#allocation10 + $0xda8] sm:$0xff]  ;;  %v5573_v60 = vcombine.low %v968_v45, %v972_v46  ;;  %v1016_v45 = vld [vmem:[#allocation10 + $0xec0] sm:$0xff] }
 0x206   :  { %3781 = vmatprep.subr.bf16.mxu0 %v5534_v39  ;;  %3945 = vmatprep.subr.bf16.mxu1 %v5536_v61  ;;  %v5575_v39 = vcombine.low %v969_v47, %v973_v49  ;;  %v5582_v61 = vcombine.high %v976_v56, %v980_v57  ;;  %v5584_v62 = vcombine.high %v977_v58, %v981_v59  ;;  %v1020_v46 = vld [vmem:[#allocation10 + $0xee0] sm:$0xff]  ;;  %v1017_v47 = vld [vmem:[#allocation10 + $0xec8] sm:$0xff] }
 0x207   :  { %v1021_v49 = vld [vmem:[#allocation10 + $0xee8] sm:$0xff] }
 0x208   :  { %3773 = vmatmul.mubr.bf16.vlgmr.msra.gmra.mrb[8].mxu0 %v6510_v11  ;;  %3937 = vmatmul.mubr.bf16.vlgmr.msra.gmra.mrb[8].mxu1 %v6510_v11 }
 0x209   :  { %3782 = vmatpush1.bf16.msra.mxu0 %v5533_v13  ;;  %3946 = vmatpush1.bf16.msra.mxu1 %v5535_v14  ;;  %v5581_v13 = vcombine.low %v976_v56, %v980_v57  ;;  %v5583_v14 = vcombine.low %v977_v58, %v981_v59  ;;  %v5624_v56 = vcombine.high %v1017_v47, %v1021_v49  ;;  %v1024_v57 = vld [vmem:[#allocation10 + $0xf00] sm:$0xff]  ;;  %v1025_v59 = vld [vmem:[#allocation10 + $0xf08] sm:$0xff] }
 0x20a   :  { %3783 = vmatprep.subr.bf16.mxu0 %v5542_v15  ;;  %3947 = vmatprep.subr.bf16.mxu1 %v5544_v16  ;;  %v5590_v15 = vcombine.high %v984_v2, %v988_v4  ;;  %v5592_v16 = vcombine.high %v985_v5, %v989_v6  ;;  %v1028_v58 = vld [vmem:[#allocation10 + $0xf20] sm:$0xff] }
 0x20b   :  { %3813 = vmatprep.mubr.bf16.mxu0 %v6512_v23  ;;  %3977 = vmatprep.mubr.bf16.mxu1 %v6512_v23 }
 0x20d   :  { %3784 = vmatpush1.bf16.msra.mxu0 %v5541_v24  ;;  %3948 = vmatpush1.bf16.msra.mxu1 %v5543_v25  ;;  %v5589_v24 = vcombine.low %v984_v2, %v988_v4  ;;  %v5591_v25 = vcombine.low %v985_v5, %v989_v6  ;;  %v5630_v4 = vcombine.high %v1024_v57, %v1028_v58  ;;  %v1032_v5 = vld [vmem:[#allocation10 + $0xf40] sm:$0xff] }
 0x20e   :  { %3785 = vmatprep.subr.bf16.mxu0 %v5550_v26  ;;  %3949 = vmatprep.subr.bf16.mxu1 %v5552_v27  ;;  %v5598_v26 = vcombine.high %v992_v17, %v996_v18  ;;  %v5600_v27 = vcombine.high %v993_v19, %v997_v22  ;;  %v1036_v6 = vld [vmem:[#allocation10 + $0xf60] sm:$0xff] }
 0x211   :  { %3786 = vmatpush1.bf16.msra.mxu0 %v5549_v7  ;;  %3950 = vmatpush1.bf16.msra.mxu1 %v5551_v38  ;;  %v5597_v7 = vcombine.low %v992_v17, %v996_v18  ;;  %v5599_v38 = vcombine.low %v993_v19, %v997_v22  ;;  %v5629_v17 = vcombine.low %v1024_v57, %v1028_v58  ;;  %v554_v58 = vld [vmem:[#allocation10 + $0x50] sm:$0xff] }
 0x212   :  { %3787 = vmatprep.subr.bf16.mxu0 %v5558_v28  ;;  %3951 = vmatprep.subr.bf16.mxu1 %v5560_v29  ;;  %v5606_v28 = vcombine.high %v1000_v48, %v1004_v30  ;;  %v5608_v29 = vcombine.high %v1001_v31, %v1005_v34  ;;  %v5638_v22 = vcombine.high %v1032_v5, %v1036_v6 }
 0x215   :  { %3788 = vmatpush1.bf16.msra.mxu0 %v5557_v44  ;;  %3952 = vmatpush1.bf16.msra.mxu1 %v5559_v9  ;;  %v5605_v44 = vcombine.low %v1000_v48, %v1004_v30  ;;  %v5607_v9 = vcombine.low %v1001_v31, %v1005_v34  ;;  %v1045_v48 = vld [vmem:[#allocation10 + $0xfa8] sm:$0xff]  ;;  %v5949_v30 = vld [vmem:[#allocation8] sm:$0xff]  ;;  %v5637_v34 = vcombine.low %v1032_v5, %v1036_v6  ;;  %v562_v5 = vld [vmem:[#allocation10 + $0x90] sm:$0xff] }
 0x216   :  { %3789 = vmatprep.subr.bf16.mxu0 %v5566_v3  ;;  %3953 = vmatprep.subr.bf16.mxu1 %v5568_v37  ;;  %v5614_v3 = vcombine.high %v1008_v40, %v1012_v41  ;;  %v5616_v37 = vcombine.high %v1009_v42, %v1013_v43  ;;  %v566_v6 = vld [vmem:[#allocation10 + $0xb0] sm:$0xff] }
 0x219   :  { %3790 = vmatpush1.bf16.msra.mxu0 %v5565_v50  ;;  %3954 = vmatpush1.bf16.msra.mxu1 %v5567_v51  ;;  %v5613_v50 = vcombine.low %v1008_v40, %v1012_v41  ;;  %v5615_v51 = vcombine.low %v1009_v42, %v1013_v43  ;;  %v1052_v40 = vld [vmem:[#allocation10 + $0xfe0] sm:$0xff]  ;;  %v1049_v41 = vld [vmem:[#allocation10 + $0xfc8] sm:$0xff] }
 0x21a   :  { %3791 = vmatprep.subr.bf16.mxu0 %v5574_v52  ;;  %3955 = vmatprep.subr.bf16.mxu1 %v5576_v55  ;;  %v6519_v52 = vsub.s32 6, %v6405_v32  ;;  %v5622_v55 = vcombine.high %v1016_v45, %v1020_v46  ;;  %v1053_v42 = vld [vmem:[#allocation10 + $0xfe8] sm:$0xff] }
 0x21c   :  { %v507_v31 = vrot.slane %v5949_v30, %v6519_v52 }
 0x21d   :  { %3792 = vmatpush1.bf16.msra.mxu0 %v5573_v60  ;;  %3956 = vmatpush1.bf16.msra.mxu1 %v5575_v39  ;;  %v1029_v60 = vld [vmem:[#allocation10 + $0xf28] sm:$0xff]  ;;  %v5621_v39 = vcombine.low %v1016_v45, %v1020_v46  ;;  %v546_v45 = vld [vmem:[#allocation10 + $0x10] sm:$0xff] }
 0x21e   :  { %3793 = vmatprep.subr.bf16.mxu0 %v5582_v61  ;;  %3957 = vmatprep.subr.bf16.mxu1 %v5584_v62  ;;  %v5623_v61 = vcombine.low %v1017_v47, %v1021_v49  ;;  %v5947_v62 = vld [vmem:[#allocation5] sm:$0xff]  ;;  %v5632_v32 = vcombine.high %v1025_v59, %v1029_v60  ;;  %v5631_v18 = vcombine.low %v1025_v59, %v1029_v60  ;;  %v550_v46 = vld [vmem:[#allocation10 + $0x30] sm:$0xff]  ;;  %v547_v47 = vld [vmem:[#allocation10 + $0x18] sm:$0xff] }
 0x21f   :  { %v190_v2 = vrot.slane %v5947_v62, %v6519_v52  ;;  %v551_v49 = vld [vmem:[#allocation10 + $0x38] sm:$0xff]  ;;  %v558_v59 = vld [vmem:[#allocation10 + $0x70] sm:$0xff] }
 0x220   :  { %v5156_v57 = vcombine.high %v547_v47, %v551_v49  ;;  %v555_v60 = vld [vmem:[#allocation10 + $0x58] sm:$0xff] }
 0x221   :  { %3794 = vmatpush1.bf16.msra.mxu0 %v5581_v13  ;;  %3958 = vmatpush1.bf16.msra.mxu1 %v5583_v14  ;;  %v1033_v13 = vld [vmem:[#allocation10 + $0xf48] sm:$0xff]  ;;  %v422_v19 = vadd.f32 %v6458_v63, %v190_v2  ;;  %v5155_v2 = vcombine.low %v547_v47, %v551_v49  ;;  %v595_v47 = vld [vmem:[#allocation10 + $0x198] sm:$0xff] }
 0x222   :  { %3795 = vmatprep.subr.bf16.mxu0 %v5590_v15  ;;  %3959 = vmatprep.subr.bf16.mxu1 %v5592_v16  ;;  %v1037_v14 = vld [vmem:[#allocation10 + $0xf68] sm:$0xff]  ;;  %v5948_v15 = vld [vmem:[#allocation7] sm:$0xff]  ;;  %v599_v49 = vld [vmem:[#allocation10 + $0x1b8] sm:$0xff] }
 0x223   :  { %v457_v16 = vrot.slane %v5948_v15, %v6519_v52  ;;  %v5161_v15 = vcombine.low %v554_v58, %v558_v59 }
 0x225   :  { %3796 = vmatpush1.bf16.msra.mxu0 %v5589_v24  ;;  %3960 = vmatpush1.bf16.msra.mxu1 %v5591_v25  ;;  %v5640_v24 = vcombine.high %v1033_v13, %v1037_v14  ;;  %v1040_v25 = vld [vmem:[#allocation10 + $0xf80] sm:$0xff] }
 0x226   :  { %3797 = vmatprep.subr.bf16.mxu0 %v5598_v26  ;;  %3961 = vmatprep.subr.bf16.mxu1 %v5600_v27  ;;  %v1044_v26 = vld [vmem:[#allocation10 + $0xfa0] sm:$0xff]  ;;  %v1041_v27 = vld [vmem:[#allocation10 + $0xf88] sm:$0xff] }
 0x227   :  { %v5648_v63 = vcombine.high %v1041_v27, %v1045_v48  ;;  %v5645_v43 = vcombine.low %v1040_v25, %v1044_v26 }
 0x229   :  { %3798 = vmatpush1.bf16.msra.mxu0 %v5597_v7  ;;  %3962 = vmatpush1.bf16.msra.mxu1 %v5599_v38  ;;  %v5639_v7 = vcombine.low %v1033_v13, %v1037_v14  ;;  %v476_v38 = vmul.f32 %v457_v16, %v422_v19  ;;  %v563_v13 = vld [vmem:[#allocation10 + $0x98] sm:$0xff]  ;;  %v570_v19 = vld [vmem:[#allocation10 + $0xd0] sm:$0xff] }
 0x22a   :  { %3799 = vmatprep.subr.bf16.mxu0 %v5606_v28  ;;  %3963 = vmatprep.subr.bf16.mxu1 %v5608_v29  ;;  %v5646_v28 = vcombine.high %v1040_v25, %v1044_v26  ;;  %v1048_v29 = vld [vmem:[#allocation10 + $0xfc0] sm:$0xff]  ;;  %v567_v14 = vld [vmem:[#allocation10 + $0xb8] sm:$0xff]  ;;  %v5169_v26 = vcombine.low %v562_v5, %v566_v6 }
 0x22b   :  { %v575_v25 = vld [vmem:[#allocation10 + $0xf8] sm:$0xff] }
 0x22d   :  { %3800 = vmatpush1.bf16.msra.mxu0 %v5605_v44  ;;  %3964 = vmatpush1.bf16.msra.mxu1 %v5607_v9  ;;  %v5647_v44 = vcombine.low %v1041_v27, %v1045_v48  ;;  %v526_v9 = vadd.f32 %v507_v31, %v476_v38  ;;  %v5171_v27 = vcombine.low %v563_v13, %v567_v14  ;;  %v578_v31 = vld [vmem:[#allocation10 + $0x110] sm:$0xff] }
 0x22e   :  { %3801 = vmatprep.subr.bf16.mxu0 %v5614_v3  ;;  %3965 = vmatprep.subr.bf16.mxu1 %v5616_v37  ;;  %v5654_v3 = vcombine.high %v1048_v29, %v1052_v40  ;;  %v5656_v37 = vcombine.high %v1049_v41, %v1053_v42 }
 0x231   :  { %3802 = vmatpush1.bf16.msra.mxu0 %v5613_v50  ;;  %3966 = vmatpush1.bf16.msra.mxu1 %v5615_v51  ;;  %v5653_v50 = vcombine.low %v1048_v29, %v1052_v40  ;;  %v5655_v51 = vcombine.low %v1049_v41, %v1053_v42  ;;  %v586_v40 = vld [vmem:[#allocation10 + $0x150] sm:$0xff]  ;;  %v587_v42 = vld [vmem:[#allocation10 + $0x158] sm:$0xff] }
 0x232   :  { %3803 = vmatprep.subr.bf16.mxu0 %v5622_v55  ;;  %3967 = vmatprep.subr.bf16.mxu1 %v5624_v56  ;;  %v534_v55 = vmax.f32 %v526_v9, 0.0  ;;  %v5154_v56 = vcombine.high %v546_v45, %v550_v46  ;;  %v590_v41 = vld [vmem:[#allocation10 + $0x170] sm:$0xff] }
 0x234   :  { %v6525_v62 = vpack.c.bf16 %v534_v55, %v534_v55 }
 0x235   :  { %3804 = vmatpush1.bf16.msra.mxu0 %v5621_v39  ;;  %3968 = vmatpush1.bf16.msra.mxu1 %v5623_v61  ;;  %v559_v39 = vld [vmem:[#allocation10 + $0x78] sm:$0xff]  ;;  %v5153_v61 = vcombine.low %v546_v45, %v550_v46  ;;  %v594_v45 = vld [vmem:[#allocation10 + $0x190] sm:$0xff] }
 0x236   :  { %3805 = vmatprep.subr.bf16.mxu0 %v5630_v4  ;;  %3969 = vmatprep.subr.bf16.mxu1 %v5632_v32  ;;  %v5162_v4 = vcombine.high %v554_v58, %v558_v59  ;;  %v5164_v32 = vcombine.high %v555_v60, %v559_v39  ;;  %v5163_v16 = vcombine.low %v555_v60, %v559_v39  ;;  %v598_v46 = vld [vmem:[#allocation10 + $0x1b0] sm:$0xff]  ;;  %v603_v59 = vld [vmem:[#allocation10 + $0x1d8] sm:$0xff] }
 0x237   :  { %v5202_v55 = vcombine.high %v594_v45, %v598_v46  ;;  %v606_v58 = vld [vmem:[#allocation10 + $0x1f0] sm:$0xff]  ;;  %v607_v60 = vld [vmem:[#allocation10 + $0x1f8] sm:$0xff]  ;;  %v5201_v39 = vcombine.low %v594_v45, %v598_v46 }
 0x238   :  { %v646_v45 = vld [vmem:[#allocation10 + $0x330] sm:$0xff]  ;;  %v643_v46 = vld [vmem:[#allocation10 + $0x318] sm:$0xff] }
 0x239   :  { %3806 = vmatpush1.bf16.msra.mxu0 %v5629_v17  ;;  %3970 = vmatpush1.bf16.msra.mxu1 %v5631_v18  ;;  %v5170_v17 = vcombine.high %v562_v5, %v566_v6  ;;  %v5172_v18 = vcombine.high %v563_v13, %v567_v14  ;;  %v614_v5 = vld [vmem:[#allocation10 + $0x230] sm:$0xff]  ;;  %v611_v6 = vld [vmem:[#allocation10 + $0x218] sm:$0xff] }
 0x23a   :  { %3807 = vmatprep.subr.bf16.mxu0 %v5638_v22  ;;  %3971 = vmatprep.subr.bf16.mxu1 %v5640_v24  ;;  %v574_v22 = vld [vmem:[#allocation10 + $0xf0] sm:$0xff]  ;;  %v571_v24 = vld [vmem:[#allocation10 + $0xd8] sm:$0xff] }
 0x23b   :  { %v5178_v48 = vcombine.high %v570_v19, %v574_v22  ;;  %v5180_v30 = vcombine.high %v571_v24, %v575_v25  ;;  %v5177_v38 = vcombine.low %v570_v19, %v574_v22  ;;  %v615_v13 = vld [vmem:[#allocation10 + $0x238] sm:$0xff]  ;;  %v622_v19 = vld [vmem:[#allocation10 + $0x270] sm:$0xff] }
 0x23c   :  { %v619_v22 = vld [vmem:[#allocation10 + $0x258] sm:$0xff] }
 0x23d   :  { %3808 = vmatpush1.bf16.msra.mxu0 %v5637_v34  ;;  %3972 = vmatpush1.bf16.msra.mxu1 %v5639_v7  ;;  %v582_v34 = vld [vmem:[#allocation10 + $0x130] sm:$0xff]  ;;  %v583_v7 = vld [vmem:[#allocation10 + $0x138] sm:$0xff] }
 0x23e   :  { %3809 = vmatprep.subr.bf16.mxu0 %v5646_v28  ;;  %3973 = vmatprep.subr.bf16.mxu1 %v5648_v63  ;;  %v5179_v28 = vcombine.low %v571_v24, %v575_v25  ;;  %v5186_v63 = vcombine.high %v578_v31, %v582_v34  ;;  %v623_v24 = vld [vmem:[#allocation10 + $0x278] sm:$0xff] }
 0x241   :  { %3810 = vmatpush1.bf16.msra.mxu0 %v5645_v43  ;;  %3974 = vmatpush1.bf16.msra.mxu1 %v5647_v44  ;;  %v591_v43 = vld [vmem:[#allocation10 + $0x178] sm:$0xff]  ;;  %v5185_v44 = vcombine.low %v578_v31, %v582_v34  ;;  %v630_v31 = vld [vmem:[#allocation10 + $0x2b0] sm:$0xff] }
 0x242   :  { %3811 = vmatprep.subr.bf16.mxu0 %v5654_v3  ;;  %3975 = vmatprep.subr.bf16.mxu1 %v5656_v37  ;;  %v5194_v3 = vcombine.high %v586_v40, %v590_v41  ;;  %v5196_v37 = vcombine.high %v587_v42, %v591_v43  ;;  %v627_v34 = vld [vmem:[#allocation10 + $0x298] sm:$0xff] }
 0x245   :  { %3812 = vmatpush1.bf16.msra.mxu0 %v5653_v50  ;;  %3976 = vmatpush1.bf16.msra.mxu1 %v5655_v51  ;;  %v5193_v50 = vcombine.low %v586_v40, %v590_v41  ;;  %v5195_v51 = vcombine.low %v587_v42, %v591_v43  ;;  %v638_v40 = vld [vmem:[#allocation10 + $0x2f0] sm:$0xff]  ;;  %v635_v41 = vld [vmem:[#allocation10 + $0x2d8] sm:$0xff] }
 0x246   :  { %3986 = vmatprep.subr.bf16.mxu0 %v5154_v56  ;;  %4150 = vmatprep.subr.bf16.mxu1 %v5156_v57  ;;  %v5204_v56 = vcombine.high %v595_v47, %v599_v49  ;;  %v602_v57 = vld [vmem:[#allocation10 + $0x1d0] sm:$0xff]  ;;  %v639_v42 = vld [vmem:[#allocation10 + $0x2f8] sm:$0xff] }
 0x247   :  { %v5209_v14 = vcombine.low %v602_v57, %v606_v58 }
 0x248   :  { %3814 = vmatmul.mubr.bf16.vlgmr.msra.gmra.mrb[8].mxu0 %v6525_v62  ;;  %3978 = vmatmul.mubr.bf16.vlgmr.msra.gmra.mrb[8].mxu1 %v6525_v62 }
 0x249   :  { %3987 = vmatpush1.bf16.msra.mxu0 %v5153_v61  ;;  %4018 = vmatprep.mubr.bf16.mxu0 %v6446_v10  ;;  %v5203_v61 = vcombine.low %v595_v47, %v599_v49  ;;  %v647_v47 = vld [vmem:[#allocation10 + $0x338] sm:$0xff] }
 0x24a   :  { %4151 = vmatpush1.bf16.msra.mxu1 %v5155_v2  ;;  %4182 = vmatprep.mubr.bf16.mxu1 %v6446_v10  ;;  %v579_v10 = vld [vmem:[#allocation10 + $0x118] sm:$0xff]  ;;  %v5210_v2 = vcombine.high %v602_v57, %v606_v58  ;;  %v654_v57 = vld [vmem:[#allocation10 + $0x370] sm:$0xff] }
 0x24b   :  { %3988 = vmatprep.subr.bf16.mxu0 %v5162_v4  ;;  %4152 = vmatprep.subr.bf16.mxu1 %v5164_v32  ;;  %v5188_v29 = vcombine.high %v579_v10, %v583_v7  ;;  %v5187_v9 = vcombine.low %v579_v10, %v583_v7  ;;  %v5212_v4 = vcombine.high %v603_v59, %v607_v60  ;;  %v610_v32 = vld [vmem:[#allocation10 + $0x210] sm:$0xff]  ;;  %v631_v10 = vld [vmem:[#allocation10 + $0x2b8] sm:$0xff] }
 0x24c   :  { %v5217_v25 = vcombine.low %v610_v32, %v614_v5  ;;  %v651_v58 = vld [vmem:[#allocation10 + $0x358] sm:$0xff] }
 0x24d   :  { %3989 = vmatpush1.bf16.msra.mxu0 %v5161_v15  ;;  %v5211_v15 = vcombine.low %v603_v59, %v607_v60  ;;  %v655_v59 = vld [vmem:[#allocation10 + $0x378] sm:$0xff] }
 0x24e   :  { %4153 = vmatpush1.bf16.msra.mxu1 %v5163_v16  ;;  %3990 = vmatprep.subr.bf16.mxu0 %v5170_v17  ;;  %v5218_v16 = vcombine.high %v610_v32, %v614_v5  ;;  %v5220_v17 = vcombine.high %v611_v6, %v615_v13  ;;  %v662_v32 = vld [vmem:[#allocation10 + $0x3b0] sm:$0xff]  ;;  %v659_v5 = vld [vmem:[#allocation10 + $0x398] sm:$0xff] }
 0x24f   :  { %4154 = vmatprep.subr.bf16.mxu1 %v5172_v18  ;;  %v618_v18 = vld [vmem:[#allocation10 + $0x250] sm:$0xff] }
 0x250   :  { %v5225_v7 = vcombine.low %v618_v18, %v622_v19 }
 0x251   :  { %3991 = vmatpush1.bf16.msra.mxu0 %v5169_v26  ;;  %v5219_v26 = vcombine.low %v611_v6, %v615_v13  ;;  %v663_v6 = vld [vmem:[#allocation10 + $0x3b8] sm:$0xff] }
 0x252   :  { %4155 = vmatpush1.bf16.msra.mxu1 %v5171_v27  ;;  %3992 = vmatprep.subr.bf16.mxu0 %v5178_v48  ;;  %v5226_v27 = vcombine.high %v618_v18, %v622_v19  ;;  %v5228_v48 = vcombine.high %v619_v22, %v623_v24  ;;  %v670_v18 = vld [vmem:[#allocation10 + $0x3f0] sm:$0xff]  ;;  %v667_v19 = vld [vmem:[#allocation10 + $0x3d8] sm:$0xff] }
 0x253   :  { %4156 = vmatprep.subr.bf16.mxu1 %v5180_v30  ;;  %v626_v30 = vld [vmem:[#allocation10 + $0x290] sm:$0xff] }
 0x254   :  { %v5233_v43 = vcombine.low %v626_v30, %v630_v31 }
 0x255   :  { %3993 = vmatpush1.bf16.msra.mxu0 %v5177_v38  ;;  %v5227_v38 = vcombine.low %v619_v22, %v623_v24  ;;  %v671_v22 = vld [vmem:[#allocation10 + $0x3f8] sm:$0xff] }
 0x256   :  { %4157 = vmatpush1.bf16.msra.mxu1 %v5179_v28  ;;  %3994 = vmatprep.subr.bf16.mxu0 %v5186_v63  ;;  %v5234_v28 = vcombine.high %v626_v30, %v630_v31  ;;  %v5236_v63 = vcombine.high %v627_v34, %v631_v10  ;;  %v678_v30 = vld [vmem:[#allocation10 + $0x430] sm:$0xff]  ;;  %v675_v31 = vld [vmem:[#allocation10 + $0x418] sm:$0xff] }
 0x257   :  { %4158 = vmatprep.subr.bf16.mxu1 %v5188_v29  ;;  %v634_v29 = vld [vmem:[#allocation10 + $0x2d0] sm:$0xff] }
 0x258   :  { %v5241_v49 = vcombine.low %v634_v29, %v638_v40 }
 0x259   :  { %3995 = vmatpush1.bf16.msra.mxu0 %v5185_v44  ;;  %v5235_v44 = vcombine.low %v627_v34, %v631_v10  ;;  %v679_v34 = vld [vmem:[#allocation10 + $0x438] sm:$0xff] }
 0x25a   :  { %4159 = vmatpush1.bf16.msra.mxu1 %v5187_v9  ;;  %3996 = vmatprep.subr.bf16.mxu0 %v5194_v3  ;;  %v5242_v9 = vcombine.high %v634_v29, %v638_v40  ;;  %v5244_v3 = vcombine.high %v635_v41, %v639_v42  ;;  %v686_v29 = vld [vmem:[#allocation10 + $0x470] sm:$0xff] }
 0x25b   :  { %4160 = vmatprep.subr.bf16.mxu1 %v5196_v37  ;;  %v642_v37 = vld [vmem:[#allocation10 + $0x310] sm:$0xff] }
 0x25c   :  { %v5249_v60 = vcombine.low %v642_v37, %v646_v45 }
 0x25d   :  { %3997 = vmatpush1.bf16.msra.mxu0 %v5193_v50  ;;  %v5243_v50 = vcombine.low %v635_v41, %v639_v42  ;;  %v683_v41 = vld [vmem:[#allocation10 + $0x458] sm:$0xff] }
 0x25e   :  { %4161 = vmatpush1.bf16.msra.mxu1 %v5195_v51  ;;  %3998 = vmatprep.subr.bf16.mxu0 %v5202_v55  ;;  %v5250_v51 = vcombine.high %v642_v37, %v646_v45  ;;  %v5252_v55 = vcombine.high %v643_v46, %v647_v47  ;;  %v687_v42 = vld [vmem:[#allocation10 + $0x478] sm:$0xff] }
 0x25f   :  { %4162 = vmatprep.subr.bf16.mxu1 %v5204_v56  ;;  %v650_v56 = vld [vmem:[#allocation10 + $0x350] sm:$0xff]  ;;  %v5292_v37 = vcombine.high %v683_v41, %v687_v42  ;;  %v691_v45 = vld [vmem:[#allocation10 + $0x498] sm:$0xff] }
 0x260   :  { %v5257_v13 = vcombine.low %v650_v56, %v654_v57 }
 0x261   :  { %3999 = vmatpush1.bf16.msra.mxu0 %v5201_v39  ;;  %v5251_v39 = vcombine.low %v643_v46, %v647_v47  ;;  %v695_v46 = vld [vmem:[#allocation10 + $0x4b8] sm:$0xff] }
 0x262   :  { %4163 = vmatpush1.bf16.msra.mxu1 %v5203_v61  ;;  %4000 = vmatprep.subr.bf16.mxu0 %v5210_v2  ;;  %v5258_v61 = vcombine.high %v650_v56, %v654_v57  ;;  %v5260_v2 = vcombine.high %v651_v58, %v655_v59  ;;  %v702_v56 = vld [vmem:[#allocation10 + $0x4f0] sm:$0xff]  ;;  %v699_v57 = vld [vmem:[#allocation10 + $0x4d8] sm:$0xff] }
 0x263   :  { %4164 = vmatprep.subr.bf16.mxu1 %v5212_v4  ;;  %v658_v4 = vld [vmem:[#allocation10 + $0x390] sm:$0xff] }
 0x264   :  { %v5265_v24 = vcombine.low %v658_v4, %v662_v32 }
 0x265   :  { %4001 = vmatpush1.bf16.msra.mxu0 %v5209_v14  ;;  %v5259_v14 = vcombine.low %v651_v58, %v655_v59  ;;  %v703_v58 = vld [vmem:[#allocation10 + $0x4f8] sm:$0xff] }
 0x266   :  { %4165 = vmatpush1.bf16.msra.mxu1 %v5211_v15  ;;  %4002 = vmatprep.subr.bf16.mxu0 %v5218_v16  ;;  %v5266_v15 = vcombine.high %v658_v4, %v662_v32  ;;  %v5268_v16 = vcombine.high %v659_v5, %v663_v6  ;;  %v707_v4 = vld [vmem:[#allocation10 + $0x518] sm:$0xff] }
 0x267   :  { %4166 = vmatprep.subr.bf16.mxu1 %v5220_v17  ;;  %v666_v17 = vld [vmem:[#allocation10 + $0x3d0] sm:$0xff]  ;;  %v711_v32 = vld [vmem:[#allocation10 + $0x538] sm:$0xff] }
 0x268   :  { %v5273_v10 = vcombine.low %v666_v17, %v670_v18 }
 0x269   :  { %4003 = vmatpush1.bf16.msra.mxu0 %v5217_v25  ;;  %v5267_v25 = vcombine.low %v659_v5, %v663_v6  ;;  %v5307_v5 = vcombine.low %v699_v57, %v703_v58 }
 0x26a   :  { %4167 = vmatpush1.bf16.msra.mxu1 %v5219_v26  ;;  %4004 = vmatprep.subr.bf16.mxu0 %v5226_v27  ;;  %v5274_v26 = vcombine.high %v666_v17, %v670_v18  ;;  %v5276_v27 = vcombine.high %v667_v19, %v671_v22  ;;  %v719_v17 = vld [vmem:[#allocation10 + $0x578] sm:$0xff] }
 0x26b   :  { %4168 = vmatprep.subr.bf16.mxu1 %v5228_v48  ;;  %v674_v48 = vld [vmem:[#allocation10 + $0x410] sm:$0xff] }
 0x26c   :  { %v5281_v40 = vcombine.low %v674_v48, %v678_v30 }
 0x26d   :  { %4005 = vmatpush1.bf16.msra.mxu0 %v5225_v7  ;;  %v5275_v7 = vcombine.low %v667_v19, %v671_v22  ;;  %v5315_v19 = vcombine.low %v707_v4, %v711_v32 }
 0x26e   :  { %4169 = vmatpush1.bf16.msra.mxu1 %v5227_v38  ;;  %4006 = vmatprep.subr.bf16.mxu0 %v5234_v28  ;;  %v5282_v38 = vcombine.high %v674_v48, %v678_v30  ;;  %v5284_v28 = vcombine.high %v675_v31, %v679_v34  ;;  %v727_v48 = vld [vmem:[#allocation10 + $0x5b8] sm:$0xff] }
 0x26f   :  { %4170 = vmatprep.subr.bf16.mxu1 %v5236_v63  ;;  %v682_v63 = vld [vmem:[#allocation10 + $0x450] sm:$0xff] }
 0x270   :  { %v5289_v47 = vcombine.low %v682_v63, %v686_v29 }
 0x271   :  { %4007 = vmatpush1.bf16.msra.mxu0 %v5233_v43  ;;  %v5283_v43 = vcombine.low %v675_v31, %v679_v34 }
 0x272   :  { %4171 = vmatpush1.bf16.msra.mxu1 %v5235_v44  ;;  %4008 = vmatprep.subr.bf16.mxu0 %v5242_v9  ;;  %v5290_v44 = vcombine.high %v682_v63, %v686_v29  ;;  %v690_v9 = vld [vmem:[#allocation10 + $0x490] sm:$0xff]  ;;  %v735_v63 = vld [vmem:[#allocation10 + $0x5f8] sm:$0xff] }
 0x273   :  { %4172 = vmatprep.subr.bf16.mxu1 %v5244_v3  ;;  %v694_v3 = vld [vmem:[#allocation10 + $0x4b0] sm:$0xff] }
 0x274   :  { %v5297_v59 = vcombine.low %v690_v9, %v694_v3 }
 0x275   :  { %4009 = vmatpush1.bf16.msra.mxu0 %v5241_v49  ;;  %v5291_v49 = vcombine.low %v683_v41, %v687_v42 }
 0x276   :  { %4173 = vmatpush1.bf16.msra.mxu1 %v5243_v50  ;;  %4010 = vmatprep.subr.bf16.mxu0 %v5250_v51  ;;  %v5298_v50 = vcombine.high %v690_v9, %v694_v3  ;;  %v5300_v51 = vcombine.high %v691_v45, %v695_v46  ;;  %v739_v9 = vld [vmem:[#allocation10 + $0x618] sm:$0xff] }
 0x277   :  { %4174 = vmatprep.subr.bf16.mxu1 %v5252_v55  ;;  %v698_v55 = vld [vmem:[#allocation10 + $0x4d0] sm:$0xff]  ;;  %v743_v3 = vld [vmem:[#allocation10 + $0x638] sm:$0xff] }
 0x279   :  { %4011 = vmatpush1.bf16.msra.mxu0 %v5249_v60  ;;  %v5306_v60 = vcombine.high %v698_v55, %v702_v56 }
 0x27a   :  { %4175 = vmatpush1.bf16.msra.mxu1 %v5251_v39  ;;  %4012 = vmatprep.subr.bf16.mxu0 %v5258_v61  ;;  %v5308_v39 = vcombine.high %v699_v57, %v703_v58  ;;  %v706_v61 = vld [vmem:[#allocation10 + $0x510] sm:$0xff]  ;;  %v5347_v57 = vcombine.low %v739_v9, %v743_v3 }
 0x27b   :  { %4176 = vmatprep.subr.bf16.mxu1 %v5260_v2  ;;  %v710_v2 = vld [vmem:[#allocation10 + $0x530] sm:$0xff] }
 0x27c   :  { %v5314_v6 = vcombine.high %v706_v61, %v710_v2  ;;  %v5313_v18 = vcombine.low %v706_v61, %v710_v2  ;;  %v759_v61 = vld [vmem:[#allocation10 + $0x6b8] sm:$0xff] }
 0x27d   :  { %4013 = vmatpush1.bf16.msra.mxu0 %v5257_v13  ;;  %v5316_v13 = vcombine.high %v707_v4, %v711_v32 }
 0x27e   :  { %4177 = vmatpush1.bf16.msra.mxu1 %v5259_v14  ;;  %4014 = vmatprep.subr.bf16.mxu0 %v5266_v15  ;;  %v714_v14 = vld [vmem:[#allocation10 + $0x550] sm:$0xff] }
 0x27f   :  { %4178 = vmatprep.subr.bf16.mxu1 %v5268_v16  ;;  %v718_v15 = vld [vmem:[#allocation10 + $0x570] sm:$0xff]  ;;  %v715_v16 = vld [vmem:[#allocation10 + $0x558] sm:$0xff] }
 0x280   :  { %v5322_v22 = vcombine.high %v714_v14, %v718_v15  ;;  %v5321_v30 = vcombine.low %v714_v14, %v718_v15  ;;  %v5323_v31 = vcombine.low %v715_v16, %v719_v17  ;;  %v767_v14 = vld [vmem:[#allocation10 + $0x6f8] sm:$0xff] }
 0x281   :  { %4015 = vmatpush1.bf16.msra.mxu0 %v5265_v24  ;;  %v5324_v24 = vcombine.high %v715_v16, %v719_v17 }
 0x282   :  { %4179 = vmatpush1.bf16.msra.mxu1 %v5267_v25  ;;  %4016 = vmatprep.subr.bf16.mxu0 %v5274_v26  ;;  %v722_v25 = vld [vmem:[#allocation10 + $0x590] sm:$0xff] }
 0x283   :  { %4180 = vmatprep.subr.bf16.mxu1 %v5276_v27  ;;  %v726_v26 = vld [vmem:[#allocation10 + $0x5b0] sm:$0xff]  ;;  %v723_v27 = vld [vmem:[#allocation10 + $0x598] sm:$0xff] }
 0x284   :  { %v5330_v34 = vcombine.high %v722_v25, %v726_v26  ;;  %v5329_v29 = vcombine.low %v722_v25, %v726_v26  ;;  %v775_v25 = vld [vmem:[#allocation10 + $0x738] sm:$0xff] }
 0x285   :  { %4017 = vmatpush1.bf16.msra.mxu0 %v5273_v10  ;;  %v5332_v10 = vcombine.high %v723_v27, %v727_v48 }
 0x286   :  { %4181 = vmatpush1.bf16.msra.mxu1 %v5275_v7  ;;  %4027 = vmatprep.subr.bf16.mxu0 %v5282_v38  ;;  %v730_v7 = vld [vmem:[#allocation10 + $0x5d0] sm:$0xff] }
 0x287   :  { %4191 = vmatprep.subr.bf16.mxu1 %v5284_v28  ;;  %v734_v38 = vld [vmem:[#allocation10 + $0x5f0] sm:$0xff]  ;;  %v731_v28 = vld [vmem:[#allocation10 + $0x5d8] sm:$0xff] }
 0x288   :  { %4019 = vmatmul.mubr.bf16.vlgmr.msra.gmra.mrb[12].mxu0 %v6448_v12  ;;  %v5338_v41 = vcombine.high %v730_v7, %v734_v38  ;;  %v5340_v42 = vcombine.high %v731_v28, %v735_v63 }
 0x289   :  { %4183 = vmatmul.mubr.bf16.vlgmr.msra.gmra.mrb[12].mxu1 %v6448_v12  ;;  %4028 = vmatpush1.bf16.msra.mxu0 %v5281_v40  ;;  %v5299_v12 = vcombine.low %v691_v45, %v695_v46  ;;  %v5331_v40 = vcombine.low %v723_v27, %v727_v48  ;;  %v5339_v45 = vcombine.low %v731_v28, %v735_v63 }
 0x28a   :  { %4059 = vmatprep.mubr.bf16.mxu0 %v6452_v20  ;;  %4192 = vmatpush1.bf16.msra.mxu1 %v5283_v43  ;;  %v738_v43 = vld [vmem:[#allocation10 + $0x610] sm:$0xff] }
 0x28b   :  { %4223 = vmatprep.mubr.bf16.mxu1 %v6452_v20  ;;  %4029 = vmatprep.subr.bf16.mxu0 %v5290_v44  ;;  %v5305_v20 = vcombine.low %v698_v55, %v702_v56  ;;  %v742_v44 = vld [vmem:[#allocation10 + $0x630] sm:$0xff]  ;;  %v751_v55 = vld [vmem:[#allocation10 + $0x678] sm:$0xff] }
 0x28c   :  { %4193 = vmatprep.subr.bf16.mxu1 %v5292_v37  ;;  %v5337_v37 = vcombine.low %v730_v7, %v734_v38  ;;  %v5346_v46 = vcombine.high %v738_v43, %v742_v44  ;;  %v5345_v56 = vcombine.low %v738_v43, %v742_v44  ;;  %v783_v7 = vld [vmem:[#allocation10 + $0x778] sm:$0xff] }
 0x28d   :  { %4030 = vmatpush1.bf16.msra.mxu0 %v5289_v47  ;;  %v5348_v47 = vcombine.high %v739_v9, %v743_v3  ;;  %v791_v43 = vld [vmem:[#allocation10 + $0x7b8] sm:$0xff] }
 0x28e   :  { %4194 = vmatpush1.bf16.msra.mxu1 %v5291_v49  ;;  %4031 = vmatprep.subr.bf16.mxu0 %v5298_v50  ;;  %v746_v49 = vld [vmem:[#allocation10 + $0x650] sm:$0xff] }
 0x28f   :  { %4195 = vmatprep.subr.bf16.mxu1 %v5300_v51  ;;  %v750_v50 = vld [vmem:[#allocation10 + $0x670] sm:$0xff]  ;;  %v747_v51 = vld [vmem:[#allocation10 + $0x658] sm:$0xff] }
 0x290   :  { %v5354_v58 = vcombine.high %v746_v49, %v750_v50  ;;  %v5353_v2 = vcombine.low %v746_v49, %v750_v50  ;;  %v5355_v4 = vcombine.low %v747_v51, %v751_v55  ;;  %v799_v49 = vld [vmem:[#allocation10 + $0x7f8] sm:$0xff] }
 0x291   :  { %4032 = vmatpush1.bf16.msra.mxu0 %v5297_v59  ;;  %v5356_v59 = vcombine.high %v747_v51, %v751_v55 }
 0x292   :  { %4196 = vmatpush1.bf16.msra.mxu1 %v5299_v12  ;;  %4033 = vmatprep.subr.bf16.mxu0 %v5306_v60  ;;  %v754_v12 = vld [vmem:[#allocation10 + $0x690] sm:$0xff] }
 0x293   :  { %4197 = vmatprep.subr.bf16.mxu1 %v5308_v39  ;;  %v758_v60 = vld [vmem:[#allocation10 + $0x6b0] sm:$0xff]  ;;  %v755_v39 = vld [vmem:[#allocation10 + $0x698] sm:$0xff] }
 0x294   :  { %v5362_v32 = vcombine.high %v754_v12, %v758_v60  ;;  %v5361_v15 = vcombine.low %v754_v12, %v758_v60  ;;  %v5363_v16 = vcombine.low %v755_v39, %v759_v61  ;;  %v807_v12 = vld [vmem:[#allocation10 + $0x838] sm:$0xff] }
 0x295   :  { %4034 = vmatpush1.bf16.msra.mxu0 %v5305_v20  ;;  %v5364_v20 = vcombine.high %v755_v39, %v759_v61 }
 0x296   :  { %4198 = vmatpush1.bf16.msra.mxu1 %v5307_v5  ;;  %4035 = vmatprep.subr.bf16.mxu0 %v5314_v6  ;;  %v762_v5 = vld [vmem:[#allocation10 + $0x6d0] sm:$0xff] }
 0x297   :  { %4199 = vmatprep.subr.bf16.mxu1 %v5316_v13  ;;  %v766_v6 = vld [vmem:[#allocation10 + $0x6f0] sm:$0xff]  ;;  %v763_v13 = vld [vmem:[#allocation10 + $0x6d8] sm:$0xff] }
 0x298   :  { %v5370_v17 = vcombine.high %v762_v5, %v766_v6  ;;  %v5369_v26 = vcombine.low %v762_v5, %v766_v6  ;;  %v5371_v27 = vcombine.low %v763_v13, %v767_v14  ;;  %v811_v5 = vld [vmem:[#allocation10 + $0x858] sm:$0xff] }
 0x299   :  { %4036 = vmatpush1.bf16.msra.mxu0 %v5313_v18  ;;  %v5372_v18 = vcombine.high %v763_v13, %v767_v14  ;;  %v815_v6 = vld [vmem:[#allocation10 + $0x878] sm:$0xff] }
 0x29a   :  { %4200 = vmatpush1.bf16.msra.mxu1 %v5315_v19  ;;  %4037 = vmatprep.subr.bf16.mxu0 %v5322_v22  ;;  %v770_v19 = vld [vmem:[#allocation10 + $0x710] sm:$0xff] }
 0x29b   :  { %4201 = vmatprep.subr.bf16.mxu1 %v5324_v24  ;;  %v774_v22 = vld [vmem:[#allocation10 + $0x730] sm:$0xff]  ;;  %v771_v24 = vld [vmem:[#allocation10 + $0x718] sm:$0xff] }
 0x29c   :  { %v5378_v48 = vcombine.high %v770_v19, %v774_v22  ;;  %v5377_v38 = vcombine.low %v770_v19, %v774_v22  ;;  %v5379_v28 = vcombine.low %v771_v24, %v775_v25  ;;  %v823_v19 = vld [vmem:[#allocation10 + $0x8b8] sm:$0xff] }
 0x29d   :  { %4038 = vmatpush1.bf16.msra.mxu0 %v5321_v30  ;;  %v5380_v30 = vcombine.high %v771_v24, %v775_v25  ;;  %v5419_v24 = vcombine.low %v811_v5, %v815_v6 }
 0x29e   :  { %4202 = vmatpush1.bf16.msra.mxu1 %v5323_v31  ;;  %4039 = vmatprep.subr.bf16.mxu0 %v5330_v34  ;;  %v778_v31 = vld [vmem:[#allocation10 + $0x750] sm:$0xff] }
 0x29f   :  { %4203 = vmatprep.subr.bf16.mxu1 %v5332_v10  ;;  %v782_v34 = vld [vmem:[#allocation10 + $0x770] sm:$0xff]  ;;  %v779_v10 = vld [vmem:[#allocation10 + $0x758] sm:$0xff] }
 0x2a0   :  { %v5386_v63 = vcombine.high %v778_v31, %v782_v34  ;;  %v5385_v44 = vcombine.low %v778_v31, %v782_v34  ;;  %v5387_v9 = vcombine.low %v779_v10, %v783_v7  ;;  %v831_v31 = vld [vmem:[#allocation10 + $0x8f8] sm:$0xff] }
 0x2a1   :  { %4040 = vmatpush1.bf16.msra.mxu0 %v5329_v29  ;;  %v5388_v29 = vcombine.high %v779_v10, %v783_v7 }
 0x2a2   :  { %4204 = vmatpush1.bf16.msra.mxu1 %v5331_v40  ;;  %4041 = vmatprep.subr.bf16.mxu0 %v5338_v41  ;;  %v786_v40 = vld [vmem:[#allocation10 + $0x790] sm:$0xff] }
 0x2a3   :  { %4205 = vmatprep.subr.bf16.mxu1 %v5340_v42  ;;  %v790_v41 = vld [vmem:[#allocation10 + $0x7b0] sm:$0xff]  ;;  %v787_v42 = vld [vmem:[#allocation10 + $0x798] sm:$0xff] }
 0x2a4   :  { %v5394_v3 = vcombine.high %v786_v40, %v790_v41  ;;  %v5393_v50 = vcombine.low %v786_v40, %v790_v41  ;;  %v5395_v51 = vcombine.low %v787_v42, %v791_v43 }
 0x2a5   :  { %4042 = vmatpush1.bf16.msra.mxu0 %v5337_v37  ;;  %v5396_v37 = vcombine.high %v787_v42, %v791_v43  ;;  %v842_v43 = vld [vmem:[#allocation10 + $0x950] sm:$0xff] }
 0x2a6   :  { %4206 = vmatpush1.bf16.msra.mxu1 %v5339_v45  ;;  %4043 = vmatprep.subr.bf16.mxu0 %v5346_v46  ;;  %v794_v45 = vld [vmem:[#allocation10 + $0x7d0] sm:$0xff] }
 0x2a7   :  { %4207 = vmatprep.subr.bf16.mxu1 %v5348_v47  ;;  %v798_v46 = vld [vmem:[#allocation10 + $0x7f0] sm:$0xff]  ;;  %v795_v47 = vld [vmem:[#allocation10 + $0x7d8] sm:$0xff] }
 0x2a8   :  { %v5402_v55 = vcombine.high %v794_v45, %v798_v46  ;;  %v5401_v60 = vcombine.low %v794_v45, %v798_v46  ;;  %v5403_v39 = vcombine.low %v795_v47, %v799_v49 }
 0x2a9   :  { %4044 = vmatpush1.bf16.msra.mxu0 %v5345_v56  ;;  %v5404_v56 = vcombine.high %v795_v47, %v799_v49  ;;  %v850_v49 = vld [vmem:[#allocation10 + $0x990] sm:$0xff] }
 0x2aa   :  { %4208 = vmatpush1.bf16.msra.mxu1 %v5347_v57  ;;  %4045 = vmatprep.subr.bf16.mxu0 %v5354_v58  ;;  %v802_v57 = vld [vmem:[#allocation10 + $0x810] sm:$0xff] }
 0x2ab   :  { %4209 = vmatprep.subr.bf16.mxu1 %v5356_v59  ;;  %v806_v58 = vld [vmem:[#allocation10 + $0x830] sm:$0xff]  ;;  %v803_v59 = vld [vmem:[#allocation10 + $0x818] sm:$0xff] }
 0x2ac   :  { %v5410_v61 = vcombine.high %v802_v57, %v806_v58  ;;  %v5411_v13 = vcombine.low %v803_v59, %v807_v12 }
 0x2ad   :  { %4046 = vmatpush1.bf16.msra.mxu0 %v5353_v2  ;;  %v5412_v2 = vcombine.high %v803_v59, %v807_v12  ;;  %v858_v12 = vld [vmem:[#allocation10 + $0x9d0] sm:$0xff] }
 0x2ae   :  { %4210 = vmatpush1.bf16.msra.mxu1 %v5355_v4  ;;  %4047 = vmatprep.subr.bf16.mxu0 %v5362_v32  ;;  %v810_v4 = vld [vmem:[#allocation10 + $0x850] sm:$0xff] }
 0x2af   :  { %4211 = vmatprep.subr.bf16.mxu1 %v5364_v20  ;;  %v814_v32 = vld [vmem:[#allocation10 + $0x870] sm:$0xff]  ;;  %v5409_v20 = vcombine.low %v802_v57, %v806_v58 }
 0x2b0   :  { %v5418_v14 = vcombine.high %v810_v4, %v814_v32  ;;  %v5417_v22 = vcombine.low %v810_v4, %v814_v32 }
 0x2b1   :  { %4048 = vmatpush1.bf16.msra.mxu0 %v5361_v15  ;;  %v818_v15 = vld [vmem:[#allocation10 + $0x890] sm:$0xff] }
 0x2b2   :  { %4212 = vmatpush1.bf16.msra.mxu1 %v5363_v16  ;;  %4049 = vmatprep.subr.bf16.mxu0 %v5370_v17  ;;  %v822_v16 = vld [vmem:[#allocation10 + $0x8b0] sm:$0xff]  ;;  %v5420_v17 = vcombine.high %v811_v5, %v815_v6 }
 0x2b3   :  { %4213 = vmatprep.subr.bf16.mxu1 %v5372_v18  ;;  %v819_v18 = vld [vmem:[#allocation10 + $0x898] sm:$0xff]  ;;  %v5426_v25 = vcombine.high %v818_v15, %v822_v16  ;;  %v5425_v34 = vcombine.low %v818_v15, %v822_v16  ;;  %v866_v5 = vld [vmem:[#allocation10 + $0xa10] sm:$0xff] }
 0x2b4   :  { %v870_v6 = vld [vmem:[#allocation10 + $0xa30] sm:$0xff] }
 0x2b5   :  { %4050 = vmatpush1.bf16.msra.mxu0 %v5369_v26  ;;  %v5428_v26 = vcombine.high %v819_v18, %v823_v19 }
 0x2b6   :  { %4214 = vmatpush1.bf16.msra.mxu1 %v5371_v27  ;;  %4051 = vmatprep.subr.bf16.mxu0 %v5378_v48  ;;  %v826_v27 = vld [vmem:[#allocation10 + $0x8d0] sm:$0xff] }
 0x2b7   :  { %4215 = vmatprep.subr.bf16.mxu1 %v5380_v30  ;;  %v830_v48 = vld [vmem:[#allocation10 + $0x8f0] sm:$0xff]  ;;  %v827_v30 = vld [vmem:[#allocation10 + $0x8d8] sm:$0xff] }
 0x2b8   :  { %v5434_v10 = vcombine.high %v826_v27, %v830_v48  ;;  %v5436_v7 = vcombine.high %v827_v30, %v831_v31  ;;  %v5435_v40 = vcombine.low %v827_v30, %v831_v31  ;;  %v882_v31 = vld [vmem:[#allocation10 + $0xa90] sm:$0xff] }
 0x2b9   :  { %4052 = vmatpush1.bf16.msra.mxu0 %v5377_v38  ;;  %v834_v38 = vld [vmem:[#allocation10 + $0x910] sm:$0xff] }
 0x2ba   :  { %4216 = vmatpush1.bf16.msra.mxu1 %v5379_v28  ;;  %4053 = vmatprep.subr.bf16.mxu0 %v5386_v63  ;;  %v838_v28 = vld [vmem:[#allocation10 + $0x930] sm:$0xff]  ;;  %v835_v63 = vld [vmem:[#allocation10 + $0x918] sm:$0xff] }
 0x2bb   :  { %4217 = vmatprep.subr.bf16.mxu1 %v5388_v29  ;;  %v839_v29 = vld [vmem:[#allocation10 + $0x938] sm:$0xff]  ;;  %v5442_v41 = vcombine.high %v834_v38, %v838_v28 }
 0x2bc   :  { %v5444_v42 = vcombine.high %v835_v63, %v839_v29  ;;  %v5443_v45 = vcombine.low %v835_v63, %v839_v29  ;;  %v890_v29 = vld [vmem:[#allocation10 + $0xad0] sm:$0xff] }
 0x2bd   :  { %4054 = vmatpush1.bf16.msra.mxu0 %v5385_v44  ;;  %v846_v44 = vld [vmem:[#allocation10 + $0x970] sm:$0xff] }
 0x2be   :  { %4218 = vmatpush1.bf16.msra.mxu1 %v5387_v9  ;;  %4055 = vmatprep.subr.bf16.mxu0 %v5394_v3  ;;  %v843_v9 = vld [vmem:[#allocation10 + $0x958] sm:$0xff]  ;;  %v5450_v46 = vcombine.high %v842_v43, %v846_v44 }
 0x2bf   :  { %4219 = vmatprep.subr.bf16.mxu1 %v5396_v37  ;;  %v847_v3 = vld [vmem:[#allocation10 + $0x978] sm:$0xff]  ;;  %v5441_v37 = vcombine.low %v834_v38, %v838_v28 }
 0x2c0   :  { %v5452_v47 = vcombine.high %v843_v9, %v847_v3  ;;  %v5451_v57 = vcombine.low %v843_v9, %v847_v3  ;;  %v898_v3 = vld [vmem:[#allocation10 + $0xb10] sm:$0xff] }
 0x2c1   :  { %4056 = vmatpush1.bf16.msra.mxu0 %v5393_v50  ;;  %v854_v50 = vld [vmem:[#allocation10 + $0x9b0] sm:$0xff] }
 0x2c2   :  { %4220 = vmatpush1.bf16.msra.mxu1 %v5395_v51  ;;  %4057 = vmatprep.subr.bf16.mxu0 %v5402_v55  ;;  %v851_v51 = vld [vmem:[#allocation10 + $0x998] sm:$0xff]  ;;  %v5458_v58 = vcombine.high %v850_v49, %v854_v50 }
 0x2c3   :  { %4221 = vmatprep.subr.bf16.mxu1 %v5404_v56  ;;  %v855_v55 = vld [vmem:[#allocation10 + $0x9b8] sm:$0xff]  ;;  %v5449_v56 = vcombine.low %v842_v43, %v846_v44 }
 0x2c4   :  { %v5460_v59 = vcombine.high %v851_v51, %v855_v55  ;;  %v5459_v4 = vcombine.low %v851_v51, %v855_v55  ;;  %v906_v55 = vld [vmem:[#allocation10 + $0xb50] sm:$0xff] }
 0x2c5   :  { %4058 = vmatpush1.bf16.msra.mxu0 %v5401_v60  ;;  %v862_v60 = vld [vmem:[#allocation10 + $0x9f0] sm:$0xff] }
 0x2c6   :  { %4222 = vmatpush1.bf16.msra.mxu1 %v5403_v39  ;;  %4068 = vmatprep.subr.bf16.mxu0 %v5410_v61  ;;  %v859_v39 = vld [vmem:[#allocation10 + $0x9d8] sm:$0xff]  ;;  %v5466_v32 = vcombine.high %v858_v12, %v862_v60  ;;  %v5465_v15 = vcombine.low %v858_v12, %v862_v60 }
 0x2c7   :  { %4232 = vmatprep.subr.bf16.mxu1 %v5412_v2  ;;  %v863_v61 = vld [vmem:[#allocation10 + $0x9f8] sm:$0xff]  ;;  %v5457_v2 = vcombine.low %v850_v49, %v854_v50 }
 0x2c8   :  { %4060 = vmatmul.mubr.bf16.vlgmr.msra.gmra.mrb[12].mxu0 %v6482_v8  ;;  %v5467_v16 = vcombine.low %v859_v39, %v863_v61 }
 0x2c9   :  { %4224 = vmatmul.mubr.bf16.vlgmr.msra.gmra.mrb[12].mxu1 %v6482_v8  ;;  %4069 = vmatpush1.bf16.msra.mxu0 %v5409_v20  ;;  %v5427_v8 = vcombine.low %v819_v18, %v823_v19  ;;  %v5468_v20 = vcombine.high %v859_v39, %v863_v61  ;;  %v874_v19 = vld [vmem:[#allocation10 + $0xa50] sm:$0xff] }
 0x2ca   :  { %4100 = vmatprep.mubr.bf16.mxu0 %v6484_v21  ;;  %4233 = vmatpush1.bf16.msra.mxu1 %v5411_v13  ;;  %v867_v13 = vld [vmem:[#allocation10 + $0xa18] sm:$0xff]  ;;  %v914_v61 = vld [vmem:[#allocation10 + $0xb90] sm:$0xff] }
 0x2cb   :  { %4264 = vmatprep.mubr.bf16.mxu1 %v6484_v21  ;;  %4070 = vmatprep.subr.bf16.mxu0 %v5418_v14  ;;  %v5433_v21 = vcombine.low %v826_v27, %v830_v48  ;;  %v871_v14 = vld [vmem:[#allocation10 + $0xa38] sm:$0xff] }
 0x2cc   :  { %4234 = vmatprep.subr.bf16.mxu1 %v5420_v17  ;;  %v5474_v17 = vcombine.high %v866_v5, %v870_v6  ;;  %v5476_v18 = vcombine.high %v867_v13, %v871_v14  ;;  %v5475_v27 = vcombine.low %v867_v13, %v871_v14  ;;  %v922_v14 = vld [vmem:[#allocation10 + $0xbd0] sm:$0xff] }
 0x2cd   :  { %4071 = vmatpush1.bf16.msra.mxu0 %v5417_v22  ;;  %v878_v22 = vld [vmem:[#allocation10 + $0xa70] sm:$0xff] }
 0x2ce   :  { %4235 = vmatpush1.bf16.msra.mxu1 %v5419_v24  ;;  %4072 = vmatprep.subr.bf16.mxu0 %v5426_v25  ;;  %v875_v24 = vld [vmem:[#allocation10 + $0xa58] sm:$0xff]  ;;  %v5482_v48 = vcombine.high %v874_v19, %v878_v22 }
 0x2cf   :  { %4236 = vmatprep.subr.bf16.mxu1 %v5428_v26  ;;  %v879_v25 = vld [vmem:[#allocation10 + $0xa78] sm:$0xff]  ;;  %v5473_v26 = vcombine.low %v866_v5, %v870_v6 }
 0x2d0   :  { %v5484_v30 = vcombine.high %v875_v24, %v879_v25  ;;  %v5483_v38 = vcombine.low %v875_v24, %v879_v25  ;;  %v930_v25 = vld [vmem:[#allocation10 + $0xc10] sm:$0xff] }
 0x2d1   :  { %4073 = vmatpush1.bf16.msra.mxu0 %v5425_v34  ;;  %v886_v34 = vld [vmem:[#allocation10 + $0xab0] sm:$0xff] }
 0x2d2   :  { %4237 = vmatpush1.bf16.msra.mxu1 %v5427_v8  ;;  %4074 = vmatprep.subr.bf16.mxu0 %v5434_v10  ;;  %v883_v8 = vld [vmem:[#allocation10 + $0xa98] sm:$0xff]  ;;  %v5490_v28 = vcombine.high %v882_v31, %v886_v34 }
 0x2d3   :  { %4238 = vmatprep.subr.bf16.mxu1 %v5436_v7  ;;  %v887_v10 = vld [vmem:[#allocation10 + $0xab8] sm:$0xff]  ;;  %v5481_v7 = vcombine.low %v874_v19, %v878_v22 }
 0x2d4   :  { %v5492_v63 = vcombine.high %v883_v8, %v887_v10  ;;  %v5491_v43 = vcombine.low %v883_v8, %v887_v10  ;;  %v938_v10 = vld [vmem:[#allocation10 + $0xc50] sm:$0xff] }
 0x2d5   :  { %4075 = vmatpush1.bf16.msra.mxu0 %v5433_v21  ;;  %v894_v21 = vld [vmem:[#allocation10 + $0xaf0] sm:$0xff] }
 0x2d6   :  { %4239 = vmatpush1.bf16.msra.mxu1 %v5435_v40  ;;  %4076 = vmatprep.subr.bf16.mxu0 %v5442_v41  ;;  %v891_v40 = vld [vmem:[#allocation10 + $0xad8] sm:$0xff]  ;;  %v5498_v44 = vcombine.high %v890_v29, %v894_v21 }
 0x2d7   :  { %4240 = vmatprep.subr.bf16.mxu1 %v5444_v42  ;;  %v895_v41 = vld [vmem:[#allocation10 + $0xaf8] sm:$0xff]  ;;  %v5489_v42 = vcombine.low %v882_v31, %v886_v34 }
 0x2d8   :  { %v5500_v9 = vcombine.high %v891_v40, %v895_v41  ;;  %v5499_v49 = vcombine.low %v891_v40, %v895_v41  ;;  %v946_v40 = vld [vmem:[#allocation10 + $0xc90] sm:$0xff] }
 0x2d9   :  { %4077 = vmatpush1.bf16.msra.mxu0 %v5441_v37  ;;  %v902_v37 = vld [vmem:[#allocation10 + $0xb30] sm:$0xff] }
 0x2da   :  { %4241 = vmatpush1.bf16.msra.mxu1 %v5443_v45  ;;  %4078 = vmatprep.subr.bf16.mxu0 %v5450_v46  ;;  %v899_v45 = vld [vmem:[#allocation10 + $0xb18] sm:$0xff]  ;;  %v5506_v50 = vcombine.high %v898_v3, %v902_v37  ;;  %v950_v41 = vld [vmem:[#allocation10 + $0xcb0] sm:$0xff] }
 0x2db   :  { %4242 = vmatprep.subr.bf16.mxu1 %v5452_v47  ;;  %v903_v46 = vld [vmem:[#allocation10 + $0xb38] sm:$0xff]  ;;  %v5497_v47 = vcombine.low %v890_v29, %v894_v21 }
 0x2dc   :  { %v5508_v51 = vcombine.high %v899_v45, %v903_v46  ;;  %v5507_v12 = vcombine.low %v899_v45, %v903_v46  ;;  %v954_v46 = vld [vmem:[#allocation10 + $0xcd0] sm:$0xff] }
 0x2dd   :  { %4079 = vmatpush1.bf16.msra.mxu0 %v5449_v56  ;;  %v910_v56 = vld [vmem:[#allocation10 + $0xb70] sm:$0xff] }
 0x2de   :  { %4243 = vmatpush1.bf16.msra.mxu1 %v5451_v57  ;;  %4080 = vmatprep.subr.bf16.mxu0 %v5458_v58  ;;  %v907_v57 = vld [vmem:[#allocation10 + $0xb58] sm:$0xff]  ;;  %v5514_v60 = vcombine.high %v906_v55, %v910_v56 }
 0x2df   :  { %4244 = vmatprep.subr.bf16.mxu1 %v5460_v59  ;;  %v911_v58 = vld [vmem:[#allocation10 + $0xb78] sm:$0xff]  ;;  %v5505_v59 = vcombine.low %v898_v3, %v902_v37  ;;  %v5554_v37 = vcombine.high %v946_v40, %v950_v41 }
 0x2e0   :  { %v5516_v39 = vcombine.high %v907_v57, %v911_v58  ;;  %v5515_v5 = vcombine.low %v907_v57, %v911_v58  ;;  %v962_v57 = vld [vmem:[#allocation10 + $0xd10] sm:$0xff] }
 0x2e1   :  { %4081 = vmatpush1.bf16.msra.mxu0 %v5457_v2  ;;  %v918_v2 = vld [vmem:[#allocation10 + $0xbb0] sm:$0xff] }
 0x2e2   :  { %4245 = vmatpush1.bf16.msra.mxu1 %v5459_v4  ;;  %4082 = vmatprep.subr.bf16.mxu0 %v5466_v32  ;;  %v915_v4 = vld [vmem:[#allocation10 + $0xb98] sm:$0xff]  ;;  %v5522_v6 = vcombine.high %v914_v61, %v918_v2  ;;  %v966_v58 = vld [vmem:[#allocation10 + $0xd30] sm:$0xff] }
 0x2e3   :  { %4246 = vmatprep.subr.bf16.mxu1 %v5468_v20  ;;  %v919_v32 = vld [vmem:[#allocation10 + $0xbb8] sm:$0xff]  ;;  %v5513_v20 = vcombine.low %v906_v55, %v910_v56 }
 0x2e4   :  { %v5524_v13 = vcombine.high %v915_v4, %v919_v32  ;;  %v5523_v19 = vcombine.low %v915_v4, %v919_v32  ;;  %v974_v4 = vld [vmem:[#allocation10 + $0xd70] sm:$0xff]  ;;  %v971_v32 = vld [vmem:[#allocation10 + $0xd58] sm:$0xff] }
 0x2e5   :  { %4083 = vmatpush1.bf16.msra.mxu0 %v5465_v15  ;;  %v926_v15 = vld [vmem:[#allocation10 + $0xbf0] sm:$0xff] }
 0x2e6   :  { %4247 = vmatpush1.bf16.msra.mxu1 %v5467_v16  ;;  %4084 = vmatprep.subr.bf16.mxu0 %v5474_v17  ;;  %v923_v16 = vld [vmem:[#allocation10 + $0xbd8] sm:$0xff]  ;;  %v5530_v22 = vcombine.high %v922_v14, %v926_v15 }
 0x2e7   :  { %4248 = vmatprep.subr.bf16.mxu1 %v5476_v18  ;;  %v927_v17 = vld [vmem:[#allocation10 + $0xbf8] sm:$0xff]  ;;  %v5521_v18 = vcombine.low %v914_v61, %v918_v2  ;;  %v970_v2 = vld [vmem:[#allocation10 + $0xd50] sm:$0xff] }
 0x2e8   :  { %v5532_v24 = vcombine.high %v923_v16, %v927_v17  ;;  %v5531_v31 = vcombine.low %v923_v16, %v927_v17  ;;  %v982_v16 = vld [vmem:[#allocation10 + $0xdb0] sm:$0xff]  ;;  %v979_v17 = vld [vmem:[#allocation10 + $0xd98] sm:$0xff] }
 0x2e9   :  { %4085 = vmatpush1.bf16.msra.mxu0 %v5473_v26  ;;  %v934_v26 = vld [vmem:[#allocation10 + $0xc30] sm:$0xff] }
 0x2ea   :  { %4249 = vmatpush1.bf16.msra.mxu1 %v5475_v27  ;;  %4086 = vmatprep.subr.bf16.mxu0 %v5482_v48  ;;  %v931_v27 = vld [vmem:[#allocation10 + $0xc18] sm:$0xff]  ;;  %v5538_v34 = vcombine.high %v930_v25, %v934_v26 }
 0x2eb   :  { %4250 = vmatprep.subr.bf16.mxu1 %v5484_v30  ;;  %v935_v48 = vld [vmem:[#allocation10 + $0xc38] sm:$0xff]  ;;  %v5529_v30 = vcombine.low %v922_v14, %v926_v15  ;;  %v978_v15 = vld [vmem:[#allocation10 + $0xd90] sm:$0xff] }
 0x2ec   :  { %v5540_v8 = vcombine.high %v931_v27, %v935_v48  ;;  %v5539_v29 = vcombine.low %v931_v27, %v935_v48  ;;  %v986_v48 = vld [vmem:[#allocation10 + $0xdd0] sm:$0xff] }
 0x2ed   :  { %4087 = vmatpush1.bf16.msra.mxu0 %v5481_v7  ;;  %v942_v7 = vld [vmem:[#allocation10 + $0xc70] sm:$0xff] }
 0x2ee   :  { %4251 = vmatpush1.bf16.msra.mxu1 %v5483_v38  ;;  %4088 = vmatprep.subr.bf16.mxu0 %v5490_v28  ;;  %v5537_v38 = vcombine.low %v930_v25, %v934_v26  ;;  %v939_v28 = vld [vmem:[#allocation10 + $0xc58] sm:$0xff]  ;;  %v5546_v21 = vcombine.high %v938_v10, %v942_v7 }
 0x2ef   :  { %4252 = vmatprep.subr.bf16.mxu1 %v5492_v63  ;;  %v943_v63 = vld [vmem:[#allocation10 + $0xc78] sm:$0xff] }
 0x2f0   :  { %v5547_v3 = vcombine.low %v939_v28, %v943_v63 }
 0x2f1   :  { %4089 = vmatpush1.bf16.msra.mxu0 %v5489_v42  ;;  %v5548_v42 = vcombine.high %v939_v28, %v943_v63  ;;  %v5585_v28 = vcombine.low %v978_v15, %v982_v16 }
 0x2f2   :  { %4253 = vmatpush1.bf16.msra.mxu1 %v5491_v43  ;;  %4090 = vmatprep.subr.bf16.mxu0 %v5498_v44  ;;  %v947_v43 = vld [vmem:[#allocation10 + $0xc98] sm:$0xff] }
 0x2f3   :  { %4254 = vmatprep.subr.bf16.mxu1 %v5500_v9  ;;  %v951_v44 = vld [vmem:[#allocation10 + $0xcb8] sm:$0xff]  ;;  %v5545_v9 = vcombine.low %v938_v10, %v942_v7 }
 0x2f4   :  { %v5556_v45 = vcombine.high %v947_v43, %v951_v44  ;;  %v991_v10 = vld [vmem:[#allocation10 + $0xdf8] sm:$0xff] }
 0x2f5   :  { %4091 = vmatpush1.bf16.msra.mxu0 %v5497_v47  ;;  %v958_v47 = vld [vmem:[#allocation10 + $0xcf0] sm:$0xff] }
 0x2f6   :  { %4255 = vmatpush1.bf16.msra.mxu1 %v5499_v49  ;;  %4092 = vmatprep.subr.bf16.mxu0 %v5506_v50  ;;  %v955_v49 = vld [vmem:[#allocation10 + $0xcd8] sm:$0xff]  ;;  %v5562_v55 = vcombine.high %v954_v46, %v958_v47 }
 0x2f7   :  { %4256 = vmatprep.subr.bf16.mxu1 %v5508_v51  ;;  %v959_v50 = vld [vmem:[#allocation10 + $0xcf8] sm:$0xff]  ;;  %v5553_v51 = vcombine.low %v946_v40, %v950_v41 }
 0x2f8   :  { %v5564_v56 = vcombine.high %v955_v49, %v959_v50 }
 0x2f9   :  { %4093 = vmatpush1.bf16.msra.mxu0 %v5505_v59  ;;  %v963_v59 = vld [vmem:[#allocation10 + $0xd18] sm:$0xff] }
 0x2fa   :  { %4257 = vmatpush1.bf16.msra.mxu1 %v5507_v12  ;;  %4094 = vmatprep.subr.bf16.mxu0 %v5514_v60  ;;  %v967_v12 = vld [vmem:[#allocation10 + $0xd38] sm:$0xff]  ;;  %v5563_v60 = vcombine.low %v955_v49, %v959_v50  ;;  %v1006_v49 = vld [vmem:[#allocation10 + $0xe70] sm:$0xff] }
 0x2fb   :  { %4258 = vmatprep.subr.bf16.mxu1 %v5516_v39  ;;  %v5570_v39 = vcombine.high %v962_v57, %v966_v58  ;;  %v5572_v61 = vcombine.high %v963_v59, %v967_v12  ;;  %v1003_v50 = vld [vmem:[#allocation10 + $0xe58] sm:$0xff] }
 0x2fd   :  { %4095 = vmatpush1.bf16.msra.mxu0 %v5513_v20  ;;  %v975_v20 = vld [vmem:[#allocation10 + $0xd78] sm:$0xff] }
 0x2fe   :  { %4259 = vmatpush1.bf16.msra.mxu1 %v5515_v5  ;;  %4096 = vmatprep.subr.bf16.mxu0 %v5522_v6  ;;  %v5569_v5 = vcombine.low %v962_v57, %v966_v58  ;;  %v5571_v6 = vcombine.low %v963_v59, %v967_v12  ;;  %v5580_v14 = vcombine.high %v971_v32, %v975_v20  ;;  %v1010_v58 = vld [vmem:[#allocation10 + $0xe90] sm:$0xff]  ;;  %v1011_v12 = vld [vmem:[#allocation10 + $0xe98] sm:$0xff] }
 0x2ff   :  { %4260 = vmatprep.subr.bf16.mxu1 %v5524_v13  ;;  %v5578_v13 = vcombine.high %v970_v2, %v974_v4  ;;  %v1014_v59 = vld [vmem:[#allocation10 + $0xeb0] sm:$0xff] }
 0x301   :  { %4097 = vmatpush1.bf16.msra.mxu0 %v5521_v18  ;;  %v983_v18 = vld [vmem:[#allocation10 + $0xdb8] sm:$0xff] }
 0x302   :  { %4261 = vmatpush1.bf16.msra.mxu1 %v5523_v19  ;;  %4098 = vmatprep.subr.bf16.mxu0 %v5530_v22  ;;  %v5577_v19 = vcombine.low %v970_v2, %v974_v4  ;;  %v5579_v22 = vcombine.low %v971_v32, %v975_v20  ;;  %v5588_v27 = vcombine.high %v979_v17, %v983_v18  ;;  %v1018_v4 = vld [vmem:[#allocation10 + $0xed0] sm:$0xff]  ;;  %v1019_v20 = vld [vmem:[#allocation10 + $0xed8] sm:$0xff] }
 0x303   :  { %4262 = vmatprep.subr.bf16.mxu1 %v5532_v24  ;;  %v5586_v24 = vcombine.high %v978_v15, %v982_v16  ;;  %v1022_v32 = vld [vmem:[#allocation10 + $0xef0] sm:$0xff] }
 0x304   :  { %v1026_v16 = vld [vmem:[#allocation10 + $0xf10] sm:$0xff] }
 0x305   :  { %4099 = vmatpush1.bf16.msra.mxu0 %v5529_v30  ;;  %v990_v30 = vld [vmem:[#allocation10 + $0xdf0] sm:$0xff] }
 0x306   :  { %4263 = vmatpush1.bf16.msra.mxu1 %v5531_v31  ;;  %4109 = vmatprep.subr.bf16.mxu0 %v5538_v34  ;;  %v5594_v40 = vcombine.high %v986_v48, %v990_v30 }
 0x307   :  { %4273 = vmatprep.subr.bf16.mxu1 %v5540_v8  ;;  %v987_v8 = vld [vmem:[#allocation10 + $0xdd8] sm:$0xff] }
 0x308   :  { %4101 = vmatmul.mubr.bf16.vlgmr.msra.gmra.mrb[12].mxu0 %v6510_v11  ;;  %v5596_v41 = vcombine.high %v987_v8, %v991_v10 }
 0x309   :  { %4265 = vmatmul.mubr.bf16.vlgmr.msra.gmra.mrb[12].mxu1 %v6510_v11  ;;  %4110 = vmatpush1.bf16.msra.mxu0 %v5537_v38  ;;  %v5555_v11 = vcombine.low %v947_v43, %v951_v44  ;;  %v998_v43 = vld [vmem:[#allocation10 + $0xe30] sm:$0xff]  ;;  %v995_v44 = vld [vmem:[#allocation10 + $0xe18] sm:$0xff] }
 0x30a   :  { %4141 = vmatprep.mubr.bf16.mxu0 %v6512_v23  ;;  %4274 = vmatpush1.bf16.msra.mxu1 %v5539_v29 }
 0x30b   :  { %4305 = vmatprep.mubr.bf16.mxu1 %v6512_v23  ;;  %4111 = vmatprep.subr.bf16.mxu0 %v5546_v21  ;;  %v5561_v23 = vcombine.low %v954_v46, %v958_v47  ;;  %v5587_v21 = vcombine.low %v979_v17, %v983_v18  ;;  %v1002_v47 = vld [vmem:[#allocation10 + $0xe50] sm:$0xff]  ;;  %v1027_v18 = vld [vmem:[#allocation10 + $0xf18] sm:$0xff] }
 0x30c   :  { %4275 = vmatprep.subr.bf16.mxu1 %v5548_v42  ;;  %v994_v42 = vld [vmem:[#allocation10 + $0xe10] sm:$0xff] }
 0x30d   :  { %4112 = vmatpush1.bf16.msra.mxu0 %v5545_v9  ;;  %v999_v9 = vld [vmem:[#allocation10 + $0xe38] sm:$0xff]  ;;  %v1030_v17 = vld [vmem:[#allocation10 + $0xf30] sm:$0xff] }
 0x30e   :  { %4276 = vmatpush1.bf16.msra.mxu1 %v5547_v3  ;;  %4113 = vmatprep.subr.bf16.mxu0 %v5554_v37  ;;  %v5593_v3 = vcombine.low %v986_v48, %v990_v30  ;;  %v5595_v37 = vcombine.low %v987_v8, %v991_v10  ;;  %v5604_v46 = vcombine.high %v995_v44, %v999_v9  ;;  %v1034_v8 = vld [vmem:[#allocation10 + $0xf50] sm:$0xff] }
 0x30f   :  { %4277 = vmatprep.subr.bf16.mxu1 %v5556_v45  ;;  %v5602_v45 = vcombine.high %v994_v42, %v998_v43  ;;  %v5634_v48 = vcombine.high %v1026_v16, %v1030_v17  ;;  %v1038_v10 = vld [vmem:[#allocation10 + $0xf70] sm:$0xff] }
 0x311   :  { %4114 = vmatpush1.bf16.msra.mxu0 %v5553_v51  ;;  %v1007_v51 = vld [vmem:[#allocation10 + $0xe78] sm:$0xff] }
 0x312   :  { %4278 = vmatpush1.bf16.msra.mxu1 %v5555_v11  ;;  %4115 = vmatprep.subr.bf16.mxu0 %v5562_v55  ;;  %v5601_v11 = vcombine.low %v994_v42, %v998_v43  ;;  %v5603_v55 = vcombine.low %v995_v44, %v999_v9  ;;  %v5612_v57 = vcombine.high %v1003_v50, %v1007_v51  ;;  %v1042_v43 = vld [vmem:[#allocation10 + $0xf90] sm:$0xff] }
 0x313   :  { %4279 = vmatprep.subr.bf16.mxu1 %v5564_v56  ;;  %v5610_v56 = vcombine.high %v1002_v47, %v1006_v49  ;;  %v1046_v44 = vld [vmem:[#allocation10 + $0xfb0] sm:$0xff] }
 0x315   :  { %4116 = vmatpush1.bf16.msra.mxu0 %v5561_v23  ;;  %v1015_v23 = vld [vmem:[#allocation10 + $0xeb8] sm:$0xff] }
 0x316   :  { %4280 = vmatpush1.bf16.msra.mxu1 %v5563_v60  ;;  %4117 = vmatprep.subr.bf16.mxu0 %v5570_v39  ;;  %v5609_v60 = vcombine.low %v1002_v47, %v1006_v49  ;;  %v5611_v39 = vcombine.low %v1003_v50, %v1007_v51  ;;  %v5620_v2 = vcombine.high %v1011_v12, %v1015_v23 }
 0x317   :  { %4281 = vmatprep.subr.bf16.mxu1 %v5572_v61  ;;  %v5618_v61 = vcombine.high %v1010_v58, %v1014_v59  ;;  %v5641_v50 = vcombine.low %v1034_v8, %v1038_v10 }
 0x319   :  { %4118 = vmatpush1.bf16.msra.mxu0 %v5569_v5  ;;  %v1023_v5 = vld [vmem:[#allocation10 + $0xef8] sm:$0xff] }
 0x31a   :  { %4282 = vmatpush1.bf16.msra.mxu1 %v5571_v6  ;;  %4119 = vmatprep.subr.bf16.mxu0 %v5578_v13  ;;  %v5617_v6 = vcombine.low %v1010_v58, %v1014_v59  ;;  %v5619_v13 = vcombine.low %v1011_v12, %v1015_v23  ;;  %v5628_v15 = vcombine.high %v1019_v20, %v1023_v5  ;;  %v1051_v59 = vld [vmem:[#allocation10 + $0xfd8] sm:$0xff] }
 0x31b   :  { %v6543_v25 = vpop.f32.mrb[8].mxu0  ;;  %v6545_v26 = vpop.f32.mrb[8].mxu1  ;;  %4283 = vmatprep.subr.bf16.mxu1 %v5580_v14  ;;  %v5626_v14 = vcombine.high %v1018_v4, %v1022_v32  ;;  %v1055_v12 = vld [vmem:[#allocation10 + $0xff8] sm:$0xff] }
 0x31c   :  { %v6547_v31 = vpop.f32.mrb[9].mxu0  ;;  %v6549_v34 = vpop.f32.mrb[9].mxu1 }
 0x31d   :  { %v3819_v7 = vpop.f32.mrb[10].mxu0  ;;  %v3983_v38 = vpop.f32.mrb[10].mxu1  ;;  %4120 = vmatpush1.bf16.msra.mxu0 %v5577_v19  ;;  %v1031_v19 = vld [vmem:[#allocation10 + $0xf38] sm:$0xff] }
 0x31e   :  { %4284 = vmatpush1.bf16.msra.mxu1 %v5579_v22  ;;  %v3820_v63 = vpop.f32.mrb[11].mxu0  ;;  %v3984_v29 = vpop.f32.mrb[11].mxu1  ;;  %4121 = vmatprep.subr.bf16.mxu0 %v5586_v24  ;;  %v6551_v22 = vld [vmem:[#allocation11] sm:$0xff]  ;;  %v5625_v24 = vcombine.low %v1018_v4, %v1022_v32  ;;  %v5636_v30 = vcombine.high %v1027_v18, %v1031_v19  ;;  %v1035_v38 = vld [vmem:[#allocation10 + $0xf58] sm:$0xff] }
 0x31f   :  { %4285 = vmatprep.subr.bf16.mxu1 %v5588_v27  ;;  %v5627_v27 = vcombine.low %v1019_v20, %v1023_v5  ;;  %v1065_v7 = vrot.slane %v6551_v22, %v6413_v35  ;;  %v6555_v63 = vld [vmem:[#allocation13] sm:$0xff]  ;;  %v1073_v29 = vrot.slane %v6551_v22, %v6416_v36 }
 0x320   :  { %v4331_v49 = vrot.slane %v6555_v63, %v6416_v36  ;;  %v5883_v5 = vld [vmem:[%s6827_s9 + $0x40] sm:$0xff]  }
 0x321   :  { %4122 = vmatpush1.bf16.msra.mxu0 %v5585_v28  ;;  %v1039_v28 = vld [vmem:[#allocation10 + $0xf78] sm:$0xff]  ;;  %v5815_v9 = vadd.f32 %v6547_v31, %v1065_v7  ;;  %v5817_v47 = vadd.f32 %v6549_v34, %v1073_v29  ;;  %v5896_v7 = vld [vmem:[%s6827_s9 + $0xd8] sm:$0xff]  }
 0x322   :  { %4286 = vmatpush1.bf16.msra.mxu1 %v5587_v21  ;;  %4123 = vmatprep.subr.bf16.mxu0 %v5594_v40  ;;  %v5633_v21 = vcombine.low %v1026_v16, %v1030_v17  ;;  %v5635_v40 = vcombine.low %v1027_v18, %v1031_v19  ;;  %v5644_v42 = vcombine.high %v1035_v38, %v1039_v28  ;;  %v5887_v16 = vld [vmem:[%s6827_s9 + $0x48] sm:$0xff]   ;;  %v5898_v29 = vld [vmem:[%s6827_s9 + $0x98] sm:$0xff]  }
 0x323   :  { %4287 = vmatprep.subr.bf16.mxu1 %v5596_v41  ;;  %v5642_v41 = vcombine.high %v1034_v8, %v1038_v10  ;;  %v5643_v51 = vcombine.low %v1035_v38, %v1039_v28  ;;  %v4359_v34 = vmul.f32 %v5817_v47, %v4331_v49  ;;  %v5888_v18 = vld [vmem:[%s6827_s9 + $0xc8] sm:$0xff]   ;;  %v5894_v8 = vld [vmem:[%s6827_s9 + $0x90] sm:$0xff]   ;;  %v5895_v10 = vld [vmem:[%s6827_s9 + $0x58] sm:$0xff]   ;;  %v1061_v28 = vrot.slane %v6551_v22, %v6408_v33 }
 0x324   :  { %v5897_v38 = vld [vmem:[%s6827_s9 + $0x18] sm:$0xff]   ;;  %v5905_v47 = vld [vmem:[%s6827_s9 + $0x28] sm:$0xff]  }
 0x325   :  { %4124 = vmatpush1.bf16.msra.mxu0 %v5593_v3  ;;  %v4323_v3 = vrot.slane %v6555_v63, %v6413_v35 }
 0x326   :  { %4288 = vmatpush1.bf16.msra.mxu1 %v5595_v37  ;;  %4125 = vmatprep.subr.bf16.mxu0 %v5602_v45  ;;  %v1043_v37 = vld [vmem:[#allocation10 + $0xf98] sm:$0xff] }
 0x327   :  { %4289 = vmatprep.subr.bf16.mxu1 %v5604_v46  ;;  %v1047_v45 = vld [vmem:[#allocation10 + $0xfb8] sm:$0xff]  ;;  %v6562_v46 = vld [vmem:[#allocation14] sm:$0xff] }
 0x328   :  { %v5652_v31 = vcombine.high %v1043_v37, %v1047_v45  ;;  %v4373_v58 = vrot.slane %v6562_v46, %v6413_v35  ;;  %v4381_v23 = vrot.slane %v6562_v46, %v6416_v36  ;;  %v5659_v35 = vcombine.low %v1051_v59, %v1055_v12  ;;  %v5884_v36 = vld [vmem:[%s6827_s9 + $0xc0] sm:$0xff]  }
 0x329   :  { %4126 = vmatpush1.bf16.msra.mxu0 %v5601_v11  ;;  %v5650_v11 = vcombine.high %v1042_v43, %v1046_v44 }
 0x32a   :  { %4290 = vmatpush1.bf16.msra.mxu1 %v5603_v55  ;;  %4127 = vmatprep.subr.bf16.mxu0 %v5610_v56  ;;  %v1050_v55 = vld [vmem:[#allocation10 + $0xfd0] sm:$0xff]  ;;  %v4409_v32 = vadd.f32 %v4381_v23, %v4359_v34  ;;  %v5914_v23 = vld [vmem:[%s6827_s9 + $0xb8] sm:$0xff]  }
 0x32b   :  { %4291 = vmatprep.subr.bf16.mxu1 %v5612_v57  ;;  %v1054_v56 = vld [vmem:[#allocation10 + $0xff0] sm:$0xff]  ;;  %v4357_v57 = vmul.f32 %v5815_v9, %v4323_v3  ;;  %v5902_v9 = vld [vmem:[%s6827_s9 + $0xa0] sm:$0xff]  }
 0x32c   :  { %v5657_v20 = vcombine.low %v1050_v55, %v1054_v56  ;;  %v5903_v3 = vld [vmem:[%s6827_s9 + $0x68] sm:$0xff]  }
 0x32d   :  { %4128 = vmatpush1.bf16.msra.mxu0 %v5609_v60  ;;  %v5649_v60 = vcombine.low %v1042_v43, %v1046_v44  ;;  %v4407_v4 = vadd.f32 %v4373_v58, %v4357_v57  ;;  %v5814_v43 = vadd.f32 %v6543_v25, %v1061_v28  ;;  %v4319_v44 = vrot.slane %v6555_v63, %v6408_v33  ;;  %v5904_v25 = vld [vmem:[%s6827_s9 + $0xe8] sm:$0xff]   ;;  %v5910_v57 = vld [vmem:[%s6827_s9 + $0xb0] sm:$0xff]  }
 0x32e   :  { %4292 = vmatpush1.bf16.msra.mxu1 %v5611_v39  ;;  %4129 = vmatprep.subr.bf16.mxu0 %v5618_v61  ;;  %v5651_v39 = vcombine.low %v1043_v37, %v1047_v45  ;;  %v5658_v61 = vcombine.high %v1050_v55, %v1054_v56  ;;  %v4327_v45 = vrot.slane %v6555_v63, %v6463_v54  ;;  %v5908_v55 = vld [vmem:[%s6827_s9 + $0xf0] sm:$0xff]  }
 0x32f   :  { %4293 = vmatprep.subr.bf16.mxu1 %v5620_v2  ;;  %v5660_v2 = vcombine.high %v1051_v59, %v1055_v12  ;;  %v4356_v49 = vmul.f32 %v5814_v43, %v4319_v44  ;;  %v5912_v59 = vld [vmem:[%s6827_s9 + $0xf8] sm:$0xff]   ;;  %v5939_v28 = vld [vmem:[%s6827_s9 + $0x170] sm:$0xff]  }
 0x330   :  { %v5913_v12 = vld [vmem:[%s6827_s9 + $0x38] sm:$0xff]  }
 0x331   :  { %4130 = vmatpush1.bf16.msra.mxu0 %v5617_v6  ;;  %v4415_v6 = vmax.f32 %v4407_v4, 0.0  ;;  %v5945_v43 = vld [vmem:[%s6827_s9 + $0x138] sm:$0xff]  }
 0x332   :  { %4294 = vmatpush1.bf16.msra.mxu1 %v5619_v13  ;;  %4131 = vmatprep.subr.bf16.mxu0 %v5626_v14  ;;  %v5885_v13 = vld [vmem:[%s6827_s9] sm:$0xff]   ;;  %v4417_v14 = vmax.f32 %v4409_v32, 0.0  ;;  %v5946_v44 = vld [vmem:[%s6827_s9 + $0x1b8] sm:$0xff]  }
 0x333   :  { %4295 = vmatprep.subr.bf16.mxu1 %v5628_v15  ;;  %v5886_v15 = vld [vmem:[%s6827_s9 + $0x80] sm:$0xff]   ;;  %v4423_v17 = vpack.c.bf16 %v4415_v6, %v4415_v6  ;;  %v5922_v6 = vld [vmem:[%s6827_s9 + $0x188] sm:$0xff]  }
 0x334   :  { %v4425_v19 = vpack.c.bf16 %v4417_v14, %v4417_v14  ;;  %v5918_v32 = vld [vmem:[%s6827_s9 + $0x180] sm:$0xff]   ;;  %v5924_v14 = vld [vmem:[%s6827_s9 + $0x1d0] sm:$0xff]  }
 0x335   :  { %4132 = vmatpush1.bf16.msra.mxu0 %v5625_v24  ;;  %v5889_v24 = vld [vmem:[%s6827_s9 + $0x8] sm:$0xff]  }
 0x336   :  { %4296 = vmatpush1.bf16.msra.mxu1 %v5627_v27  ;;  %4133 = vmatprep.subr.bf16.mxu0 %v5634_v48  ;;  %v5890_v27 = vld [vmem:[%s6827_s9 + $0x88] sm:$0xff]   ;;  %v5891_v48 = vld [vmem:[%s6827_s9 + $0x50] sm:$0xff]  }
 0x337   :  { %4297 = vmatprep.subr.bf16.mxu1 %v5636_v30  ;;  %v5893_v30 = vld [vmem:[%s6827_s9 + $0x10] sm:$0xff]  }
 0x339   :  { %4134 = vmatpush1.bf16.msra.mxu0 %v5633_v21  ;;  %v5899_v21 = vld [vmem:[%s6827_s9 + $0x60] sm:$0xff]  }
 0x33a   :  { %4298 = vmatpush1.bf16.msra.mxu1 %v5635_v40  ;;  %4135 = vmatprep.subr.bf16.mxu0 %v5642_v41  ;;  %v1069_v40 = vrot.slane %v6551_v22, %v6463_v54  ;;  %v5900_v41 = vld [vmem:[%s6827_s9 + $0xe0] sm:$0xff]  }
 0x33b   :  { %4299 = vmatprep.subr.bf16.mxu1 %v5644_v42  ;;  %v5901_v42 = vld [vmem:[%s6827_s9 + $0x20] sm:$0xff]  }
 0x33c   :  { %v5816_v37 = vadd.f32 %v6545_v26, %v1069_v40  ;;  %v5906_v26 = vld [vmem:[%s6827_s9 + $0xa8] sm:$0xff]   ;;  %v5942_v40 = vld [vmem:[%s6827_s9 + $0x1b0] sm:$0xff]  }
 0x33d   :  { %4136 = vmatpush1.bf16.msra.mxu0 %v5641_v50  ;;  %v4369_v50 = vrot.slane %v6562_v46, %v6408_v33  ;;  %v5909_v33 = vld [vmem:[%s6827_s9 + $0x30] sm:$0xff]  }
 0x33e   :  { %4300 = vmatpush1.bf16.msra.mxu1 %v5643_v51  ;;  %4137 = vmatprep.subr.bf16.mxu0 %v5650_v11  ;;  %v5907_v51 = vld [vmem:[%s6827_s9 + $0x70] sm:$0xff]   ;;  %v4358_v11 = vmul.f32 %v5816_v37, %v4327_v45  ;;  %v1081_v37 = vrot.slane %v6551_v22, %v6466_v0  ;;  %v4335_v45 = vrot.slane %v6555_v63, %v6491_v53 }
 0x33f   :  { %4301 = vmatprep.subr.bf16.mxu1 %v5652_v31  ;;  %v4377_v31 = vrot.slane %v6562_v46, %v6463_v54  ;;  %v4406_v56 = vadd.f32 %v4369_v50, %v4356_v49  ;;  %v5911_v54 = vld [vmem:[%s6827_s9 + $0x78] sm:$0xff]   ;;  %v4343_v49 = vrot.slane %v6555_v63, %v6519_v52  ;;  %v4339_v50 = vrot.slane %v6555_v63, %v6466_v0 }
 0x341   :  { %4138 = vmatpush1.bf16.msra.mxu0 %v5649_v60  ;;  %v4408_v58 = vadd.f32 %v4377_v31, %v4358_v11  ;;  %v4414_v34 = vmax.f32 %v4406_v56, 0.0  ;;  %v5915_v60 = vld [vmem:[%s6827_s9 + $0x140] sm:$0xff]  }
 0x342   :  { %4302 = vmatpush1.bf16.msra.mxu1 %v5651_v39  ;;  %4139 = vmatprep.subr.bf16.mxu0 %v5658_v61  ;;  %v5916_v61 = vld [vmem:[%s6827_s9 + $0x1c0] sm:$0xff]  }
 0x343   :  { %4303 = vmatprep.subr.bf16.mxu1 %v5660_v2  ;;  %v4416_v39 = vmax.f32 %v4408_v58, 0.0  ;;  %v5917_v2 = vld [vmem:[%s6827_s9 + $0x100] sm:$0xff]   ;;  %v4422_v4 = vpack.c.bf16 %v4414_v34, %v4414_v34 }
 0x345   :  { %4140 = vmatpush1.bf16.msra.mxu0 %v5657_v20  ;;  %v5919_v20 = vld [vmem:[%s6827_s9 + $0x148] sm:$0xff]  }
 0x346   :  { %4304 = vmatpush1.bf16.msra.mxu1 %v5659_v35  ;;  %5726 = vmatprep.subr.bf16.mxu0 %v5883_v5  ;;  %v4424_v35 = vpack.c.bf16 %v4416_v39, %v4416_v39  ;;  %v5920_v5 = vld [vmem:[%s6827_s9 + $0x1c8] sm:$0xff]  }
 0x347   :  { %5748 = vmatprep.subr.bf16.mxu1 %v5884_v36  ;;  %v5921_v36 = vld [vmem:[%s6827_s9 + $0x108] sm:$0xff]  }
 0x348   :  { %4142 = vmatmul.mubr.bf16.vlgmr.msra.gmra.mrb[12].mxu0 %v6525_v62 }
 0x349   :  { %4306 = vmatmul.mubr.bf16.vlgmr.msra.gmra.mrb[12].mxu1 %v6525_v62  ;;  %5727 = vmatpush3.bf16.msra.mxu0 %v5885_v13  ;;  %v5892_v62 = vld [vmem:[%s6827_s9 + $0xd0] sm:$0xff]  }
 0x34a   :  { %4981 = vmatprep.mubr.bf16.mxu0 %v4423_v17  ;;  %5749 = vmatpush3.bf16.msra.mxu1 %v5886_v15  ;;  %v5923_v13 = vld [vmem:[%s6827_s9 + $0x150] sm:$0xff]   ;;  %v5927_v17 = vld [vmem:[%s6827_s9 + $0x158] sm:$0xff]  }
 0x34b   :  { %5021 = vmatprep.mubr.bf16.mxu1 %v4425_v19  ;;  %5728 = vmatprep.subr.bf16.mxu0 %v5887_v16  ;;  %v5925_v15 = vld [vmem:[%s6827_s9 + $0x110] sm:$0xff]   ;;  %v5929_v19 = vld [vmem:[%s6827_s9 + $0x118] sm:$0xff]  }
 0x34c   :  { %5750 = vmatprep.subr.bf16.mxu1 %v5888_v18  ;;  %v5926_v16 = vld [vmem:[%s6827_s9 + $0x190] sm:$0xff]   ;;  %v5928_v18 = vld [vmem:[%s6827_s9 + $0x1d8] sm:$0xff]  }
 0x34d   :  { %5729 = vmatpush3.bf16.msra.mxu0 %v5889_v24  ;;  %v5930_v24 = vld [vmem:[%s6827_s9 + $0x198] sm:$0xff]  }
 0x34e   :  { %5751 = vmatpush3.bf16.msra.mxu1 %v5890_v27  ;;  %5730 = vmatprep.subr.bf16.mxu0 %v5891_v48  ;;  %v5931_v27 = vld [vmem:[%s6827_s9 + $0x160] sm:$0xff]  }
 0x34f   :  { %5752 = vmatprep.subr.bf16.mxu1 %v5892_v62  ;;  %v5932_v48 = vld [vmem:[%s6827_s9 + $0x1e0] sm:$0xff]  }
 0x350   :  { %v5933_v62 = vld [vmem:[%s6827_s9 + $0x120] sm:$0xff]  }
 0x351   :  { %5731 = vmatpush3.bf16.msra.mxu0 %v5893_v30  ;;  %v5934_v30 = vld [vmem:[%s6827_s9 + $0x1a0] sm:$0xff]  }
 0x352   :  { %5753 = vmatpush3.bf16.msra.mxu1 %v5894_v8  ;;  %5732 = vmatprep.subr.bf16.mxu0 %v5895_v10  ;;  %v5935_v8 = vld [vmem:[%s6827_s9 + $0x168] sm:$0xff]  }
 0x353   :  { %5754 = vmatprep.subr.bf16.mxu1 %v5896_v7  ;;  %v5936_v10 = vld [vmem:[%s6827_s9 + $0x1e8] sm:$0xff]  }
 0x354   :  { %v5937_v7 = vld [vmem:[%s6827_s9 + $0x128] sm:$0xff]  }
 0x355   :  { %5733 = vmatpush3.bf16.msra.mxu0 %v5897_v38  ;;  %v5938_v38 = vld [vmem:[%s6827_s9 + $0x1a8] sm:$0xff]  }
 0x356   :  { %5755 = vmatpush3.bf16.msra.mxu1 %v5898_v29  ;;  %5734 = vmatprep.subr.bf16.mxu0 %v5899_v21  ;;  %v5940_v29 = vld [vmem:[%s6827_s9 + $0x1f0] sm:$0xff]  }
 0x357   :  { %5756 = vmatprep.subr.bf16.mxu1 %v5900_v41  ;;  %v5941_v21 = vld [vmem:[%s6827_s9 + $0x130] sm:$0xff]   ;;  %v5943_v41 = vld [vmem:[%s6827_s9 + $0x178] sm:$0xff]  }
 0x359   :  { %5735 = vmatpush3.bf16.msra.mxu0 %v5901_v42  ;;  %v5944_v42 = vld [vmem:[%s6827_s9 + $0x1f8] sm:$0xff]  }
 0x35a   :  { %5757 = vmatpush3.bf16.msra.mxu1 %v5902_v9  ;;  %5736 = vmatprep.subr.bf16.mxu0 %v5903_v3  ;;  %v1077_v9 = vrot.slane %v6551_v22, %v6491_v53  ;;  %v1085_v3 = vrot.slane %v6551_v22, %v6519_v52 }
 0x35b   :  { %5758 = vmatprep.subr.bf16.mxu1 %v5904_v25  ;;  %v1089_v25 = vrot.slane %v6551_v22, %v6494_v1  ;;  %v4393_v22 = vrot.slane %v6562_v46, %v6519_v52 }
 0x35d   :  { %5737 = vmatpush3.bf16.msra.mxu0 %v5905_v47 }
 0x35e   :  { %5759 = vmatpush3.bf16.msra.mxu1 %v5906_v26  ;;  %5738 = vmatprep.subr.bf16.mxu0 %v5907_v51  ;;  %v4385_v51 = vrot.slane %v6562_v46, %v6491_v53  ;;  %v4397_v53 = vrot.slane %v6562_v46, %v6494_v1 }
 0x35f   :  { %5760 = vmatprep.subr.bf16.mxu1 %v5908_v55  ;;  %v4347_v55 = vrot.slane %v6555_v63, %v6494_v1 }
 0x361   :  { %5739 = vmatpush3.bf16.msra.mxu0 %v5909_v33 }
 0x362   :  { %5761 = vmatpush3.bf16.msra.mxu1 %v5910_v57  ;;  %5740 = vmatprep.subr.bf16.mxu0 %v5911_v54  ;;  %v4389_v57 = vrot.slane %v6562_v46, %v6466_v0 }
 0x363   :  { %5762 = vmatprep.subr.bf16.mxu1 %v5912_v59 }
 0x365   :  { %5741 = vmatpush3.bf16.msra.mxu0 %v5913_v12 }
 0x366   :  { %5763 = vmatpush3.bf16.msra.mxu1 %v5914_v23  ;;  %5770 = vmatprep.subr.bf16.mxu0 %v5915_v60 }
 0x367   :  { %5792 = vmatprep.subr.bf16.mxu1 %v5916_v61 }
 0x368   :  { %4982 = vmatmul.mubr.bf16.vlgmr.msra.gmra.mrb[16].mxu0 %v4422_v4 }
 0x369   :  { %5022 = vmatmul.mubr.bf16.vlgmr.msra.gmra.mrb[16].mxu1 %v4424_v35  ;;  %5771 = vmatpush3.bf16.msra.mxu0 %v5917_v2 }
 0x36a   :  { %5793 = vmatpush3.bf16.msra.mxu1 %v5918_v32  ;;  %5772 = vmatprep.subr.bf16.mxu0 %v5919_v20 }
 0x36b   :  { %5794 = vmatprep.subr.bf16.mxu1 %v5920_v5 }
 0x36d   :  { %5773 = vmatpush3.bf16.msra.mxu0 %v5921_v36 }
 0x36e   :  { %5795 = vmatpush3.bf16.msra.mxu1 %v5922_v6  ;;  %5774 = vmatprep.subr.bf16.mxu0 %v5923_v13 }
 0x36f   :  { %5796 = vmatprep.subr.bf16.mxu1 %v5924_v14 }
 0x371   :  { %5775 = vmatpush3.bf16.msra.mxu0 %v5925_v15  ;;  %v5661_v15 = vld [vmem:[#allocation16] ss:$0 sm:$0xff] }
 0x372   :  { %5797 = vmatpush3.bf16.msra.mxu1 %v5926_v16  ;;  %5776 = vmatprep.subr.bf16.mxu0 %v5927_v17 }
 0x373   :  { %5798 = vmatprep.subr.bf16.mxu1 %v5928_v18 }
 0x375   :  { %5777 = vmatpush3.bf16.msra.mxu0 %v5929_v19 }
 0x376   :  { %5799 = vmatpush3.bf16.msra.mxu1 %v5930_v24  ;;  %5778 = vmatprep.subr.bf16.mxu0 %v5931_v27 }
 0x377   :  { %5800 = vmatprep.subr.bf16.mxu1 %v5932_v48 }
 0x379   :  { %5779 = vmatpush3.bf16.msra.mxu0 %v5933_v62 }
 0x37a   :  { %5801 = vmatpush3.bf16.msra.mxu1 %v5934_v30  ;;  %5780 = vmatprep.subr.bf16.mxu0 %v5935_v8 }
 0x37b   :  { %5802 = vmatprep.subr.bf16.mxu1 %v5936_v10 }
 0x37d   :  { %5781 = vmatpush3.bf16.msra.mxu0 %v5937_v7 }
 0x37e   :  { %5803 = vmatpush3.bf16.msra.mxu1 %v5938_v38  ;;  %5782 = vmatprep.subr.bf16.mxu0 %v5939_v28 }
 0x37f   :  { %5804 = vmatprep.subr.bf16.mxu1 %v5940_v29 }
 0x381   :  { %5783 = vmatpush3.bf16.msra.mxu0 %v5941_v21 }
 0x382   :  { %5805 = vmatpush3.bf16.msra.mxu1 %v5942_v40  ;;  %5784 = vmatprep.subr.bf16.mxu0 %v5943_v41 }
 0x383   :  { %5806 = vmatprep.subr.bf16.mxu1 %v5944_v42 }
 0x385   :  { %5785 = vmatpush3.bf16.msra.mxu0 %v5945_v43 }
 0x386   :  { %5807 = vmatpush3.bf16.msra.mxu1 %v5946_v44 }
 0x41b   :  { %v4143_v47 = vpop.f32.mrb[12].mxu0 }
 0x41c   :  { %v5818_v26 = vadd.f32 %v4143_v47, %v1077_v9  ;;  %v4307_v11 = vpop.f32.mrb[12].mxu1  ;;  %v4145_v31 = vpop.f32.mrb[13].mxu0  ;;  %v5109_v9 = vld [vmem:[%s6829_s11] sm:$0x3] }
 0x41d   :  { %v5820_v33 = vadd.f32 %v4307_v11, %v1085_v3  ;;  %v5819_v56 = vadd.f32 %v4145_v31, %v1081_v37  ;;  %v4309_v54 = vpop.f32.mrb[13].mxu1  ;;  %v4147_v58 = vpop.f32.mrb[14].mxu0 }
 0x41e   :  { %v4360_v59 = vmul.f32 %v5818_v26, %v4335_v45  ;;  %v5821_v12 = vadd.f32 %v4309_v54, %v1089_v25  ;;  %v4311_v34 = vpop.f32.mrb[14].mxu1  ;;  %v4148_v23 = vpop.f32.mrb[15].mxu0 }
 0x41f   :  { %v4362_v60 = vmul.f32 %v5820_v33, %v4343_v49  ;;  %v4361_v39 = vmul.f32 %v5819_v56, %v4339_v50  ;;  %v4312_v63 = vpop.f32.mrb[15].mxu1 }
 0x420   :  { %v4410_v61 = vadd.f32 %v4385_v51, %v4360_v59  ;;  %v4363_v2 = vmul.f32 %v5821_v12, %v4347_v55 }
 0x421   :  { %v4412_v4 = vadd.f32 %v4393_v22, %v4362_v60  ;;  %v4411_v52 = vadd.f32 %v4389_v57, %v4361_v39 }
 0x422   :  { %v4418_v32 = vmax.f32 %v4410_v61, 0.0  ;;  %v4413_v20 = vadd.f32 %v4397_v53, %v4363_v2 }
 0x423   :  { %v4420_v35 = vmax.f32 %v4412_v4, 0.0  ;;  %v4419_v0 = vmax.f32 %v4411_v52, 0.0 }
 0x424   :  { %v4421_v5 = vmax.f32 %v4413_v20, 0.0  ;;  %v4426_v6 = vpack.c.bf16 %v4418_v32, %v4418_v32 }
 0x425   :  { %v4427_v36 = vpack.c.bf16 %v4419_v0, %v4419_v0  ;;  %v4428_v14 = vpack.c.bf16 %v4420_v35, %v4420_v35 }
 0x426   :  { %v4429_v13 = vpack.c.bf16 %v4421_v5, %v4421_v5 }
 0x427   :  { %5061 = vmatprep.mubr.bf16.mxu0 %v4427_v36 }
 0x428   :  { %5101 = vmatprep.mubr.bf16.mxu1 %v4429_v13  ;;  %5062 = vmatmul.mubr.bf16.vlgmr.msra.gmra.mrb[20].mxu0 %v4426_v6 }
 0x429   :  { %5102 = vmatmul.mubr.bf16.vlgmr.msra.gmra.mrb[20].mxu1 %v4428_v14 }
 0x43b   :  { %v5742_v1 = vpop.f32.mrb[16].mxu0 }
 0x43c   :  { %v5764_v46 = vpop.f32.mrb[16].mxu1  ;;  %v5743_v16 = vpop.f32.mrb[17].mxu0 }
 0x43d   :  { %v5744_v17 = vadd.f32 %v5743_v16, %v5742_v1  ;;  %v5765_v18 = vpop.f32.mrb[17].mxu1  ;;  %v5745_v19 = vpop.f32.mrb[18].mxu0 }
 0x43e   :  { %v5766_v24 = vadd.f32 %v5765_v18, %v5764_v46  ;;  %v5767_v27 = vpop.f32.mrb[18].mxu1  ;;  %v5746_v48 = vpop.f32.mrb[19].mxu0 }
 0x43f   :  { %v4984_v62 = vadd.f32 %v5744_v17, %v5661_v15  ;;  %v5768_v30 = vpop.f32.mrb[19].mxu1 }
 0x441   :  { %v5024_v8 = vadd.f32 %v5766_v24, %v4984_v62 }
 0x4fb   :  { %v5786_v10 = vpop.f32.mrb[20].mxu0 }
 0x4fc   :  { %v5808_v7 = vpop.f32.mrb[20].mxu1  ;;  %v5787_v38 = vpop.f32.mrb[21].mxu0 }
 0x4fd   :  { %v5788_v28 = vadd.f32 %v5787_v38, %v5786_v10  ;;  %v5809_v29 = vpop.f32.mrb[21].mxu1  ;;  %v5789_v21 = vpop.f32.mrb[22].mxu0 }
 0x4fe   :  { %v5810_v40 = vadd.f32 %v5809_v29, %v5808_v7  ;;  %v5811_v41 = vpop.f32.mrb[22].mxu1  ;;  %v5790_v42 = vpop.f32.mrb[23].mxu0 }
 0x4ff   :  { %v5064_v43 = vadd.f32 %v5788_v28, %v5024_v8  ;;  %v5812_v44 = vpop.f32.mrb[23].mxu1 }
 0x501   :  { %v5104_v3 = vadd.f32 %v5810_v40, %v5064_v43 }
 0x503   :  { %v5110_v37 = vadd.f32 %v5109_v9, %v5104_v3 }
 0x505   :  { %v5111_v45 = vmul.f32 0.5, %v5110_v37 }
 0x507   :  { %5113 = vst.msk [vmem:[#allocation17] sm:$0x3] %vm5112_vm2, %v5111_v45 }
 0x508   :  { %6159 = shalt.err (!%p6156_p6)
}
 0x509   :  { %s6160_s23 = scalar_lea.hbm %s6830_s12, 32 }
 0x50a   :  { %p6161_p7 = scmp.ne.s32.totalorder %s6830_s12, %s6160_s23  ;;  %p6164_p8 = scmp.lt.u32.totalorder %s6160_s23, %s6830_s12 }
 0x50c   :  { %p6166_p9 = pnand %p6164_p8, %p6161_p7 }
 0x50e   :  { %6169 = shalt.err (!%p6166_p9)
}
 0x50f   :  { %5123 = dma.vmem_to_hbm [thread:$0]  %s5121_s4, 32, %s6830_s12, [#allocation4]  }
 0x510   :  { %6180 = dma.done.wait [#allocation4], 32  }
 0x511   :  { %6181 = vsyncadd [#allocation4], 4294967264 }
 0x512   :  { %5127 = vsyncpa [#allocation3], 1 }
 0x513   :  { %5128 = vsyncpa [#allocation6], 1 }
 0x514   :  { %5129 = vsyncpa [#allocation9], 1 }
 0x515   :  { %5130 = vsyncpa [#allocation12], 1 }
 0x516   :  { %5131 = vsyncpa [#allocation15], 1 }
 0x517   :  { %5132 = vsyncpa [#allocation4], 1 }

</bundles_post_ra>
